<compile_context>
chip_gen: v6e
topology: v6e:2x2x1
jax: 0.10.0
libtpu: 0.0.40
codegen_flags: <defaults>
</compile_context>

<pallas_src>
import jax
import jax.numpy as jnp
from jax import lax
from jax.experimental import pallas as pl
from jax.experimental.pallas import tpu as pltpu

LANE = 128
EPS = 1e-5


# ----------------------------- small helpers --------------------------------
def _round_up(x, m):
    return (x + m - 1) // m * m


def _pad_last(a, target):
    pad = target - a.shape[-1]
    if pad == 0:
        return a
    cfg = [(0, 0)] * (a.ndim - 1) + [(0, pad)]
    return jnp.pad(a, cfg)


def _tile_spec(shape):
    """Block = size-1 slice along the (batch) leading axis, full otherwise."""
    block = (1,) + tuple(shape[1:])
    zeros = (0,) * (len(shape) - 1)
    return pl.BlockSpec(block, lambda n, _z=zeros: (n,) + _z)


def _whole_spec(shape):
    """Whole array every grid step (weights / fused BN scale-shift)."""
    zeros = (0,) * len(shape)
    return pl.BlockSpec(tuple(shape), lambda n, _z=zeros: _z)


def _pcall(kernel, grid_n, args, in_specs, out_shape, out_specs):
    return pl.pallas_call(
        kernel,
        out_shape=out_shape,
        grid=(grid_n,),
        in_specs=in_specs,
        out_specs=out_specs,
        compiler_params=pltpu.CompilerParams(
            dimension_semantics=("parallel",)),
    )(*args)


def _stats_rows(v):
    """v: (M, C) f32 -> (1, 2, C) with [sum, sum of squares] per channel."""
    s = jnp.sum(v, axis=0, keepdims=True)
    q = jnp.sum(v * v, axis=0, keepdims=True)
    return jnp.concatenate([s, q], axis=0)[None]


def _scale_shift(stats, gamma, beta, count, eps):
    """Finalize two-pass BN: per-channel scale/shift from partial stats."""
    s = jnp.sum(stats[:, 0, :], axis=0)
    q = jnp.sum(stats[:, 1, :], axis=0)
    mean = s / count
    var = jnp.maximum(q / count - mean * mean, 0.0)   # biased batch variance
    inv = lax.rsqrt(var + eps)
    scale = gamma * inv
    shift = beta - mean * scale
    return jnp.stack([scale, shift]).astype(jnp.float32)       # (2, C)


# ------------------------------- kernels -------------------------------------
def _stage1_proj_kernel(xpad_ref, w1_ref, wsc_ref,
                        y1_ref, st1_ref, ysc_ref, stsc_ref):
    # conv1 (1x1) evaluated on the spatially padded grid + projection shortcut.
    _, Hp, Wp, Cin = xpad_ref.shape
    H, W = Hp - 2, Wp - 2
    xpad = xpad_ref[...]                                   # caller dtype
    lhs = xpad.reshape(Hp * Wp, Cin)
    y1 = jnp.dot(lhs, w1_ref[...], preferred_element_type=jnp.float32)
    st1_ref[...] = _stats_rows(y1)                         # border rows are 0
    y1_ref[...] = y1.reshape(1, Hp, Wp, -1).astype(y1_ref.dtype)

    xc = xpad[:, 1:H + 1, 1:W + 1, :].reshape(H * W, Cin)  # interior only
    ysc = jnp.dot(xc, wsc_ref[...], preferred_element_type=jnp.float32)
    stsc_ref[...] = _stats_rows(ysc)
    ysc_ref[...] = ysc.reshape(1, H, W, -1).astype(ysc_ref.dtype)


def _stage1_kernel(xpad_ref, w1_ref, y1_ref, st1_ref):
    # conv1 (1x1) only (identity-shortcut case).
    _, Hp, Wp, Cin = xpad_ref.shape
    lhs = xpad_ref[...].reshape(Hp * Wp, Cin)
    y1 = jnp.dot(lhs, w1_ref[...], preferred_element_type=jnp.float32)
    st1_ref[...] = _stats_rows(y1)
    y1_ref[...] = y1.reshape(1, Hp, Wp, -1).astype(y1_ref.dtype)


def _stage2_kernel(y1_ref, sb1_ref, w2_ref, y2_ref, st2_ref):
    # bn1 (fused affine) + relu + 3x3 conv as a single K=9*Cp matmul.
    _, Hp, Wp, Cp = y1_ref.shape
    H, W = Hp - 2, Wp - 2
    sb = sb1_ref[...]                                      # (2, Cp) f32
    a = y1_ref[...].astype(jnp.float32) * sb[0:1, :] + sb[1:2, :]
    a = jnp.maximum(a, 0.0)
    # Re-zero the 1-px halo so the 3x3 taps see SAME zero padding.
    ri = lax.broadcasted_iota(jnp.int32, (1, Hp, Wp, 1), 1)
    ci = lax.broadcasted_iota(jnp.int32, (1, Hp, Wp, 1), 2)
    interior = (ri > 0) & (ri < Hp - 1) & (ci > 0) & (ci < Wp - 1)
    h1 = jnp.where(interior, a, 0.0).astype(y1_ref.dtype)

    taps = []
    for dy in range(3):
        for dx in range(3):
            taps.append(h1[:, dy:dy + H, dx:dx + W, :].reshape(H * W, Cp))
    lhs = jnp.concatenate(taps, axis=-1)                   # (H*W, 9*Cp)
    y2 = jnp.dot(lhs, w2_ref[...], preferred_element_type=jnp.float32)
    st2_ref[...] = _stats_rows(y2)
    y2_ref[...] = y2.reshape(1, H, W, -1).astype(y2_ref.dtype)


def _stage3_kernel(y2_ref, sb2_ref, w3_ref, y3_ref, st3_ref):
    # bn2 (fused affine) + relu + conv3 (1x1).
    _, H, W, Cp = y2_ref.shape
    sb = sb2_ref[...]
    h2 = jnp.maximum(
        y2_ref[...].astype(jnp.float32) * sb[0:1, :] + sb[1:2, :], 0.0)
    h2 = h2.reshape(H * W, Cp).astype(y2_ref.dtype)
    y3 = jnp.dot(h2, w3_ref[...], preferred_element_type=jnp.float32)
    st3_ref[...] = _stats_rows(y3)
    y3_ref[...] = y3.reshape(1, H, W, -1).astype(y3_ref.dtype)


def _stage4_kernel(y3_ref, ysc_ref, sb3_ref, sbsc_ref, out_ref):
    # bn3 + bn_sc (fused affines) + residual add + relu.
    sb3 = sb3_ref[...]
    sbs = sbsc_ref[...]
    a = y3_ref[...].astype(jnp.float32) * sb3[0:1, :] + sb3[1:2, :]
    b = ysc_ref[...].astype(jnp.float32) * sbs[0:1, :] + sbs[1:2, :]
    out_ref[...] = jnp.maximum(a + b, 0.0).astype(out_ref.dtype)


# ---------------------------- stage runners -----------------------------------
def _run_stage1_proj(xpad, w1p, wscp, dtype):
    N, Hp, Wp, _ = xpad.shape
    H, W = Hp - 2, Wp - 2
    Cp, Cep = w1p.shape[-1], wscp.shape[-1]
    out_shape = (jax.ShapeDtypeStruct((N, Hp, Wp, Cp), dtype),
                 jax.ShapeDtypeStruct((N, 2, Cp), jnp.float32),
                 jax.ShapeDtypeStruct((N, H, W, Cep), dtype),
                 jax.ShapeDtypeStruct((N, 2, Cep), jnp.float32))
    out_specs = tuple(_tile_spec(s.shape) for s in out_shape)
    in_specs = [_tile_spec(xpad.shape), _whole_spec(w1p.shape),
                _whole_spec(wscp.shape)]
    return _pcall(_stage1_proj_kernel, N, (xpad, w1p, wscp),
                  in_specs, out_shape, out_specs)


def _run_stage1(xpad, w1p, dtype):
    N, Hp, Wp, _ = xpad.shape
    Cp = w1p.shape[-1]
    out_shape = (jax.ShapeDtypeStruct((N, Hp, Wp, Cp), dtype),
                 jax.ShapeDtypeStruct((N, 2, Cp), jnp.float32))
    out_specs = tuple(_tile_spec(s.shape) for s in out_shape)
    in_specs = [_tile_spec(xpad.shape), _whole_spec(w1p.shape)]
    return _pcall(_stage1_kernel, N, (xpad, w1p), in_specs, out_shape, out_specs)


def _run_stage2(y1, sb1, w2p, dtype):
    N, Hp, Wp, Cp = y1.shape
    H, W = Hp - 2, Wp - 2
    out_shape = (jax.ShapeDtypeStruct((N, H, W, Cp), dtype),
                 jax.ShapeDtypeStruct((N, 2, Cp), jnp.float32))
    out_specs = tuple(_tile_spec(s.shape) for s in out_shape)
    in_specs = [_tile_spec(y1.shape), _whole_spec(sb1.shape),
                _whole_spec(w2p.shape)]
    return _pcall(_stage2_kernel, N, (y1, sb1, w2p),
                  in_specs, out_shape, out_specs)


def _run_stage3(y2, sb2, w3p, dtype):
    N, H, W, Cp = y2.shape
    Cep = w3p.shape[-1]
    out_shape = (jax.ShapeDtypeStruct((N, H, W, Cep), dtype),
                 jax.ShapeDtypeStruct((N, 2, Cep), jnp.float32))
    out_specs = tuple(_tile_spec(s.shape) for s in out_shape)
    in_specs = [_tile_spec(y2.shape), _whole_spec(sb2.shape),
                _whole_spec(w3p.shape)]
    return _pcall(_stage3_kernel, N, (y2, sb2, w3p),
                  in_specs, out_shape, out_specs)


def _run_stage4(y3, ysc, sb3, sbsc, dtype):
    N, H, W, Cep = y3.shape
    out_shape = jax.ShapeDtypeStruct((N, H, W, Cep), dtype)
    out_specs = _tile_spec(out_shape.shape)
    in_specs = [_tile_spec(y3.shape), _tile_spec(ysc.shape),
                _whole_spec(sb3.shape), _whole_spec(sbsc.shape)]
    return _pcall(_stage4_kernel, N, (y3, ysc, sb3, sbsc),
                  in_specs, out_shape, out_specs)


# ------------------------------- forward --------------------------------------
def bottleneck_forward(x_nchw, params, stride=1, eps=EPS):
    # TODO(synk): stride > 1 not implemented (strided conv2/shortcut).
    assert stride == 1, "only stride=1 is implemented in the Pallas kernels"

    x = jnp.transpose(x_nchw, (0, 2, 3, 1))                # NCHW -> NHWC
    N, H, W, Cin = x.shape
    dtype = x.dtype
    planes = params["w1"].shape[-1]
    cexp = params["w3"].shape[-1]
    has_proj = (stride != 1) or (Cin != cexp)

    Cp = _round_up(planes, LANE)
    Cep = _round_up(cexp, LANE)

    # Lane-pad weights once (output-channel dims -> multiples of 128); fold the
    # 3x3 kernel into a (9*Cp, Cp) matrix matching the im2col tap order.
    w1p = _pad_last(params["w1"], Cp).astype(dtype)                        # (Cin, Cp)
    w2p = jnp.pad(params["w2"],
                  ((0, 0), (0, 0), (0, Cp - planes), (0, Cp - planes)))
    w2p = w2p.astype(dtype).reshape(9 * Cp, Cp)                            # (9Cp, Cp)
    w3p = jnp.pad(params["w3"],
                  ((0, Cp - planes), (0, Cep - cexp))).astype(dtype)       # (Cp, Cep)
    g1, b1 = _pad_last(params["g1"], Cp), _pad_last(params["b1"], Cp)
    g2, b2 = _pad_last(params["g2"], Cp), _pad_last(params["b2"], Cp)
    g3, b3 = _pad_last(params["g3"], Cep), _pad_last(params["b3"], Cep)

    xpad = jnp.pad(x, ((0, 0), (1, 1), (1, 1), (0, 0)))    # 1-px halo for the 3x3
    count = float(N * H * W)

    if has_proj:
        wscp = _pad_last(params["wsc"], Cep).astype(dtype)
        gsc, bsc = _pad_last(params["gsc"], Cep), _pad_last(params["bsc"], Cep)
        y1, st1, ysc, stsc = _run_stage1_proj(xpad, w1p, wscp, dtype)
        sbsc = _scale_shift(stsc, gsc, bsc, count, eps)
    else:
        y1, st1 = _run_stage1(xpad, w1p, dtype)
        ysc = _pad_last(x, Cep)                            # identity shortcut
        sbsc = jnp.stack([jnp.ones((Cep,), jnp.float32),
                          jnp.zeros((Cep,), jnp.float32)])

    sb1 = _scale_shift(st1, g1, b1, count, eps)
    y2, st2 = _run_stage2(y1, sb1, w2p, dtype)
    sb2 = _scale_shift(st2, g2, b2, count, eps)
    y3, st3 = _run_stage3(y2, sb2, w3p, dtype)
    sb3 = _scale_shift(st3, g3, b3, count, eps)
    out = _run_stage4(y3, ysc, sb3, sbsc, dtype)

    out = out[..., :cexp]                                  # drop lane padding
    return jnp.transpose(out, (0, 3, 1, 2))                # NHWC -> NCHW


# ---------------- pure-JAX reference (training-mode BN, fresh module) ---------
def bottleneck_ref(x_nchw, params, stride=1, eps=EPS):
    x = jnp.transpose(x_nchw, (0, 2, 3, 1))

    def conv(inp, w, s):
        if w.ndim == 2:
            w = w.reshape(1, 1, *w.shape)
        return lax.conv_general_dilated(
            inp, w, (s, s), "SAME",
            dimension_numbers=("NHWC", "HWIO", "NHWC"),
            precision=lax.Precision.HIGHEST)

    def bn(inp, g, b):
        mean = inp.mean((0, 1, 2))
        var = ((inp - mean) ** 2).mean((0, 1, 2))
        return (inp - mean) * lax.rsqrt(var + eps) * g + b

    h = jax.nn.relu(bn(conv(x, params["w1"], 1), params["g1"], params["b1"]))
    h = jax.nn.relu(bn(conv(h, params["w2"], stride), params["g2"], params["b2"]))
    h = bn(conv(h, params["w3"], 1), params["g3"], params["b3"])
    cexp = params["w3"].shape[-1]
    if stride != 1 or x.shape[-1] != cexp:
        sc = bn(conv(x, params["wsc"], stride), params["gsc"], params["bsc"])
    else:
        sc = x
    out = jax.nn.relu(h + sc)
    return jnp.transpose(out, (0, 3, 1, 2))


def init_params(key, in_planes, planes, expansion=4):
    cexp = expansion * planes
    k1, k2, k3, k4 = jax.random.split(key, 4)
    p = {
        "w1": 0.1 * jax.random.normal(k1, (in_planes, planes), jnp.float32),
        "g1": jnp.ones((planes,), jnp.float32),
        "b1": jnp.zeros((planes,), jnp.float32),
        "w2": 0.1 * jax.random.normal(k2, (3, 3, planes, planes), jnp.float32),
        "g2": jnp.ones((planes,), jnp.float32),
        "b2": jnp.zeros((planes,), jnp.float32),
        "w3": 0.1 * jax.random.normal(k3, (planes, cexp), jnp.float32),
        "g3": jnp.ones((cexp,), jnp.float32),
        "b3": jnp.zeros((cexp,), jnp.float32),
    }
    if in_planes != cexp:  # projection shortcut (1x1 conv + BN)
        p["wsc"] = 0.1 * jax.random.normal(k4, (in_planes, cexp), jnp.float32)
        p["gsc"] = jnp.ones((cexp,), jnp.float32)
        p["bsc"] = jnp.zeros((cexp,), jnp.float32)
    return p


if __name__ == "__main__":
    key = jax.random.PRNGKey(0)
    kx, kp = jax.random.split(key)

    N, in_planes, planes, H, W = 2, 4, 8, 16, 16           # out channels = 32
    x = jax.random.normal(kx, (N, in_planes, H, W), jnp.float32)
    params = init_params(kp, in_planes, planes)

    out = jax.jit(bottleneck_forward)(x, params)
    out = jax.block_until_ready(out)

    ref = bottleneck_ref(x, params)
    assert out.shape == (N, 4 * planes, H, W), out.shape
    err = jnp.max(jnp.abs(out - ref))
    assert jnp.allclose(out, ref, atol=2e-2, rtol=2e-2), f"max abs diff {err}"

    print("KERNEL_OK")
</pallas_src>

<mosaic_0001>
module attributes {stable_mosaic.version = 11 : i64} {
  func.func @_stage1_proj_kernel(%arg0: i32, %arg1: memref<1x18x18x4xf32, #tpu.memory_space<vmem>>, %arg2: memref<4x128xf32, #tpu.memory_space<vmem>>, %arg3: memref<4x128xf32, #tpu.memory_space<vmem>>, %arg4: memref<1x18x18x128xf32, #tpu.memory_space<vmem>>, %arg5: memref<1x2x128xf32, #tpu.memory_space<vmem>>, %arg6: memref<1x16x16x128xf32, #tpu.memory_space<vmem>>, %arg7: memref<1x2x128xf32, #tpu.memory_space<vmem>>) attributes {dimension_semantics = [#tpu.dimension_semantics<parallel>], iteration_bounds = array<i64: 2>, scalar_prefetch = 0 : i64, scratch_operands = 0 : i64, tpu.core_type = #tpu.core_type<tc>, window_params = [{transform_indices = @transform_0, window_bounds = array<i64: 1, 18, 18, 4>}, {pipeline_mode = #tpu.pipeline_mode<synchronous>, transform_indices = @transform_1, window_bounds = array<i64: 4, 128>}, {pipeline_mode = #tpu.pipeline_mode<synchronous>, transform_indices = @transform_2, window_bounds = array<i64: 4, 128>}, {transform_indices = @transform_3, window_bounds = array<i64: 1, 18, 18, 128>}, {transform_indices = @transform_4, window_bounds = array<i64: 1, 2, 128>}, {transform_indices = @transform_5, window_bounds = array<i64: 1, 16, 16, 128>}, {transform_indices = @transform_6, window_bounds = array<i64: 1, 2, 128>}]} {
    %c0 = arith.constant 0 : index
    %c0_0 = arith.constant 0 : index
    %c0_1 = arith.constant 0 : index
    %c0_2 = arith.constant 0 : index
    %0 = vector.load %arg1[%c0, %c0_0, %c0_1, %c0_2] : memref<1x18x18x4xf32, #tpu.memory_space<vmem>>, vector<1x18x18x4xf32>
    %1 = vector.shape_cast %0 : vector<1x18x18x4xf32> to vector<324x4xf32>
    %c0_3 = arith.constant 0 : index
    %c0_4 = arith.constant 0 : index
    %2 = vector.load %arg2[%c0_3, %c0_4] : memref<4x128xf32, #tpu.memory_space<vmem>>, vector<4x128xf32>
    %cst = arith.constant dense<0.000000e+00> : vector<324x128xf32>
    %3 = tpu.matmul %1, %2, %cst {dimension_numbers = #tpu.dot_dimension_numbers<[1], [0], [0], [1], [0, 0, 1, 1], [], []>} : vector<324x4xf32>, vector<4x128xf32>, vector<324x128xf32> -> vector<324x128xf32>
    %cst_5 = arith.constant dense<0.000000e+00> : vector<128xf32>
    %4 = vector.multi_reduction <add>, %3, %cst_5 [0] : vector<324x128xf32> to vector<128xf32>
    %5 = vector.shape_cast %4 : vector<128xf32> to vector<1x128xf32>
    %6 = arith.mulf %3, %3 : vector<324x128xf32>
    %cst_6 = arith.constant dense<0.000000e+00> : vector<128xf32>
    %7 = vector.multi_reduction <add>, %6, %cst_6 [0] : vector<324x128xf32> to vector<128xf32>
    %8 = vector.shape_cast %7 : vector<128xf32> to vector<1x128xf32>
    %9 = tpu.concatenate %5, %8 in 0 : vector<1x128xf32>, vector<1x128xf32> -> vector<2x128xf32>
    %10 = vector.shape_cast %9 : vector<2x128xf32> to vector<1x2x128xf32>
    %c0_7 = arith.constant 0 : index
    %c0_8 = arith.constant 0 : index
    %c0_9 = arith.constant 0 : index
    %11 = vector.load %arg5[%c0_7, %c0_8, %c0_9] : memref<1x2x128xf32, #tpu.memory_space<vmem>>, vector<1x2x128xf32>
    tpu.vector_store %arg5[%c0_7, %c0_8, %c0_9], %10 {strides = array<i32>} : memref<1x2x128xf32, #tpu.memory_space<vmem>>, vector<1x2x128xf32>,
    %12 = vector.shape_cast %3 : vector<324x128xf32> to vector<1x18x18x128xf32>
    %c0_10 = arith.constant 0 : index
    %c0_11 = arith.constant 0 : index
    %c0_12 = arith.constant 0 : index
    %c0_13 = arith.constant 0 : index
    %13 = vector.load %arg4[%c0_10, %c0_11, %c0_12, %c0_13] : memref<1x18x18x128xf32, #tpu.memory_space<vmem>>, vector<1x18x18x128xf32>
    tpu.vector_store %arg4[%c0_10, %c0_11, %c0_12, %c0_13], %12 {strides = array<i32>} : memref<1x18x18x128xf32, #tpu.memory_space<vmem>>, vector<1x18x18x128xf32>,
    %14 = vector.extract_strided_slice %0 {offsets = [0, 1, 1, 0], sizes = [1, 16, 16, 4], strides = [1, 1, 1, 1]} : vector<1x18x18x4xf32> to vector<1x16x16x4xf32>
    %15 = vector.shape_cast %14 : vector<1x16x16x4xf32> to vector<256x4xf32>
    %c0_14 = arith.constant 0 : index
    %c0_15 = arith.constant 0 : index
    %16 = vector.load %arg3[%c0_14, %c0_15] : memref<4x128xf32, #tpu.memory_space<vmem>>, vector<4x128xf32>
    %cst_16 = arith.constant dense<0.000000e+00> : vector<256x128xf32>
    %17 = tpu.matmul %15, %16, %cst_16 {dimension_numbers = #tpu.dot_dimension_numbers<[1], [0], [0], [1], [0, 0, 1, 1], [], []>} : vector<256x4xf32>, vector<4x128xf32>, vector<256x128xf32> -> vector<256x128xf32>
    %cst_17 = arith.constant dense<0.000000e+00> : vector<128xf32>
    %18 = vector.multi_reduction <add>, %17, %cst_17 [0] : vector<256x128xf32> to vector<128xf32>
    %19 = vector.shape_cast %18 : vector<128xf32> to vector<1x128xf32>
    %20 = arith.mulf %17, %17 : vector<256x128xf32>
    %cst_18 = arith.constant dense<0.000000e+00> : vector<128xf32>
    %21 = vector.multi_reduction <add>, %20, %cst_18 [0] : vector<256x128xf32> to vector<128xf32>
    %22 = vector.shape_cast %21 : vector<128xf32> to vector<1x128xf32>
    %23 = tpu.concatenate %19, %22 in 0 : vector<1x128xf32>, vector<1x128xf32> -> vector<2x128xf32>
    %24 = vector.shape_cast %23 : vector<2x128xf32> to vector<1x2x128xf32>
    %c0_19 = arith.constant 0 : index
    %c0_20 = arith.constant 0 : index
    %c0_21 = arith.constant 0 : index
    %25 = vector.load %arg7[%c0_19, %c0_20, %c0_21] : memref<1x2x128xf32, #tpu.memory_space<vmem>>, vector<1x2x128xf32>
    tpu.vector_store %arg7[%c0_19, %c0_20, %c0_21], %24 {strides = array<i32>} : memref<1x2x128xf32, #tpu.memory_space<vmem>>, vector<1x2x128xf32>,
    %26 = vector.shape_cast %17 : vector<256x128xf32> to vector<1x16x16x128xf32>
    %c0_22 = arith.constant 0 : index
    %c0_23 = arith.constant 0 : index
    %c0_24 = arith.constant 0 : index
    %c0_25 = arith.constant 0 : index
    %27 = vector.load %arg6[%c0_22, %c0_23, %c0_24, %c0_25] : memref<1x16x16x128xf32, #tpu.memory_space<vmem>>, vector<1x16x16x128xf32>
    tpu.vector_store %arg6[%c0_22, %c0_23, %c0_24, %c0_25], %26 {strides = array<i32>} : memref<1x16x16x128xf32, #tpu.memory_space<vmem>>, vector<1x16x16x128xf32>,
    return
  }
  func.func @transform_0(%arg0: i32) -> (i32, i32, i32, i32) {
    %c0_i32 = arith.constant 0 : i32
    %c0_i32_0 = arith.constant 0 : i32
    %c0_i32_1 = arith.constant 0 : i32
    %c0_i32_2 = arith.constant 0 : i32
    return %arg0, %c0_i32, %c0_i32_0, %c0_i32_1 : i32, i32, i32, i32
  }
  func.func @transform_1(%arg0: i32) -> (i32, i32) {
    %c0_i32 = arith.constant 0 : i32
    %c0_i32_0 = arith.constant 0 : i32
    %c0_i32_1 = arith.constant 0 : i32
    return %c0_i32, %c0_i32_0 : i32, i32
  }
  func.func @transform_2(%arg0: i32) -> (i32, i32) {
    %c0_i32 = arith.constant 0 : i32
    %c0_i32_0 = arith.constant 0 : i32
    %c0_i32_1 = arith.constant 0 : i32
    return %c0_i32, %c0_i32_0 : i32, i32
  }
  func.func @transform_3(%arg0: i32) -> (i32, i32, i32, i32) {
    %c0_i32 = arith.constant 0 : i32
    %c0_i32_0 = arith.constant 0 : i32
    %c0_i32_1 = arith.constant 0 : i32
    %c0_i32_2 = arith.constant 0 : i32
    return %arg0, %c0_i32, %c0_i32_0, %c0_i32_1 : i32, i32, i32, i32
  }
  func.func @transform_4(%arg0: i32) -> (i32, i32, i32) {
    %c0_i32 = arith.constant 0 : i32
    %c0_i32_0 = arith.constant 0 : i32
    %c0_i32_1 = arith.constant 0 : i32
    return %arg0, %c0_i32, %c0_i32_0 : i32, i32, i32
  }
  func.func @transform_5(%arg0: i32) -> (i32, i32, i32, i32) {
    %c0_i32 = arith.constant 0 : i32
    %c0_i32_0 = arith.constant 0 : i32
    %c0_i32_1 = arith.constant 0 : i32
    %c0_i32_2 = arith.constant 0 : i32
    return %arg0, %c0_i32, %c0_i32_0, %c0_i32_1 : i32, i32, i32, i32
  }
  func.func @transform_6(%arg0: i32) -> (i32, i32, i32) {
    %c0_i32 = arith.constant 0 : i32
    %c0_i32_0 = arith.constant 0 : i32
    %c0_i32_1 = arith.constant 0 : i32
    return %arg0, %c0_i32, %c0_i32_0 : i32, i32, i32
  }
}

module attributes {stable_mosaic.version = 11 : i64} {
  func.func @_stage2_kernel(%arg0: i32, %arg1: memref<1x18x18x128xf32, #tpu.memory_space<vmem>>, %arg2: memref<2x128xf32, #tpu.memory_space<vmem>>, %arg3: memref<1152x128xf32, #tpu.memory_space<vmem>>, %arg4: memref<1x16x16x128xf32, #tpu.memory_space<vmem>>, %arg5: memref<1x2x128xf32, #tpu.memory_space<vmem>>) attributes {dimension_semantics = [#tpu.dimension_semantics<parallel>], iteration_bounds = array<i64: 2>, scalar_prefetch = 0 : i64, scratch_operands = 0 : i64, tpu.core_type = #tpu.core_type<tc>, window_params = [{transform_indices = @transform_0, window_bounds = array<i64: 1, 18, 18, 128>}, {pipeline_mode = #tpu.pipeline_mode<synchronous>, transform_indices = @transform_1, window_bounds = array<i64: 2, 128>}, {pipeline_mode = #tpu.pipeline_mode<synchronous>, transform_indices = @transform_2, window_bounds = array<i64: 1152, 128>}, {transform_indices = @transform_3, window_bounds = array<i64: 1, 16, 16, 128>}, {transform_indices = @transform_4, window_bounds = array<i64: 1, 2, 128>}]} {
    %c0 = arith.constant 0 : index
    %c0_0 = arith.constant 0 : index
    %0 = vector.load %arg2[%c0, %c0_0] : memref<2x128xf32, #tpu.memory_space<vmem>>, vector<2x128xf32>
    %c0_1 = arith.constant 0 : index
    %c0_2 = arith.constant 0 : index
    %c0_3 = arith.constant 0 : index
    %c0_4 = arith.constant 0 : index
    %1 = vector.load %arg1[%c0_1, %c0_2, %c0_3, %c0_4] : memref<1x18x18x128xf32, #tpu.memory_space<vmem>>, vector<1x18x18x128xf32>
    %2 = vector.extract_strided_slice %0 {offsets = [0, 0], sizes = [1, 128], strides = [1, 1]} : vector<2x128xf32> to vector<1x128xf32>
    %3 = vector.shape_cast %2 : vector<1x128xf32> to vector<1x1x1x128xf32>
    %4 = vector.broadcast %3 : vector<1x1x1x128xf32> to vector<1x18x18x128xf32>
    %5 = arith.mulf %1, %4 : vector<1x18x18x128xf32>
    %6 = vector.extract_strided_slice %0 {offsets = [1, 0], sizes = [1, 128], strides = [1, 1]} : vector<2x128xf32> to vector<1x128xf32>
    %7 = vector.shape_cast %6 : vector<1x128xf32> to vector<1x1x1x128xf32>
    %8 = vector.broadcast %7 : vector<1x1x1x128xf32> to vector<1x18x18x128xf32>
    %9 = arith.addf %5, %8 : vector<1x18x18x128xf32>
    %cst = arith.constant 0.000000e+00 : f32
    %10 = vector.broadcast %cst : f32 to vector<1x18x18x128xf32>
    %11 = arith.maximumf %9, %10 : vector<1x18x18x128xf32>
    %12 = tpu.iota {dimensions = array<i32: 1>} : vector<1x18x18x1xi32>
    %13 = tpu.iota {dimensions = array<i32: 2>} : vector<1x18x18x1xi32>
    %c0_i32 = arith.constant 0 : i32
    %14 = vector.broadcast %c0_i32 : i32 to vector<1x18x18x1xi32>
    %15 = arith.cmpi sgt, %12, %14 : vector<1x18x18x1xi32>
    %c17_i32 = arith.constant 17 : i32
    %16 = vector.broadcast %c17_i32 : i32 to vector<1x18x18x1xi32>
    %17 = arith.cmpi slt, %12, %16 : vector<1x18x18x1xi32>
    %18 = arith.andi %15, %17 : vector<1x18x18x1xi1>
    %c0_i32_5 = arith.constant 0 : i32
    %19 = vector.broadcast %c0_i32_5 : i32 to vector<1x18x18x1xi32>
    %20 = arith.cmpi sgt, %13, %19 : vector<1x18x18x1xi32>
    %21 = arith.andi %18, %20 : vector<1x18x18x1xi1>
    %c17_i32_6 = arith.constant 17 : i32
    %22 = vector.broadcast %c17_i32_6 : i32 to vector<1x18x18x1xi32>
    %23 = arith.cmpi slt, %13, %22 : vector<1x18x18x1xi32>
    %24 = arith.andi %21, %23 : vector<1x18x18x1xi1>
    %cst_7 = arith.constant 0.000000e+00 : f32
    %25 = vector.shape_cast %24 : vector<1x18x18x1xi1> to vector<1x18x18x1xi1>
    %26 = vector.broadcast %25 : vector<1x18x18x1xi1> to vector<1x18x18x128xi1>
    %27 = vector.broadcast %cst_7 : f32 to vector<1x18x18x128xf32>
    %28 = arith.select %26, %11, %27 : vector<1x18x18x128xi1>, vector<1x18x18x128xf32>
    %29 = vector.extract_strided_slice %28 {offsets = [0, 0, 0, 0], sizes = [1, 16, 16, 128], strides = [1, 1, 1, 1]} : vector<1x18x18x128xf32> to vector<1x16x16x128xf32>
    %30 = vector.shape_cast %29 : vector<1x16x16x128xf32> to vector<256x128xf32>
    %31 = vector.extract_strided_slice %28 {offsets = [0, 0, 1, 0], sizes = [1, 16, 16, 128], strides = [1, 1, 1, 1]} : vector<1x18x18x128xf32> to vector<1x16x16x128xf32>
    %32 = vector.shape_cast %31 : vector<1x16x16x128xf32> to vector<256x128xf32>
    %33 = vector.extract_strided_slice %28 {offsets = [0, 0, 2, 0], sizes = [1, 16, 16, 128], strides = [1, 1, 1, 1]} : vector<1x18x18x128xf32> to vector<1x16x16x128xf32>
    %34 = vector.shape_cast %33 : vector<1x16x16x128xf32> to vector<256x128xf32>
    %35 = vector.extract_strided_slice %28 {offsets = [0, 1, 0, 0], sizes = [1, 16, 16, 128], strides = [1, 1, 1, 1]} : vector<1x18x18x128xf32> to vector<1x16x16x128xf32>
    %36 = vector.shape_cast %35 : vector<1x16x16x128xf32> to vector<256x128xf32>
    %37 = vector.extract_strided_slice %28 {offsets = [0, 1, 1, 0], sizes = [1, 16, 16, 128], strides = [1, 1, 1, 1]} : vector<1x18x18x128xf32> to vector<1x16x16x128xf32>
    %38 = vector.shape_cast %37 : vector<1x16x16x128xf32> to vector<256x128xf32>
    %39 = vector.extract_strided_slice %28 {offsets = [0, 1, 2, 0], sizes = [1, 16, 16, 128], strides = [1, 1, 1, 1]} : vector<1x18x18x128xf32> to vector<1x16x16x128xf32>
    %40 = vector.shape_cast %39 : vector<1x16x16x128xf32> to vector<256x128xf32>
    %41 = vector.extract_strided_slice %28 {offsets = [0, 2, 0, 0], sizes = [1, 16, 16, 128], strides = [1, 1, 1, 1]} : vector<1x18x18x128xf32> to vector<1x16x16x128xf32>
    %42 = vector.shape_cast %41 : vector<1x16x16x128xf32> to vector<256x128xf32>
    %43 = vector.extract_strided_slice %28 {offsets = [0, 2, 1, 0], sizes = [1, 16, 16, 128], strides = [1, 1, 1, 1]} : vector<1x18x18x128xf32> to vector<1x16x16x128xf32>
    %44 = vector.shape_cast %43 : vector<1x16x16x128xf32> to vector<256x128xf32>
    %45 = vector.extract_strided_slice %28 {offsets = [0, 2, 2, 0], sizes = [1, 16, 16, 128], strides = [1, 1, 1, 1]} : vector<1x18x18x128xf32> to vector<1x16x16x128xf32>
    %46 = vector.shape_cast %45 : vector<1x16x16x128xf32> to vector<256x128xf32>
    %47 = tpu.concatenate %30, %32, %34, %36, %38, %40, %42, %44, %46 in 1 : vector<256x128xf32>, vector<256x128xf32>, vector<256x128xf32>, vector<256x128xf32>, vector<256x128xf32>, vector<256x128xf32>, vector<256x128xf32>, vector<256x128xf32>, vector<256x128xf32> -> vector<256x1152xf32>
    %c0_8 = arith.constant 0 : index
    %c0_9 = arith.constant 0 : index
    %48 = vector.load %arg3[%c0_8, %c0_9] : memref<1152x128xf32, #tpu.memory_space<vmem>>, vector<1152x128xf32>
    %cst_10 = arith.constant dense<0.000000e+00> : vector<256x128xf32>
    %49 = tpu.matmul %47, %48, %cst_10 {dimension_numbers = #tpu.dot_dimension_numbers<[1], [0], [0], [1], [0, 0, 1, 1], [], []>} : vector<256x1152xf32>, vector<1152x128xf32>, vector<256x128xf32> -> vector<256x128xf32>
    %cst_11 = arith.constant dense<0.000000e+00> : vector<128xf32>
    %50 = vector.multi_reduction <add>, %49, %cst_11 [0] : vector<256x128xf32> to vector<128xf32>
    %51 = vector.shape_cast %50 : vector<128xf32> to vector<1x128xf32>
    %52 = arith.mulf %49, %49 : vector<256x128xf32>
    %cst_12 = arith.constant dense<0.000000e+00> : vector<128xf32>
    %53 = vector.multi_reduction <add>, %52, %cst_12 [0] : vector<256x128xf32> to vector<128xf32>
    %54 = vector.shape_cast %53 : vector<128xf32> to vector<1x128xf32>
    %55 = tpu.concatenate %51, %54 in 0 : vector<1x128xf32>, vector<1x128xf32> -> vector<2x128xf32>
    %56 = vector.shape_cast %55 : vector<2x128xf32> to vector<1x2x128xf32>
    %c0_13 = arith.constant 0 : index
    %c0_14 = arith.constant 0 : index
    %c0_15 = arith.constant 0 : index
    %57 = vector.load %arg5[%c0_13, %c0_14, %c0_15] : memref<1x2x128xf32, #tpu.memory_space<vmem>>, vector<1x2x128xf32>
    tpu.vector_store %arg5[%c0_13, %c0_14, %c0_15], %56 {strides = array<i32>} : memref<1x2x128xf32, #tpu.memory_space<vmem>>, vector<1x2x128xf32>,
    %58 = vector.shape_cast %49 : vector<256x128xf32> to vector<1x16x16x128xf32>
    %c0_16 = arith.constant 0 : index
    %c0_17 = arith.constant 0 : index
    %c0_18 = arith.constant 0 : index
    %c0_19 = arith.constant 0 : index
    %59 = vector.load %arg4[%c0_16, %c0_17, %c0_18, %c0_19] : memref<1x16x16x128xf32, #tpu.memory_space<vmem>>, vector<1x16x16x128xf32>
    tpu.vector_store %arg4[%c0_16, %c0_17, %c0_18, %c0_19], %58 {strides = array<i32>} : memref<1x16x16x128xf32, #tpu.memory_space<vmem>>, vector<1x16x16x128xf32>,
    return
  }
  func.func @transform_0(%arg0: i32) -> (i32, i32, i32, i32) {
    %c0_i32 = arith.constant 0 : i32
    %c0_i32_0 = arith.constant 0 : i32
    %c0_i32_1 = arith.constant 0 : i32
    %c0_i32_2 = arith.constant 0 : i32
    return %arg0, %c0_i32, %c0_i32_0, %c0_i32_1 : i32, i32, i32, i32
  }
  func.func @transform_1(%arg0: i32) -> (i32, i32) {
    %c0_i32 = arith.constant 0 : i32
    %c0_i32_0 = arith.constant 0 : i32
    %c0_i32_1 = arith.constant 0 : i32
    return %c0_i32, %c0_i32_0 : i32, i32
  }
  func.func @transform_2(%arg0: i32) -> (i32, i32) {
    %c0_i32 = arith.constant 0 : i32
    %c0_i32_0 = arith.constant 0 : i32
    %c0_i32_1 = arith.constant 0 : i32
    return %c0_i32, %c0_i32_0 : i32, i32
  }
  func.func @transform_3(%arg0: i32) -> (i32, i32, i32, i32) {
    %c0_i32 = arith.constant 0 : i32
    %c0_i32_0 = arith.constant 0 : i32
    %c0_i32_1 = arith.constant 0 : i32
    %c0_i32_2 = arith.constant 0 : i32
    return %arg0, %c0_i32, %c0_i32_0, %c0_i32_1 : i32, i32, i32, i32
  }
  func.func @transform_4(%arg0: i32) -> (i32, i32, i32) {
    %c0_i32 = arith.constant 0 : i32
    %c0_i32_0 = arith.constant 0 : i32
    %c0_i32_1 = arith.constant 0 : i32
    return %arg0, %c0_i32, %c0_i32_0 : i32, i32, i32
  }
}

module attributes {stable_mosaic.version = 11 : i64} {
  func.func @_stage3_kernel(%arg0: i32, %arg1: memref<1x16x16x128xf32, #tpu.memory_space<vmem>>, %arg2: memref<2x128xf32, #tpu.memory_space<vmem>>, %arg3: memref<128x128xf32, #tpu.memory_space<vmem>>, %arg4: memref<1x16x16x128xf32, #tpu.memory_space<vmem>>, %arg5: memref<1x2x128xf32, #tpu.memory_space<vmem>>) attributes {dimension_semantics = [#tpu.dimension_semantics<parallel>], iteration_bounds = array<i64: 2>, scalar_prefetch = 0 : i64, scratch_operands = 0 : i64, tpu.core_type = #tpu.core_type<tc>, window_params = [{transform_indices = @transform_0, window_bounds = array<i64: 1, 16, 16, 128>}, {pipeline_mode = #tpu.pipeline_mode<synchronous>, transform_indices = @transform_1, window_bounds = array<i64: 2, 128>}, {pipeline_mode = #tpu.pipeline_mode<synchronous>, transform_indices = @transform_2, window_bounds = array<i64: 128, 128>}, {transform_indices = @transform_3, window_bounds = array<i64: 1, 16, 16, 128>}, {transform_indices = @transform_4, window_bounds = array<i64: 1, 2, 128>}]} {
    %c0 = arith.constant 0 : index
    %c0_0 = arith.constant 0 : index
    %0 = vector.load %arg2[%c0, %c0_0] : memref<2x128xf32, #tpu.memory_space<vmem>>, vector<2x128xf32>
    %c0_1 = arith.constant 0 : index
    %c0_2 = arith.constant 0 : index
    %c0_3 = arith.constant 0 : index
    %c0_4 = arith.constant 0 : index
    %1 = vector.load %arg1[%c0_1, %c0_2, %c0_3, %c0_4] : memref<1x16x16x128xf32, #tpu.memory_space<vmem>>, vector<1x16x16x128xf32>
    %2 = vector.extract_strided_slice %0 {offsets = [0, 0], sizes = [1, 128], strides = [1, 1]} : vector<2x128xf32> to vector<1x128xf32>
    %3 = vector.shape_cast %2 : vector<1x128xf32> to vector<1x1x1x128xf32>
    %4 = vector.broadcast %3 : vector<1x1x1x128xf32> to vector<1x16x16x128xf32>
    %5 = arith.mulf %1, %4 : vector<1x16x16x128xf32>
    %6 = vector.extract_strided_slice %0 {offsets = [1, 0], sizes = [1, 128], strides = [1, 1]} : vector<2x128xf32> to vector<1x128xf32>
    %7 = vector.shape_cast %6 : vector<1x128xf32> to vector<1x1x1x128xf32>
    %8 = vector.broadcast %7 : vector<1x1x1x128xf32> to vector<1x16x16x128xf32>
    %9 = arith.addf %5, %8 : vector<1x16x16x128xf32>
    %cst = arith.constant 0.000000e+00 : f32
    %10 = vector.broadcast %cst : f32 to vector<1x16x16x128xf32>
    %11 = arith.maximumf %9, %10 : vector<1x16x16x128xf32>
    %12 = vector.shape_cast %11 : vector<1x16x16x128xf32> to vector<256x128xf32>
    %c0_5 = arith.constant 0 : index
    %c0_6 = arith.constant 0 : index
    %13 = vector.load %arg3[%c0_5, %c0_6] : memref<128x128xf32, #tpu.memory_space<vmem>>, vector<128x128xf32>
    %cst_7 = arith.constant dense<0.000000e+00> : vector<256x128xf32>
    %14 = tpu.matmul %12, %13, %cst_7 {dimension_numbers = #tpu.dot_dimension_numbers<[1], [0], [0], [1], [0, 0, 1, 1], [], []>} : vector<256x128xf32>, vector<128x128xf32>, vector<256x128xf32> -> vector<256x128xf32>
    %cst_8 = arith.constant dense<0.000000e+00> : vector<128xf32>
    %15 = vector.multi_reduction <add>, %14, %cst_8 [0] : vector<256x128xf32> to vector<128xf32>
    %16 = vector.shape_cast %15 : vector<128xf32> to vector<1x128xf32>
    %17 = arith.mulf %14, %14 : vector<256x128xf32>
    %cst_9 = arith.constant dense<0.000000e+00> : vector<128xf32>
    %18 = vector.multi_reduction <add>, %17, %cst_9 [0] : vector<256x128xf32> to vector<128xf32>
    %19 = vector.shape_cast %18 : vector<128xf32> to vector<1x128xf32>
    %20 = tpu.concatenate %16, %19 in 0 : vector<1x128xf32>, vector<1x128xf32> -> vector<2x128xf32>
    %21 = vector.shape_cast %20 : vector<2x128xf32> to vector<1x2x128xf32>
    %c0_10 = arith.constant 0 : index
    %c0_11 = arith.constant 0 : index
    %c0_12 = arith.constant 0 : index
    %22 = vector.load %arg5[%c0_10, %c0_11, %c0_12] : memref<1x2x128xf32, #tpu.memory_space<vmem>>, vector<1x2x128xf32>
    tpu.vector_store %arg5[%c0_10, %c0_11, %c0_12], %21 {strides = array<i32>} : memref<1x2x128xf32, #tpu.memory_space<vmem>>, vector<1x2x128xf32>,
    %23 = vector.shape_cast %14 : vector<256x128xf32> to vector<1x16x16x128xf32>
    %c0_13 = arith.constant 0 : index
    %c0_14 = arith.constant 0 : index
    %c0_15 = arith.constant 0 : index
    %c0_16 = arith.constant 0 : index
    %24 = vector.load %arg4[%c0_13, %c0_14, %c0_15, %c0_16] : memref<1x16x16x128xf32, #tpu.memory_space<vmem>>, vector<1x16x16x128xf32>
    tpu.vector_store %arg4[%c0_13, %c0_14, %c0_15, %c0_16], %23 {strides = array<i32>} : memref<1x16x16x128xf32, #tpu.memory_space<vmem>>, vector<1x16x16x128xf32>,
    return
  }
  func.func @transform_0(%arg0: i32) -> (i32, i32, i32, i32) {
    %c0_i32 = arith.constant 0 : i32
    %c0_i32_0 = arith.constant 0 : i32
    %c0_i32_1 = arith.constant 0 : i32
    %c0_i32_2 = arith.constant 0 : i32
    return %arg0, %c0_i32, %c0_i32_0, %c0_i32_1 : i32, i32, i32, i32
  }
  func.func @transform_1(%arg0: i32) -> (i32, i32) {
    %c0_i32 = arith.constant 0 : i32
    %c0_i32_0 = arith.constant 0 : i32
    %c0_i32_1 = arith.constant 0 : i32
    return %c0_i32, %c0_i32_0 : i32, i32
  }
  func.func @transform_2(%arg0: i32) -> (i32, i32) {
    %c0_i32 = arith.constant 0 : i32
    %c0_i32_0 = arith.constant 0 : i32
    %c0_i32_1 = arith.constant 0 : i32
    return %c0_i32, %c0_i32_0 : i32, i32
  }
  func.func @transform_3(%arg0: i32) -> (i32, i32, i32, i32) {
    %c0_i32 = arith.constant 0 : i32
    %c0_i32_0 = arith.constant 0 : i32
    %c0_i32_1 = arith.constant 0 : i32
    %c0_i32_2 = arith.constant 0 : i32
    return %arg0, %c0_i32, %c0_i32_0, %c0_i32_1 : i32, i32, i32, i32
  }
  func.func @transform_4(%arg0: i32) -> (i32, i32, i32) {
    %c0_i32 = arith.constant 0 : i32
    %c0_i32_0 = arith.constant 0 : i32
    %c0_i32_1 = arith.constant 0 : i32
    return %arg0, %c0_i32, %c0_i32_0 : i32, i32, i32
  }
}

module attributes {stable_mosaic.version = 11 : i64} {
  func.func @_stage4_kernel(%arg0: i32, %arg1: memref<1x16x16x128xf32, #tpu.memory_space<vmem>>, %arg2: memref<1x16x16x128xf32, #tpu.memory_space<vmem>>, %arg3: memref<2x128xf32, #tpu.memory_space<vmem>>, %arg4: memref<2x128xf32, #tpu.memory_space<vmem>>, %arg5: memref<1x16x16x128xf32, #tpu.memory_space<vmem>>) attributes {dimension_semantics = [#tpu.dimension_semantics<parallel>], iteration_bounds = array<i64: 2>, scalar_prefetch = 0 : i64, scratch_operands = 0 : i64, tpu.core_type = #tpu.core_type<tc>, window_params = [{transform_indices = @transform_0, window_bounds = array<i64: 1, 16, 16, 128>}, {transform_indices = @transform_1, window_bounds = array<i64: 1, 16, 16, 128>}, {pipeline_mode = #tpu.pipeline_mode<synchronous>, transform_indices = @transform_2, window_bounds = array<i64: 2, 128>}, {pipeline_mode = #tpu.pipeline_mode<synchronous>, transform_indices = @transform_3, window_bounds = array<i64: 2, 128>}, {transform_indices = @transform_4, window_bounds = array<i64: 1, 16, 16, 128>}]} {
    %c0 = arith.constant 0 : index
    %c0_0 = arith.constant 0 : index
    %0 = vector.load %arg3[%c0, %c0_0] : memref<2x128xf32, #tpu.memory_space<vmem>>, vector<2x128xf32>
    %c0_1 = arith.constant 0 : index
    %c0_2 = arith.constant 0 : index
    %1 = vector.load %arg4[%c0_1, %c0_2] : memref<2x128xf32, #tpu.memory_space<vmem>>, vector<2x128xf32>
    %c0_3 = arith.constant 0 : index
    %c0_4 = arith.constant 0 : index
    %c0_5 = arith.constant 0 : index
    %c0_6 = arith.constant 0 : index
    %2 = vector.load %arg1[%c0_3, %c0_4, %c0_5, %c0_6] : memref<1x16x16x128xf32, #tpu.memory_space<vmem>>, vector<1x16x16x128xf32>
    %3 = vector.extract_strided_slice %0 {offsets = [0, 0], sizes = [1, 128], strides = [1, 1]} : vector<2x128xf32> to vector<1x128xf32>
    %4 = vector.shape_cast %3 : vector<1x128xf32> to vector<1x1x1x128xf32>
    %5 = vector.broadcast %4 : vector<1x1x1x128xf32> to vector<1x16x16x128xf32>
    %6 = arith.mulf %2, %5 : vector<1x16x16x128xf32>
    %7 = vector.extract_strided_slice %0 {offsets = [1, 0], sizes = [1, 128], strides = [1, 1]} : vector<2x128xf32> to vector<1x128xf32>
    %8 = vector.shape_cast %7 : vector<1x128xf32> to vector<1x1x1x128xf32>
    %9 = vector.broadcast %8 : vector<1x1x1x128xf32> to vector<1x16x16x128xf32>
    %10 = arith.addf %6, %9 : vector<1x16x16x128xf32>
    %c0_7 = arith.constant 0 : index
    %c0_8 = arith.constant 0 : index
    %c0_9 = arith.constant 0 : index
    %c0_10 = arith.constant 0 : index
    %11 = vector.load %arg2[%c0_7, %c0_8, %c0_9, %c0_10] : memref<1x16x16x128xf32, #tpu.memory_space<vmem>>, vector<1x16x16x128xf32>
    %12 = vector.extract_strided_slice %1 {offsets = [0, 0], sizes = [1, 128], strides = [1, 1]} : vector<2x128xf32> to vector<1x128xf32>
    %13 = vector.shape_cast %12 : vector<1x128xf32> to vector<1x1x1x128xf32>
    %14 = vector.broadcast %13 : vector<1x1x1x128xf32> to vector<1x16x16x128xf32>
    %15 = arith.mulf %11, %14 : vector<1x16x16x128xf32>
    %16 = vector.extract_strided_slice %1 {offsets = [1, 0], sizes = [1, 128], strides = [1, 1]} : vector<2x128xf32> to vector<1x128xf32>
    %17 = vector.shape_cast %16 : vector<1x128xf32> to vector<1x1x1x128xf32>
    %18 = vector.broadcast %17 : vector<1x1x1x128xf32> to vector<1x16x16x128xf32>
    %19 = arith.addf %15, %18 : vector<1x16x16x128xf32>
    %20 = arith.addf %10, %19 : vector<1x16x16x128xf32>
    %cst = arith.constant 0.000000e+00 : f32
    %21 = vector.broadcast %cst : f32 to vector<1x16x16x128xf32>
    %22 = arith.maximumf %20, %21 : vector<1x16x16x128xf32>
    %c0_11 = arith.constant 0 : index
    %c0_12 = arith.constant 0 : index
    %c0_13 = arith.constant 0 : index
    %c0_14 = arith.constant 0 : index
    %23 = vector.load %arg5[%c0_11, %c0_12, %c0_13, %c0_14] : memref<1x16x16x128xf32, #tpu.memory_space<vmem>>, vector<1x16x16x128xf32>
    tpu.vector_store %arg5[%c0_11, %c0_12, %c0_13, %c0_14], %22 {strides = array<i32>} : memref<1x16x16x128xf32, #tpu.memory_space<vmem>>, vector<1x16x16x128xf32>,
    return
  }
  func.func @transform_0(%arg0: i32) -> (i32, i32, i32, i32) {
    %c0_i32 = arith.constant 0 : i32
    %c0_i32_0 = arith.constant 0 : i32
    %c0_i32_1 = arith.constant 0 : i32
    %c0_i32_2 = arith.constant 0 : i32
    return %arg0, %c0_i32, %c0_i32_0, %c0_i32_1 : i32, i32, i32, i32
  }
  func.func @transform_1(%arg0: i32) -> (i32, i32, i32, i32) {
    %c0_i32 = arith.constant 0 : i32
    %c0_i32_0 = arith.constant 0 : i32
    %c0_i32_1 = arith.constant 0 : i32
    %c0_i32_2 = arith.constant 0 : i32
    return %arg0, %c0_i32, %c0_i32_0, %c0_i32_1 : i32, i32, i32, i32
  }
  func.func @transform_2(%arg0: i32) -> (i32, i32) {
    %c0_i32 = arith.constant 0 : i32
    %c0_i32_0 = arith.constant 0 : i32
    %c0_i32_1 = arith.constant 0 : i32
    return %c0_i32, %c0_i32_0 : i32, i32
  }
  func.func @transform_3(%arg0: i32) -> (i32, i32) {
    %c0_i32 = arith.constant 0 : i32
    %c0_i32_0 = arith.constant 0 : i32
    %c0_i32_1 = arith.constant 0 : i32
    return %c0_i32, %c0_i32_0 : i32, i32
  }
  func.func @transform_4(%arg0: i32) -> (i32, i32, i32, i32) {
    %c0_i32 = arith.constant 0 : i32
    %c0_i32_0 = arith.constant 0 : i32
    %c0_i32_1 = arith.constant 0 : i32
    %c0_i32_2 = arith.constant 0 : i32
    return %arg0, %c0_i32, %c0_i32_0, %c0_i32_1 : i32, i32, i32, i32
  }
}

</mosaic_0001>

<bundles_post_ra>
// kernel: bottleneck_forward.6
= control target key start
LH: loop header
LB: loop body
LE: loop exit
PB: predicated region body
PF: predicated region fallthrough
CT: control target
= control target key end

     0   :  { %s1029_s15 = smov 0   ;;  %s1310_s0 = inlined_call_operand.vmem [shape: f32[2,16,16,128], index: 0, kind: input, shape index: {}]   ;;  %s1311_s1 = inlined_call_operand.vmem [shape: f32[2,128], index: 1, kind: input, shape index: {}]   ;;  %s1312_s2 = inlined_call_operand.vmem [shape: f32[128,128], index: 2, kind: input, shape index: {}]   ;;  %s1313_s3 = inlined_call_operand.vmem [shape: f32[2,16,16,128], index: 3, kind: output, shape index: {0}]   ;;  %s1314_s4 = inlined_call_operand.vmem [shape: f32[2,2,128], index: 4, kind: output, shape index: {1}]  }
   0x1 LB: > { %s814_s16 = sadd.s32 4294967295, %s1002_s15   ;;  %p818_p0 = scmp.ge.s32.totalorder %s1002_s15, 1  ;;  %s1002_s15 = sphi %s1029_s15, %s15_s15  }
   0x2   : > { %p165_p1 = scmp.lt.s32.totalorder %s1002_s15, 3 }
   0x4   : > { %p166_p2 = pnand %p818_p0, %p165_p1 }
   0x5   : > { %p195_p3 = scmp.lt.s32.totalorder (!%p166_p2), %s814_s16, 1 }
   0x6   : > { %169 = sbr.rel (%p166_p2) target bundleno = 319 (0x13f), region = 32 }
   0xb   : > { %v361_v0 = vld [vmem:[%s1312_s2 + $0x78] sm:$0xff]  ;;  %v360_v1 = vld [vmem:[%s1312_s2 + $0x70] sm:$0xff]  ;;  %v242_v2 = vlaneseq  ;;  %v359_v3 = vld [vmem:[%s1312_s2 + $0x68] sm:$0xff]  ;;  %s1316_s16 = smov (!%p195_p3, %s814_s16), 1  ;;  %vm693_vm0 = vcmask 1040384  }
   0xc   : > { %876 = vmatprep.subr.mxu0 %v361_v0  ;;  %956 = vmatprep.subr.mxu1 %v361_v0  ;;  %v358_v5 = vld [vmem:[%s1312_s2 + $0x60] sm:$0xff]  ;;  %s826_s25 = sshll.u32 %s1316_s16, 8  ;;  %v357_v9 = vld [vmem:[%s1312_s2 + $0x58] sm:$0xff]  ;;  %v356_v13 = vld [vmem:[%s1312_s2 + $0x50] sm:$0xff] }
   0xd   : > { %877 = vmatpush3.msra.mxu0 %v361_v0  ;;  %972 = vmatpush3.msra.mxu1 %v361_v0  ;;  %v243_v4 = vshrl.u32 %v242_v2, 7  ;;  %s1057_s28 = scalar_lea.vmem %s1310_s0, %s826_s25  ;;  %v209_v8 = vld [vmem:[%s1311_s1] sm:$0x3]  ;;  %v355_v15 = vld [vmem:[%s1312_s2 + $0x48] sm:$0xff]  ;;  %v353_v19 = vld [vmem:[%s1312_s2 + $0x38] sm:$0xff]  ;;  %s1203_s8 = scalar_lea.vmem %s1313_s3, %s826_s25 }
   0xe   : > { %878 = vmatprep.subr.mxu0 %v360_v1  ;;  %957 = vmatprep.subr.mxu1 %v360_v1  ;;  %v210_v10 = vld [vmem:[%s1057_s28] sm:$0xff]  ;;  %v352_v20 = vld [vmem:[%s1312_s2 + $0x30] sm:$0xff]  ;;  %v351_v21 = vld [vmem:[%s1312_s2 + $0x28] sm:$0xff]  ;;  %s823_s25 = sshll.u32 %s1316_s16, 1 }
   0xf   : > { %879 = vmatpush3.msra.mxu0 %v360_v1  ;;  %v244_v6 = vsub.s32 0, %v243_v4  ;;  %v280_v7 = vsub.s32 1, %v243_v4  ;;  %973 = vmatpush3.msra.mxu1 %v360_v1  ;;  %v354_v17 = vld [vmem:[%s1312_s2 + $0x40] sm:$0xff]  ;;  %v211_v22 = vld [vmem:[%s1057_s28 + $0x8] sm:$0xff]  ;;  %v212_v23 = vld [vmem:[%s1057_s28 + $0x10] sm:$0xff]  ;;  %s208_s11 = scalar_lea.vmem %s1314_s4, %s823_s25 }
  0x10   : > { %880 = vmatprep.subr.mxu0 %v359_v3  ;;  %958 = vmatprep.subr.mxu1 %v359_v3  ;;  %v350_v24 = vld [vmem:[%s1312_s2 + $0x20] sm:$0xff]  ;;  %v213_v27 = vld [vmem:[%s1057_s28 + $0x18] sm:$0xff]  ;;  %v227_v28 = vld [vmem:[%s1057_s28 + $0x88] sm:$0xff] }
  0x11   : > { %881 = vmatpush3.msra.mxu0 %v359_v3  ;;  %v1066_v11 = vrot.slane %v209_v8, %v244_v6  ;;  %v1068_v12 = vrot.slane %v209_v8, %v280_v7  ;;  %974 = vmatpush3.msra.mxu1 %v359_v3  ;;  %v226_v25 = vld [vmem:[%s1057_s28 + $0x80] sm:$0xff]  ;;  %v349_v29 = vld [vmem:[%s1312_s2 + $0x18] sm:$0xff]  ;;  %v228_v31 = vld [vmem:[%s1057_s28 + $0x90] sm:$0xff] }
  0x12   : > { %882 = vmatprep.subr.mxu0 %v358_v5  ;;  %959 = vmatprep.subr.mxu1 %v358_v5  ;;  %v214_v32 = vld [vmem:[%s1057_s28 + $0x20] sm:$0xff]  ;;  %v348_v34 = vld [vmem:[%s1312_s2 + $0x10] sm:$0xff]  ;;  %v215_v36 = vld [vmem:[%s1057_s28 + $0x28] sm:$0xff] }
  0x13   : > { %883 = vmatpush3.msra.mxu0 %v358_v5  ;;  %v246_v14 = vmul.f32 %v1066_v11, %v210_v10  ;;  %975 = vmatpush3.msra.mxu1 %v358_v5  ;;  %v247_v26 = vmul.f32 %v1066_v11, %v211_v22  ;;  %v248_v30 = vmul.f32 %v1066_v11, %v212_v23  ;;  %v229_v40 = vld [vmem:[%s1057_s28 + $0x98] sm:$0xff]  ;;  %v347_v41 = vld [vmem:[%s1312_s2 + $0x8] sm:$0xff]  ;;  %v230_v44 = vld [vmem:[%s1057_s28 + $0xa0] sm:$0xff] }
  0x14   : > { %884 = vmatprep.subr.mxu0 %v357_v9  ;;  %960 = vmatprep.subr.mxu1 %v357_v9  ;;  %v262_v33 = vmul.f32 %v1066_v11, %v226_v25  ;;  %v249_v35 = vmul.f32 %v1066_v11, %v213_v27  ;;  %v263_v37 = vmul.f32 %v1066_v11, %v227_v28  ;;  %v216_v46 = vld [vmem:[%s1057_s28 + $0x30] sm:$0xff]  ;;  %v346_v48 = vld [vmem:[%s1312_s2] sm:$0xff]  ;;  %v231_v55 = vld [vmem:[%s1057_s28 + $0xa8] sm:$0xff] }
  0x15   : > { %885 = vmatpush3.msra.mxu0 %v357_v9  ;;  %v282_v16 = vadd.f32 %v1068_v12, %v246_v14  ;;  %976 = vmatpush3.msra.mxu1 %v357_v9  ;;  %v283_v38 = vadd.f32 %v1068_v12, %v247_v26  ;;  %v264_v39 = vmul.f32 %v1066_v11, %v228_v31  ;;  %v217_v59 = vld [vmem:[%s1057_s28 + $0x38] sm:$0xff]  ;;  %v232_v60 = vld [vmem:[%s1057_s28 + $0xb0] sm:$0xff]  ;;  %v218_v62 = vld [vmem:[%s1057_s28 + $0x40] sm:$0xff] }
  0x16   : > { %886 = vmatprep.subr.mxu0 %v356_v13  ;;  %961 = vmatprep.subr.mxu1 %v356_v13  ;;  %v284_v42 = vadd.f32 %v1068_v12, %v248_v30  ;;  %v250_v43 = vmul.f32 %v1066_v11, %v214_v32  ;;  %v251_v45 = vmul.f32 %v1066_v11, %v215_v36  ;;  %v219_v5 = vld [vmem:[%s1057_s28 + $0x48] sm:$0xff]  ;;  %v233_v9 = vld [vmem:[%s1057_s28 + $0xb8] sm:$0xff]  ;;  %v236_v31 = vld [vmem:[%s1057_s28 + $0xd0] sm:$0xff] }
  0x17   : > { %887 = vmatpush3.msra.mxu0 %v356_v13  ;;  %v314_v18 = vmax.f32 %v282_v16, 0.0  ;;  %977 = vmatpush3.msra.mxu1 %v356_v13  ;;  %v298_v47 = vadd.f32 %v1068_v12, %v262_v33  ;;  %v285_v49 = vadd.f32 %v1068_v12, %v249_v35  ;;  %v299_v50 = vadd.f32 %v1068_v12, %v263_v37  ;;  %v235_v27 = vld [vmem:[%s1057_s28 + $0xc8] sm:$0xff]  ;;  %v222_v33 = vld [vmem:[%s1057_s28 + $0x60] sm:$0xff] }
  0x18   : > { %888 = vmatprep.subr.mxu0 %v355_v15  ;;  %962 = vmatprep.subr.mxu1 %v355_v15  ;;  %v265_v51 = vmul.f32 %v1066_v11, %v229_v40  ;;  %v315_v52 = vmax.f32 %v283_v38, 0.0  ;;  %v300_v53 = vadd.f32 %v1068_v12, %v264_v39  ;;  %v266_v54 = vmul.f32 %v1066_v11, %v230_v44  ;;  %v223_v39 = vld [vmem:[%s1057_s28 + $0x68] sm:$0xff] }
  0x19   : > { %889 = vmatpush3.msra.mxu0 %v355_v15  ;;  %908 = vmatprep.mubr.f32.mxu0 %v314_v18  ;;  %v316_v56 = vmax.f32 %v284_v42, 0.0  ;;  %v286_v57 = vadd.f32 %v1068_v12, %v250_v43  ;;  %v252_v58 = vmul.f32 %v1066_v11, %v216_v46  ;;  %v287_v61 = vadd.f32 %v1068_v12, %v251_v45  ;;  %v237_v43 = vld [vmem:[%s1057_s28 + $0xd8] sm:$0xff] }
  0x1a   : > { %890 = vmatprep.subr.mxu0 %v354_v17  ;;  %978 = vmatpush3.msra.mxu1 %v355_v15  ;;  %v330_v63 = vmax.f32 %v298_v47, 0.0  ;;  %v317_v0 = vmax.f32 %v285_v49, 0.0  ;;  %v331_v1 = vmax.f32 %v299_v50, 0.0  ;;  %v301_v2 = vadd.f32 %v1068_v12, %v265_v51  ;;  %v234_v15 = vld [vmem:[%s1057_s28 + $0xc0] sm:$0xff]  ;;  %v224_v49 = vld [vmem:[%s1057_s28 + $0x70] sm:$0xff] }
  0x1b   : > { %891 = vmatpush3.msra.mxu0 %v354_v17  ;;  %963 = vmatprep.subr.mxu1 %v354_v17  ;;  %v267_v3 = vmul.f32 %v1066_v11, %v231_v55  ;;  %v253_v4 = vmul.f32 %v1066_v11, %v217_v59  ;;  %v332_v6 = vmax.f32 %v300_v53, 0.0  ;;  %v302_v7 = vadd.f32 %v1068_v12, %v266_v54  ;;  %v238_v47 = vld [vmem:[%s1057_s28 + $0xe0] sm:$0xff] }
  0x1c   : > { %892 = vmatprep.subr.mxu0 %v353_v19  ;;  %979 = vmatpush3.msra.mxu1 %v354_v17  ;;  %v268_v8 = vmul.f32 %v1066_v11, %v232_v60  ;;  %v318_v10 = vmax.f32 %v286_v57, 0.0  ;;  %v288_v13 = vadd.f32 %v1068_v12, %v252_v58  ;;  %v254_v14 = vmul.f32 %v1066_v11, %v218_v62  ;;  %v220_v17 = vld [vmem:[%s1057_s28 + $0x50] sm:$0xff]  ;;  %v239_v58 = vld [vmem:[%s1057_s28 + $0xe8] sm:$0xff]  ;;  %v225_v62 = vld [vmem:[%s1057_s28 + $0x78] sm:$0xff] }
  0x1d   : > { %893 = vmatpush3.msra.mxu0 %v353_v19  ;;  %964 = vmatprep.subr.mxu1 %v353_v19  ;;  %v319_v16 = vmax.f32 %v287_v61, 0.0  ;;  %v255_v18 = vmul.f32 %v1066_v11, %v219_v5  ;;  %v269_v22 = vmul.f32 %v1066_v11, %v233_v9  ;;  %v289_v23 = vadd.f32 %v1068_v12, %v253_v4  ;;  %v241_v9 = vld [vmem:[%s1057_s28 + $0xf8] sm:$0xff] }
  0x1e   : > { %894 = vmatprep.subr.mxu0 %v352_v20  ;;  %980 = vmatpush3.msra.mxu1 %v353_v19  ;;  %v221_v19 = vld [vmem:[%s1057_s28 + $0x58] sm:$0xff]  ;;  %v304_v25 = vadd.f32 %v1068_v12, %v268_v8  ;;  %v270_v26 = vmul.f32 %v1066_v11, %v234_v15  ;;  %v320_v28 = vmax.f32 %v288_v13, 0.0  ;;  %v256_v30 = vmul.f32 %v1066_v11, %v220_v17 }
  0x1f   : > { %895 = vmatpush3.msra.mxu0 %v352_v20  ;;  %965 = vmatprep.subr.mxu1 %v352_v20  ;;  %v257_v32 = vmul.f32 %v1066_v11, %v221_v19  ;;  %v305_v36 = vadd.f32 %v1068_v12, %v269_v22  ;;  %v271_v37 = vmul.f32 %v1066_v11, %v235_v27  ;;  %v321_v38 = vmax.f32 %v289_v23, 0.0 }
  0x20   : > { %896 = vmatprep.subr.mxu0 %v351_v21  ;;  %981 = vmatpush3.msra.mxu1 %v352_v20  ;;  %v333_v20 = vmax.f32 %v301_v2, 0.0  ;;  %v336_v40 = vmax.f32 %v304_v25, 0.0  ;;  %v272_v42 = vmul.f32 %v1066_v11, %v236_v31  ;;  %v292_v45 = vadd.f32 %v1068_v12, %v256_v30 }
  0x21   : > { %897 = vmatpush3.msra.mxu0 %v351_v21  ;;  %966 = vmatprep.subr.mxu1 %v351_v21  ;;  %v258_v46 = vmul.f32 %v1066_v11, %v222_v33  ;;  %v259_v50 = vmul.f32 %v1066_v11, %v223_v39  ;;  %v337_v51 = vmax.f32 %v305_v36, 0.0  ;;  %v273_v53 = vmul.f32 %v1066_v11, %v237_v43 }
  0x22   : > { %898 = vmatprep.subr.mxu0 %v350_v24  ;;  %982 = vmatpush3.msra.mxu1 %v351_v21  ;;  %v303_v21 = vadd.f32 %v1068_v12, %v267_v3  ;;  %v274_v57 = vmul.f32 %v1066_v11, %v238_v47  ;;  %v324_v59 = vmax.f32 %v292_v45, 0.0  ;;  %v260_v61 = vmul.f32 %v1066_v11, %v224_v49 }
  0x23   : > { %899 = vmatpush3.msra.mxu0 %v350_v24  ;;  %967 = vmatprep.subr.mxu1 %v350_v24  ;;  %v294_v60 = vadd.f32 %v1068_v12, %v258_v46  ;;  %v309_v3 = vadd.f32 %v1068_v12, %v273_v53  ;;  %v275_v4 = vmul.f32 %v1066_v11, %v239_v58 }
  0x24   : > { %900 = vmatprep.subr.mxu0 %v349_v29  ;;  %983 = vmatpush3.msra.mxu1 %v350_v24  ;;  %v334_v24 = vmax.f32 %v302_v7, 0.0  ;;  %v335_v35 = vmax.f32 %v303_v21, 0.0  ;;  %v261_v5 = vmul.f32 %v1066_v11, %v225_v62  ;;  %v310_v7 = vadd.f32 %v1068_v12, %v274_v57 }
  0x25   : > { %901 = vmatpush3.msra.mxu0 %v349_v29  ;;  %968 = vmatprep.subr.mxu1 %v349_v29  ;;  %v296_v13 = vadd.f32 %v1068_v12, %v260_v61  ;;  %v311_v15 = vadd.f32 %v1068_v12, %v275_v4 }
  0x26   : > { %902 = vmatprep.subr.mxu0 %v348_v34  ;;  %984 = vmatpush3.msra.mxu1 %v349_v29  ;;  %v290_v29 = vadd.f32 %v1068_v12, %v254_v14  ;;  %v341_v14 = vmax.f32 %v309_v3, 0.0  ;;  %v342_v19 = vmax.f32 %v310_v7, 0.0 }
  0x27   : > { %903 = vmatpush3.msra.mxu0 %v348_v34  ;;  %969 = vmatprep.subr.mxu1 %v348_v34  ;;  %v328_v21 = vmax.f32 %v296_v13, 0.0  ;;  %v343_v22 = vmax.f32 %v311_v15, 0.0 }
  0x28   : > { %904 = vmatprep.subr.mxu0 %v347_v41  ;;  %985 = vmatpush3.msra.mxu1 %v348_v34  ;;  %v291_v34 = vadd.f32 %v1068_v12, %v255_v18  ;;  %v322_v44 = vmax.f32 %v290_v29, 0.0  ;;  %v297_v18 = vadd.f32 %v1068_v12, %v261_v5 }
  0x29   : > { %905 = vmatpush3.msra.mxu0 %v347_v41  ;;  %970 = vmatprep.subr.mxu1 %v347_v41 }
  0x2a   : > { %906 = vmatprep.subr.mxu0 %v346_v48  ;;  %986 = vmatpush3.msra.mxu1 %v347_v41  ;;  %v306_v41 = vadd.f32 %v1068_v12, %v270_v26  ;;  %v323_v54 = vmax.f32 %v291_v34, 0.0 }
  0x2b   : > { %907 = vmatpush3.msra.mxu0 %v346_v48  ;;  %971 = vmatprep.subr.mxu1 %v346_v48 }
  0x2c   : > { %909 = vmatmul.mubr.f32.vlgmr.msra.gmra.mxu0 %v315_v52  ;;  %987 = vmatpush3.msra.mxu1 %v346_v48  ;;  %v293_v48 = vadd.f32 %v1068_v12, %v257_v32  ;;  %v307_v52 = vadd.f32 %v1068_v12, %v271_v37  ;;  %v338_v55 = vmax.f32 %v306_v41, 0.0 }
  0x2d   : > { %911 = vmatprep.mubr.f32.mxu0 %v316_v56  ;;  %932 = vmatprep.mubr.f32.mxu1 %v330_v63  ;;  %v308_v56 = vadd.f32 %v1068_v12, %v272_v42  ;;  %v240_v63 = vld [vmem:[%s1057_s28 + $0xf0] sm:$0xff] }
  0x2e   : > { %933 = vmatmul.mubr.f32.vlgmr.msra.gmra.mxu1 %v331_v1  ;;  %v295_v1 = vadd.f32 %v1068_v12, %v259_v50  ;;  %v339_v2 = vmax.f32 %v307_v52, 0.0  ;;  %v276_v8 = vmul.f32 %v1066_v11, %v240_v63 }
  0x2f   : > { %935 = vmatprep.mubr.f32.mxu1 %v332_v6  ;;  %v340_v6 = vmax.f32 %v308_v56, 0.0 }
  0x30   : > { %912 = vmatmul.mubr.f32.gmra.mxu0 %v317_v0  ;;  %v325_v0 = vmax.f32 %v293_v48, 0.0  ;;  %v327_v17 = vmax.f32 %v295_v1, 0.0 }
  0x31   : > { %914 = vmatprep.mubr.f32.mxu0 %v318_v10  ;;  %v326_v10 = vmax.f32 %v294_v60, 0.0 }
  0x32   : > { %936 = vmatmul.mubr.f32.gmra.mxu1 %v333_v20  ;;  %v312_v20 = vadd.f32 %v1068_v12, %v276_v8 }
  0x33   : > { %938 = vmatprep.mubr.f32.mxu1 %v334_v24  ;;  %v329_v24 = vmax.f32 %v297_v18, 0.0 }
  0x34   : > { %915 = vmatmul.mubr.f32.gmra.mxu0 %v319_v16  ;;  %v277_v16 = vmul.f32 %v1066_v11, %v241_v9  ;;  %v344_v25 = vmax.f32 %v312_v20, 0.0 }
  0x35   : > { %917 = vmatprep.mubr.f32.mxu0 %v320_v28 }
  0x36   : > { %939 = vmatmul.mubr.f32.gmra.mxu1 %v335_v35  ;;  %v313_v23 = vadd.f32 %v1068_v12, %v277_v16 }
  0x37   : > { %941 = vmatprep.mubr.f32.mxu1 %v336_v40 }
  0x38   : > { %918 = vmatmul.mubr.f32.gmra.mxu0 %v321_v38  ;;  %v345_v11 = vmax.f32 %v313_v23, 0.0 }
  0x39   : > { %920 = vmatprep.mubr.f32.mxu0 %v322_v44 }
  0x3a   : > { %942 = vmatmul.mubr.f32.gmra.mxu1 %v337_v51 }
  0x3b   : > { %944 = vmatprep.mubr.f32.mxu1 %v338_v55 }
  0x3c   : > { %921 = vmatmul.mubr.f32.gmra.mxu0 %v323_v54 }
  0x3d   : > { %923 = vmatprep.mubr.f32.mxu0 %v324_v59 }
  0x3e   : > { %945 = vmatmul.mubr.f32.gmra.mxu1 %v339_v2 }
  0x3f   : > { %947 = vmatprep.mubr.f32.mxu1 %v340_v6 }
  0x40   : > { %924 = vmatmul.mubr.f32.gmra.mxu0 %v325_v0 }
  0x41   : > { %926 = vmatprep.mubr.f32.mxu0 %v326_v10 }
  0x42   : > { %948 = vmatmul.mubr.f32.gmra.mxu1 %v341_v14 }
  0x43   : > { %950 = vmatprep.mubr.f32.mxu1 %v342_v19 }
  0x44   : > { %927 = vmatmul.mubr.f32.gmra.mxu0 %v327_v17 }
  0x45   : > { %929 = vmatprep.mubr.f32.mxu0 %v328_v21 }
  0x46   : > { %951 = vmatmul.mubr.f32.gmra.mxu1 %v343_v22 }
  0x47   : > { %953 = vmatprep.mubr.f32.mxu1 %v344_v25 }
  0x48   : > { %930 = vmatmul.mubr.f32.gmra.mxu0 %v329_v24 }
  0x4a   : > { %954 = vmatmul.mubr.f32.gmra.mxu1 %v345_v11 }
  0xec   : > { %v910_v12 = vpop.f32.mrf.mxu0 }
  0xed   : > { %697 = vst [vmem:[%s1203_s8 + $0x8] sm:$0xff] %v910_v12  ;;  %v625_v30 = vmul.f32 %v910_v12, %v910_v12 }
  0xee   : > { %v428_v26 = vpop.f32.mrf.mxu0  ;;  %v1207_v28 = vpop.f32.mrf.mxu1 }
  0xef   : > { %v624_v27 = vmul.f32 %v428_v26, %v428_v26  ;;  %696 = vst [vmem:[%s1203_s8] sm:$0xff] %v428_v26  ;;  %713 = vst [vmem:[%s1203_s8 + $0x88] sm:$0xff] %v1207_v28  ;;  %v587_v31 = vadd.f32 %v910_v12, %v428_v26 }
  0xf0   : > { %v913_v29 = vpop.f32.mrf.mxu0  ;;  %v1212_v32 = vpop.f32.mrf.mxu1 }
  0xf1   : > { %699 = vst [vmem:[%s1203_s8 + $0x18] sm:$0xff] %v913_v29  ;;  %712 = vst [vmem:[%s1203_s8 + $0x80] sm:$0xff] %v1212_v32  ;;  %v656_v34 = vadd.f32 %v625_v30, %v624_v27  ;;  %v627_v39 = vmul.f32 %v913_v29, %v913_v29 }
  0xf2   : > { %v438_v33 = vpop.f32.mrf.mxu0  ;;  %v1217_v37 = vpop.f32.mrf.mxu1 }
  0xf3   : > { %v588_v35 = vadd.f32 %v587_v31, %v438_v33  ;;  %v626_v36 = vmul.f32 %v438_v33, %v438_v33  ;;  %698 = vst [vmem:[%s1203_s8 + $0x10] sm:$0xff] %v438_v33  ;;  %715 = vst [vmem:[%s1203_s8 + $0x98] sm:$0xff] %v1217_v37 }
  0xf4   : > { %v916_v38 = vpop.f32.mrf.mxu0  ;;  %v1222_v42 = vpop.f32.mrf.mxu1 }
  0xf5   : > { %v657_v40 = vadd.f32 %v656_v34, %v626_v36  ;;  %701 = vst [vmem:[%s1203_s8 + $0x28] sm:$0xff] %v916_v38  ;;  %v589_v41 = vadd.f32 %v913_v29, %v588_v35  ;;  %714 = vst [vmem:[%s1203_s8 + $0x90] sm:$0xff] %v1222_v42  ;;  %v629_v49 = vmul.f32 %v916_v38, %v916_v38 }
  0xf6   : > { %v448_v43 = vpop.f32.mrf.mxu0  ;;  %v1227_v47 = vpop.f32.mrf.mxu1 }
  0xf7   : > { %v590_v44 = vadd.f32 %v589_v41, %v448_v43  ;;  %v628_v45 = vmul.f32 %v448_v43, %v448_v43  ;;  %v658_v46 = vadd.f32 %v657_v40, %v627_v39  ;;  %700 = vst [vmem:[%s1203_s8 + $0x20] sm:$0xff] %v448_v43  ;;  %717 = vst [vmem:[%s1203_s8 + $0xa8] sm:$0xff] %v1227_v47 }
  0xf8   : > { %v919_v48 = vpop.f32.mrf.mxu0  ;;  %v1232_v52 = vpop.f32.mrf.mxu1 }
  0xf9   : > { %v659_v50 = vadd.f32 %v658_v46, %v628_v45  ;;  %703 = vst [vmem:[%s1203_s8 + $0x38] sm:$0xff] %v919_v48  ;;  %v591_v51 = vadd.f32 %v916_v38, %v590_v44  ;;  %716 = vst [vmem:[%s1203_s8 + $0xa0] sm:$0xff] %v1232_v52  ;;  %v631_v59 = vmul.f32 %v919_v48, %v919_v48 }
  0xfa   : > { %v458_v53 = vpop.f32.mrf.mxu0  ;;  %v1237_v57 = vpop.f32.mrf.mxu1  ;;  %v640_v44 = vmul.f32 %v1212_v32, %v1212_v32  ;;  %v641_v45 = vmul.f32 %v1207_v28, %v1207_v28 }
  0xfb   : > { %v592_v54 = vadd.f32 %v591_v51, %v458_v53  ;;  %v630_v55 = vmul.f32 %v458_v53, %v458_v53  ;;  %v660_v56 = vadd.f32 %v659_v50, %v629_v49  ;;  %702 = vst [vmem:[%s1203_s8 + $0x30] sm:$0xff] %v458_v53  ;;  %719 = vst [vmem:[%s1203_s8 + $0xb8] sm:$0xff] %v1237_v57 }
  0xfc   : > { %v922_v58 = vpop.f32.mrf.mxu0  ;;  %v1242_v62 = vpop.f32.mrf.mxu1  ;;  %v642_v50 = vmul.f32 %v1222_v42, %v1222_v42  ;;  %v643_v53 = vmul.f32 %v1217_v37, %v1217_v37 }
  0xfd   : > { %v661_v60 = vadd.f32 %v660_v56, %v630_v55  ;;  %705 = vst [vmem:[%s1203_s8 + $0x48] sm:$0xff] %v922_v58  ;;  %v593_v61 = vadd.f32 %v919_v48, %v592_v54  ;;  %718 = vst [vmem:[%s1203_s8 + $0xb0] sm:$0xff] %v1242_v62  ;;  %v633_v5 = vmul.f32 %v922_v58, %v922_v58 }
  0xfe   : > { %v468_v63 = vpop.f32.mrf.mxu0  ;;  %v1247_v3 = vpop.f32.mrf.mxu1  ;;  %v644_v56 = vmul.f32 %v1232_v52, %v1232_v52 }
  0xff   : > { %v594_v0 = vadd.f32 %v593_v61, %v468_v63  ;;  %v632_v1 = vmul.f32 %v468_v63, %v468_v63  ;;  %v662_v2 = vadd.f32 %v661_v60, %v631_v59  ;;  %704 = vst [vmem:[%s1203_s8 + $0x40] sm:$0xff] %v468_v63  ;;  %721 = vst [vmem:[%s1203_s8 + $0xc8] sm:$0xff] %v1247_v3 }
 0x100   : > { %v925_v4 = vpop.f32.mrf.mxu0  ;;  %v1252_v8 = vpop.f32.mrf.mxu1  ;;  %v646_v61 = vmul.f32 %v1242_v62, %v1242_v62 }
 0x101   : > { %v663_v6 = vadd.f32 %v662_v2, %v632_v1  ;;  %707 = vst [vmem:[%s1203_s8 + $0x58] sm:$0xff] %v925_v4  ;;  %v595_v7 = vadd.f32 %v922_v58, %v594_v0  ;;  %720 = vst [vmem:[%s1203_s8 + $0xc0] sm:$0xff] %v1252_v8  ;;  %v635_v17 = vmul.f32 %v925_v4, %v925_v4 }
 0x102   : > { %v478_v9 = vpop.f32.mrf.mxu0  ;;  %v1257_v15 = vpop.f32.mrf.mxu1  ;;  %v648_v2 = vmul.f32 %v1252_v8, %v1252_v8 }
 0x103   : > { %v596_v10 = vadd.f32 %v595_v7, %v478_v9  ;;  %v634_v13 = vmul.f32 %v478_v9, %v478_v9  ;;  %v664_v14 = vadd.f32 %v663_v6, %v633_v5  ;;  %706 = vst [vmem:[%s1203_s8 + $0x50] sm:$0xff] %v478_v9  ;;  %723 = vst [vmem:[%s1203_s8 + $0xd8] sm:$0xff] %v1257_v15 }
 0x104   : > { %v928_v16 = vpop.f32.mrf.mxu0  ;;  %v558_v20 = vpop.f32.mrf.mxu1 }
 0x105   : > { %v665_v18 = vadd.f32 %v664_v14, %v634_v13  ;;  %709 = vst [vmem:[%s1203_s8 + $0x68] sm:$0xff] %v928_v16  ;;  %v597_v19 = vadd.f32 %v925_v4, %v596_v10  ;;  %722 = vst [vmem:[%s1203_s8 + $0xd0] sm:$0xff] %v558_v20  ;;  %v637_v12 = vmul.f32 %v928_v16, %v928_v16 }
 0x106   : > { %v488_v21 = vpop.f32.mrf.mxu0  ;;  %v952_v25 = vpop.f32.mrf.mxu1  ;;  %v650_v7 = vmul.f32 %v558_v20, %v558_v20  ;;  %v651_v10 = vmul.f32 %v1257_v15, %v1257_v15 }
 0x107   : > { %v598_v22 = vadd.f32 %v597_v19, %v488_v21  ;;  %v636_v23 = vmul.f32 %v488_v21, %v488_v21  ;;  %v666_v24 = vadd.f32 %v665_v18, %v635_v17  ;;  %708 = vst [vmem:[%s1203_s8 + $0x60] sm:$0xff] %v488_v21  ;;  %725 = vst [vmem:[%s1203_s8 + $0xe8] sm:$0xff] %v952_v25 }
 0x108   : > { %v931_v11 = vpop.f32.mrf.mxu0  ;;  %v568_v29 = vpop.f32.mrf.mxu1 }
 0x109   : > { %v667_v26 = vadd.f32 %v666_v24, %v636_v23  ;;  %711 = vst [vmem:[%s1203_s8 + $0x78] sm:$0xff] %v931_v11  ;;  %v599_v27 = vadd.f32 %v928_v16, %v598_v22  ;;  %724 = vst [vmem:[%s1203_s8 + $0xe0] sm:$0xff] %v568_v29  ;;  %v639_v36 = vmul.f32 %v931_v11, %v931_v11 }
 0x10a   : > { %v498_v30 = vpop.f32.mrf.mxu0  ;;  %v955_v35 = vpop.f32.mrf.mxu1  ;;  %v652_v16 = vmul.f32 %v568_v29, %v568_v29 }
 0x10b   : > { %v600_v31 = vadd.f32 %v599_v27, %v498_v30  ;;  %v638_v33 = vmul.f32 %v498_v30, %v498_v30  ;;  %v668_v34 = vadd.f32 %v667_v26, %v637_v12  ;;  %710 = vst [vmem:[%s1203_s8 + $0x70] sm:$0xff] %v498_v30  ;;  %727 = vst [vmem:[%s1203_s8 + $0xf8] sm:$0xff] %v955_v35 }
 0x10c   : > { %v578_v40 = vpop.f32.mrf.mxu1 }
 0x10d   : > { %v601_v38 = vadd.f32 %v931_v11, %v600_v31  ;;  %v669_v39 = vadd.f32 %v668_v34, %v638_v33  ;;  %726 = vst [vmem:[%s1203_s8 + $0xf0] sm:$0xff] %v578_v40  ;;  %v654_v22 = vmul.f32 %v578_v40, %v578_v40 }
 0x10f   : > { %v670_v41 = vadd.f32 %v669_v39, %v639_v36  ;;  %v602_v43 = vadd.f32 %v601_v38, %v1212_v32 }
 0x111   : > { %v671_v46 = vadd.f32 %v670_v41, %v640_v44  ;;  %v603_v48 = vadd.f32 %v1207_v28, %v602_v43  ;;  %v645_v28 = vmul.f32 %v1227_v47, %v1227_v47 }
 0x113   : > { %v604_v49 = vadd.f32 %v603_v48, %v1222_v42  ;;  %v672_v51 = vadd.f32 %v671_v46, %v641_v45 }
 0x115   : > { %v673_v54 = vadd.f32 %v672_v51, %v642_v50  ;;  %v605_v55 = vadd.f32 %v1217_v37, %v604_v49  ;;  %v647_v37 = vmul.f32 %v1237_v57, %v1237_v57 }
 0x117   : > { %v606_v32 = vadd.f32 %v605_v55, %v1232_v52  ;;  %v674_v58 = vadd.f32 %v673_v54, %v643_v53 }
 0x119   : > { %v675_v59 = vadd.f32 %v674_v58, %v644_v56  ;;  %v607_v60 = vadd.f32 %v1227_v47, %v606_v32  ;;  %v649_v47 = vmul.f32 %v1247_v3, %v1247_v3 }
 0x11b   : > { %v608_v42 = vadd.f32 %v607_v60, %v1242_v62  ;;  %v676_v63 = vadd.f32 %v675_v59, %v645_v28 }
 0x11d   : > { %v677_v0 = vadd.f32 %v676_v63, %v646_v61  ;;  %v609_v1 = vadd.f32 %v1237_v57, %v608_v42 }
 0x11f   : > { %v610_v52 = vadd.f32 %v609_v1, %v1252_v8  ;;  %v678_v4 = vadd.f32 %v677_v0, %v647_v37  ;;  %v653_v8 = vmul.f32 %v952_v25, %v952_v25 }
 0x121   : > { %v679_v5 = vadd.f32 %v678_v4, %v648_v2  ;;  %v611_v6 = vadd.f32 %v1247_v3, %v610_v52  ;;  %v655_v3 = vmul.f32 %v955_v35, %v955_v35 }
 0x123   : > { %v612_v62 = vadd.f32 %v611_v6, %v558_v20  ;;  %v680_v9 = vadd.f32 %v679_v5, %v649_v47 }
 0x125   : > { %v681_v13 = vadd.f32 %v680_v9, %v650_v7  ;;  %v613_v57 = vadd.f32 %v1257_v15, %v612_v62 }
 0x127   : > { %v614_v14 = vadd.f32 %v613_v57, %v568_v29  ;;  %v682_v17 = vadd.f32 %v681_v13, %v651_v10 }
 0x129   : > { %v683_v18 = vadd.f32 %v682_v17, %v652_v16  ;;  %v615_v19 = vadd.f32 %v952_v25, %v614_v14 }
 0x12b   : > { %v616_v21 = vadd.f32 %v615_v19, %v578_v40  ;;  %v684_v23 = vadd.f32 %v683_v18, %v653_v8 }
 0x12d   : > { %v617_v24 = vadd.f32 %v955_v35, %v616_v21  ;;  %v685_v20 = vadd.f32 %v684_v23, %v654_v22 }
 0x12f   : > { %v618_v11 = vrot.slane %v617_v24, 4  ;;  %v686_v12 = vadd.f32 %v685_v20, %v655_v3 }
 0x131   : > { %v619_v26 = vadd.f32 %v618_v11, %v617_v24  ;;  %v687_v27 = vrot.slane %v686_v12, 4 }
 0x133   : > { %v620_v30 = vrot.slane %v619_v26, 2  ;;  %v688_v31 = vadd.f32 %v687_v27, %v686_v12 }
 0x135   : > { %v621_v15 = vadd.f32 %v620_v30, %v619_v26  ;;  %v689_v33 = vrot.slane %v688_v31, 2 }
 0x137   : > { %v622_v29 = vrot.slane %v621_v15, 1  ;;  %v690_v34 = vadd.f32 %v689_v33, %v688_v31 }
 0x139   : > { %v691_v36 = vrot.slane %v690_v34, 1  ;;  %v623_v25 = vadd.f32 %v622_v29, %v621_v15 }
 0x13b   : > { %v692_v35 = vadd.f32 %v691_v36, %v690_v34 }
 0x13d   : > { %v694_v38 = vsel %vm693_vm0, %v623_v25, %v692_v35 }
 0x13e   : > { %695 = vst [vmem:[%s208_s11] sm:$0x3] %v694_v38 }
 0x13f PF: > { %s15_s15 = sadd.s32 1, %s1002_s15  }
 0x140   : > { %p12_p4 = scmp.ge.s32.totalorder %s15_s15, 4  }
 0x142   :  { %14 = sbr.rel (!%p12_p4) target bundleno = 1 (0x1), region = 74 }

// kernel: bottleneck_forward.7
= control target key start
LH: loop header
LB: loop body
LE: loop exit
PB: predicated region body
PF: predicated region fallthrough
CT: control target
= control target key end

     0   :  { %s648_s15 = smov 0   ;;  %s917_s0 = inlined_call_operand.vmem [shape: f32[2,16,16,128], index: 0, kind: input, shape index: {}]   ;;  %s918_s1 = inlined_call_operand.vmem [shape: f32[2,16,16,128], index: 1, kind: input, shape index: {}]   ;;  %s919_s2 = inlined_call_operand.vmem [shape: f32[2,128], index: 2, kind: input, shape index: {}]   ;;  %s920_s3 = inlined_call_operand.vmem [shape: f32[2,128], index: 3, kind: input, shape index: {}]   ;;  %s921_s4 = inlined_call_operand.vmem [shape: f32[2,16,16,128], index: 4, kind: output, shape index: {}]  }
   0x1 LB: > { %s591_s16 = sadd.s32 4294967295, %s621_s15   ;;  %p595_p0 = scmp.ge.s32.totalorder %s621_s15, 1  ;;  %s621_s15 = sphi %s648_s15, %s14_s15  }
   0x2   : > { %p172_p1 = scmp.lt.s32.totalorder %s621_s15, 3 }
   0x4   : > { %p173_p2 = pnand %p595_p0, %p172_p1 }
   0x5   : > { %p203_p3 = scmp.lt.s32.totalorder (!%p173_p2), %s591_s16, 1 }
   0x6   : > { %176 = sbr.rel (%p173_p2) target bundleno = 74 (0x4a), region = 36 }
   0xb   : > { %v252_v0 = vlaneseq  ;;  %s923_s16 = smov (!%p203_p3, %s591_s16), 1  ;;  %v218_v2 = vld [vmem:[%s919_s2] sm:$0x3] }
   0xc   : > { %v219_v3 = vld [vmem:[%s920_s3] sm:$0x3]  ;;  %s662_s21 = sshll.u32 %s923_s16, 8 }
   0xd   : > { %v253_v1 = vshrl.u32 %v252_v0, 7  ;;  %s668_s24 = scalar_lea.vmem %s917_s0, %s662_s21  ;;  %s674_s27 = scalar_lea.vmem %s918_s1, %s662_s21 }
   0xe   : > { %v220_v6 = vld [vmem:[%s668_s24] sm:$0xff]  ;;  %v221_v12 = vld [vmem:[%s668_s24 + $0x8] sm:$0xff]  ;;  %v222_v14 = vld [vmem:[%s668_s24 + $0x10] sm:$0xff]  ;;  %s718_s30 = scalar_lea.vmem %s921_s4, %s662_s21 }
   0xf   : > { %v254_v4 = vsub.s32 0, %v253_v1  ;;  %v290_v5 = vsub.s32 1, %v253_v1  ;;  %v324_v9 = vld [vmem:[%s674_s27] sm:$0xff]  ;;  %v325_v13 = vld [vmem:[%s674_s27 + $0x8] sm:$0xff]  ;;  %v326_v15 = vld [vmem:[%s674_s27 + $0x10] sm:$0xff] }
  0x10   : > { %v223_v20 = vld [vmem:[%s668_s24 + $0x18] sm:$0xff]  ;;  %v224_v26 = vld [vmem:[%s668_s24 + $0x20] sm:$0xff]  ;;  %v225_v32 = vld [vmem:[%s668_s24 + $0x28] sm:$0xff] }
  0x11   : > { %v677_v7 = vrot.slane %v218_v2, %v254_v4  ;;  %v679_v8 = vrot.slane %v218_v2, %v290_v5  ;;  %v682_v10 = vrot.slane %v219_v3, %v254_v4  ;;  %v684_v11 = vrot.slane %v219_v3, %v290_v5  ;;  %v327_v21 = vld [vmem:[%s674_s27 + $0x18] sm:$0xff]  ;;  %v328_v27 = vld [vmem:[%s674_s27 + $0x20] sm:$0xff]  ;;  %v329_v33 = vld [vmem:[%s674_s27 + $0x28] sm:$0xff] }
  0x12   : > { %v226_v46 = vld [vmem:[%s668_s24 + $0x30] sm:$0xff]  ;;  %v227_v48 = vld [vmem:[%s668_s24 + $0x38] sm:$0xff]  ;;  %v228_v54 = vld [vmem:[%s668_s24 + $0x40] sm:$0xff] }
  0x13   : > { %v256_v16 = vmul.f32 %v677_v7, %v220_v6  ;;  %v360_v17 = vmul.f32 %v682_v10, %v324_v9  ;;  %v257_v18 = vmul.f32 %v677_v7, %v221_v12  ;;  %v361_v19 = vmul.f32 %v682_v10, %v325_v13  ;;  %v330_v47 = vld [vmem:[%s674_s27 + $0x30] sm:$0xff]  ;;  %v331_v53 = vld [vmem:[%s674_s27 + $0x38] sm:$0xff]  ;;  %v332_v55 = vld [vmem:[%s674_s27 + $0x40] sm:$0xff] }
  0x14   : > { %v258_v22 = vmul.f32 %v677_v7, %v222_v14  ;;  %v362_v23 = vmul.f32 %v682_v10, %v326_v15  ;;  %v259_v24 = vmul.f32 %v677_v7, %v223_v20  ;;  %v363_v25 = vmul.f32 %v682_v10, %v327_v21  ;;  %v229_v4 = vld [vmem:[%s668_s24 + $0x48] sm:$0xff]  ;;  %v230_v6 = vld [vmem:[%s668_s24 + $0x50] sm:$0xff] }
  0x15   : > { %v292_v28 = vadd.f32 %v679_v8, %v256_v16  ;;  %v396_v29 = vadd.f32 %v684_v11, %v360_v17  ;;  %v293_v30 = vadd.f32 %v679_v8, %v257_v18  ;;  %v397_v31 = vadd.f32 %v684_v11, %v361_v19  ;;  %v333_v5 = vld [vmem:[%s674_s27 + $0x48] sm:$0xff]  ;;  %v334_v15 = vld [vmem:[%s674_s27 + $0x50] sm:$0xff]  ;;  %v231_v16 = vld [vmem:[%s668_s24 + $0x58] sm:$0xff] }
  0x16   : > { %v294_v34 = vadd.f32 %v679_v8, %v258_v22  ;;  %v398_v35 = vadd.f32 %v684_v11, %v362_v23  ;;  %v295_v36 = vadd.f32 %v679_v8, %v259_v24  ;;  %v399_v37 = vadd.f32 %v684_v11, %v363_v25 }
  0x17   : > { %v428_v38 = vadd.f32 %v396_v29, %v292_v28  ;;  %v429_v39 = vadd.f32 %v397_v31, %v293_v30  ;;  %v260_v40 = vmul.f32 %v677_v7, %v224_v26  ;;  %v364_v41 = vmul.f32 %v682_v10, %v328_v27  ;;  %v335_v29 = vld [vmem:[%s674_s27 + $0x58] sm:$0xff]  ;;  %v232_v30 = vld [vmem:[%s668_s24 + $0x60] sm:$0xff] }
  0x18   : > { %v430_v42 = vadd.f32 %v398_v35, %v294_v34  ;;  %v431_v43 = vadd.f32 %v399_v37, %v295_v36  ;;  %v261_v44 = vmul.f32 %v677_v7, %v225_v32  ;;  %v365_v45 = vmul.f32 %v682_v10, %v329_v33  ;;  %v336_v31 = vld [vmem:[%s674_s27 + $0x60] sm:$0xff]  ;;  %v233_v36 = vld [vmem:[%s668_s24 + $0x68] sm:$0xff] }
  0x19   : > { %v460_v49 = vmax.f32 %v428_v38, 0.0  ;;  %v461_v50 = vmax.f32 %v429_v39, 0.0  ;;  %v296_v51 = vadd.f32 %v679_v8, %v260_v40  ;;  %v400_v52 = vadd.f32 %v684_v11, %v364_v41  ;;  %v337_v37 = vld [vmem:[%s674_s27 + $0x68] sm:$0xff]  ;;  %v234_v38 = vld [vmem:[%s668_s24 + $0x70] sm:$0xff] }
  0x1a   : > { %v462_v56 = vmax.f32 %v430_v42, 0.0  ;;  %v463_v57 = vmax.f32 %v431_v43, 0.0  ;;  %v297_v58 = vadd.f32 %v679_v8, %v261_v44  ;;  %v401_v59 = vadd.f32 %v684_v11, %v365_v45 }
  0x1b   : > { %492 = vst [vmem:[%s718_s30] sm:$0xff] %v460_v49  ;;  %493 = vst [vmem:[%s718_s30 + $0x8] sm:$0xff] %v461_v50  ;;  %v432_v60 = vadd.f32 %v400_v52, %v296_v51  ;;  %v262_v61 = vmul.f32 %v677_v7, %v226_v46  ;;  %v366_v62 = vmul.f32 %v682_v10, %v330_v47  ;;  %v338_v51 = vld [vmem:[%s674_s27 + $0x70] sm:$0xff]  ;;  %v235_v52 = vld [vmem:[%s668_s24 + $0x78] sm:$0xff] }
  0x1c   : > { %v263_v63 = vmul.f32 %v677_v7, %v227_v48  ;;  %494 = vst [vmem:[%s718_s30 + $0x10] sm:$0xff] %v462_v56  ;;  %495 = vst [vmem:[%s718_s30 + $0x18] sm:$0xff] %v463_v57  ;;  %v433_v0 = vadd.f32 %v401_v59, %v297_v58  ;;  %v367_v1 = vmul.f32 %v682_v10, %v331_v53  ;;  %v339_v57 = vld [vmem:[%s674_s27 + $0x78] sm:$0xff]  ;;  %v236_v58 = vld [vmem:[%s668_s24 + $0x80] sm:$0xff] }
  0x1d   : > { %v264_v2 = vmul.f32 %v677_v7, %v228_v54  ;;  %v368_v3 = vmul.f32 %v682_v10, %v332_v55  ;;  %v464_v9 = vmax.f32 %v432_v60, 0.0  ;;  %v298_v12 = vadd.f32 %v679_v8, %v262_v61  ;;  %v340_v59 = vld [vmem:[%s674_s27 + $0x80] sm:$0xff] }
  0x1e   : > { %v402_v13 = vadd.f32 %v684_v11, %v366_v62  ;;  %v299_v14 = vadd.f32 %v679_v8, %v263_v63  ;;  %v465_v17 = vmax.f32 %v433_v0, 0.0  ;;  %v403_v18 = vadd.f32 %v684_v11, %v367_v1 }
  0x1f   : > { %v300_v19 = vadd.f32 %v679_v8, %v264_v2  ;;  %v404_v20 = vadd.f32 %v684_v11, %v368_v3  ;;  %496 = vst [vmem:[%s718_s30 + $0x20] sm:$0xff] %v464_v9  ;;  %v265_v22 = vmul.f32 %v677_v7, %v229_v4  ;;  %v369_v23 = vmul.f32 %v682_v10, %v333_v5 }
  0x20   : > { %v434_v21 = vadd.f32 %v402_v13, %v298_v12  ;;  %v266_v24 = vmul.f32 %v677_v7, %v230_v6  ;;  %497 = vst [vmem:[%s718_s30 + $0x28] sm:$0xff] %v465_v17  ;;  %v435_v25 = vadd.f32 %v403_v18, %v299_v14  ;;  %v370_v27 = vmul.f32 %v682_v10, %v334_v15  ;;  %v237_v12 = vld [vmem:[%s668_s24 + $0x88] sm:$0xff]  ;;  %v238_v14 = vld [vmem:[%s668_s24 + $0x90] sm:$0xff] }
  0x21   : > { %v436_v26 = vadd.f32 %v404_v20, %v300_v19  ;;  %v267_v28 = vmul.f32 %v677_v7, %v231_v16  ;;  %v301_v33 = vadd.f32 %v679_v8, %v265_v22  ;;  %v405_v34 = vadd.f32 %v684_v11, %v369_v23  ;;  %v341_v13 = vld [vmem:[%s674_s27 + $0x88] sm:$0xff]  ;;  %v342_v19 = vld [vmem:[%s674_s27 + $0x90] sm:$0xff]  ;;  %v239_v20 = vld [vmem:[%s668_s24 + $0x98] sm:$0xff] }
  0x22   : > { %v466_v32 = vmax.f32 %v434_v21, 0.0  ;;  %v302_v35 = vadd.f32 %v679_v8, %v266_v24  ;;  %v467_v39 = vmax.f32 %v435_v25, 0.0  ;;  %v406_v41 = vadd.f32 %v684_v11, %v370_v27 }
  0x23   : > { %v468_v40 = vmax.f32 %v436_v26, 0.0  ;;  %v303_v42 = vadd.f32 %v679_v8, %v267_v28  ;;  %v437_v43 = vadd.f32 %v405_v34, %v301_v33  ;;  %v371_v44 = vmul.f32 %v682_v10, %v335_v29  ;;  %v343_v33 = vld [vmem:[%s674_s27 + $0x98] sm:$0xff]  ;;  %v240_v34 = vld [vmem:[%s668_s24 + $0xa0] sm:$0xff] }
  0x24   : > { %498 = vst [vmem:[%s718_s30 + $0x30] sm:$0xff] %v466_v32  ;;  %v268_v45 = vmul.f32 %v677_v7, %v232_v30  ;;  %v372_v46 = vmul.f32 %v682_v10, %v336_v31  ;;  %499 = vst [vmem:[%s718_s30 + $0x38] sm:$0xff] %v467_v39  ;;  %v438_v47 = vadd.f32 %v406_v41, %v302_v35  ;;  %v344_v35 = vld [vmem:[%s674_s27 + $0xa0] sm:$0xff]  ;;  %v345_v41 = vld [vmem:[%s674_s27 + $0xa8] sm:$0xff] }
  0x25   : > { %500 = vst [vmem:[%s718_s30 + $0x40] sm:$0xff] %v468_v40  ;;  %v269_v48 = vmul.f32 %v677_v7, %v233_v36  ;;  %v373_v49 = vmul.f32 %v682_v10, %v337_v37  ;;  %v270_v50 = vmul.f32 %v677_v7, %v234_v38  ;;  %v469_v53 = vmax.f32 %v437_v43, 0.0  ;;  %v241_v40 = vld [vmem:[%s668_s24 + $0xa8] sm:$0xff] }
  0x26   : > { %v407_v54 = vadd.f32 %v684_v11, %v371_v44  ;;  %v304_v55 = vadd.f32 %v679_v8, %v268_v45  ;;  %v408_v56 = vadd.f32 %v684_v11, %v372_v46  ;;  %v470_v60 = vmax.f32 %v438_v47, 0.0 }
  0x27   : > { %v305_v61 = vadd.f32 %v679_v8, %v269_v48  ;;  %v409_v62 = vadd.f32 %v684_v11, %v373_v49  ;;  %v306_v63 = vadd.f32 %v679_v8, %v270_v50  ;;  %501 = vst [vmem:[%s718_s30 + $0x48] sm:$0xff] %v469_v53  ;;  %v374_v2 = vmul.f32 %v682_v10, %v338_v51 }
  0x28   : > { %v439_v0 = vadd.f32 %v407_v54, %v303_v42  ;;  %v440_v1 = vadd.f32 %v408_v56, %v304_v55  ;;  %v271_v3 = vmul.f32 %v677_v7, %v235_v52  ;;  %502 = vst [vmem:[%s718_s30 + $0x50] sm:$0xff] %v470_v60  ;;  %v375_v5 = vmul.f32 %v682_v10, %v339_v57  ;;  %v242_v42 = vld [vmem:[%s668_s24 + $0xb0] sm:$0xff]  ;;  %v243_v56 = vld [vmem:[%s668_s24 + $0xb8] sm:$0xff] }
  0x29   : > { %v441_v4 = vadd.f32 %v409_v62, %v305_v61  ;;  %v272_v6 = vmul.f32 %v677_v7, %v236_v58  ;;  %v376_v9 = vmul.f32 %v682_v10, %v340_v59  ;;  %v410_v17 = vadd.f32 %v684_v11, %v374_v2  ;;  %v346_v55 = vld [vmem:[%s674_s27 + $0xb0] sm:$0xff]  ;;  %v347_v61 = vld [vmem:[%s674_s27 + $0xb8] sm:$0xff]  ;;  %v244_v62 = vld [vmem:[%s668_s24 + $0xc0] sm:$0xff] }
  0x2a   : > { %v471_v15 = vmax.f32 %v439_v0, 0.0  ;;  %v472_v16 = vmax.f32 %v440_v1, 0.0  ;;  %v307_v18 = vadd.f32 %v679_v8, %v271_v3  ;;  %v411_v22 = vadd.f32 %v684_v11, %v375_v5 }
  0x2b   : > { %v473_v21 = vmax.f32 %v441_v4, 0.0  ;;  %v308_v23 = vadd.f32 %v679_v8, %v272_v6  ;;  %v412_v24 = vadd.f32 %v684_v11, %v376_v9  ;;  %v442_v25 = vadd.f32 %v410_v17, %v306_v63  ;;  %v348_v63 = vld [vmem:[%s674_s27 + $0xc0] sm:$0xff]  ;;  %v349_v17 = vld [vmem:[%s674_s27 + $0xc8] sm:$0xff] }
  0x2c   : > { %503 = vst [vmem:[%s718_s30 + $0x58] sm:$0xff] %v471_v15  ;;  %504 = vst [vmem:[%s718_s30 + $0x60] sm:$0xff] %v472_v16  ;;  %v273_v26 = vmul.f32 %v677_v7, %v237_v12  ;;  %v377_v27 = vmul.f32 %v682_v10, %v341_v13  ;;  %v274_v28 = vmul.f32 %v677_v7, %v238_v14  ;;  %v245_v16 = vld [vmem:[%s668_s24 + $0xc8] sm:$0xff] }
  0x2d   : > { %505 = vst [vmem:[%s718_s30 + $0x68] sm:$0xff] %v473_v21  ;;  %v443_v29 = vadd.f32 %v411_v22, %v307_v18  ;;  %v444_v30 = vadd.f32 %v412_v24, %v308_v23  ;;  %v378_v31 = vmul.f32 %v682_v10, %v342_v19  ;;  %v275_v32 = vmul.f32 %v677_v7, %v239_v20  ;;  %v246_v18 = vld [vmem:[%s668_s24 + $0xd0] sm:$0xff]  ;;  %v247_v24 = vld [vmem:[%s668_s24 + $0xd8] sm:$0xff] }
  0x2e   : > { %v474_v36 = vmax.f32 %v442_v25, 0.0  ;;  %v309_v37 = vadd.f32 %v679_v8, %v273_v26  ;;  %v413_v38 = vadd.f32 %v684_v11, %v377_v27  ;;  %v310_v39 = vadd.f32 %v679_v8, %v274_v28  ;;  %v350_v23 = vld [vmem:[%s674_s27 + $0xd0] sm:$0xff] }
  0x2f   : > { %v475_v43 = vmax.f32 %v443_v29, 0.0  ;;  %v476_v44 = vmax.f32 %v444_v30, 0.0  ;;  %v414_v45 = vadd.f32 %v684_v11, %v378_v31  ;;  %v311_v46 = vadd.f32 %v679_v8, %v275_v32 }
  0x30   : > { %506 = vst [vmem:[%s718_s30 + $0x70] sm:$0xff] %v474_v36  ;;  %v445_v47 = vadd.f32 %v413_v38, %v309_v37  ;;  %v379_v48 = vmul.f32 %v682_v10, %v343_v33  ;;  %v276_v49 = vmul.f32 %v677_v7, %v240_v34  ;;  %v380_v50 = vmul.f32 %v682_v10, %v344_v35  ;;  %v351_v37 = vld [vmem:[%s674_s27 + $0xd8] sm:$0xff]  ;;  %v248_v38 = vld [vmem:[%s668_s24 + $0xe0] sm:$0xff] }
  0x31   : > { %507 = vst [vmem:[%s718_s30 + $0x78] sm:$0xff] %v475_v43  ;;  %508 = vst [vmem:[%s718_s30 + $0x80] sm:$0xff] %v476_v44  ;;  %v446_v51 = vadd.f32 %v414_v45, %v310_v39  ;;  %v277_v52 = vmul.f32 %v677_v7, %v241_v40  ;;  %v381_v53 = vmul.f32 %v682_v10, %v345_v41  ;;  %v352_v39 = vld [vmem:[%s674_s27 + $0xe0] sm:$0xff]  ;;  %v249_v44 = vld [vmem:[%s668_s24 + $0xe8] sm:$0xff] }
  0x32   : > { %v278_v54 = vmul.f32 %v677_v7, %v242_v42  ;;  %v477_v57 = vmax.f32 %v445_v47, 0.0  ;;  %v415_v58 = vadd.f32 %v684_v11, %v379_v48  ;;  %v312_v59 = vadd.f32 %v679_v8, %v276_v49  ;;  %v353_v45 = vld [vmem:[%s674_s27 + $0xe8] sm:$0xff] }
  0x33   : > { %v416_v60 = vadd.f32 %v684_v11, %v380_v50  ;;  %v478_v0 = vmax.f32 %v446_v51, 0.0  ;;  %v313_v1 = vadd.f32 %v679_v8, %v277_v52  ;;  %v417_v2 = vadd.f32 %v684_v11, %v381_v53 }
  0x34   : > { %v314_v3 = vadd.f32 %v679_v8, %v278_v54  ;;  %509 = vst [vmem:[%s718_s30 + $0x88] sm:$0xff] %v477_v57  ;;  %v447_v4 = vadd.f32 %v415_v58, %v311_v46  ;;  %v382_v6 = vmul.f32 %v682_v10, %v346_v55  ;;  %v279_v9 = vmul.f32 %v677_v7, %v243_v56  ;;  %v250_v46 = vld [vmem:[%s668_s24 + $0xf0] sm:$0xff] }
  0x35   : > { %v448_v5 = vadd.f32 %v416_v60, %v312_v59  ;;  %510 = vst [vmem:[%s718_s30 + $0x90] sm:$0xff] %v478_v0  ;;  %v449_v12 = vadd.f32 %v417_v2, %v313_v1  ;;  %v383_v13 = vmul.f32 %v682_v10, %v347_v61  ;;  %v280_v14 = vmul.f32 %v677_v7, %v244_v62  ;;  %v354_v59 = vld [vmem:[%s674_s27 + $0xf0] sm:$0xff]  ;;  %v251_v60 = vld [vmem:[%s668_s24 + $0xf8] sm:$0xff] }
  0x36   : > { %v384_v15 = vmul.f32 %v682_v10, %v348_v63  ;;  %v479_v19 = vmax.f32 %v447_v4, 0.0  ;;  %v418_v21 = vadd.f32 %v684_v11, %v382_v6  ;;  %v315_v22 = vadd.f32 %v679_v8, %v279_v9  ;;  %v355_v1 = vld [vmem:[%s674_s27 + $0xf8] sm:$0xff] }
  0x37   : > { %v480_v20 = vmax.f32 %v448_v5, 0.0  ;;  %v481_v25 = vmax.f32 %v449_v12, 0.0  ;;  %v419_v26 = vadd.f32 %v684_v11, %v383_v13  ;;  %v316_v27 = vadd.f32 %v679_v8, %v280_v14 }
  0x38   : > { %v420_v28 = vadd.f32 %v684_v11, %v384_v15  ;;  %511 = vst [vmem:[%s718_s30 + $0x98] sm:$0xff] %v479_v19  ;;  %v450_v29 = vadd.f32 %v418_v21, %v314_v3  ;;  %v281_v30 = vmul.f32 %v677_v7, %v245_v16  ;;  %v385_v31 = vmul.f32 %v682_v10, %v349_v17 }
  0x39   : > { %512 = vst [vmem:[%s718_s30 + $0xa0] sm:$0xff] %v480_v20  ;;  %v282_v32 = vmul.f32 %v677_v7, %v246_v18  ;;  %513 = vst [vmem:[%s718_s30 + $0xa8] sm:$0xff] %v481_v25  ;;  %v451_v33 = vadd.f32 %v419_v26, %v315_v22  ;;  %v386_v35 = vmul.f32 %v682_v10, %v350_v23 }
  0x3a   : > { %v452_v34 = vadd.f32 %v420_v28, %v316_v27  ;;  %v283_v36 = vmul.f32 %v677_v7, %v247_v24  ;;  %v482_v40 = vmax.f32 %v450_v29, 0.0  ;;  %v317_v41 = vadd.f32 %v679_v8, %v281_v30 }
  0x3b   : > { %v421_v42 = vadd.f32 %v684_v11, %v385_v31  ;;  %v318_v43 = vadd.f32 %v679_v8, %v282_v32  ;;  %v483_v47 = vmax.f32 %v451_v33, 0.0  ;;  %v422_v49 = vadd.f32 %v684_v11, %v386_v35 }
  0x3c   : > { %v484_v48 = vmax.f32 %v452_v34, 0.0  ;;  %v319_v50 = vadd.f32 %v679_v8, %v283_v36  ;;  %514 = vst [vmem:[%s718_s30 + $0xb0] sm:$0xff] %v482_v40  ;;  %v387_v52 = vmul.f32 %v682_v10, %v351_v37  ;;  %v284_v53 = vmul.f32 %v677_v7, %v248_v38 }
  0x3d   : > { %v453_v51 = vadd.f32 %v421_v42, %v317_v41  ;;  %v388_v54 = vmul.f32 %v682_v10, %v352_v39  ;;  %515 = vst [vmem:[%s718_s30 + $0xb8] sm:$0xff] %v483_v47  ;;  %v454_v55 = vadd.f32 %v422_v49, %v318_v43  ;;  %v285_v56 = vmul.f32 %v677_v7, %v249_v44 }
  0x3e   : > { %516 = vst [vmem:[%s718_s30 + $0xc0] sm:$0xff] %v484_v48  ;;  %v389_v57 = vmul.f32 %v682_v10, %v353_v45  ;;  %v286_v58 = vmul.f32 %v677_v7, %v250_v46  ;;  %v423_v62 = vadd.f32 %v684_v11, %v387_v52  ;;  %v320_v63 = vadd.f32 %v679_v8, %v284_v53 }
  0x3f   : > { %v485_v61 = vmax.f32 %v453_v51, 0.0  ;;  %v424_v0 = vadd.f32 %v684_v11, %v388_v54  ;;  %v486_v2 = vmax.f32 %v454_v55, 0.0  ;;  %v321_v3 = vadd.f32 %v679_v8, %v285_v56 }
  0x40   : > { %v425_v4 = vadd.f32 %v684_v11, %v389_v57  ;;  %v322_v5 = vadd.f32 %v679_v8, %v286_v58  ;;  %v455_v6 = vadd.f32 %v423_v62, %v319_v50  ;;  %v390_v12 = vmul.f32 %v682_v10, %v354_v59 }
  0x41   : > { %517 = vst [vmem:[%s718_s30 + $0xc8] sm:$0xff] %v485_v61  ;;  %v456_v9 = vadd.f32 %v424_v0, %v320_v63  ;;  %v287_v13 = vmul.f32 %v677_v7, %v251_v60  ;;  %518 = vst [vmem:[%s718_s30 + $0xd0] sm:$0xff] %v486_v2  ;;  %v391_v15 = vmul.f32 %v682_v10, %v355_v1 }
  0x42   : > { %v457_v14 = vadd.f32 %v425_v4, %v321_v3  ;;  %v487_v16 = vmax.f32 %v455_v6, 0.0  ;;  %v426_v18 = vadd.f32 %v684_v11, %v390_v12 }
  0x43   : > { %v488_v17 = vmax.f32 %v456_v9, 0.0  ;;  %v323_v19 = vadd.f32 %v679_v8, %v287_v13  ;;  %v427_v21 = vadd.f32 %v684_v11, %v391_v15 }
  0x44   : > { %v489_v20 = vmax.f32 %v457_v14, 0.0  ;;  %519 = vst [vmem:[%s718_s30 + $0xd8] sm:$0xff] %v487_v16  ;;  %v458_v22 = vadd.f32 %v426_v18, %v322_v5 }
  0x45   : > { %520 = vst [vmem:[%s718_s30 + $0xe0] sm:$0xff] %v488_v17  ;;  %v459_v7 = vadd.f32 %v427_v21, %v323_v19 }
  0x46   : > { %521 = vst [vmem:[%s718_s30 + $0xe8] sm:$0xff] %v489_v20  ;;  %v490_v23 = vmax.f32 %v458_v22, 0.0 }
  0x47   : > { %v491_v24 = vmax.f32 %v459_v7, 0.0 }
  0x48   : > { %522 = vst [vmem:[%s718_s30 + $0xf0] sm:$0xff] %v490_v23 }
  0x49   : > { %523 = vst [vmem:[%s718_s30 + $0xf8] sm:$0xff] %v491_v24 }
  0x4a PF: > { %s14_s15 = sadd.s32 1, %s621_s15  }
  0x4b   : > { %p11_p4 = scmp.ge.s32.totalorder %s14_s15, 4  }
  0x4d   :  { %13 = sbr.rel (!%p11_p4) target bundleno = 1 (0x1), region = 69 }

// kernel: bottleneck_forward.5
= control target key start
LH: loop header
LB: loop body
LE: loop exit
PB: predicated region body
PF: predicated region fallthrough
CT: control target
= control target key end

     0   :  { %s2588_s15 = smov 0   ;;  %s4437_s0 = inlined_call_operand.vmem [shape: f32[2,18,18,128], index: 0, kind: input, shape index: {}]   ;;  %s4438_s1 = inlined_call_operand.vmem [shape: f32[2,128], index: 1, kind: input, shape index: {}]   ;;  %s4439_s2 = inlined_call_operand.vmem [shape: f32[1152,128], index: 2, kind: input, shape index: {}]   ;;  %s4440_s3 = inlined_call_operand.vmem [shape: f32[2,16,16,128], index: 3, kind: output, shape index: {0}]   ;;  %s4441_s4 = inlined_call_operand.vmem [shape: f32[2,2,128], index: 4, kind: output, shape index: {1}]  }
   0x1 LB: > { %s2326_s16 = sadd.s32 4294967295, %s2560_s15   ;;  %p2330_p0 = scmp.ge.s32.totalorder %s2560_s15, 1  ;;  %s2560_s15 = sphi %s2588_s15, %s15_s15  }
   0x2   : > { %p165_p1 = scmp.lt.s32.totalorder %s2560_s15, 3 }
   0x4   : > { %p166_p2 = pnand %p2330_p0, %p165_p1 }
   0x6   : > { %169 = sbr.rel (%p166_p2) target bundleno = 610 (0x262), region = 32 }
   0xb   : > { %v845_v0 = vld [vmem:[%s4439_s2 + $0x78] sm:$0xff]  ;;  %v4446_v2 = vmov 0.0   ;;  %v844_v3 = vld [vmem:[%s4439_s2 + $0x70] sm:$0xff]  ;;  %v843_v5 = vld [vmem:[%s4439_s2 + $0x68] sm:$0xff]  ;;  %p2740_p3 = scmp.lt.s32.totalorder %s2326_s16, 1  ;;  %v264_v39 = vlaneseq  ;;  %vm570_vm2 = vcmask 1046528  }
   0xc   : > { %v877_v1 = vld [vmem:[%s4439_s2 + $0x178] sm:$0xff]  ;;  %974 = vmatprep.subr.mxu0 %v4446_v2  ;;  %1199 = vmatprep.subr.mxu1 %v4446_v2  ;;  %v876_v4 = vld [vmem:[%s4439_s2 + $0x170] sm:$0xff]  ;;  %v875_v6 = vld [vmem:[%s4439_s2 + $0x168] sm:$0xff]  ;;  %vm683_vm3 = vcmask 1045504   ;;  %vm2205_vm4 = vcmask 1040384  }
   0xd   : > { %975 = vmatpush1.msra.mxu0 %v845_v0  ;;  %1200 = vmatpush1.msra.mxu1 %v877_v1  ;;  %v842_v7 = vld [vmem:[%s4439_s2 + $0x60] sm:$0xff]  ;;  %v841_v9 = vld [vmem:[%s4439_s2 + $0x58] sm:$0xff]  ;;  %v840_v11 = vld [vmem:[%s4439_s2 + $0x50] sm:$0xff]  ;;  %s4619_s16 = smov (!%p2740_p3, %s2326_s16), 1  ;;  %v2774_v44 = vshrl.u32 %v264_v39, 7 }
   0xe   : > { %976 = vmatprep.subr.mxu0 %v4446_v2  ;;  %1201 = vmatprep.subr.mxu1 %v4446_v2  ;;  %v874_v8 = vld [vmem:[%s4439_s2 + $0x160] sm:$0xff]  ;;  %v873_v10 = vld [vmem:[%s4439_s2 + $0x158] sm:$0xff]  ;;  %v872_v12 = vld [vmem:[%s4439_s2 + $0x150] sm:$0xff]  ;;  %s2544_s8 = smul.u32 432, %s4619_s16  ;;  %s2334_s9 = sshll.u32 %s4619_s16, 1 }
   0xf   : > { %977 = vmatpush1.msra.mxu0 %v844_v3  ;;  %1202 = vmatpush1.msra.mxu1 %v876_v4  ;;  %v839_v13 = vld [vmem:[%s4439_s2 + $0x48] sm:$0xff]  ;;  %v838_v15 = vld [vmem:[%s4439_s2 + $0x40] sm:$0xff]  ;;  %v837_v17 = vld [vmem:[%s4439_s2 + $0x38] sm:$0xff]  ;;  %v266_v49 = vsub.s32 0, %v2774_v44  ;;  %v324_v56 = vsub.s32 1, %v2774_v44  ;;  %vm438_vm0 = vcmp.gt.s32.totalorder %v2774_v44, 0  ;;  %s208_s12 = scalar_lea.vmem %s4441_s4, %s2334_s9 }
  0x10   : > { %978 = vmatprep.subr.mxu0 %v4446_v2  ;;  %1203 = vmatprep.subr.mxu1 %v4446_v2  ;;  %v871_v14 = vld [vmem:[%s4439_s2 + $0x148] sm:$0xff]  ;;  %v870_v16 = vld [vmem:[%s4439_s2 + $0x140] sm:$0xff]  ;;  %v869_v18 = vld [vmem:[%s4439_s2 + $0x138] sm:$0xff]  ;;  %s2808_s23 = scalar_lea.vmem %s4437_s0, %s2544_s8 }
  0x11   : > { %979 = vmatpush1.msra.mxu0 %v843_v5  ;;  %1204 = vmatpush1.msra.mxu1 %v875_v6  ;;  %v836_v19 = vld [vmem:[%s4439_s2 + $0x30] sm:$0xff]  ;;  %v835_v21 = vld [vmem:[%s4439_s2 + $0x28] sm:$0xff]  ;;  %v834_v23 = vld [vmem:[%s4439_s2 + $0x20] sm:$0xff] }
  0x12   : > { %980 = vmatprep.subr.mxu0 %v4446_v2  ;;  %1205 = vmatprep.subr.mxu1 %v4446_v2  ;;  %v868_v20 = vld [vmem:[%s4439_s2 + $0x130] sm:$0xff]  ;;  %v867_v22 = vld [vmem:[%s4439_s2 + $0x128] sm:$0xff]  ;;  %v866_v24 = vld [vmem:[%s4439_s2 + $0x120] sm:$0xff] }
  0x13   : > { %981 = vmatpush1.msra.mxu0 %v842_v7  ;;  %1206 = vmatpush1.msra.mxu1 %v874_v8  ;;  %v833_v25 = vld [vmem:[%s4439_s2 + $0x18] sm:$0xff]  ;;  %v832_v27 = vld [vmem:[%s4439_s2 + $0x10] sm:$0xff]  ;;  %v831_v29 = vld [vmem:[%s4439_s2 + $0x8] sm:$0xff] }
  0x14   : > { %982 = vmatprep.subr.mxu0 %v4446_v2  ;;  %1207 = vmatprep.subr.mxu1 %v4446_v2  ;;  %v865_v26 = vld [vmem:[%s4439_s2 + $0x118] sm:$0xff]  ;;  %v864_v28 = vld [vmem:[%s4439_s2 + $0x110] sm:$0xff]  ;;  %v863_v30 = vld [vmem:[%s4439_s2 + $0x108] sm:$0xff] }
  0x15   : > { %983 = vmatpush1.msra.mxu0 %v841_v9  ;;  %1208 = vmatpush1.msra.mxu1 %v873_v10  ;;  %v830_v31 = vld [vmem:[%s4439_s2] sm:$0xff]  ;;  %v861_v33 = vld [vmem:[%s4439_s2 + $0xf8] sm:$0xff]  ;;  %v860_v35 = vld [vmem:[%s4439_s2 + $0xf0] sm:$0xff] }
  0x16   : > { %984 = vmatprep.subr.mxu0 %v4446_v2  ;;  %1209 = vmatprep.subr.mxu1 %v4446_v2  ;;  %v862_v32 = vld [vmem:[%s4439_s2 + $0x100] sm:$0xff]  ;;  %v893_v34 = vld [vmem:[%s4439_s2 + $0x1f8] sm:$0xff]  ;;  %v892_v36 = vld [vmem:[%s4439_s2 + $0x1f0] sm:$0xff] }
  0x17   : > { %985 = vmatpush1.msra.mxu0 %v840_v11  ;;  %1210 = vmatpush1.msra.mxu1 %v872_v12  ;;  %v859_v37 = vld [vmem:[%s4439_s2 + $0xe8] sm:$0xff]  ;;  %v858_v40 = vld [vmem:[%s4439_s2 + $0xe0] sm:$0xff]  ;;  %v857_v42 = vld [vmem:[%s4439_s2 + $0xd8] sm:$0xff] }
  0x18   : > { %986 = vmatprep.subr.mxu0 %v4446_v2  ;;  %1211 = vmatprep.subr.mxu1 %v4446_v2  ;;  %v891_v38 = vld [vmem:[%s4439_s2 + $0x1e8] sm:$0xff]  ;;  %v890_v41 = vld [vmem:[%s4439_s2 + $0x1e0] sm:$0xff]  ;;  %v889_v43 = vld [vmem:[%s4439_s2 + $0x1d8] sm:$0xff] }
  0x19   : > { %987 = vmatpush1.msra.mxu0 %v839_v13  ;;  %1212 = vmatpush1.msra.mxu1 %v871_v14  ;;  %v856_v45 = vld [vmem:[%s4439_s2 + $0xd0] sm:$0xff]  ;;  %v855_v47 = vld [vmem:[%s4439_s2 + $0xc8] sm:$0xff]  ;;  %v209_v50 = vld [vmem:[%s4438_s1] sm:$0x3] }
  0x1a   : > { %988 = vmatprep.subr.mxu0 %v4446_v2  ;;  %1213 = vmatprep.subr.mxu1 %v4446_v2  ;;  %v888_v46 = vld [vmem:[%s4439_s2 + $0x1d0] sm:$0xff]  ;;  %v887_v48 = vld [vmem:[%s4439_s2 + $0x1c8] sm:$0xff]  ;;  %v854_v51 = vld [vmem:[%s4439_s2 + $0xc0] sm:$0xff]  ;;  %v2818_v55 = vrot.slane %v209_v50, %v266_v49  ;;  %v2841_v1 = vrot.slane %v209_v50, %v324_v56 }
  0x1b   : > { %989 = vmatpush1.msra.mxu0 %v838_v15  ;;  %1214 = vmatpush1.msra.mxu1 %v870_v16  ;;  %v886_v52 = vld [vmem:[%s4439_s2 + $0x1c0] sm:$0xff]  ;;  %v853_v53 = vld [vmem:[%s4439_s2 + $0xb8] sm:$0xff]  ;;  %v852_v58 = vld [vmem:[%s4439_s2 + $0xb0] sm:$0xff]  ;;  %v2875_v16 = vadd.s32 16, %v2774_v44 }
  0x1c   : > { %990 = vmatprep.subr.mxu0 %v4446_v2  ;;  %1215 = vmatprep.subr.mxu1 %v4446_v2  ;;  %v885_v54 = vld [vmem:[%s4439_s2 + $0x1b8] sm:$0xff]  ;;  %v884_v59 = vld [vmem:[%s4439_s2 + $0x1b0] sm:$0xff]  ;;  %v214_v60 = vld [vmem:[%s2808_s23 + $0x20] sm:$0xff] }
  0x1d   : > { %991 = vmatpush1.msra.mxu0 %v837_v17  ;;  %1216 = vmatpush1.msra.mxu1 %v869_v18  ;;  %v213_v57 = vld [vmem:[%s2808_s23 + $0x18] sm:$0xff]  ;;  %v215_v61 = vld [vmem:[%s2808_s23 + $0x28] sm:$0x3]  ;;  %v272_v3 = vmul.f32 %v2818_v55, %v214_v60  ;;  %v850_v4 = vld [vmem:[%s4439_s2 + $0xa0] sm:$0xff]  ;;  %4517 = vst [vmem:[#allocation2_spill] sm:$0xff] %v2875_v16  ;;  %vm449_vm1 = vcmp.lt.s32.totalorder %v2875_v16, 17 }
  0x1e   : > { %992 = vmatprep.subr.mxu0 %v4446_v2  ;;  %1217 = vmatprep.subr.mxu1 %v4446_v2  ;;  %v851_v62 = vld [vmem:[%s4439_s2 + $0xa8] sm:$0xff]  ;;  %v271_v0 = vmul.f32 %v2818_v55, %v213_v57  ;;  %v882_v5 = vld [vmem:[%s4439_s2 + $0x1a0] sm:$0xff]  ;;  %v273_v6 = vmul.f32 %v2818_v55, %v215_v61  ;;  %v849_v7 = vld [vmem:[%s4439_s2 + $0x98] sm:$0xff] }
  0x1f   : > { %993 = vmatpush1.msra.mxu0 %v836_v19  ;;  %1218 = vmatpush1.msra.mxu1 %v868_v20  ;;  %v883_v63 = vld [vmem:[%s4439_s2 + $0x1a8] sm:$0xff]  ;;  %v881_v8 = vld [vmem:[%s4439_s2 + $0x198] sm:$0xff]  ;;  %v330_v10 = vadd.f32 %v2841_v1, %v272_v3  ;;  %v216_v11 = vld [vmem:[%s2808_s23 + $0x30] sm:$0xff] }
  0x20   : > { %994 = vmatprep.subr.mxu0 %v4446_v2  ;;  %1219 = vmatprep.subr.mxu1 %v4446_v2  ;;  %v329_v9 = vadd.f32 %v2841_v1, %v271_v0  ;;  %v848_v12 = vld [vmem:[%s4439_s2 + $0x90] sm:$0xff]  ;;  %v331_v14 = vadd.f32 %v2841_v1, %v273_v6  ;;  %v217_v15 = vld [vmem:[%s2808_s23 + $0x38] sm:$0xff]  ;;  %v218_v17 = vld [vmem:[%s2808_s23 + $0x40] sm:$0x3] }
  0x21   : > { %995 = vmatpush1.msra.mxu0 %v835_v21  ;;  %1220 = vmatpush1.msra.mxu1 %v867_v22  ;;  %v880_v13 = vld [vmem:[%s4439_s2 + $0x190] sm:$0xff]  ;;  %v847_v18 = vld [vmem:[%s4439_s2 + $0x88] sm:$0xff]  ;;  %v274_v21 = vmul.f32 %v2818_v55, %v216_v11  ;;  %v2890_v22 = vrot.slane %v4446_v2, 1  ;;  %v941_v57 = vld [vmem:[%s4439_s2 + $0x378] sm:$0xff] }
  0x22   : > { %996 = vmatprep.subr.mxu0 %v4446_v2  ;;  %1221 = vmatprep.subr.mxu1 %v4446_v2  ;;  %v879_v19 = vld [vmem:[%s4439_s2 + $0x188] sm:$0xff]  ;;  %v2886_v20 = vmax.f32 %v329_v9, 0.0  ;;  %v220_v39 = vld [vmem:[%s2808_s23 + $0x50] sm:$0xff]  ;;  %v222_v0 = vld [vmem:[%s2808_s23 + $0x60] sm:$0xff] }
  0x23   : > { %997 = vmatpush1.msra.mxu0 %v834_v23  ;;  %1222 = vmatpush1.msra.mxu1 %v866_v24  ;;  %4518 = vst [vmem:[#allocation3_spill] sm:$0xff] %v2890_v22  ;;  %v2893_v23 = vmax.f32 %v330_v10, 0.0  ;;  %v275_v24 = vmul.f32 %v2818_v55, %v217_v15  ;;  %v278_v50 = vmul.f32 %v2818_v55, %v220_v39  ;;  %v906_v6 = vld [vmem:[%s4439_s2 + $0x260] sm:$0xff]  ;;  %v940_v9 = vld [vmem:[%s4439_s2 + $0x370] sm:$0xff]  ;;  %v227_v39 = vld [vmem:[%s2808_s23 + $0x88] sm:$0x3] }
  0x24   : > { %998 = vmatprep.subr.mxu0 %v4446_v2  ;;  %1223 = vmatprep.subr.mxu1 %v4446_v2 }
  0x25   : > { %999 = vmatpush1.msra.mxu0 %v833_v25  ;;  %1224 = vmatpush1.msra.mxu1 %v865_v26  ;;  %v846_v25 = vld [vmem:[%s4439_s2 + $0x80] sm:$0xff]  ;;  %v471_v26 = vsel %vm438_vm0, %v2886_v20, 0.0 }
  0x26   : > { %1000 = vmatprep.subr.mxu0 %v4446_v2  ;;  %1225 = vmatprep.subr.mxu1 %v4446_v2 }
  0x27   : > { %1001 = vmatpush1.msra.mxu0 %v832_v27  ;;  %1226 = vmatpush1.msra.mxu1 %v864_v28  ;;  %v385_v27 = vmax.f32 %v331_v14, 0.0  ;;  %v276_v28 = vmul.f32 %v2818_v55, %v218_v17 }
  0x28   : > { %1002 = vmatprep.subr.mxu0 %v4446_v2  ;;  %1227 = vmatprep.subr.mxu1 %v4446_v2 }
  0x29   : > { %1003 = vmatpush1.msra.mxu0 %v831_v29  ;;  %1228 = vmatpush1.msra.mxu1 %v863_v30  ;;  %v878_v29 = vld [vmem:[%s4439_s2 + $0x180] sm:$0xff]  ;;  %v2909_v30 = vrot.slane %v4446_v2, 2 }
  0x2a   : > { %1004 = vmatprep.subr.mxu0 %v4446_v2  ;;  %1229 = vmatprep.subr.mxu1 %v4446_v2  ;;  %v4602_v44 = vld [vmem:[#allocation3_spill] sm:$0xff] }
  0x2b   : > { %1005 = vmatpush1.msra.mxu0 %v830_v31  ;;  %1230 = vmatpush1.msra.mxu1 %v862_v32  ;;  %4519 = vst [vmem:[#allocation4_spill] sm:$0xff] %v2909_v30  ;;  %v332_v31 = vadd.f32 %v2841_v1, %v274_v21  ;;  %v219_v32 = vld [vmem:[%s2808_s23 + $0x48] sm:$0xff] }
  0x2c   : > { %1006 = vmatprep.subr.mxu0 %v4446_v2  ;;  %1231 = vmatprep.subr.mxu1 %v4446_v2 }
  0x2d   : > { %1007 = vmatpush2.msra.mxu0 %v861_v33  ;;  %1232 = vmatpush2.msra.mxu1 %v893_v34  ;;  %v576_v33 = vrot.slane %v471_v26, 1  ;;  %v577_v34 = vrot.slane %v2893_v23, 1 }
  0x2e   : > { %1008 = vmatprep.subr.mxu0 %v4446_v2  ;;  %1233 = vmatprep.subr.mxu1 %v4446_v2 }
  0x2f   : > { %1009 = vmatpush2.msra.mxu0 %v860_v35  ;;  %1234 = vmatpush2.msra.mxu1 %v892_v36  ;;  %v333_v35 = vadd.f32 %v2841_v1, %v275_v24  ;;  %v909_v36 = vld [vmem:[%s4439_s2 + $0x278] sm:$0xff] }
  0x30   : > { %1010 = vmatprep.subr.mxu0 %v4446_v2  ;;  %1235 = vmatprep.subr.mxu1 %v4446_v2  ;;  %v905_v24 = vld [vmem:[%s4439_s2 + $0x258] sm:$0xff] }
  0x31   : > { %1011 = vmatpush2.msra.mxu0 %v859_v37  ;;  %1236 = vmatpush2.msra.mxu1 %v891_v38  ;;  %v473_v37 = vsel %vm449_vm1, %v385_v27, 0.0  ;;  %v334_v38 = vadd.f32 %v2841_v1, %v276_v28  ;;  %v2945_v49 = vmax.f32 %v333_v35, 0.0  ;;  %v225_v28 = vld [vmem:[%s2808_s23 + $0x78] sm:$0xff] }
  0x32   : > { %1012 = vmatprep.subr.mxu0 %v4446_v2  ;;  %1237 = vmatprep.subr.mxu1 %v4446_v2 }
  0x33   : > { %1013 = vmatpush2.msra.mxu0 %v858_v40  ;;  %1238 = vmatpush2.msra.mxu1 %v890_v41  ;;  %v277_v40 = vmul.f32 %v2818_v55, %v219_v32  ;;  %v221_v41 = vld [vmem:[%s2808_s23 + $0x58] sm:$0x3] }
  0x34   : > { %1014 = vmatprep.subr.mxu0 %v4446_v2  ;;  %1239 = vmatprep.subr.mxu1 %v4446_v2 }
  0x35   : > { %1015 = vmatpush2.msra.mxu0 %v857_v42  ;;  %1240 = vmatpush2.msra.mxu1 %v889_v43  ;;  %v2935_v42 = vmax.f32 %v332_v31, 0.0  ;;  %v689_v43 = vrot.slane %v471_v26, 2  ;;  %v335_v56 = vadd.f32 %v2841_v1, %v277_v40  ;;  %v938_v40 = vld [vmem:[%s4439_s2 + $0x360] sm:$0xff] }
  0x36   : > { %1016 = vmatprep.subr.mxu0 %v4446_v2  ;;  %1241 = vmatprep.subr.mxu1 %v4446_v2 }
  0x37   : > { %1017 = vmatpush2.msra.mxu0 %v856_v45  ;;  %1242 = vmatpush2.msra.mxu1 %v888_v46  ;;  %v690_v45 = vrot.slane %v2893_v23, 2  ;;  %v908_v46 = vld [vmem:[%s4439_s2 + $0x270] sm:$0xff] }
  0x38   : > { %1018 = vmatprep.subr.mxu0 %v4446_v2  ;;  %1243 = vmatprep.subr.mxu1 %v4446_v2 }
  0x39   : > { %1019 = vmatpush2.msra.mxu0 %v855_v47  ;;  %1244 = vmatpush2.msra.mxu1 %v887_v48  ;;  %v2943_v47 = vsel %vm570_vm2, %v576_v33, %v577_v34  ;;  %v579_v48 = vrot.slane %v473_v37, 1 }
  0x3a   : > { %1020 = vmatprep.subr.mxu0 %v4446_v2  ;;  %1245 = vmatprep.subr.mxu1 %v4446_v2 }
  0x3b   : > { %1021 = vmatpush2.msra.mxu0 %v854_v51  ;;  %1246 = vmatpush2.msra.mxu1 %v886_v52  ;;  %v474_v51 = vsel %vm438_vm0, %v2935_v42, 0.0  ;;  %v388_v52 = vmax.f32 %v334_v38, 0.0  ;;  %v2972_v60 = vsel %vm570_vm2, %v577_v34, %v579_v48  ;;  %v283_v38 = vmul.f32 %v2818_v55, %v225_v28 }
  0x3c   : > { %1022 = vmatprep.subr.mxu0 %v4446_v2  ;;  %1247 = vmatprep.subr.mxu1 %v4446_v2  ;;  %v581_v61 = vrot.slane %v474_v51, 1  ;;  %v694_v11 = vrot.slane %v474_v51, 2 }
  0x3d   : > { %1023 = vmatpush2.msra.mxu0 %v853_v53  ;;  %1248 = vmatpush2.msra.mxu1 %v885_v54  ;;  %v279_v53 = vmul.f32 %v2818_v55, %v221_v41  ;;  %v907_v54 = vld [vmem:[%s4439_s2 + $0x268] sm:$0xff]  ;;  %v476_v3 = vsel %vm449_vm1, %v388_v52, 0.0 }
  0x3e   : > { %1024 = vmatprep.subr.mxu0 %v4446_v2  ;;  %1249 = vmatprep.subr.mxu1 %v4446_v2  ;;  %v584_v15 = vrot.slane %v476_v3, 1 }
  0x3f   : > { %1025 = vmatpush2.msra.mxu0 %v852_v58  ;;  %1250 = vmatpush2.msra.mxu1 %v884_v59  ;;  %v2965_v58 = vsel %vm683_vm3, %v689_v43, %v690_v45  ;;  %v692_v59 = vrot.slane %v473_v37, 2  ;;  %v904_v37 = vld [vmem:[%s4439_s2 + $0x250] sm:$0xff] }
  0x40   : > { %1026 = vmatprep.subr.mxu0 %v4446_v2  ;;  %1251 = vmatprep.subr.mxu1 %v4446_v2 }
  0x41   : > { %1027 = vmatpush2.msra.mxu0 %v851_v62  ;;  %1252 = vmatpush2.msra.mxu1 %v883_v63  ;;  %v582_v62 = vrot.slane %v2945_v49, 1  ;;  %v336_v63 = vadd.f32 %v2841_v1, %v278_v50  ;;  %v2997_v10 = vsel %vm683_vm3, %v690_v45, %v692_v59  ;;  %v341_v59 = vadd.f32 %v2841_v1, %v283_v38 }
  0x42   : > { %1028 = vmatprep.subr.mxu0 %v4446_v2  ;;  %1253 = vmatprep.subr.mxu1 %v4446_v2 }
  0x43   : > { %1029 = vmatpush2.msra.mxu0 %v850_v4  ;;  %1254 = vmatpush2.msra.mxu1 %v882_v5  ;;  %v337_v4 = vadd.f32 %v2841_v1, %v279_v53  ;;  %v223_v5 = vld [vmem:[%s2808_s23 + $0x68] sm:$0xff]  ;;  %v3003_v14 = vsel %vm570_vm2, %v581_v61, %v582_v62  ;;  %v3005_v17 = vmax.f32 %v336_v63, 0.0  ;;  %v937_v61 = vld [vmem:[%s4439_s2 + $0x358] sm:$0xff] }
  0x44   : > { %1030 = vmatprep.subr.mxu0 %v4446_v2  ;;  %1255 = vmatprep.subr.mxu1 %v4446_v2 }
  0x45   : > { %1031 = vmatpush2.msra.mxu0 %v849_v7  ;;  %1256 = vmatpush2.msra.mxu1 %v881_v8  ;;  %v2988_v7 = vmax.f32 %v335_v56, 0.0  ;;  %v224_v8 = vld [vmem:[%s2808_s23 + $0x70] sm:$0x3]  ;;  %v587_v32 = vrot.slane %v3005_v17, 1  ;;  %v285_v56 = vmul.f32 %v2818_v55, %v227_v39 }
  0x46   : > { %1032 = vmatprep.subr.mxu0 %v4446_v2  ;;  %1257 = vmatprep.subr.mxu1 %v4446_v2  ;;  %v282_v21 = vmul.f32 %v2818_v55, %v224_v8 }
  0x47   : > { %1033 = vmatpush2.msra.mxu0 %v848_v12  ;;  %1258 = vmatpush2.msra.mxu1 %v880_v13  ;;  %v695_v12 = vrot.slane %v2945_v49, 2  ;;  %v280_v13 = vmul.f32 %v2818_v55, %v222_v0 }
  0x48   : > { %1034 = vmatprep.subr.mxu0 %v4446_v2  ;;  %1259 = vmatprep.subr.mxu1 %v4446_v2  ;;  %v340_v35 = vadd.f32 %v2841_v1, %v282_v21 }
  0x49   : > { %1035 = vmatpush2.msra.mxu0 %v847_v18  ;;  %1260 = vmatpush2.msra.mxu1 %v879_v19  ;;  %v281_v18 = vmul.f32 %v2818_v55, %v223_v5  ;;  %v477_v19 = vsel %vm438_vm0, %v2988_v7, 0.0  ;;  %v3026_v26 = vsel %vm683_vm3, %v694_v11, %v695_v12  ;;  %v338_v27 = vadd.f32 %v2841_v1, %v280_v13  ;;  %v229_v11 = vld [vmem:[%s2808_s23 + $0x98] sm:$0xff] }
  0x4a   : > { %1036 = vmatprep.subr.mxu0 %v4446_v2  ;;  %1261 = vmatprep.subr.mxu1 %v4446_v2  ;;  %v586_v31 = vrot.slane %v477_v19, 1  ;;  %v699_v45 = vrot.slane %v477_v19, 2  ;;  %v3108_v13 = vmax.f32 %v341_v59, 0.0  ;;  %v287_v28 = vmul.f32 %v2818_v55, %v229_v11  ;;  %v233_v59 = vld [vmem:[%s2808_s23 + $0xb8] sm:$0x3] }
  0x4b   : > { %1037 = vmatpush2.msra.mxu0 %v846_v25  ;;  %1038 = vmatprep.mubr.f32.mxu0 %v2890_v22  ;;  %v939_v25 = vld [vmem:[%s4439_s2 + $0x368] sm:$0xff]  ;;  %v339_v33 = vadd.f32 %v2841_v1, %v281_v18  ;;  %v3058_v43 = vmax.f32 %v338_v27, 0.0  ;;  %v936_v18 = vld [vmem:[%s4439_s2 + $0x350] sm:$0xff] }
  0x4c   : > { %1262 = vmatpush2.msra.mxu1 %v878_v29  ;;  %2350 = vmatprep.mubr.msk.f32.mxu1 %vm438_vm0, %v2886_v20  ;;  %v3032_v29 = vsel %vm570_vm2, %v582_v62, %v584_v15  ;;  %v3063_v48 = vsel %vm570_vm2, %v586_v31, %v587_v32  ;;  %v230_v15 = vld [vmem:[%s2808_s23 + $0xa0] sm:$0x3]  ;;  %v483_v31 = vsel %vm438_vm0, %v3108_v13, 0.0 }
  0x4d   : > { %1039 = vmatmul.mubr.f32.vlgmr.msra.gmra.mxu0 %v4446_v2  ;;  %1264 = vmatmul.mubr.f32.vlgmr.msra.gmra.mxu1 %v2909_v30  ;;  %v3065_v51 = vmax.f32 %v339_v33, 0.0  ;;  %v480_v53 = vsel %vm438_vm0, %v3058_v43, 0.0  ;;  %v288_v33 = vmul.f32 %v2818_v55, %v230_v15 }
  0x4e   : > { %1424 = vmatprep.subr.mxu0 %v4446_v2  ;;  %1043 = vmatprep.mubr.f32.mxu0 %v2890_v22 }
  0x4f   : > { %1425 = vmatpush1.msra.mxu0 %v909_v36  ;;  %1268 = vmatprep.mubr.f32.mxu1 %v2893_v23  ;;  %v226_v36 = vld [vmem:[%s2808_s23 + $0x80] sm:$0xff]  ;;  %v705_v21 = vrot.slane %v3065_v51, 2 }
  0x50   : > { %1426 = vmatprep.subr.mxu0 %v4446_v2  ;;  %1649 = vmatprep.subr.mxu1 %v4446_v2  ;;  %v284_v52 = vmul.f32 %v2818_v55, %v226_v36 }
  0x51   : > { %1044 = vmatmul.mubr.f32.gmra.mxu0 %v4446_v2  ;;  %1269 = vmatmul.mubr.f32.gmra.mxu1 %v2909_v30 }
  0x52   : > { %1427 = vmatpush1.msra.mxu0 %v908_v46  ;;  %1048 = vmatprep.mubr.f32.mxu0 %v2943_v47  ;;  %v700_v46 = vrot.slane %v3005_v17, 2  ;;  %v342_v5 = vadd.f32 %v2841_v1, %v284_v52 }
  0x53   : > { %2351 = vmatprep.mubr.msk.f32.mxu1 %vm438_vm0, %v2935_v42  ;;  %1428 = vmatprep.subr.mxu0 %v4446_v2 }
  0x54   : > { %1429 = vmatpush1.msra.mxu0 %v907_v54  ;;  %1650 = vmatpush1.msra.mxu1 %v941_v57  ;;  %v394_v54 = vmax.f32 %v340_v35, 0.0  ;;  %v903_v57 = vld [vmem:[%s4439_s2 + $0x248] sm:$0xff]  ;;  %v3087_v62 = vsel %vm683_vm3, %v699_v45, %v700_v46  ;;  %v3125_v27 = vmax.f32 %v342_v5, 0.0 }
  0x55   : > { %2335 = vmatmul.mubr.msk.f32.gmra.mxu0 %vm438_vm0, %v2886_v20  ;;  %1274 = vmatmul.mubr.f32.gmra.mxu1 %v2965_v58  ;;  %v391_v20 = vmax.f32 %v337_v4, 0.0  ;;  %v592_v4 = vrot.slane %v3065_v51, 1  ;;  %v935_v35 = vld [vmem:[%s4439_s2 + $0x348] sm:$0xff] }
  0x56   : > { %1053 = vmatprep.mubr.f32.mxu0 %v2972_v60  ;;  %1278 = vmatprep.mubr.f32.mxu1 %v2945_v49  ;;  %v482_v8 = vsel %vm449_vm1, %v394_v54, 0.0  ;;  %v597_v45 = vrot.slane %v3125_v27, 1  ;;  %v232_v54 = vld [vmem:[%s2808_s23 + $0xb0] sm:$0xff] }
  0x57   : > { %1430 = vmatprep.subr.mxu0 %v4446_v2  ;;  %1651 = vmatprep.subr.mxu1 %v4446_v2  ;;  %v479_v34 = vsel %vm449_vm1, %v391_v20, 0.0  ;;  %v704_v20 = vrot.slane %v480_v53, 2  ;;  %v290_v11 = vmul.f32 %v2818_v55, %v232_v54 }
  0x58   : > { %1431 = vmatpush1.msra.mxu0 %v906_v6  ;;  %1652 = vmatpush1.msra.mxu1 %v940_v9  ;;  %v589_v50 = vrot.slane %v479_v34, 1  ;;  %v702_v63 = vrot.slane %v479_v34, 2  ;;  %v228_v6 = vld [vmem:[%s2808_s23 + $0x90] sm:$0xff]  ;;  %v343_v9 = vadd.f32 %v2841_v1, %v285_v56  ;;  %v901_v34 = vld [vmem:[%s4439_s2 + $0x238] sm:$0xff] }
  0x59   : > { %1054 = vmatmul.mubr.f32.gmra.mxu0 %v2893_v23  ;;  %1279 = vmatmul.mubr.f32.gmra.mxu1 %v2997_v10  ;;  %v697_v23 = vrot.slane %v476_v3, 2  ;;  %v591_v3 = vrot.slane %v480_v53, 1  ;;  %v3146_v36 = vsel %vm683_vm3, %v704_v20, %v705_v21  ;;  %v346_v53 = vadd.f32 %v2841_v1, %v288_v33  ;;  %v900_v56 = vld [vmem:[%s4439_s2 + $0x230] sm:$0xff]  ;;  %v899_v20 = vld [vmem:[%s4439_s2 + $0x228] sm:$0xff] }
  0x5a   : > { %1058 = vmatprep.mubr.f32.mxu0 %v3003_v14  ;;  %2352 = vmatprep.mubr.msk.f32.mxu1 %vm438_vm0, %v2988_v7  ;;  %v3091_v0 = vsel %vm570_vm2, %v587_v32, %v589_v50  ;;  %v3117_v19 = vsel %vm683_vm3, %v700_v46, %v702_v63  ;;  %v397_v32 = vmax.f32 %v343_v9, 0.0  ;;  %v345_v46 = vadd.f32 %v2841_v1, %v287_v28  ;;  %v231_v50 = vld [vmem:[%s2808_s23 + $0xa8] sm:$0xff] }
  0x5b   : > { %1432 = vmatprep.subr.mxu0 %v4446_v2  ;;  %1653 = vmatprep.subr.mxu1 %v4446_v2  ;;  %v3056_v41 = vsel %vm683_vm3, %v695_v12, %v697_v23  ;;  %v902_v12 = vld [vmem:[%s4439_s2 + $0x240] sm:$0xff]  ;;  %v594_v23 = vrot.slane %v482_v8, 1  ;;  %v289_v5 = vmul.f32 %v2818_v55, %v231_v50  ;;  %v400_v15 = vmax.f32 %v346_v53, 0.0  ;;  %v236_v50 = vld [vmem:[%s2808_s23 + $0xd0] sm:$0x3] }
  0x5c   : > { %1433 = vmatpush1.msra.mxu0 %v905_v24  ;;  %1654 = vmatpush1.msra.mxu1 %v939_v25  ;;  %v286_v24 = vmul.f32 %v2818_v55, %v228_v6  ;;  %v3123_v25 = vsel %vm570_vm2, %v591_v3, %v592_v4  ;;  %v485_v52 = vsel %vm449_vm1, %v397_v32, 0.0  ;;  %v3185_v9 = vmax.f32 %v345_v46, 0.0 }
  0x5d   : > { %2336 = vmatmul.mubr.msk.f32.gmra.mxu0 %vm438_vm0, %v2935_v42  ;;  %1284 = vmatmul.mubr.f32.gmra.mxu1 %v3026_v26  ;;  %v3151_v39 = vsel %vm570_vm2, %v592_v4, %v594_v23  ;;  %v710_v4 = vrot.slane %v3125_v27, 2  ;;  %v712_v23 = vrot.slane %v485_v52, 2  ;;  %v347_v28 = vadd.f32 %v2841_v1, %v289_v5 }
  0x5e   : > { %1063 = vmatprep.mubr.f32.mxu0 %v3032_v29  ;;  %1288 = vmatprep.mubr.f32.mxu1 %v3005_v17  ;;  %v344_v38 = vadd.f32 %v2841_v1, %v286_v24 }
  0x5f   : > { %1434 = vmatprep.subr.mxu0 %v4446_v2  ;;  %1655 = vmatprep.subr.mxu1 %v4446_v2  ;;  %v3236_v53 = vsel %vm683_vm3, %v710_v4, %v712_v23  ;;  %v3238_v54 = vmax.f32 %v347_v28, 0.0 }
  0x60   : > { %1435 = vmatpush1.msra.mxu0 %v904_v37  ;;  %1656 = vmatpush1.msra.mxu1 %v938_v40  ;;  %v707_v37 = vrot.slane %v482_v8, 2  ;;  %v596_v40 = vrot.slane %v483_v31, 1  ;;  %v3177_v3 = vmax.f32 %v344_v38, 0.0  ;;  %v599_v8 = vrot.slane %v485_v52, 1  ;;  %v932_v52 = vld [vmem:[%s4439_s2 + $0x330] sm:$0xff] }
  0x61   : > { %1064 = vmatmul.mubr.f32.gmra.mxu0 %v2945_v49  ;;  %1289 = vmatmul.mubr.f32.gmra.mxu1 %v3056_v41  ;;  %4520 = vst [vmem:[#allocation5_spill] sm:$0xff] %v3238_v54 }
  0x62   : > { %1068 = vmatprep.mubr.f32.mxu0 %v3063_v48  ;;  %2353 = vmatprep.mubr.msk.f32.mxu1 %vm438_vm0, %v3058_v43  ;;  %v3175_v63 = vsel %vm683_vm3, %v705_v21, %v707_v37  ;;  %v3183_v6 = vsel %vm570_vm2, %v596_v40, %v597_v45  ;;  %v933_v21 = vld [vmem:[%s4439_s2 + $0x338] sm:$0xff]  ;;  %v3212_v32 = vsel %vm570_vm2, %v597_v45, %v599_v8  ;;  %v488_v37 = vsel %vm449_vm1, %v400_v15, 0.0  ;;  %v235_v40 = vld [vmem:[%s2808_s23 + $0xc8] sm:$0xff]  ;;  %v898_v45 = vld [vmem:[%s4439_s2 + $0x220] sm:$0xff] }
  0x63   : > { %1436 = vmatprep.subr.mxu0 %v4446_v2  ;;  %1657 = vmatprep.subr.mxu1 %v4446_v2  ;;  %v293_v8 = vmul.f32 %v2818_v55, %v235_v40  ;;  %v897_v15 = vld [vmem:[%s4439_s2 + $0x218] sm:$0xff]  ;;  %v717_v23 = vrot.slane %v488_v37, 2 }
  0x64   : > { %1437 = vmatpush1.msra.mxu0 %v903_v57  ;;  %1658 = vmatpush1.msra.mxu1 %v937_v61  ;;  %v709_v57 = vrot.slane %v483_v31, 2  ;;  %v934_v61 = vld [vmem:[%s4439_s2 + $0x340] sm:$0xff] }
  0x65   : > { %2337 = vmatmul.mubr.msk.f32.gmra.mxu0 %vm438_vm0, %v2988_v7  ;;  %1294 = vmatmul.mubr.f32.gmra.mxu1 %v3087_v62  ;;  %v234_v31 = vld [vmem:[%s2808_s23 + $0xc0] sm:$0xff] }
  0x66   : > { %1073 = vmatprep.mubr.f32.mxu0 %v3091_v0  ;;  %1298 = vmatprep.mubr.f32.mxu1 %v3065_v51  ;;  %v3206_v24 = vsel %vm683_vm3, %v709_v57, %v710_v4  ;;  %v292_v46 = vmul.f32 %v2818_v55, %v234_v31  ;;  %v715_v57 = vrot.slane %v3185_v9, 2  ;;  %v489_v4 = vsel %vm438_vm0, %v3238_v54, 0.0 }
  0x67   : > { %1438 = vmatprep.subr.mxu0 %v4446_v2  ;;  %1659 = vmatprep.subr.mxu1 %v4446_v2  ;;  %v606_v31 = vrot.slane %v489_v4, 1 }
  0x68   : > { %1439 = vmatpush1.msra.mxu0 %v902_v12  ;;  %1660 = vmatpush1.msra.mxu1 %v936_v18  ;;  %v486_v12 = vsel %vm438_vm0, %v3177_v3, 0.0  ;;  %v291_v18 = vmul.f32 %v2818_v55, %v233_v59 }
  0x69   : > { %1074 = vmatmul.mubr.f32.gmra.mxu0 %v3005_v17  ;;  %1299 = vmatmul.mubr.f32.gmra.mxu1 %v3117_v19  ;;  %v601_v33 = vrot.slane %v486_v12, 1 }
  0x6a   : > { %1078 = vmatprep.mubr.f32.mxu0 %v3123_v25  ;;  %2354 = vmatprep.mubr.msk.f32.mxu1 %vm438_vm0, %v3108_v13  ;;  %v349_v38 = vadd.f32 %v2841_v1, %v291_v18  ;;  %v350_v18 = vadd.f32 %v2841_v1, %v292_v46 }
  0x6b   : > { %1440 = vmatprep.subr.mxu0 %v4446_v2  ;;  %1661 = vmatprep.subr.mxu1 %v4446_v2 }
  0x6c   : > { %1441 = vmatpush1.msra.mxu0 %v901_v34  ;;  %1662 = vmatpush1.msra.mxu1 %v935_v35  ;;  %v602_v34 = vrot.slane %v3185_v9, 1  ;;  %v348_v35 = vadd.f32 %v2841_v1, %v290_v11  ;;  %v403_v11 = vmax.f32 %v349_v38, 0.0  ;;  %v237_v38 = vld [vmem:[%s2808_s23 + $0xd8] sm:$0xff]  ;;  %v3288_v46 = vmax.f32 %v350_v18, 0.0 }
  0x6d   : > { %2338 = vmatmul.mubr.msk.f32.gmra.mxu0 %vm438_vm0, %v3058_v43  ;;  %1304 = vmatmul.mubr.f32.gmra.mxu1 %v3146_v36 }
  0x6e   : > { %1083 = vmatprep.mubr.f32.mxu0 %v3151_v39  ;;  %1308 = vmatprep.mubr.f32.mxu1 %v3125_v27  ;;  %v3243_v59 = vsel %vm570_vm2, %v601_v33, %v602_v34  ;;  %v3245_v5 = vmax.f32 %v348_v35, 0.0  ;;  %v351_v35 = vadd.f32 %v2841_v1, %v293_v8  ;;  %v491_v40 = vsel %vm449_vm1, %v403_v11, 0.0  ;;  %4522 = vst [vmem:[#allocation7_spill] sm:$0xff] %v3288_v46 }
  0x6f   : > { %1442 = vmatprep.subr.mxu0 %v4446_v2  ;;  %1663 = vmatprep.subr.mxu1 %v4446_v2  ;;  %v295_v11 = vmul.f32 %v2818_v55, %v237_v38 }
  0x70   : > { %1443 = vmatpush1.msra.mxu0 %v900_v56  ;;  %1664 = vmatpush1.msra.mxu1 %v934_v61  ;;  %v714_v56 = vrot.slane %v486_v12, 2  ;;  %v604_v61 = vrot.slane %v488_v37, 1  ;;  %4521 = vst [vmem:[#allocation6_spill] sm:$0xff] %v3245_v5  ;;  %v294_v12 = vmul.f32 %v2818_v55, %v236_v50  ;;  %v607_v33 = vrot.slane %v3245_v5, 1  ;;  %v239_v50 = vld [vmem:[%s2808_s23 + $0xe8] sm:$0x3] }
  0x71   : > { %1084 = vmatmul.mubr.f32.gmra.mxu0 %v3065_v51  ;;  %1309 = vmatmul.mubr.f32.gmra.mxu1 %v3175_v63  ;;  %v720_v8 = vrot.slane %v3245_v5, 2  ;;  %v3305_v18 = vmax.f32 %v351_v35, 0.0  ;;  %v929_v35 = vld [vmem:[%s4439_s2 + $0x318] sm:$0xff] }
  0x72   : > { %1088 = vmatprep.mubr.f32.mxu0 %v3183_v6  ;;  %2355 = vmatprep.mubr.msk.f32.mxu1 %vm438_vm0, %v3177_v3  ;;  %v3271_v28 = vsel %vm570_vm2, %v602_v34, %v604_v61  ;;  %v352_v37 = vadd.f32 %v2841_v1, %v294_v12  ;;  %v896_v34 = vld [vmem:[%s4439_s2 + $0x210] sm:$0xff]  ;;  %v719_v61 = vrot.slane %v489_v4, 2  ;;  %v3303_v12 = vsel %vm570_vm2, %v606_v31, %v607_v33  ;;  %v895_v31 = vld [vmem:[%s4439_s2 + $0x208] sm:$0xff] }
  0x73   : > { %1444 = vmatprep.subr.mxu0 %v4446_v2  ;;  %1665 = vmatprep.subr.mxu1 %v4446_v2  ;;  %4524 = vst [vmem:[#allocation9_spill] sm:$0xff] %v3305_v18  ;;  %v612_v30 = vrot.slane %v3305_v18, 1 }
  0x74   : > { %1445 = vmatpush1.msra.mxu0 %v899_v20  ;;  %1666 = vmatpush1.msra.mxu1 %v933_v21  ;;  %v931_v20 = vld [vmem:[%s4439_s2 + $0x328] sm:$0xff]  ;;  %v3267_v21 = vsel %vm683_vm3, %v714_v56, %v715_v57  ;;  %v3297_v56 = vsel %vm683_vm3, %v715_v57, %v717_v23  ;;  %v492_v57 = vsel %vm438_vm0, %v3288_v46, 0.0  ;;  %v406_v4 = vmax.f32 %v352_v37, 0.0 }
  0x75   : > { %2339 = vmatmul.mubr.msk.f32.gmra.mxu0 %vm438_vm0, %v3108_v13  ;;  %1314 = vmatmul.mubr.f32.gmra.mxu1 %v3206_v24  ;;  %4523 = vst [vmem:[#allocation8_spill] sm:$0xff] %v3297_v56  ;;  %v297_v23 = vmul.f32 %v2818_v55, %v239_v50  ;;  %v3326_v38 = vsel %vm683_vm3, %v719_v61, %v720_v8  ;;  %v722_v37 = vrot.slane %v491_v40, 2 }
  0x76   : > { %1093 = vmatprep.mubr.f32.mxu0 %v3212_v32  ;;  %1318 = vmatprep.mubr.f32.mxu1 %v3185_v9  ;;  %4525 = vst [vmem:[#allocation10_spill] sm:$0xff] %v3326_v38 }
  0x77   : > { %1446 = vmatprep.subr.mxu0 %v4446_v2  ;;  %1667 = vmatprep.subr.mxu1 %v4446_v2  ;;  %v355_v61 = vadd.f32 %v2841_v1, %v297_v23  ;;  %v3356_v23 = vsel %vm683_vm3, %v720_v8, %v722_v37 }
  0x78   : > { %1447 = vmatpush1.msra.mxu0 %v898_v45  ;;  %1668 = vmatpush1.msra.mxu1 %v932_v52  ;;  %v238_v45 = vld [vmem:[%s2808_s23 + $0xe0] sm:$0xff]  ;;  %4527 = vst [vmem:[#allocation12_spill] sm:$0xff] %v3356_v23 }
  0x79   : > { %1094 = vmatmul.mubr.f32.gmra.mxu0 %v3125_v27  ;;  %1319 = vmatmul.mubr.f32.gmra.mxu1 %v3236_v53  ;;  %v930_v52 = vld [vmem:[%s4439_s2 + $0x320] sm:$0xff] }
  0x7a   : > { %1098 = vmatprep.mubr.f32.mxu0 %v3243_v59  ;;  %2356 = vmatprep.mubr.msk.f32.mxu1 %vm438_vm0, %v3238_v54 }
  0x7b   : > { %1448 = vmatprep.subr.mxu0 %v4446_v2  ;;  %1669 = vmatprep.subr.mxu1 %v4446_v2 }
  0x7c   : > { %1449 = vmatpush1.msra.mxu0 %v897_v15  ;;  %1670 = vmatpush1.msra.mxu1 %v931_v20  ;;  %v609_v15 = vrot.slane %v491_v40, 1  ;;  %v296_v20 = vmul.f32 %v2818_v55, %v238_v45  ;;  %v353_v45 = vadd.f32 %v2841_v1, %v295_v11  ;;  %v494_v40 = vsel %vm449_vm1, %v406_v4, 0.0  ;;  %v241_v11 = vld [vmem:[%s2808_s23 + $0xf8] sm:$0xff]  ;;  %v928_v4 = vld [vmem:[%s4439_s2 + $0x310] sm:$0xff] }
  0x7d   : > { %2340 = vmatmul.mubr.msk.f32.gmra.mxu0 %vm438_vm0, %v3177_v3  ;;  %1324 = vmatmul.mubr.f32.gmra.mxu1 %v3267_v21 }
  0x7e   : > { %1103 = vmatprep.mubr.f32.mxu0 %v3271_v28  ;;  %1328 = vmatprep.mubr.f32.mxu1 %v3245_v5  ;;  %v3332_v50 = vsel %vm570_vm2, %v607_v33, %v609_v15  ;;  %v354_v22 = vadd.f32 %v2841_v1, %v296_v20  ;;  %v894_v33 = vld [vmem:[%s4439_s2 + $0x200] sm:$0xff] }
  0x7f   : > { %1450 = vmatprep.subr.mxu0 %v4446_v2  ;;  %1671 = vmatprep.subr.mxu1 %v4446_v2  ;;  %4526 = vst [vmem:[#allocation11_spill] sm:$0xff] %v3332_v50  ;;  %v242_v20 = vld [vmem:[%s2808_s23 + $0x100] sm:$0x3] }
  0x80   : > { %1451 = vmatpush1.msra.mxu0 %v896_v34  ;;  %1672 = vmatpush1.msra.mxu1 %v930_v52  ;;  %v240_v34 = vld [vmem:[%s2808_s23 + $0xf0] sm:$0xff]  ;;  %v611_v52 = vrot.slane %v492_v57, 1  ;;  %v300_v37 = vmul.f32 %v2818_v55, %v242_v20 }
  0x81   : > { %1104 = vmatmul.mubr.f32.gmra.mxu0 %v3185_v9  ;;  %1329 = vmatmul.mubr.f32.gmra.mxu1 %v3297_v56  ;;  %v298_v15 = vmul.f32 %v2818_v55, %v240_v34  ;;  %v614_v56 = vrot.slane %v494_v40, 1 }
  0x82   : > { %1108 = vmatprep.mubr.f32.mxu0 %v3303_v12  ;;  %2357 = vmatprep.mubr.msk.f32.mxu1 %vm438_vm0, %v3288_v46  ;;  %v3363_v34 = vsel %vm570_vm2, %v611_v52, %v612_v30  ;;  %v927_v52 = vld [vmem:[%s4439_s2 + $0x308] sm:$0xff] }
  0x83   : > { %1452 = vmatprep.subr.mxu0 %v4446_v2  ;;  %1673 = vmatprep.subr.mxu1 %v4446_v2  ;;  %v725_v2 = vrot.slane %v3305_v18, 2  ;;  %4530 = vst [vmem:[#allocation14_spill] sm:$0xff] %v3363_v34 }
  0x84   : > { %1453 = vmatpush1.msra.mxu0 %v895_v31  ;;  %1674 = vmatpush1.msra.mxu1 %v929_v35  ;;  %v3358_v31 = vmax.f32 %v353_v45, 0.0  ;;  %v724_v35 = vrot.slane %v492_v57, 2  ;;  %v409_v57 = vmax.f32 %v355_v61, 0.0  ;;  %v356_v45 = vadd.f32 %v2841_v1, %v298_v15 }
  0x85   : > { %2341 = vmatmul.mubr.msk.f32.gmra.mxu0 %vm438_vm0, %v3238_v54  ;;  %1334 = vmatmul.mubr.f32.gmra.mxu1 %v3326_v38  ;;  %v4529_v38 = vmov 0.0   ;;  %v3365_v54 = vmax.f32 %v354_v22, 0.0  ;;  %v925_v22 = vld [vmem:[%s4439_s2 + $0x2f8] sm:$0xff] }
  0x86   : > { %1113 = vmatprep.mubr.f32.mxu0 %v3332_v50  ;;  %1338 = vmatprep.mubr.f32.mxu1 %v3305_v18  ;;  %4528 = vst [vmem:[#allocation13_spill] sm:$0xff] %v3358_v31  ;;  %v299_v50 = vmul.f32 %v2818_v55, %v241_v11  ;;  %v495_v8 = vsel %vm438_vm0, %v3358_v31, 0.0  ;;  %v3387_v61 = vsel %vm683_vm3, %v724_v35, %v725_v2  ;;  %v727_v11 = vrot.slane %v494_v40, 2 }
  0x87   : > { %1454 = vmatprep.subr.mxu0 %v4529_v38  ;;  %4531 = vst [vmem:[#allocation15_spill] sm:$0xff] %v3365_v54  ;;  %1675 = vmatprep.subr.mxu1 %v4529_v38  ;;  %4532 = vst [vmem:[#allocation16_spill] sm:$0xff] %v3387_v61  ;;  %v616_v15 = vrot.slane %v495_v8, 1  ;;  %v617_v20 = vrot.slane %v3365_v54, 1  ;;  %v497_v35 = vsel %vm449_vm1, %v409_v57, 0.0  ;;  %v358_v40 = vadd.f32 %v2841_v1, %v300_v37  ;;  %v926_v57 = vld [vmem:[%s4439_s2 + $0x300] sm:$0xff] }
  0x88   : > { %1455 = vmatpush1.msra.mxu0 %v894_v33  ;;  %1676 = vmatpush1.msra.mxu1 %v928_v4  ;;  %v3391_v33 = vsel %vm570_vm2, %v612_v30, %v614_v56  ;;  %v357_v4 = vadd.f32 %v2841_v1, %v299_v50  ;;  %v924_v30 = vld [vmem:[%s4439_s2 + $0x2f0] sm:$0xff]  ;;  %v3408_v56 = vmax.f32 %v356_v45, 0.0  ;;  %v245_v50 = vld [vmem:[%s2808_s23 + $0x118] sm:$0x3]  ;;  %v3417_v37 = vsel %vm683_vm3, %v725_v2, %v727_v11 }
  0x89   : > { %1114 = vmatmul.mubr.f32.gmra.mxu0 %v3245_v5  ;;  %1339 = vmatmul.mubr.f32.gmra.mxu1 %v3356_v23  ;;  %4533 = vst [vmem:[#allocation17_spill] sm:$0xff] %v3391_v33  ;;  %v243_v23 = vld [vmem:[%s2808_s23 + $0x108] sm:$0xff]  ;;  %4535 = vst [vmem:[#allocation19_spill] sm:$0xff] %v3417_v37  ;;  %v3423_v45 = vsel %vm570_vm2, %v616_v15, %v617_v20  ;;  %v957_v11 = vld [vmem:[%s4439_s2 + $0x3f8] sm:$0xff] }
  0x8a   : > { %1118 = vmatprep.mubr.f32.mxu0 %v3363_v34  ;;  %2358 = vmatprep.mubr.msk.f32.mxu1 %vm438_vm0, %v3358_v31  ;;  %v244_v34 = vld [vmem:[%s2808_s23 + $0x110] sm:$0xff]  ;;  %4534 = vst [vmem:[#allocation18_spill] sm:$0xff] %v3408_v56  ;;  %4536 = vst [vmem:[#allocation20_spill] sm:$0xff] %v3423_v45  ;;  %v3425_v5 = vmax.f32 %v357_v4, 0.0  ;;  %v498_v2 = vsel %vm438_vm0, %v3408_v56, 0.0  ;;  %v732_v4 = vrot.slane %v497_v35, 2 }
  0x8b   : > { %1456 = vmatprep.subr.mxu0 %v4529_v38  ;;  %1677 = vmatprep.subr.mxu1 %v4529_v38 }
  0x8c   : > { %1457 = vmatpush2.msra.mxu0 %v925_v22  ;;  %1678 = vmatpush1.msra.mxu1 %v927_v52  ;;  %v729_v22 = vrot.slane %v495_v8, 2  ;;  %v730_v52 = vrot.slane %v3365_v54, 2  ;;  %4537 = vst [vmem:[#allocation21_spill] sm:$0xff] %v3425_v5  ;;  %v412_v8 = vmax.f32 %v358_v40, 0.0 }
  0x8d   : > { %2342 = vmatmul.mubr.msk.f32.gmra.mxu0 %vm438_vm0, %v3288_v46  ;;  %1344 = vmatmul.mubr.f32.gmra.mxu1 %v3387_v61  ;;  %v301_v61 = vmul.f32 %v2818_v55, %v243_v23  ;;  %v619_v46 = vrot.slane %v497_v35, 1  ;;  %v303_v23 = vmul.f32 %v2818_v55, %v245_v50  ;;  %v621_v50 = vrot.slane %v498_v2, 1 }
  0x8e   : > { %1123 = vmatprep.mubr.f32.mxu0 %v3391_v33  ;;  %1348 = vmatprep.mubr.f32.mxu1 %v3365_v54  ;;  %v302_v33 = vmul.f32 %v2818_v55, %v244_v34  ;;  %v923_v34 = vld [vmem:[%s4439_s2 + $0x2e8] sm:$0xff]  ;;  %v3446_v15 = vsel %vm683_vm3, %v729_v22, %v730_v52  ;;  %v500_v35 = vsel %vm449_vm1, %v412_v8, 0.0  ;;  %v956_v8 = vld [vmem:[%s4439_s2 + $0x3f0] sm:$0xff] }
  0x8f   : > { %1458 = vmatprep.subr.mxu0 %v4529_v38  ;;  %1679 = vmatprep.subr.mxu1 %v4529_v38  ;;  %4538 = vst [vmem:[#allocation22_spill] sm:$0xff] %v3446_v15  ;;  %v359_v40 = vadd.f32 %v2841_v1, %v301_v61  ;;  %v361_v61 = vadd.f32 %v2841_v1, %v303_v23  ;;  %v247_v22 = vld [vmem:[%s2808_s23 + $0x128] sm:$0xff] }
  0x90   : > { %1459 = vmatpush2.msra.mxu0 %v924_v30  ;;  %1680 = vmatpush1.msra.mxu1 %v926_v57  ;;  %v3451_v30 = vsel %vm570_vm2, %v617_v20, %v619_v46  ;;  %v622_v57 = vrot.slane %v3425_v5, 1  ;;  %v922_v46 = vld [vmem:[%s4439_s2 + $0x2e0] sm:$0xff]  ;;  %v248_v20 = vld [vmem:[%s2808_s23 + $0x130] sm:$0x3]  ;;  %v3475_v23 = vsel %vm683_vm3, %v730_v52, %v732_v4 }
  0x91   : > { %1124 = vmatmul.mubr.f32.gmra.mxu0 %v3305_v18  ;;  %1349 = vmatmul.mubr.f32.gmra.mxu1 %v3417_v37  ;;  %4539 = vst [vmem:[#allocation23_spill] sm:$0xff] %v3451_v30  ;;  %v360_v37 = vadd.f32 %v2841_v1, %v302_v33  ;;  %v734_v33 = vrot.slane %v498_v2, 2  ;;  %4540 = vst [vmem:[#allocation24_spill] sm:$0xff] %v3475_v23  ;;  %v415_v4 = vmax.f32 %v361_v61, 0.0  ;;  %v737_v61 = vrot.slane %v500_v35, 2 }
  0x92   : > { %1128 = vmatprep.mubr.f32.mxu0 %v3423_v45  ;;  %2359 = vmatprep.mubr.msk.f32.mxu1 %vm438_vm0, %v3408_v56  ;;  %v246_v45 = vld [vmem:[%s2808_s23 + $0x120] sm:$0xff]  ;;  %v3483_v2 = vsel %vm570_vm2, %v621_v50, %v622_v57 }
  0x93   : > { %1460 = vmatprep.subr.mxu0 %v4529_v38  ;;  %1681 = vmatprep.subr.mxu1 %v4529_v38  ;;  %4542 = vst [vmem:[#allocation26_spill] sm:$0xff] %v3483_v2  ;;  %v3485_v18 = vmax.f32 %v360_v37, 0.0  ;;  %v921_v37 = vld [vmem:[%s4439_s2 + $0x2d8] sm:$0xff] }
  0x94   : > { %1461 = vmatpush2.msra.mxu0 %v923_v34  ;;  %1682 = vmatpush2.msra.mxu1 %v957_v11  ;;  %v3477_v34 = vmax.f32 %v359_v40, 0.0  ;;  %v735_v11 = vrot.slane %v3425_v5, 2  ;;  %v955_v40 = vld [vmem:[%s4439_s2 + $0x3e8] sm:$0xff] }
  0x95   : > { %2343 = vmatmul.mubr.msk.f32.gmra.mxu0 %vm438_vm0, %v3358_v31  ;;  %1354 = vmatmul.mubr.f32.gmra.mxu1 %v3446_v15  ;;  %v304_v15 = vmul.f32 %v2818_v55, %v246_v45  ;;  %v624_v31 = vrot.slane %v500_v35, 1  ;;  %4543 = vst [vmem:[#allocation27_spill] sm:$0xff] %v3485_v18  ;;  %v306_v45 = vmul.f32 %v2818_v55, %v248_v20  ;;  %v503_v35 = vsel %vm449_vm1, %v415_v4, 0.0  ;;  %v251_v4 = vld [vmem:[%s2808_s23 + $0x148] sm:$0x3] }
  0x96   : > { %1133 = vmatprep.mubr.f32.mxu0 %v3451_v30  ;;  %1358 = vmatprep.mubr.f32.mxu1 %v3425_v5  ;;  %4541 = vst [vmem:[#allocation25_spill] sm:$0xff] %v3477_v34  ;;  %v305_v30 = vmul.f32 %v2818_v55, %v247_v22  ;;  %v501_v52 = vsel %vm438_vm0, %v3477_v34, 0.0  ;;  %v3506_v50 = vsel %vm683_vm3, %v734_v33, %v735_v11  ;;  %v250_v33 = vld [vmem:[%s2808_s23 + $0x140] sm:$0xff] }
  0x97   : > { %1462 = vmatprep.subr.mxu0 %v4529_v38  ;;  %1683 = vmatprep.subr.mxu1 %v4529_v38  ;;  %4544 = vst [vmem:[#allocation28_spill] sm:$0xff] %v3506_v50  ;;  %v362_v22 = vadd.f32 %v2841_v1, %v304_v15  ;;  %v3512_v20 = vsel %vm570_vm2, %v622_v57, %v624_v31  ;;  %v920_v31 = vld [vmem:[%s4439_s2 + $0x2d0] sm:$0xff]  ;;  %v954_v57 = vld [vmem:[%s4439_s2 + $0x3e0] sm:$0xff] }
  0x98   : > { %1463 = vmatpush2.msra.mxu0 %v922_v46  ;;  %1684 = vmatpush2.msra.mxu1 %v956_v8  ;;  %v249_v46 = vld [vmem:[%s2808_s23 + $0x138] sm:$0xff]  ;;  %4545 = vst [vmem:[#allocation29_spill] sm:$0xff] %v3512_v20  ;;  %v626_v8 = vrot.slane %v501_v52, 1  ;;  %v364_v15 = vadd.f32 %v2841_v1, %v306_v45  ;;  %v3536_v45 = vsel %vm683_vm3, %v735_v11, %v737_v61 }
  0x99   : > { %1134 = vmatmul.mubr.f32.gmra.mxu0 %v3365_v54  ;;  %1359 = vmatmul.mubr.f32.gmra.mxu1 %v3475_v23  ;;  %v627_v23 = vrot.slane %v3485_v18, 1  ;;  %4546 = vst [vmem:[#allocation30_spill] sm:$0xff] %v3536_v45  ;;  %v309_v61 = vmul.f32 %v2818_v55, %v251_v4 }
  0x9a   : > { %1138 = vmatprep.mubr.f32.mxu0 %v3483_v2  ;;  %2360 = vmatprep.mubr.msk.f32.mxu1 %vm438_vm0, %v3477_v34  ;;  %v363_v2 = vadd.f32 %v2841_v1, %v305_v30  ;;  %v307_v30 = vmul.f32 %v2818_v55, %v249_v46 }
  0x9b   : > { %1464 = vmatprep.subr.mxu0 %v4529_v38  ;;  %1685 = vmatprep.subr.mxu1 %v4529_v38  ;;  %v3543_v46 = vsel %vm570_vm2, %v626_v8, %v627_v23  ;;  %v953_v8 = vld [vmem:[%s4439_s2 + $0x3d8] sm:$0xff] }
  0x9c   : > { %1465 = vmatpush2.msra.mxu0 %v921_v37  ;;  %1686 = vmatpush2.msra.mxu1 %v955_v40  ;;  %v3538_v37 = vmax.f32 %v362_v22, 0.0  ;;  %v739_v40 = vrot.slane %v501_v52, 2  ;;  %4548 = vst [vmem:[#allocation32_spill] sm:$0xff] %v3543_v46  ;;  %v3545_v54 = vmax.f32 %v363_v2, 0.0  ;;  %v418_v52 = vmax.f32 %v364_v15, 0.0  ;;  %v919_v2 = vld [vmem:[%s4439_s2 + $0x2c8] sm:$0xff] }
  0x9d   : > { %2344 = vmatmul.mubr.msk.f32.gmra.mxu0 %vm438_vm0, %v3408_v56  ;;  %1364 = vmatmul.mubr.f32.gmra.mxu1 %v3506_v50  ;;  %v740_v50 = vrot.slane %v3485_v18, 2  ;;  %v629_v56 = vrot.slane %v503_v35, 1  ;;  %v365_v22 = vadd.f32 %v2841_v1, %v307_v30 }
  0x9e   : > { %1143 = vmatprep.mubr.f32.mxu0 %v3512_v20  ;;  %1368 = vmatprep.mubr.f32.mxu1 %v3485_v18  ;;  %4547 = vst [vmem:[#allocation31_spill] sm:$0xff] %v3538_v37  ;;  %v308_v20 = vmul.f32 %v2818_v55, %v250_v33  ;;  %v504_v11 = vsel %vm438_vm0, %v3538_v37, 0.0  ;;  %v742_v33 = vrot.slane %v503_v35, 2  ;;  %v367_v35 = vadd.f32 %v2841_v1, %v309_v61 }
  0x9f   : > { %1466 = vmatprep.subr.mxu0 %v4529_v38  ;;  %1687 = vmatprep.subr.mxu1 %v4529_v38  ;;  %v3567_v15 = vsel %vm683_vm3, %v739_v40, %v740_v50  ;;  %v631_v30 = vrot.slane %v504_v11, 1  ;;  %v506_v40 = vsel %vm449_vm1, %v418_v52, 0.0  ;;  %v254_v52 = vld [vmem:[%s2808_s23 + $0x160] sm:$0x3] }
  0xa0   : > { %1467 = vmatpush2.msra.mxu0 %v920_v31  ;;  %1688 = vmatpush2.msra.mxu1 %v954_v57  ;;  %4549 = vst [vmem:[#allocation33_spill] sm:$0xff] %v3567_v15  ;;  %v3571_v31 = vsel %vm570_vm2, %v627_v23, %v629_v56  ;;  %v632_v57 = vrot.slane %v3545_v54, 1  ;;  %v366_v4 = vadd.f32 %v2841_v1, %v308_v20  ;;  %v918_v56 = vld [vmem:[%s4439_s2 + $0x2c0] sm:$0xff]  ;;  %v3588_v23 = vmax.f32 %v365_v22, 0.0  ;;  %v952_v20 = vld [vmem:[%s4439_s2 + $0x3d0] sm:$0xff] }
  0xa1   : > { %1144 = vmatmul.mubr.f32.gmra.mxu0 %v3425_v5  ;;  %1369 = vmatmul.mubr.f32.gmra.mxu1 %v3536_v45  ;;  %4550 = vst [vmem:[#allocation34_spill] sm:$0xff] %v3571_v31  ;;  %v252_v45 = vld [vmem:[%s2808_s23 + $0x150] sm:$0xff]  ;;  %v3597_v61 = vsel %vm683_vm3, %v740_v50, %v742_v33  ;;  %v917_v33 = vld [vmem:[%s4439_s2 + $0x2b8] sm:$0xff] }
  0xa2   : > { %1148 = vmatprep.mubr.f32.mxu0 %v3543_v46  ;;  %2361 = vmatprep.mubr.msk.f32.mxu1 %vm438_vm0, %v3538_v37  ;;  %v253_v46 = vld [vmem:[%s2808_s23 + $0x158] sm:$0xff]  ;;  %4551 = vst [vmem:[#allocation35_spill] sm:$0xff] %v3588_v23  ;;  %4552 = vst [vmem:[#allocation36_spill] sm:$0xff] %v3597_v61  ;;  %v3603_v22 = vsel %vm570_vm2, %v631_v30, %v632_v57  ;;  %v3605_v5 = vmax.f32 %v366_v4, 0.0  ;;  %v507_v50 = vsel %vm438_vm0, %v3588_v23, 0.0  ;;  %v747_v4 = vrot.slane %v506_v40, 2 }
  0xa3   : > { %1468 = vmatprep.subr.mxu0 %v4529_v38  ;;  %1689 = vmatprep.subr.mxu1 %v4529_v38  ;;  %4553 = vst [vmem:[#allocation37_spill] sm:$0xff] %v3603_v22 }
  0xa4   : > { %1469 = vmatpush2.msra.mxu0 %v919_v2  ;;  %1690 = vmatpush2.msra.mxu1 %v953_v8  ;;  %v744_v2 = vrot.slane %v504_v11, 2  ;;  %v745_v8 = vrot.slane %v3545_v54, 2  ;;  %4554 = vst [vmem:[#allocation38_spill] sm:$0xff] %v3605_v5  ;;  %v421_v11 = vmax.f32 %v367_v35, 0.0 }
  0xa5   : > { %2345 = vmatmul.mubr.msk.f32.gmra.mxu0 %vm438_vm0, %v3477_v34  ;;  %1374 = vmatmul.mubr.f32.gmra.mxu1 %v3567_v15  ;;  %v310_v15 = vmul.f32 %v2818_v55, %v252_v45  ;;  %v634_v34 = vrot.slane %v506_v40, 1  ;;  %v312_v45 = vmul.f32 %v2818_v55, %v254_v52  ;;  %v636_v52 = vrot.slane %v507_v50, 1 }
  0xa6   : > { %1153 = vmatprep.mubr.f32.mxu0 %v3571_v31  ;;  %1378 = vmatprep.mubr.f32.mxu1 %v3545_v54  ;;  %v311_v31 = vmul.f32 %v2818_v55, %v253_v46  ;;  %v951_v46 = vld [vmem:[%s4439_s2 + $0x3c8] sm:$0xff]  ;;  %v3626_v30 = vsel %vm683_vm3, %v744_v2, %v745_v8  ;;  %v509_v40 = vsel %vm449_vm1, %v421_v11, 0.0  ;;  %v256_v2 = vld [vmem:[%s2808_s23 + $0x170] sm:$0xff]  ;;  %v257_v11 = vld [vmem:[%s2808_s23 + $0x178] sm:$0x3] }
  0xa7   : > { %1470 = vmatprep.subr.mxu0 %v4529_v38  ;;  %1691 = vmatprep.subr.mxu1 %v4529_v38  ;;  %4555 = vst [vmem:[#allocation39_spill] sm:$0xff] %v3626_v30  ;;  %v368_v35 = vadd.f32 %v2841_v1, %v310_v15  ;;  %v370_v15 = vadd.f32 %v2841_v1, %v312_v45 }
  0xa8   : > { %1471 = vmatpush2.msra.mxu0 %v918_v56  ;;  %1692 = vmatpush2.msra.mxu1 %v952_v20  ;;  %v255_v56 = vld [vmem:[%s2808_s23 + $0x168] sm:$0xff]  ;;  %v3632_v20 = vsel %vm570_vm2, %v632_v57, %v634_v34  ;;  %v916_v34 = vld [vmem:[%s4439_s2 + $0x2b0] sm:$0xff]  ;;  %v950_v57 = vld [vmem:[%s4439_s2 + $0x3c0] sm:$0xff]  ;;  %v3656_v45 = vsel %vm683_vm3, %v745_v8, %v747_v4  ;;  %v315_v4 = vmul.f32 %v2818_v55, %v257_v11 }
  0xa9   : > { %1154 = vmatmul.mubr.f32.gmra.mxu0 %v3485_v18  ;;  %1379 = vmatmul.mubr.f32.gmra.mxu1 %v3597_v61  ;;  %4556 = vst [vmem:[#allocation40_spill] sm:$0xff] %v3632_v20  ;;  %v637_v61 = vrot.slane %v3605_v5, 1  ;;  %4557 = vst [vmem:[#allocation41_spill] sm:$0xff] %v3656_v45 }
  0xaa   : > { %1158 = vmatprep.mubr.f32.mxu0 %v3603_v22  ;;  %2362 = vmatprep.mubr.msk.f32.mxu1 %vm438_vm0, %v3588_v23  ;;  %v369_v22 = vadd.f32 %v2841_v1, %v311_v31  ;;  %v313_v31 = vmul.f32 %v2818_v55, %v255_v56 }
  0xab   : > { %1472 = vmatprep.subr.mxu0 %v4529_v38  ;;  %1693 = vmatprep.subr.mxu1 %v4529_v38  ;;  %v3663_v56 = vsel %vm570_vm2, %v636_v52, %v637_v61  ;;  %v949_v52 = vld [vmem:[%s4439_s2 + $0x3b8] sm:$0xff] }
  0xac   : > { %1473 = vmatpush2.msra.mxu0 %v917_v33  ;;  %1694 = vmatpush2.msra.mxu1 %v951_v46  ;;  %v3658_v33 = vmax.f32 %v368_v35, 0.0  ;;  %v749_v46 = vrot.slane %v507_v50, 2  ;;  %v3665_v18 = vmax.f32 %v369_v22, 0.0  ;;  %v424_v50 = vmax.f32 %v370_v15, 0.0  ;;  %v915_v22 = vld [vmem:[%s4439_s2 + $0x2a8] sm:$0xff] }
  0xad   : > { %2346 = vmatmul.mubr.msk.f32.gmra.mxu0 %vm438_vm0, %v3538_v37  ;;  %1384 = vmatmul.mubr.f32.gmra.mxu1 %v3626_v30  ;;  %v750_v30 = vrot.slane %v3605_v5, 2  ;;  %v639_v37 = vrot.slane %v509_v40, 1  ;;  %v371_v35 = vadd.f32 %v2841_v1, %v313_v31 }
  0xae   : > { %1163 = vmatprep.mubr.f32.mxu0 %v3632_v20  ;;  %1388 = vmatprep.mubr.f32.mxu1 %v3605_v5  ;;  %v314_v20 = vmul.f32 %v2818_v55, %v256_v2  ;;  %v510_v8 = vsel %vm438_vm0, %v3658_v33, 0.0  ;;  %v752_v2 = vrot.slane %v509_v40, 2  ;;  %v373_v40 = vadd.f32 %v2841_v1, %v315_v4 }
  0xaf   : > { %1474 = vmatprep.subr.mxu0 %v4529_v38  ;;  %1695 = vmatprep.subr.mxu1 %v4529_v38  ;;  %v3687_v15 = vsel %vm683_vm3, %v749_v46, %v750_v30  ;;  %v641_v31 = vrot.slane %v510_v8, 1  ;;  %v512_v46 = vsel %vm449_vm1, %v424_v50, 0.0  ;;  %v754_v4 = vrot.slane %v510_v8, 2 }
  0xb0   : > { %1475 = vmatpush2.msra.mxu0 %v916_v34  ;;  %1696 = vmatpush2.msra.mxu1 %v950_v57  ;;  %4558 = vst [vmem:[#allocation42_spill] sm:$0xff] %v3687_v15  ;;  %v3691_v34 = vsel %vm570_vm2, %v637_v61, %v639_v37  ;;  %v642_v57 = vrot.slane %v3665_v18, 1  ;;  %v372_v11 = vadd.f32 %v2841_v1, %v314_v20  ;;  %v914_v37 = vld [vmem:[%s4439_s2 + $0x2a0] sm:$0xff]  ;;  %v3707_v61 = vmax.f32 %v371_v35, 0.0  ;;  %v948_v20 = vld [vmem:[%s4439_s2 + $0x3b0] sm:$0xff] }
  0xb1   : > { %1164 = vmatmul.mubr.f32.gmra.mxu0 %v3545_v54  ;;  %1389 = vmatmul.mubr.f32.gmra.mxu1 %v3656_v45  ;;  %v258_v45 = vld [vmem:[%s2808_s23 + $0x180] sm:$0xff]  ;;  %v3715_v50 = vsel %vm683_vm3, %v750_v30, %v752_v2  ;;  %v427_v8 = vmax.f32 %v373_v40, 0.0  ;;  %v259_v2 = vld [vmem:[%s2808_s23 + $0x188] sm:$0xff]  ;;  %v757_v40 = vrot.slane %v512_v46, 2 }
  0xb2   : > { %1168 = vmatprep.mubr.f32.mxu0 %v3663_v56  ;;  %2363 = vmatprep.mubr.msk.f32.mxu1 %vm438_vm0, %v3658_v33  ;;  %4559 = vst [vmem:[#allocation43_spill] sm:$0xff] %v3715_v50  ;;  %v3721_v35 = vsel %vm570_vm2, %v641_v31, %v642_v57  ;;  %v513_v30 = vsel %vm438_vm0, %v3707_v61, 0.0  ;;  %v947_v31 = vld [vmem:[%s4439_s2 + $0x3a8] sm:$0xff] }
  0xb3   : > { %1476 = vmatprep.subr.mxu0 %v4529_v38  ;;  %1697 = vmatprep.subr.mxu1 %v4529_v38  ;;  %4560 = vst [vmem:[#allocation44_spill] sm:$0xff] %v3721_v35 }
  0xb4   : > { %1477 = vmatpush2.msra.mxu0 %v915_v22  ;;  %1698 = vmatpush2.msra.mxu1 %v949_v52  ;;  %v755_v22 = vrot.slane %v3665_v18, 2  ;;  %v316_v52 = vmul.f32 %v2818_v55, %v258_v45  ;;  %v913_v45 = vld [vmem:[%s4439_s2 + $0x298] sm:$0xff] }
  0xb5   : > { %2347 = vmatmul.mubr.msk.f32.gmra.mxu0 %vm438_vm0, %v3588_v23  ;;  %1394 = vmatmul.mubr.f32.gmra.mxu1 %v3687_v15  ;;  %v644_v15 = vrot.slane %v512_v46, 1  ;;  %v3724_v23 = vmax.f32 %v372_v11, 0.0 }
  0xb6   : > { %1173 = vmatprep.mubr.f32.mxu0 %v3691_v34  ;;  %1398 = vmatprep.mubr.f32.mxu1 %v3665_v18  ;;  %v3743_v11 = vsel %vm683_vm3, %v754_v4, %v755_v22  ;;  %v515_v4 = vsel %vm449_vm1, %v427_v8, 0.0  ;;  %v3768_v46 = vsel %vm683_vm3, %v755_v22, %v757_v40  ;;  %v759_v8 = vrot.slane %v513_v30, 2  ;;  %v911_v22 = vld [vmem:[%s4439_s2 + $0x288] sm:$0xff] }
  0xb7   : > { %1478 = vmatprep.subr.mxu0 %v4529_v38  ;;  %1699 = vmatprep.subr.mxu1 %v4529_v38 }
  0xb8   : > { %1479 = vmatpush2.msra.mxu0 %v914_v37  ;;  %1700 = vmatpush2.msra.mxu1 %v948_v20  ;;  %v374_v37 = vadd.f32 %v2841_v1, %v316_v52  ;;  %v3748_v20 = vsel %vm570_vm2, %v642_v57, %v644_v15  ;;  %v912_v15 = vld [vmem:[%s4439_s2 + $0x290] sm:$0xff]  ;;  %v946_v57 = vld [vmem:[%s4439_s2 + $0x3a0] sm:$0xff] }
  0xb9   : > { %1174 = vmatmul.mubr.f32.gmra.mxu0 %v3605_v5  ;;  %1399 = vmatmul.mubr.f32.gmra.mxu1 %v3715_v50  ;;  %v646_v50 = vrot.slane %v513_v30, 1  ;;  %v317_v5 = vmul.f32 %v2818_v55, %v259_v2  ;;  %v760_v2 = vrot.slane %v3724_v23, 2  ;;  %v945_v30 = vld [vmem:[%s4439_s2 + $0x398] sm:$0xff] }
  0xba   : > { %1178 = vmatprep.mubr.f32.mxu0 %v3721_v35  ;;  %2364 = vmatprep.mubr.msk.f32.mxu1 %vm438_vm0, %v3707_v61  ;;  %v647_v35 = vrot.slane %v3724_v23, 1  ;;  %v3770_v52 = vmax.f32 %v374_v37, 0.0 }
  0xbb   : > { %1480 = vmatprep.subr.mxu0 %v4529_v38  ;;  %1701 = vmatprep.subr.mxu1 %v4529_v38  ;;  %v375_v16 = vadd.f32 %v2841_v1, %v317_v5  ;;  %v3792_v5 = vsel %vm683_vm3, %v759_v8, %v760_v2  ;;  %v973_v8 = vld [vmem:[%s4439_s2 + $0x478] sm:$0xff] }
  0xbc   : > { %1481 = vmatpush2.msra.mxu0 %v913_v45  ;;  %1702 = vmatpush2.msra.mxu1 %v947_v31  ;;  %v3776_v45 = vsel %vm570_vm2, %v646_v50, %v647_v35  ;;  %v649_v31 = vrot.slane %v515_v4, 1  ;;  %v762_v50 = vrot.slane %v515_v4, 2  ;;  %v943_v4 = vld [vmem:[%s4439_s2 + $0x388] sm:$0xff] }
  0xbd   : > { %2348 = vmatmul.mubr.msk.f32.gmra.mxu0 %vm438_vm0, %v3658_v33  ;;  %1404 = vmatmul.mubr.f32.gmra.mxu1 %v3743_v11  ;;  %v3799_v37 = vmax.f32 %v375_v16, 0.0  ;;  %v910_v16 = vld [vmem:[%s4439_s2 + $0x280] sm:$0xff] }
  0xbe   : > { %1183 = vmatprep.mubr.f32.mxu0 %v3748_v20  ;;  %1408 = vmatprep.mubr.f32.mxu1 %v3724_v23  ;;  %v3797_v40 = vsel %vm570_vm2, %v647_v35, %v649_v31  ;;  %v3811_v35 = vsel %vm683_vm3, %v760_v2, %v762_v50  ;;  %v972_v2 = vld [vmem:[%s4439_s2 + $0x470] sm:$0xff]  ;;  %v4573_v31 = vld [vmem:[#allocation13_spill] sm:$0xff]  ;;  %v4575_v50 = vld [vmem:[#allocation23_spill] sm:$0xff] }
  0xbf   : > { %1482 = vmatprep.subr.mxu0 %v4529_v38  ;;  %1703 = vmatprep.subr.mxu1 %v4529_v38 }
  0xc0   : > { %1483 = vmatpush2.msra.mxu0 %v912_v15  ;;  %1704 = vmatpush2.msra.mxu1 %v946_v57  ;;  %v944_v15 = vld [vmem:[%s4439_s2 + $0x390] sm:$0xff]  ;;  %v942_v57 = vld [vmem:[%s4439_s2 + $0x380] sm:$0xff] }
  0xc1   : > { %1184 = vmatmul.mubr.f32.gmra.mxu0 %v3665_v18  ;;  %1409 = vmatmul.mubr.f32.gmra.mxu1 %v3768_v46 }
  0xc2   : > { %1188 = vmatprep.mubr.f32.mxu0 %v3776_v45  ;;  %2365 = vmatprep.mubr.msk.f32.mxu1 %vm438_vm0, %v3770_v52 }
  0xc3   : > { %1484 = vmatprep.subr.mxu0 %v4529_v38  ;;  %1705 = vmatprep.subr.mxu1 %v4529_v38 }
  0xc4   : > { %1485 = vmatpush2.msra.mxu0 %v911_v22  ;;  %1706 = vmatpush2.msra.mxu1 %v945_v30  ;;  %v958_v22 = vld [vmem:[%s4439_s2 + $0x400] sm:$0xff]  ;;  %v4574_v30 = vld [vmem:[#allocation19_spill] sm:$0xff] }
  0xc5   : > { %2349 = vmatmul.mubr.msk.f32.gmra.mxu0 %vm438_vm0, %v3707_v61  ;;  %1414 = vmatmul.mubr.f32.gmra.mxu1 %v3792_v5 }
  0xc6   : > { %1707 = vmatprep.subr.mxu1 %v4529_v38  ;;  %1193 = vmatprep.mubr.f32.mxu0 %v3797_v40 }
  0xc7   : > { %1418 = vmatprep.mubr.f32.mxu1 %v3799_v37  ;;  %1708 = vmatpush2.msra.mxu1 %v944_v15  ;;  %v4576_v15 = vld [vmem:[#allocation15_spill] sm:$0xff] }
  0xc8   : > { %1486 = vmatprep.subr.mxu0 %v4529_v38  ;;  %1709 = vmatprep.subr.mxu1 %v4529_v38 }
  0xc9   : > { %1194 = vmatmul.mubr.f32.gmra.mxu0 %v3724_v23  ;;  %1419 = vmatmul.mubr.f32.gmra.mxu1 %v3811_v35 }
  0xca   : > { %1487 = vmatpush2.msra.mxu0 %v910_v16  ;;  %1710 = vmatpush2.msra.mxu1 %v943_v4  ;;  %v4577_v16 = vld [vmem:[#allocation22_spill] sm:$0xff] }
  0xcb   : > { %1711 = vmatprep.subr.mxu1 %v4529_v38  ;;  %1488 = vmatprep.mubr.f32.mxu0 %v2965_v58  ;;  %v968_v58 = vld [vmem:[%s4439_s2 + $0x450] sm:$0xff]  ;;  %v4578_v4 = vld [vmem:[#allocation26_spill] sm:$0xff] }
  0xcc   : > { %1712 = vmatpush2.msra.mxu1 %v942_v57  ;;  %1713 = vmatprep.mubr.f32.mxu1 %v3003_v14 }
  0xcd   : > { %1489 = vmatmul.mubr.f32.vlgmr.msra.gmra.mxu0 %v2943_v47  ;;  %2366 = vmatmul.mubr.msk.f32.vlgmr.msra.gmra.mxu1 %vm438_vm0, %v2935_v42  ;;  %v971_v42 = vld [vmem:[%s4439_s2 + $0x468] sm:$0xff]  ;;  %v970_v47 = vld [vmem:[%s4439_s2 + $0x460] sm:$0xff] }
  0xce   : > { %2432 = vmatprep.subr.mxu0 %v973_v8  ;;  %1493 = vmatprep.mubr.f32.mxu0 %v2997_v10  ;;  %v965_v10 = vld [vmem:[%s4439_s2 + $0x438] sm:$0xff] }
  0xcf   : > { %2433 = vmatpush3.msra.mxu0 %v973_v8  ;;  %1718 = vmatprep.mubr.f32.mxu1 %v3032_v29 }
  0xd0   : > { %2434 = vmatprep.subr.mxu0 %v972_v2  ;;  %2512 = vmatprep.subr.mxu1 %v973_v8 }
  0xd1   : > { %1494 = vmatmul.mubr.f32.gmra.mxu0 %v2972_v60  ;;  %1719 = vmatmul.mubr.f32.gmra.mxu1 %v2945_v49  ;;  %v969_v49 = vld [vmem:[%s4439_s2 + $0x458] sm:$0xff]  ;;  %v967_v60 = vld [vmem:[%s4439_s2 + $0x448] sm:$0xff] }
  0xd2   : > { %1498 = vmatprep.mubr.f32.mxu0 %v3026_v26  ;;  %1723 = vmatprep.mubr.f32.mxu1 %v3063_v48 }
  0xd3   : > { %2435 = vmatpush3.msra.mxu0 %v972_v2  ;;  %2528 = vmatpush3.msra.mxu1 %v973_v8 }
  0xd4   : > { %2436 = vmatprep.subr.mxu0 %v971_v42  ;;  %2513 = vmatprep.subr.mxu1 %v972_v2 }
  0xd5   : > { %1499 = vmatmul.mubr.f32.gmra.mxu0 %v3003_v14  ;;  %2367 = vmatmul.mubr.msk.f32.gmra.mxu1 %vm438_vm0, %v2988_v7  ;;  %v966_v7 = vld [vmem:[%s4439_s2 + $0x440] sm:$0xff]  ;;  %v964_v14 = vld [vmem:[%s4439_s2 + $0x430] sm:$0xff] }
  0xd6   : > { %1503 = vmatprep.mubr.f32.mxu0 %v3056_v41  ;;  %1728 = vmatprep.mubr.f32.mxu1 %v3091_v0 }
  0xd7   : > { %2437 = vmatpush3.msra.mxu0 %v971_v42  ;;  %2529 = vmatpush3.msra.mxu1 %v972_v2  ;;  %v4579_v2 = vld [vmem:[#allocation18_spill] sm:$0xff] }
  0xd8   : > { %2438 = vmatprep.subr.mxu0 %v970_v47  ;;  %2514 = vmatprep.subr.mxu1 %v971_v42 }
  0xd9   : > { %1504 = vmatmul.mubr.f32.gmra.mxu0 %v3032_v29  ;;  %1729 = vmatmul.mubr.f32.gmra.mxu1 %v3005_v17  ;;  %v963_v17 = vld [vmem:[%s4439_s2 + $0x428] sm:$0xff]  ;;  %v4561_v29 = vld [vmem:[#allocation5_spill] sm:$0xff] }
  0xda   : > { %1508 = vmatprep.mubr.f32.mxu0 %v3087_v62  ;;  %1733 = vmatprep.mubr.f32.mxu1 %v3123_v25 }
  0xdb   : > { %2439 = vmatpush3.msra.mxu0 %v970_v47  ;;  %2530 = vmatpush3.msra.mxu1 %v971_v42 }
  0xdc   : > { %2440 = vmatprep.subr.mxu0 %v969_v49  ;;  %2515 = vmatprep.subr.mxu1 %v970_v47 }
  0xdd   : > { %1509 = vmatmul.mubr.f32.gmra.mxu0 %v3063_v48  ;;  %2368 = vmatmul.mubr.msk.f32.gmra.mxu1 %vm438_vm0, %v3058_v43  ;;  %v962_v43 = vld [vmem:[%s4439_s2 + $0x420] sm:$0xff]  ;;  %v4562_v48 = vld [vmem:[#allocation8_spill] sm:$0xff] }
  0xde   : > { %1513 = vmatprep.mubr.f32.mxu0 %v3117_v19  ;;  %1738 = vmatprep.mubr.f32.mxu1 %v3151_v39 }
  0xdf   : > { %2441 = vmatpush3.msra.mxu0 %v969_v49  ;;  %2531 = vmatpush3.msra.mxu1 %v970_v47  ;;  %v4580_v47 = vld [vmem:[#allocation24_spill] sm:$0xff] }
  0xe0   : > { %2442 = vmatprep.subr.mxu0 %v968_v58  ;;  %2516 = vmatprep.subr.mxu1 %v969_v49 }
  0xe1   : > { %1514 = vmatmul.mubr.f32.gmra.mxu0 %v3091_v0  ;;  %1739 = vmatmul.mubr.f32.gmra.mxu1 %v3065_v51  ;;  %v4563_v51 = vld [vmem:[#allocation11_spill] sm:$0xff]  ;;  %v4564_v0 = vld [vmem:[#allocation6_spill] sm:$0xff] }
  0xe2   : > { %1518 = vmatprep.mubr.f32.mxu0 %v3146_v36  ;;  %1743 = vmatprep.mubr.f32.mxu1 %v3183_v6 }
  0xe3   : > { %2443 = vmatpush3.msra.mxu0 %v968_v58  ;;  %2532 = vmatpush3.msra.mxu1 %v969_v49  ;;  %v4581_v49 = vld [vmem:[#allocation29_spill] sm:$0xff] }
  0xe4   : > { %2444 = vmatprep.subr.mxu0 %v967_v60  ;;  %2517 = vmatprep.subr.mxu1 %v968_v58 }
  0xe5   : > { %1519 = vmatmul.mubr.f32.gmra.mxu0 %v3123_v25  ;;  %2369 = vmatmul.mubr.msk.f32.gmra.mxu1 %vm438_vm0, %v3108_v13  ;;  %v961_v13 = vld [vmem:[%s4439_s2 + $0x418] sm:$0xff]  ;;  %v4565_v25 = vld [vmem:[#allocation10_spill] sm:$0xff] }
  0xe6   : > { %1523 = vmatprep.mubr.f32.mxu0 %v3175_v63  ;;  %1748 = vmatprep.mubr.f32.mxu1 %v3212_v32 }
  0xe7   : > { %2445 = vmatpush3.msra.mxu0 %v967_v60  ;;  %2533 = vmatpush3.msra.mxu1 %v968_v58 }
  0xe8   : > { %2446 = vmatprep.subr.mxu0 %v966_v7  ;;  %2518 = vmatprep.subr.mxu1 %v967_v60 }
  0xe9   : > { %1524 = vmatmul.mubr.f32.gmra.mxu0 %v3151_v39  ;;  %1749 = vmatmul.mubr.f32.gmra.mxu1 %v3125_v27  ;;  %v4566_v27 = vld [vmem:[#allocation14_spill] sm:$0xff]  ;;  %v4567_v39 = vld [vmem:[#allocation7_spill] sm:$0xff] }
  0xea   : > { %1528 = vmatprep.mubr.f32.mxu0 %v3206_v24  ;;  %1753 = vmatprep.mubr.f32.mxu1 %v3243_v59 }
  0xeb   : > { %2447 = vmatpush3.msra.mxu0 %v966_v7  ;;  %2534 = vmatpush3.msra.mxu1 %v967_v60 }
  0xec   : > { %2448 = vmatprep.subr.mxu0 %v965_v10  ;;  %2519 = vmatprep.subr.mxu1 %v966_v7 }
  0xed   : > { %1529 = vmatmul.mubr.f32.gmra.mxu0 %v3183_v6  ;;  %2370 = vmatmul.mubr.msk.f32.gmra.mxu1 %vm438_vm0, %v3177_v3  ;;  %v960_v3 = vld [vmem:[%s4439_s2 + $0x410] sm:$0xff] }
  0xee   : > { %1533 = vmatprep.mubr.f32.mxu0 %v3236_v53  ;;  %1758 = vmatprep.mubr.f32.mxu1 %v3271_v28  ;;  %v4568_v6 = vld [vmem:[#allocation12_spill] sm:$0xff] }
  0xef   : > { %2449 = vmatpush3.msra.mxu0 %v965_v10  ;;  %2535 = vmatpush3.msra.mxu1 %v966_v7 }
  0xf0   : > { %2450 = vmatprep.subr.mxu0 %v964_v14  ;;  %2520 = vmatprep.subr.mxu1 %v965_v10 }
  0xf1   : > { %1534 = vmatmul.mubr.f32.gmra.mxu0 %v3212_v32  ;;  %1759 = vmatmul.mubr.f32.gmra.mxu1 %v3185_v9  ;;  %v4569_v9 = vld [vmem:[#allocation17_spill] sm:$0xff] }
  0xf2   : > { %1538 = vmatprep.mubr.f32.mxu0 %v3267_v21  ;;  %1763 = vmatprep.mubr.f32.mxu1 %v3303_v12  ;;  %v4570_v32 = vld [vmem:[#allocation9_spill] sm:$0xff] }
  0xf3   : > { %2451 = vmatpush3.msra.mxu0 %v964_v14  ;;  %2536 = vmatpush3.msra.mxu1 %v965_v10 }
  0xf4   : > { %2452 = vmatprep.subr.mxu0 %v963_v17  ;;  %2521 = vmatprep.subr.mxu1 %v964_v14 }
  0xf5   : > { %1539 = vmatmul.mubr.f32.gmra.mxu0 %v3243_v59  ;;  %2371 = vmatmul.mubr.msk.f32.gmra.mxu1 %vm438_vm0, %v4561_v29  ;;  %v959_v59 = vld [vmem:[%s4439_s2 + $0x408] sm:$0xff]  ;;  %v4583_v29 = vld [vmem:[#allocation28_spill] sm:$0xff] }
  0xf6   : > { %1543 = vmatprep.mubr.f32.mxu0 %v4562_v48  ;;  %1768 = vmatprep.mubr.f32.mxu1 %v4563_v51 }
  0xf7   : > { %2453 = vmatpush3.msra.mxu0 %v963_v17  ;;  %2537 = vmatpush3.msra.mxu1 %v964_v14  ;;  %v4582_v14 = vld [vmem:[#allocation21_spill] sm:$0xff] }
  0xf8   : > { %2454 = vmatprep.subr.mxu0 %v962_v43  ;;  %2522 = vmatprep.subr.mxu1 %v963_v17 }
  0xf9   : > { %1544 = vmatmul.mubr.f32.gmra.mxu0 %v3271_v28  ;;  %1769 = vmatmul.mubr.f32.gmra.mxu1 %v4564_v0  ;;  %v4571_v28 = vld [vmem:[#allocation16_spill] sm:$0xff] }
  0xfa   : > { %1548 = vmatprep.mubr.f32.mxu0 %v4565_v25  ;;  %1773 = vmatprep.mubr.f32.mxu1 %v4566_v27 }
  0xfb   : > { %2455 = vmatpush3.msra.mxu0 %v962_v43  ;;  %2538 = vmatpush3.msra.mxu1 %v963_v17 }
  0xfc   : > { %2456 = vmatprep.subr.mxu0 %v961_v13  ;;  %2523 = vmatprep.subr.mxu1 %v962_v43 }
  0xfd   : > { %1549 = vmatmul.mubr.f32.gmra.mxu0 %v3303_v12  ;;  %2372 = vmatmul.mubr.msk.f32.gmra.mxu1 %vm438_vm0, %v4567_v39  ;;  %v4572_v12 = vld [vmem:[#allocation20_spill] sm:$0xff]  ;;  %v4585_v39 = vld [vmem:[#allocation25_spill] sm:$0xff] }
  0xfe   : > { %1553 = vmatprep.mubr.f32.mxu0 %v4568_v6  ;;  %1778 = vmatprep.mubr.f32.mxu1 %v4569_v9 }
  0xff   : > { %2457 = vmatpush3.msra.mxu0 %v961_v13  ;;  %2539 = vmatpush3.msra.mxu1 %v962_v43  ;;  %v4584_v43 = vld [vmem:[#allocation32_spill] sm:$0xff] }
 0x100   : > { %2458 = vmatprep.subr.mxu0 %v960_v3  ;;  %2524 = vmatprep.subr.mxu1 %v961_v13 }
 0x101   : > { %1554 = vmatmul.mubr.f32.gmra.mxu0 %v4563_v51  ;;  %1779 = vmatmul.mubr.f32.gmra.mxu1 %v4570_v32  ;;  %v4587_v32 = vld [vmem:[#allocation34_spill] sm:$0xff] }
 0x102   : > { %1558 = vmatprep.mubr.f32.mxu0 %v4571_v28  ;;  %1783 = vmatprep.mubr.f32.mxu1 %v4572_v12 }
 0x103   : > { %2459 = vmatpush3.msra.mxu0 %v960_v3  ;;  %2540 = vmatpush3.msra.mxu1 %v961_v13 }
 0x104   : > { %2460 = vmatprep.subr.mxu0 %v959_v59  ;;  %2525 = vmatprep.subr.mxu1 %v960_v3 }
 0x105   : > { %1559 = vmatmul.mubr.f32.gmra.mxu0 %v4566_v27  ;;  %2373 = vmatmul.mubr.msk.f32.gmra.mxu1 %vm438_vm0, %v4573_v31 }
 0x106   : > { %1563 = vmatprep.mubr.f32.mxu0 %v4574_v30  ;;  %1788 = vmatprep.mubr.f32.mxu1 %v4575_v50 }
 0x107   : > { %2461 = vmatpush3.msra.mxu0 %v959_v59  ;;  %2541 = vmatpush3.msra.mxu1 %v960_v3 }
 0x108   : > { %2462 = vmatprep.subr.mxu0 %v958_v22  ;;  %2526 = vmatprep.subr.mxu1 %v959_v59 }
 0x109   : > { %1564 = vmatmul.mubr.f32.gmra.mxu0 %v4569_v9  ;;  %1789 = vmatmul.mubr.f32.gmra.mxu1 %v4576_v15  ;;  %v4586_v9 = vld [vmem:[#allocation30_spill] sm:$0xff] }
 0x10a   : > { %1568 = vmatprep.mubr.f32.mxu0 %v4577_v16  ;;  %1793 = vmatprep.mubr.f32.mxu1 %v4578_v4 }
 0x10b   : > { %2463 = vmatpush3.msra.mxu0 %v958_v22  ;;  %2542 = vmatpush3.msra.mxu1 %v959_v59 }
 0x10c   : > { %2527 = vmatprep.subr.mxu1 %v958_v22 }
 0x10d   : > { %v1040_v57 = vpop.f32.mrf.mxu0  ;;  %v1265_v8 = vpop.f32.mrf.mxu1  ;;  %1569 = vmatmul.mubr.f32.gmra.mxu0 %v4572_v12  ;;  %2374 = vmatmul.mubr.msk.f32.gmra.mxu1 %vm438_vm0, %v4579_v2 }
 0x10e   : > { %v3962_v42 = vadd.f32 %v1265_v8, %v1040_v57  ;;  %1573 = vmatprep.mubr.f32.mxu0 %v4580_v47  ;;  %1798 = vmatprep.mubr.f32.mxu1 %v4581_v49  ;;  %v4590_v57 = vld [vmem:[#allocation37_spill] sm:$0xff] }
 0x10f   : > { %v1042_v58 = vpop.f32.mrf.mxu0  ;;  %v1267_v60 = vpop.f32.mrf.mxu1  ;;  %2543 = vmatpush3.msra.mxu1 %v958_v22 }
 0x111   : > { %v1045_v7 = vpop.f32.mrf.mxu0  ;;  %v1270_v10 = vpop.f32.mrf.mxu1  ;;  %1574 = vmatmul.mubr.f32.gmra.mxu0 %v4575_v50  ;;  %1799 = vmatmul.mubr.f32.gmra.mxu1 %v4582_v14  ;;  %v4588_v50 = vld [vmem:[#allocation27_spill] sm:$0xff]  ;;  %v4593_v14 = vld [vmem:[#allocation40_spill] sm:$0xff] }
 0x112   : > { %v3968_v17 = vadd.f32 %v1270_v10, %v1045_v7  ;;  %1578 = vmatprep.mubr.f32.mxu0 %v4583_v29  ;;  %1803 = vmatprep.mubr.f32.mxu1 %v4584_v43  ;;  %v4591_v7 = vld [vmem:[#allocation31_spill] sm:$0xff] }
 0x113   : > { %v1047_v51 = vpop.f32.mrf.mxu0  ;;  %v1272_v0 = vpop.f32.mrf.mxu1 }
 0x115   : > { %v1050_v13 = vpop.f32.mrf.mxu0  ;;  %v1275_v27 = vpop.f32.mrf.mxu1  ;;  %1579 = vmatmul.mubr.f32.gmra.mxu0 %v4578_v4  ;;  %2375 = vmatmul.mubr.msk.f32.gmra.mxu1 %vm438_vm0, %v4585_v39  ;;  %v4589_v4 = vld [vmem:[#allocation33_spill] sm:$0xff]  ;;  %v4594_v39 = vld [vmem:[#allocation39_spill] sm:$0xff] }
 0x116   : > { %v3976_v3 = vadd.f32 %v1275_v27, %v1050_v13  ;;  %1583 = vmatprep.mubr.f32.mxu0 %v4586_v9  ;;  %1808 = vmatprep.mubr.f32.mxu1 %v4587_v32 }
 0x117   : > { %v1052_v59 = vpop.f32.mrf.mxu0  ;;  %v1277_v12 = vpop.f32.mrf.mxu1 }
 0x119   : > { %v1055_v31 = vpop.f32.mrf.mxu0  ;;  %v1280_v22 = vpop.f32.mrf.mxu1  ;;  %1584 = vmatmul.mubr.f32.gmra.mxu0 %v4581_v49  ;;  %1809 = vmatmul.mubr.f32.gmra.mxu1 %v4588_v50  ;;  %v4592_v49 = vld [vmem:[#allocation36_spill] sm:$0xff]  ;;  %v4595_v50 = vld [vmem:[#allocation35_spill] sm:$0xff] }
 0x11a   : > { %v3982_v15 = vadd.f32 %v1280_v22, %v1055_v31  ;;  %1588 = vmatprep.mubr.f32.mxu0 %v4589_v4  ;;  %1813 = vmatprep.mubr.f32.mxu1 %v4590_v57 }
 0x11b   : > { %v1057_v8 = vpop.f32.mrf.mxu0  ;;  %v1282_v2 = vpop.f32.mrf.mxu1 }
 0x11c   : > { %v260_v8 = vld [vmem:[%s2808_s23 + $0x190] sm:$0x3]  ;;  %s2383_s23 = sshll.u32 %s4619_s16, 8 }
 0x11d   : > { %v1060_v58 = vpop.f32.mrf.mxu0  ;;  %v1285_v60 = vpop.f32.mrf.mxu1  ;;  %1589 = vmatmul.mubr.f32.gmra.mxu0 %v4584_v43  ;;  %2376 = vmatmul.mubr.msk.f32.gmra.mxu1 %vm438_vm0, %v4591_v7  ;;  %s4252_s8 = scalar_lea.vmem %s4440_s3, %s2383_s23 }
 0x11e   : > { %v3990_v10 = vadd.f32 %v1285_v60, %v1060_v58  ;;  %1593 = vmatprep.mubr.f32.mxu0 %v4592_v49  ;;  %1818 = vmatprep.mubr.f32.mxu1 %v4593_v14  ;;  %v318_v60 = vmul.f32 %v2818_v55, %v260_v8 }
 0x11f   : > { %v1062_v51 = vpop.f32.mrf.mxu0  ;;  %v1287_v0 = vpop.f32.mrf.mxu1 }
 0x121   : > { %v1065_v13 = vpop.f32.mrf.mxu0  ;;  %v1290_v27 = vpop.f32.mrf.mxu1  ;;  %1594 = vmatmul.mubr.f32.gmra.mxu0 %v4587_v32  ;;  %1819 = vmatmul.mubr.f32.gmra.mxu1 %v3545_v54  ;;  %v4596_v54 = vld [vmem:[#allocation41_spill] sm:$0xff] }
 0x122   : > { %v3996_v43 = vadd.f32 %v1290_v27, %v1065_v13  ;;  %1598 = vmatprep.mubr.f32.mxu0 %v4594_v39  ;;  %1823 = vmatprep.mubr.f32.mxu1 %v3663_v56  ;;  %v4598_v13 = vld [vmem:[#allocation42_spill] sm:$0xff]  ;;  %v4599_v27 = vld [vmem:[#allocation44_spill] sm:$0xff] }
 0x123   : > { %v1067_v59 = vpop.f32.mrf.mxu0  ;;  %v1292_v12 = vpop.f32.mrf.mxu1 }
 0x125   : > { %v1070_v31 = vpop.f32.mrf.mxu0  ;;  %v1295_v22 = vpop.f32.mrf.mxu1  ;;  %1599 = vmatmul.mubr.f32.gmra.mxu0 %v4590_v57  ;;  %2377 = vmatmul.mubr.msk.f32.gmra.mxu1 %vm438_vm0, %v4595_v50  ;;  %v4597_v57 = vld [vmem:[#allocation38_spill] sm:$0xff] }
 0x126   : > { %v4005_v32 = vadd.f32 %v1295_v22, %v1070_v31  ;;  %1603 = vmatprep.mubr.f32.mxu0 %v4596_v54  ;;  %1828 = vmatprep.mubr.f32.mxu1 %v3691_v34  ;;  %v376_v31 = vadd.f32 %v2841_v1, %v318_v60  ;;  %v516_v1 = vsel %vm438_vm0, %v3770_v52, 0.0 }
 0x127   : > { %v1072_v2 = vpop.f32.mrf.mxu0  ;;  %v1297_v58 = vpop.f32.mrf.mxu1 }
 0x128   : > { %v430_v58 = vmax.f32 %v376_v31, 0.0 }
 0x129   : > { %v1075_v7 = vpop.f32.mrf.mxu0  ;;  %v1300_v51 = vpop.f32.mrf.mxu1  ;;  %1604 = vmatmul.mubr.f32.gmra.mxu0 %v4593_v14  ;;  %1829 = vmatmul.mubr.f32.gmra.mxu1 %v4597_v57  ;;  %v4600_v14 = vld [vmem:[#allocation43_spill] sm:$0xff]  ;;  %v799_v57 = vrot.slane %v516_v1, 1 }
 0x12a   : > { %v4012_v0 = vadd.f32 %v1300_v51, %v1075_v7  ;;  %1608 = vmatprep.mubr.f32.mxu0 %v4598_v13  ;;  %1833 = vmatprep.mubr.f32.mxu1 %v4599_v27  ;;  %v518_v31 = vsel %vm449_vm1, %v430_v58, 0.0 }
 0x12b   : > { %v1077_v59 = vpop.f32.mrf.mxu0  ;;  %v1302_v12 = vpop.f32.mrf.mxu1 }
 0x12c   : > { %v800_v59 = vrot.slane %v3799_v37, 1  ;;  %v806_v12 = vrot.slane %v516_v1, 2  ;;  %v809_v1 = vrot.slane %v518_v31, 2 }
 0x12d   : > { %v1080_v22 = vpop.f32.mrf.mxu0  ;;  %v1305_v50 = vpop.f32.mrf.mxu1  ;;  %1609 = vmatmul.mubr.f32.gmra.mxu0 %v3663_v56  ;;  %2378 = vmatmul.mubr.msk.f32.gmra.mxu1 %vm438_vm0, %v3658_v33 }
 0x12e   : > { %v4021_v55 = vadd.f32 %v1305_v50, %v1080_v22  ;;  %1613 = vmatprep.mubr.f32.mxu0 %v4600_v14  ;;  %1838 = vmatprep.mubr.f32.mxu1 %v3748_v20 }
 0x12f   : > { %v1082_v8 = vpop.f32.mrf.mxu0  ;;  %v1307_v2 = vpop.f32.mrf.mxu1 }
 0x130   : > { %v801_v2 = vsel %vm570_vm2, %v799_v57, %v800_v59 }
 0x131   : > { %v1085_v60 = vpop.f32.mrf.mxu0  ;;  %v1310_v7 = vpop.f32.mrf.mxu1  ;;  %1614 = vmatmul.mubr.f32.gmra.mxu0 %v3691_v34  ;;  %1839 = vmatmul.mubr.f32.gmra.mxu1 %v3665_v18 }
 0x132   : > { %v4030_v33 = vadd.f32 %v1310_v7, %v1085_v60  ;;  %1618 = vmatprep.mubr.f32.mxu0 %v3743_v11  ;;  %1843 = vmatprep.mubr.f32.mxu1 %v3776_v45  ;;  %v802_v60 = vrot.slane %v518_v31, 1 }
 0x133   : > { %v1087_v56 = vpop.f32.mrf.mxu0  ;;  %v1312_v51 = vpop.f32.mrf.mxu1 }
 0x134   : > { %v803_v51 = vsel %vm570_vm2, %v800_v59, %v802_v60 }
 0x135   : > { %v1090_v22 = vpop.f32.mrf.mxu0  ;;  %v1315_v50 = vpop.f32.mrf.mxu1  ;;  %1619 = vmatmul.mubr.f32.gmra.mxu0 %v4599_v27  ;;  %2379 = vmatmul.mubr.msk.f32.gmra.mxu1 %vm438_vm0, %v3707_v61 }
 0x136   : > { %v4041_v18 = vadd.f32 %v1315_v50, %v1090_v22  ;;  %1623 = vmatprep.mubr.f32.mxu0 %v3768_v46  ;;  %1848 = vmatprep.mubr.f32.mxu1 %v3797_v40  ;;  %v807_v22 = vrot.slane %v3799_v37, 2 }
 0x137   : > { %v1092_v34 = vpop.f32.mrf.mxu0  ;;  %v1317_v8 = vpop.f32.mrf.mxu1 }
 0x138   : > { %v4061_v59 = vsel %vm683_vm3, %v806_v12, %v807_v22 }
 0x139   : > { %v1095_v58 = vpop.f32.mrf.mxu0  ;;  %v1320_v7 = vpop.f32.mrf.mxu1  ;;  %1624 = vmatmul.mubr.f32.gmra.mxu0 %v3748_v20  ;;  %1849 = vmatmul.mubr.f32.gmra.mxu1 %v3724_v23 }
 0x13a   : > { %v4048_v27 = vadd.f32 %v1320_v7, %v1095_v58  ;;  %1628 = vmatprep.mubr.f32.mxu0 %v3792_v5  ;;  %1853 = vmatprep.mubr.f32.mxu1 %v801_v2  ;;  %v4070_v7 = vsel %vm683_vm3, %v807_v22, %v809_v1 }
 0x13b   : > { %v1097_v61 = vpop.f32.mrf.mxu0  ;;  %v1322_v56 = vpop.f32.mrf.mxu1 }
 0x13d   : > { %v1100_v57 = vpop.f32.mrf.mxu0  ;;  %v1325_v50 = vpop.f32.mrf.mxu1  ;;  %1629 = vmatmul.mubr.f32.gmra.mxu0 %v3776_v45  ;;  %2380 = vmatmul.mubr.msk.f32.gmra.mxu1 %vm438_vm0, %v3770_v52 }
 0x13e   : > { %v4057_v23 = vadd.f32 %v1325_v50, %v1100_v57  ;;  %1633 = vmatprep.mubr.f32.mxu0 %v3811_v35  ;;  %1858 = vmatprep.mubr.f32.mxu1 %v803_v51 }
 0x13f   : > { %v1102_v20 = vpop.f32.mrf.mxu0  ;;  %v1327_v34 = vpop.f32.mrf.mxu1 }
 0x141   : > { %v1105_v8 = vpop.f32.mrf.mxu0  ;;  %v1330_v60 = vpop.f32.mrf.mxu1  ;;  %1634 = vmatmul.mubr.f32.gmra.mxu0 %v3797_v40  ;;  %1859 = vmatmul.mubr.f32.gmra.mxu1 %v3799_v37 }
 0x142   : > { %v4065_v45 = vadd.f32 %v1330_v60, %v1105_v8  ;;  %1638 = vmatprep.mubr.f32.mxu0 %v4061_v59  ;;  %1863 = vmatprep.mubr.f32.mxu1 %v4602_v44 }
 0x143   : > { %v1107_v52 = vpop.f32.mrf.mxu0  ;;  %v1332_v58 = vpop.f32.mrf.mxu1 }
 0x145   : > { %v1110_v61 = vpop.f32.mrf.mxu0  ;;  %v1335_v56 = vpop.f32.mrf.mxu1  ;;  %1639 = vmatmul.mubr.f32.gmra.mxu0 %v801_v2  ;;  %1864 = vmatmul.mubr.f32.gmra.mxu1 %v4529_v38 }
 0x146   : > { %v4073_v31 = vadd.f32 %v1335_v56, %v1110_v61  ;;  %1643 = vmatprep.mubr.f32.mxu0 %v4070_v7  ;;  %1868 = vmatprep.mubr.f32.mxu1 %v4602_v44 }
 0x147   : > { %v1112_v40 = vpop.f32.mrf.mxu0  ;;  %v1337_v37 = vpop.f32.mrf.mxu1 }
 0x149   : > { %v1115_v12 = vpop.f32.mrf.mxu0  ;;  %v1340_v57 = vpop.f32.mrf.mxu1  ;;  %1644 = vmatmul.mubr.f32.gmra.mxu0 %v803_v51  ;;  %1869 = vmatmul.mubr.f32.gmra.mxu1 %v4529_v38 }
 0x14a   : > { %v4078_v22 = vadd.f32 %v1340_v57, %v1115_v12  ;;  %2464 = vmatprep.mubr.f32.mxu0 %v3026_v26  ;;  %2488 = vmatprep.mubr.f32.mxu1 %v4583_v29 }
 0x14b   : > { %v1117_v2 = vpop.f32.mrf.mxu0  ;;  %v1342_v50 = vpop.f32.mrf.mxu1 }
 0x14d   : > { %v1120_v20 = vpop.f32.mrf.mxu0  ;;  %v1345_v34 = vpop.f32.mrf.mxu1  ;;  %2465 = vmatmul.mubr.f32.vlgmr.msra.gmra.mxu0 %v3056_v41  ;;  %2489 = vmatmul.mubr.f32.vlgmr.msra.gmra.mxu1 %v4586_v9 }
 0x14e   : > { %v4084_v1 = vadd.f32 %v1345_v34, %v1120_v20  ;;  %2467 = vmatprep.mubr.f32.mxu0 %v3087_v62  ;;  %2491 = vmatprep.mubr.f32.mxu1 %v4589_v4 }
 0x14f   : > { %v1122_v38 = vpop.f32.mrf.mxu0  ;;  %v1347_v51 = vpop.f32.mrf.mxu1 }
 0x151   : > { %v1125_v8 = vpop.f32.mrf.mxu0  ;;  %v1350_v26 = vpop.f32.mrf.mxu1  ;;  %2468 = vmatmul.mubr.f32.gmra.mxu0 %v3117_v19  ;;  %2492 = vmatmul.mubr.f32.gmra.mxu1 %v4592_v49 }
 0x152   : > { %v4090_v29 = vadd.f32 %v1350_v26, %v1125_v8  ;;  %2470 = vmatprep.mubr.f32.mxu0 %v3146_v36  ;;  %2494 = vmatprep.mubr.f32.mxu1 %v4594_v39 }
 0x153   : > { %v1127_v41 = vpop.f32.mrf.mxu0  ;;  %v1352_v9 = vpop.f32.mrf.mxu1 }
 0x155   : > { %v1130_v60 = vpop.f32.mrf.mxu0  ;;  %v1355_v62 = vpop.f32.mrf.mxu1  ;;  %2471 = vmatmul.mubr.f32.gmra.mxu0 %v3175_v63  ;;  %2495 = vmatmul.mubr.f32.gmra.mxu1 %v4596_v54 }
 0x156   : > { %v4096_v4 = vadd.f32 %v1355_v62, %v1130_v60  ;;  %2473 = vmatprep.mubr.f32.mxu0 %v3206_v24  ;;  %2497 = vmatprep.mubr.f32.mxu1 %v4598_v13 }
 0x157   : > { %v1132_v19 = vpop.f32.mrf.mxu0  ;;  %v1357_v49 = vpop.f32.mrf.mxu1 }
 0x159   : > { %v1135_v44 = vpop.f32.mrf.mxu0  ;;  %v1360_v36 = vpop.f32.mrf.mxu1  ;;  %2474 = vmatmul.mubr.f32.gmra.mxu0 %v3236_v53  ;;  %2498 = vmatmul.mubr.f32.gmra.mxu1 %v4600_v14 }
 0x15a   : > { %v4102_v39 = vadd.f32 %v1360_v36, %v1135_v44  ;;  %2476 = vmatprep.mubr.f32.mxu0 %v3267_v21  ;;  %2500 = vmatprep.mubr.f32.mxu1 %v3743_v11 }
 0x15b   : > { %v1137_v63 = vpop.f32.mrf.mxu0  ;;  %v1362_v54 = vpop.f32.mrf.mxu1 }
 0x15d   : > { %v1140_v52 = vpop.f32.mrf.mxu0  ;;  %v1365_v24 = vpop.f32.mrf.mxu1  ;;  %2477 = vmatmul.mubr.f32.gmra.mxu0 %v4562_v48  ;;  %2501 = vmatmul.mubr.f32.gmra.mxu1 %v3768_v46 }
 0x15e   : > { %v4108_v13 = vadd.f32 %v1365_v24, %v1140_v52  ;;  %2479 = vmatprep.mubr.f32.mxu0 %v4565_v25  ;;  %2503 = vmatprep.mubr.f32.mxu1 %v3792_v5 }
 0x15f   : > { %v1142_v53 = vpop.f32.mrf.mxu0  ;;  %v1367_v14 = vpop.f32.mrf.mxu1 }
 0x161   : > { %v1145_v58 = vpop.f32.mrf.mxu0  ;;  %v1370_v21 = vpop.f32.mrf.mxu1  ;;  %2480 = vmatmul.mubr.f32.gmra.mxu0 %v4568_v6  ;;  %2504 = vmatmul.mubr.f32.gmra.mxu1 %v3811_v35  ;;  %v4603_v6 = vld [vmem:[#allocation4_spill] sm:$0xff] }
 0x162   : > { %v4114_v11 = vadd.f32 %v1370_v21, %v1145_v58  ;;  %2482 = vmatprep.mubr.f32.mxu0 %v4571_v28  ;;  %2506 = vmatprep.mubr.f32.mxu1 %v4061_v59 }
 0x163   : > { %v1147_v46 = vpop.f32.mrf.mxu0  ;;  %v1372_v48 = vpop.f32.mrf.mxu1 }
 0x165   : > { %v1150_v61 = vpop.f32.mrf.mxu0  ;;  %v1375_v25 = vpop.f32.mrf.mxu1  ;;  %2483 = vmatmul.mubr.f32.gmra.mxu0 %v4574_v30  ;;  %2507 = vmatmul.mubr.f32.gmra.mxu1 %v4070_v7 }
 0x166   : > { %v4120_v5 = vadd.f32 %v1375_v25, %v1150_v61  ;;  %2485 = vmatprep.mubr.f32.mxu0 %v4577_v16  ;;  %2509 = vmatprep.mubr.f32.mxu1 %v4603_v6 }
 0x167   : > { %v1152_v35 = vpop.f32.mrf.mxu0  ;;  %v1377_v56 = vpop.f32.mrf.mxu1 }
 0x169   : > { %v1155_v40 = vpop.f32.mrf.mxu0  ;;  %v1380_v28 = vpop.f32.mrf.mxu1  ;;  %2486 = vmatmul.mubr.f32.gmra.mxu0 %v4580_v47  ;;  %2510 = vmatmul.mubr.f32.gmra.mxu1 %v4603_v6 }
 0x16a   : > { %v4126_v59 = vadd.f32 %v1380_v28, %v1155_v40 }
 0x16b   : > { %v1157_v37 = vpop.f32.mrf.mxu0  ;;  %v1382_v30 = vpop.f32.mrf.mxu1 }
 0x16d   : > { %v1160_v12 = vpop.f32.mrf.mxu0  ;;  %v1385_v7 = vpop.f32.mrf.mxu1 }
 0x16e   : > { %v4128_v57 = vadd.f32 %v1385_v7, %v1160_v12 }
 0x16f   : > { %v1162_v2 = vpop.f32.mrf.mxu0  ;;  %v1387_v16 = vpop.f32.mrf.mxu1 }
 0x171   : > { %v1165_v50 = vpop.f32.mrf.mxu0  ;;  %v1390_v20 = vpop.f32.mrf.mxu1 }
 0x172   : > { %v4130_v34 = vadd.f32 %v1390_v20, %v1165_v50 }
 0x173   : > { %v1167_v38 = vpop.f32.mrf.mxu0  ;;  %v1392_v51 = vpop.f32.mrf.mxu1 }
 0x175   : > { %v1170_v8 = vpop.f32.mrf.mxu0  ;;  %v1395_v47 = vpop.f32.mrf.mxu1 }
 0x176   : > { %v4132_v26 = vadd.f32 %v1395_v47, %v1170_v8 }
 0x177   : > { %v1172_v41 = vpop.f32.mrf.mxu0  ;;  %v1397_v9 = vpop.f32.mrf.mxu1 }
 0x179   : > { %v1175_v60 = vpop.f32.mrf.mxu0  ;;  %v1400_v62 = vpop.f32.mrf.mxu1 }
 0x17a   : > { %v4134_v19 = vadd.f32 %v1400_v62, %v1175_v60 }
 0x17b   : > { %v1177_v49 = vpop.f32.mrf.mxu0  ;;  %v1402_v44 = vpop.f32.mrf.mxu1 }
 0x17d   : > { %v1180_v36 = vpop.f32.mrf.mxu0  ;;  %v1405_v63 = vpop.f32.mrf.mxu1 }
 0x17e   : > { %v4136_v54 = vadd.f32 %v1405_v63, %v1180_v36 }
 0x17f   : > { %v1182_v52 = vpop.f32.mrf.mxu0  ;;  %v1407_v24 = vpop.f32.mrf.mxu1 }
 0x181   : > { %v1185_v53 = vpop.f32.mrf.mxu0  ;;  %v1410_v14 = vpop.f32.mrf.mxu1 }
 0x182   : > { %v4138_v58 = vadd.f32 %v1410_v14, %v1185_v53 }
 0x183   : > { %v1187_v21 = vpop.f32.mrf.mxu0  ;;  %v1412_v46 = vpop.f32.mrf.mxu1 }
 0x185   : > { %v1190_v48 = vpop.f32.mrf.mxu0  ;;  %v1415_v61 = vpop.f32.mrf.mxu1 }
 0x186   : > { %v4140_v25 = vadd.f32 %v1415_v61, %v1190_v48 }
 0x187   : > { %v1192_v6 = vpop.f32.mrf.mxu0  ;;  %v1417_v35 = vpop.f32.mrf.mxu1 }
 0x188   : > { %4604 = vst [vmem:[#allocation5_spill] sm:$0xff] %v4140_v25 }
 0x189   : > { %v1195_v56 = vpop.f32.mrf.mxu0  ;;  %v1420_v40 = vpop.f32.mrf.mxu1 }
 0x18a   : > { %v4142_v28 = vadd.f32 %v1420_v40, %v1195_v56 }
 0x18b   : > { %v1197_v37 = vpop.f32.mrf.mxu0  ;;  %v1422_v30 = vpop.f32.mrf.mxu1 }
 0x18c   : > { %4605 = vst [vmem:[#allocation8_spill] sm:$0xff] %v4142_v28 }
 0x18d   : > { %v1490_v12 = vpop.f32.mrf.mxu0  ;;  %v1715_v7 = vpop.f32.mrf.mxu1 }
 0x18e   : > { %v1491_v2 = vadd.f32 %v1490_v12, %v3962_v42 }
 0x18f   : > { %v1492_v16 = vpop.f32.mrf.mxu0  ;;  %v1717_v50 = vpop.f32.mrf.mxu1 }
 0x190   : > { %v4145_v20 = vadd.f32 %v1715_v7, %v1491_v2 }
 0x191   : > { %v1495_v38 = vpop.f32.mrf.mxu0  ;;  %v1720_v51 = vpop.f32.mrf.mxu1 }
 0x192   : > { %v1496_v8 = vadd.f32 %v1495_v38, %v3968_v17 }
 0x193   : > { %v1497_v47 = vpop.f32.mrf.mxu0  ;;  %v1722_v41 = vpop.f32.mrf.mxu1 }
 0x194   : > { %v4148_v9 = vadd.f32 %v1720_v51, %v1496_v8 }
 0x195   : > { %v1500_v60 = vpop.f32.mrf.mxu0  ;;  %v1725_v62 = vpop.f32.mrf.mxu1 }
 0x196   : > { %v1501_v49 = vadd.f32 %v1500_v60, %v3976_v3 }
 0x197   : > { %v1502_v44 = vpop.f32.mrf.mxu0  ;;  %v1727_v36 = vpop.f32.mrf.mxu1 }
 0x198   : > { %v4151_v63 = vadd.f32 %v1725_v62, %v1501_v49 }
 0x199   : > { %v1505_v42 = vpop.f32.mrf.mxu0  ;;  %v1730_v52 = vpop.f32.mrf.mxu1 }
 0x19a   : > { %v1506_v24 = vadd.f32 %v1505_v42, %v3982_v15 }
 0x19b   : > { %v1507_v53 = vpop.f32.mrf.mxu0  ;;  %v1732_v14 = vpop.f32.mrf.mxu1 }
 0x19c   : > { %v4154_v21 = vadd.f32 %v1730_v52, %v1506_v24 }
 0x19d   : > { %v1510_v17 = vpop.f32.mrf.mxu0  ;;  %v1735_v46 = vpop.f32.mrf.mxu1 }
 0x19e   : > { %v1511_v48 = vadd.f32 %v1510_v17, %v3990_v10 }
 0x19f   : > { %v1512_v61 = vpop.f32.mrf.mxu0  ;;  %v1737_v6 = vpop.f32.mrf.mxu1 }
 0x1a0   : > { %v4157_v35 = vadd.f32 %v1735_v46, %v1511_v48 }
 0x1a1   : > { %v1515_v3 = vpop.f32.mrf.mxu0  ;;  %v1740_v56 = vpop.f32.mrf.mxu1 }
 0x1a2   : > { %v1516_v40 = vadd.f32 %v1515_v3, %v3996_v43 }
 0x1a3   : > { %v1517_v37 = vpop.f32.mrf.mxu0  ;;  %v1742_v30 = vpop.f32.mrf.mxu1 }
 0x1a4   : > { %v4160_v12 = vadd.f32 %v1740_v56, %v1516_v40 }
 0x1a5   : > { %v1520_v15 = vpop.f32.mrf.mxu0  ;;  %v1745_v7 = vpop.f32.mrf.mxu1 }
 0x1a6   : > { %v1521_v2 = vadd.f32 %v1520_v15, %v4005_v32 }
 0x1a7   : > { %v1522_v16 = vpop.f32.mrf.mxu0  ;;  %v1747_v50 = vpop.f32.mrf.mxu1 }
 0x1a8   : > { %v4163_v38 = vadd.f32 %v1745_v7, %v1521_v2 }
 0x1a9   : > { %v1525_v10 = vpop.f32.mrf.mxu0  ;;  %v1750_v51 = vpop.f32.mrf.mxu1 }
 0x1aa   : > { %v1526_v8 = vadd.f32 %v1525_v10, %v4012_v0 }
 0x1ab   : > { %v1527_v47 = vpop.f32.mrf.mxu0  ;;  %v1752_v41 = vpop.f32.mrf.mxu1 }
 0x1ac   : > { %v4166_v60 = vadd.f32 %v1750_v51, %v1526_v8 }
 0x1ad   : > { %v1530_v43 = vpop.f32.mrf.mxu0  ;;  %v1755_v62 = vpop.f32.mrf.mxu1 }
 0x1ae   : > { %v1531_v49 = vadd.f32 %v1530_v43, %v4021_v55 }
 0x1af   : > { %v1532_v44 = vpop.f32.mrf.mxu0  ;;  %v1757_v36 = vpop.f32.mrf.mxu1 }
 0x1b0   : > { %v4169_v42 = vadd.f32 %v1755_v62, %v1531_v49 }
 0x1b1   : > { %v1535_v32 = vpop.f32.mrf.mxu0  ;;  %v1760_v52 = vpop.f32.mrf.mxu1 }
 0x1b2   : > { %v1536_v24 = vadd.f32 %v1535_v32, %v4030_v33 }
 0x1b3   : > { %v1537_v53 = vpop.f32.mrf.mxu0  ;;  %v1762_v14 = vpop.f32.mrf.mxu1 }
 0x1b4   : > { %v4172_v17 = vadd.f32 %v1760_v52, %v1536_v24 }
 0x1b5   : > { %v1540_v0 = vpop.f32.mrf.mxu0  ;;  %v1765_v46 = vpop.f32.mrf.mxu1 }
 0x1b6   : > { %v1541_v48 = vadd.f32 %v1540_v0, %v4041_v18 }
 0x1b7   : > { %v1542_v61 = vpop.f32.mrf.mxu0  ;;  %v1767_v6 = vpop.f32.mrf.mxu1 }
 0x1b8   : > { %v4175_v3 = vadd.f32 %v1765_v46, %v1541_v48 }
 0x1b9   : > { %v1545_v55 = vpop.f32.mrf.mxu0  ;;  %v1770_v56 = vpop.f32.mrf.mxu1 }
 0x1ba   : > { %v1546_v40 = vadd.f32 %v1545_v55, %v4048_v27 }
 0x1bb   : > { %v1547_v37 = vpop.f32.mrf.mxu0  ;;  %v1772_v30 = vpop.f32.mrf.mxu1 }
 0x1bc   : > { %v4178_v15 = vadd.f32 %v1770_v56, %v1546_v40 }
 0x1bd   : > { %v1550_v33 = vpop.f32.mrf.mxu0  ;;  %v1775_v7 = vpop.f32.mrf.mxu1 }
 0x1be   : > { %v1551_v2 = vadd.f32 %v1550_v33, %v4057_v23 }
 0x1bf   : > { %v1552_v16 = vpop.f32.mrf.mxu0  ;;  %v1777_v50 = vpop.f32.mrf.mxu1 }
 0x1c0   : > { %v4181_v10 = vadd.f32 %v1775_v7, %v1551_v2 }
 0x1c1   : > { %v1555_v18 = vpop.f32.mrf.mxu0  ;;  %v1780_v51 = vpop.f32.mrf.mxu1 }
 0x1c2   : > { %4606 = vst [vmem:[#allocation11_spill] sm:$0xff] %v4181_v10  ;;  %v1556_v8 = vadd.f32 %v1555_v18, %v4065_v45 }
 0x1c3   : > { %v1557_v47 = vpop.f32.mrf.mxu0  ;;  %v1782_v41 = vpop.f32.mrf.mxu1 }
 0x1c4   : > { %v4184_v43 = vadd.f32 %v1780_v51, %v1556_v8 }
 0x1c5   : > { %v1560_v27 = vpop.f32.mrf.mxu0  ;;  %v1785_v62 = vpop.f32.mrf.mxu1 }
 0x1c6   : > { %4607 = vst [vmem:[#allocation6_spill] sm:$0xff] %v4184_v43  ;;  %v1561_v49 = vadd.f32 %v1560_v27, %v4073_v31 }
 0x1c7   : > { %v1562_v44 = vpop.f32.mrf.mxu0  ;;  %v1787_v36 = vpop.f32.mrf.mxu1 }
 0x1c8   : > { %v4187_v32 = vadd.f32 %v1785_v62, %v1561_v49 }
 0x1c9   : > { %v1565_v23 = vpop.f32.mrf.mxu0  ;;  %v1790_v52 = vpop.f32.mrf.mxu1 }
 0x1ca   : > { %4608 = vst [vmem:[#allocation10_spill] sm:$0xff] %v4187_v32  ;;  %v1566_v24 = vadd.f32 %v1565_v23, %v4078_v22 }
 0x1cb   : > { %v1567_v53 = vpop.f32.mrf.mxu0  ;;  %v1792_v14 = vpop.f32.mrf.mxu1 }
 0x1cc   : > { %v4190_v0 = vadd.f32 %v1790_v52, %v1566_v24 }
 0x1cd   : > { %v1570_v45 = vpop.f32.mrf.mxu0  ;;  %v1795_v46 = vpop.f32.mrf.mxu1 }
 0x1ce   : > { %4609 = vst [vmem:[#allocation14_spill] sm:$0xff] %v4190_v0  ;;  %v1571_v48 = vadd.f32 %v1570_v45, %v4084_v1 }
 0x1cf   : > { %v1572_v61 = vpop.f32.mrf.mxu0  ;;  %v1797_v6 = vpop.f32.mrf.mxu1 }
 0x1d0   : > { %v4193_v55 = vadd.f32 %v1795_v46, %v1571_v48 }
 0x1d1   : > { %v1575_v31 = vpop.f32.mrf.mxu0  ;;  %v1800_v56 = vpop.f32.mrf.mxu1 }
 0x1d3   : > { %v1577_v40 = vpop.f32.mrf.mxu0  ;;  %v1802_v37 = vpop.f32.mrf.mxu1 }
 0x1d5   : > { %v1580_v30 = vpop.f32.mrf.mxu0  ;;  %v4195_v33 = vpop.f32.mrf.mxu1 }
 0x1d6   : > { %v1581_v28 = vadd.f32 %v1580_v30, %v4096_v4 }
 0x1d7   : > { %v1582_v22 = vpop.f32.mrf.mxu0  ;;  %v1807_v7 = vpop.f32.mrf.mxu1 }
 0x1d8   : > { %v1806_v30 = vadd.f32 %v4195_v33, %v1581_v28 }
 0x1d9   : > { %v1585_v2 = vpop.f32.mrf.mxu0  ;;  %v4197_v16 = vpop.f32.mrf.mxu1 }
 0x1db   : > { %v1587_v50 = vpop.f32.mrf.mxu0  ;;  %v1812_v18 = vpop.f32.mrf.mxu1 }
 0x1dd   : > { %v4199_v51 = vpop.f32.mrf.mxu0  ;;  %v4201_v1 = vpop.f32.mrf.mxu1 }
 0x1de   : > { %v1591_v28 = vadd.f32 %v4199_v51, %v4108_v13 }
 0x1df   : > { %v1592_v8 = vpop.f32.mrf.mxu0  ;;  %v1817_v47 = vpop.f32.mrf.mxu1 }
 0x1e1   : > { %v1595_v41 = vpop.f32.mrf.mxu0  ;;  %v4203_v27 = vpop.f32.mrf.mxu1 }
 0x1e3   : > { %v1597_v62 = vpop.f32.mrf.mxu0  ;;  %v1822_v49 = vpop.f32.mrf.mxu1 }
 0x1e5   : > { %v4205_v44 = vpop.f32.mrf.mxu0  ;;  %v4207_v36 = vpop.f32.mrf.mxu1 }
 0x1e7   : > { %v1602_v23 = vpop.f32.mrf.mxu0  ;;  %v1827_v52 = vpop.f32.mrf.mxu1 }
 0x1e9   : > { %v4209_v24 = vpop.f32.mrf.mxu0  ;;  %v4211_v53 = vpop.f32.mrf.mxu1 }
 0x1eb   : > { %v1607_v14 = vpop.f32.mrf.mxu0  ;;  %v1832_v45 = vpop.f32.mrf.mxu1 }
 0x1ed   : > { %v4213_v46 = vpop.f32.mrf.mxu0  ;;  %v4215_v48 = vpop.f32.mrf.mxu1 }
 0x1ef   : > { %v1612_v61 = vpop.f32.mrf.mxu0  ;;  %v1837_v6 = vpop.f32.mrf.mxu1 }
 0x1f1   : > { %v4217_v40 = vpop.f32.mrf.mxu0  ;;  %v4219_v37 = vpop.f32.mrf.mxu1 }
 0x1f3   : > { %v1617_v22 = vpop.f32.mrf.mxu0  ;;  %v1842_v7 = vpop.f32.mrf.mxu1 }
 0x1f5   : > { %v4221_v50 = vpop.f32.mrf.mxu0  ;;  %v4223_v18 = vpop.f32.mrf.mxu1 }
 0x1f7   : > { %v1622_v8 = vpop.f32.mrf.mxu0  ;;  %v1847_v47 = vpop.f32.mrf.mxu1 }
 0x1f9   : > { %v4225_v62 = vpop.f32.mrf.mxu0  ;;  %v4227_v49 = vpop.f32.mrf.mxu1 }
 0x1fb   : > { %v1627_v23 = vpop.f32.mrf.mxu0  ;;  %v1852_v52 = vpop.f32.mrf.mxu1 }
 0x1fc   : > { %v1576_v52 = vadd.f32 %v1575_v31, %v4090_v29 }
 0x1fd   : > { %v4229_v14 = vpop.f32.mrf.mxu0  ;;  %v4231_v45 = vpop.f32.mrf.mxu1 }
 0x1fe   : > { %4610 = vst [vmem:[#allocation7_spill] sm:$0xff] %v4231_v45  ;;  %v1801_v45 = vadd.f32 %v1800_v56, %v1576_v52 }
 0x1ff   : > { %v1632_v61 = vpop.f32.mrf.mxu0  ;;  %v1857_v6 = vpop.f32.mrf.mxu1 }
 0x201   : > { %v4233_v22 = vpop.f32.mrf.mxu0  ;;  %v4235_v7 = vpop.f32.mrf.mxu1 }
 0x203   : > { %v1637_v32 = vpop.f32.mrf.mxu0  ;;  %v1862_v8 = vpop.f32.mrf.mxu1 }
 0x204   : > { %v1586_v32 = vadd.f32 %v1585_v2, %v4102_v39 }
 0x205   : > { %v4237_v47 = vpop.f32.mrf.mxu0  ;;  %v4239_v0 = vpop.f32.mrf.mxu1 }
 0x206   : > { %v1811_v2 = vadd.f32 %v4197_v16, %v1586_v32 }
 0x207   : > { %v1642_v10 = vpop.f32.mrf.mxu0  ;;  %v1867_v23 = vpop.f32.mrf.mxu1 }
 0x209   : > { %v4242_v25 = vpop.f32.mrf.mxu0  ;;  %v4244_v43 = vpop.f32.mrf.mxu1 }
 0x20b   : > { %v1647_v61 = vpop.f32.mrf.mxu0  ;;  %v1872_v6 = vpop.f32.mrf.mxu1 }
 0x20d   : > { %v2466_v29 = vpop.f32.mrf.mxu0  ;;  %v2490_v10 = vpop.f32.mrf.mxu1 }
 0x20e   : > { %v1946_v31 = vadd.f32 %v2466_v29, %v4148_v9  ;;  %v4255_v8 = vadd.f32 %v2490_v10, %v1801_v45  ;;  %v1596_v9 = vadd.f32 %v1595_v41, %v4114_v11 }
 0x20f   : > { %v1940_v56 = vpop.f32.mrf.mxu0  ;;  %v2020_v23 = vpop.f32.mrf.mxu1 }
 0x210   : > { %2209 = vst [vmem:[%s4252_s8 + $0x8] sm:$0xff] %v1946_v31  ;;  %2225 = vst [vmem:[%s4252_s8 + $0x88] sm:$0xff] %v4255_v8  ;;  %v1941_v4 = vadd.f32 %v1940_v56, %v4145_v20  ;;  %v4262_v39 = vadd.f32 %v2020_v23, %v4193_v55  ;;  %v2137_v61 = vmul.f32 %v1946_v31, %v1946_v31 }
 0x211   : > { %v2469_v45 = vpop.f32.mrf.mxu0  ;;  %v2493_v52 = vpop.f32.mrf.mxu1  ;;  %v1821_v10 = vadd.f32 %v4203_v27, %v1596_v9  ;;  %v1816_v23 = vadd.f32 %v4201_v1, %v1591_v28  ;;  %v1601_v27 = vadd.f32 %v4205_v44, %v4120_v5 }
 0x212   : > { %v2099_v6 = vadd.f32 %v1946_v31, %v1941_v4  ;;  %v2136_v29 = vmul.f32 %v1941_v4, %v1941_v4  ;;  %2208 = vst [vmem:[%s4252_s8] sm:$0xff] %v1941_v4  ;;  %2224 = vst [vmem:[%s4252_s8 + $0x80] sm:$0xff] %v4262_v39  ;;  %v1956_v20 = vadd.f32 %v2469_v45, %v4154_v21 }
 0x213   : > { %v4273_v55 = vadd.f32 %v2493_v52, %v1811_v2  ;;  %v1950_v33 = vpop.f32.mrf.mxu0  ;;  %v2030_v11 = vpop.f32.mrf.mxu1  ;;  %v1606_v21 = vadd.f32 %v4209_v24, %v4126_v59 }
 0x214   : > { %v2168_v16 = vadd.f32 %v2137_v61, %v2136_v29  ;;  %2211 = vst [vmem:[%s4252_s8 + $0x18] sm:$0xff] %v1956_v20  ;;  %v1951_v41 = vadd.f32 %v1950_v33, %v4151_v63  ;;  %v4277_v32 = vadd.f32 %v2030_v11, %v1806_v30  ;;  %v2139_v30 = vmul.f32 %v1956_v20, %v1956_v20 }
 0x215   : > { %2227 = vst [vmem:[%s4252_s8 + $0x98] sm:$0xff] %v4273_v55  ;;  %v2472_v13 = vpop.f32.mrf.mxu0  ;;  %v2496_v51 = vpop.f32.mrf.mxu1  ;;  %v1831_v52 = vadd.f32 %v4211_v53, %v1606_v21  ;;  %v1611_v53 = vadd.f32 %v4213_v46, %v4128_v57 }
 0x216   : > { %v2100_v31 = vadd.f32 %v2099_v6, %v1951_v41  ;;  %v2138_v56 = vmul.f32 %v1951_v41, %v1951_v41  ;;  %2210 = vst [vmem:[%s4252_s8 + $0x10] sm:$0xff] %v1951_v41  ;;  %2226 = vst [vmem:[%s4252_s8 + $0x90] sm:$0xff] %v4277_v32  ;;  %v1966_v63 = vadd.f32 %v2472_v13, %v4160_v12 }
 0x217   : > { %v4291_v4 = vadd.f32 %v2496_v51, %v1821_v10  ;;  %v1960_v59 = vpop.f32.mrf.mxu0  ;;  %v2040_v24 = vpop.f32.mrf.mxu1  ;;  %v1616_v12 = vadd.f32 %v4217_v40, %v4130_v34 }
 0x218   : > { %v2169_v2 = vadd.f32 %v2168_v16, %v2138_v56  ;;  %2213 = vst [vmem:[%s4252_s8 + $0x28] sm:$0xff] %v1966_v63  ;;  %v1961_v9 = vadd.f32 %v1960_v59, %v4157_v35  ;;  %v2101_v45 = vadd.f32 %v2100_v31, %v1956_v20  ;;  %v4300_v5 = vadd.f32 %v2040_v24, %v1816_v23 }
 0x219   : > { %2229 = vst [vmem:[%s4252_s8 + $0xa8] sm:$0xff] %v4291_v4  ;;  %v2475_v1 = vpop.f32.mrf.mxu0  ;;  %v2499_v44 = vpop.f32.mrf.mxu1  ;;  %v1826_v20 = vadd.f32 %v4207_v36, %v1601_v27  ;;  %v2141_v33 = vmul.f32 %v1966_v63, %v1966_v63  ;;  %v1626_v36 = vadd.f32 %v4225_v62, %v4134_v19  ;;  %v1836_v31 = vadd.f32 %v4215_v48, %v1611_v53 }
 0x21a   : > { %v2102_v61 = vadd.f32 %v2101_v45, %v1961_v9  ;;  %v2140_v6 = vmul.f32 %v1961_v9, %v1961_v9  ;;  %v2170_v29 = vadd.f32 %v2169_v2, %v2139_v30  ;;  %2212 = vst [vmem:[%s4252_s8 + $0x20] sm:$0xff] %v1961_v9  ;;  %v1976_v35 = vadd.f32 %v2475_v1, %v4166_v60 }
 0x21b   : > { %2228 = vst [vmem:[%s4252_s8 + $0xa0] sm:$0xff] %v4300_v5  ;;  %v4309_v34 = vadd.f32 %v2499_v44, %v1831_v52  ;;  %v1970_v40 = vpop.f32.mrf.mxu0  ;;  %v2050_v28 = vpop.f32.mrf.mxu1  ;;  %v1841_v60 = vadd.f32 %v4219_v37, %v1616_v12  ;;  %v1621_v37 = vadd.f32 %v4221_v50, %v4132_v26  ;;  %v1636_v48 = vadd.f32 %v4233_v22, %v4138_v58 }
 0x21c   : > { %v2171_v11 = vadd.f32 %v2170_v29, %v2140_v6  ;;  %2215 = vst [vmem:[%s4252_s8 + $0x38] sm:$0xff] %v1976_v35  ;;  %v1971_v16 = vadd.f32 %v1970_v40, %v4163_v38  ;;  %v2103_v41 = vadd.f32 %v2102_v61, %v1966_v63  ;;  %v4318_v57 = vadd.f32 %v2050_v28, %v1826_v20  ;;  %v4612_v40 = vld [vmem:[#allocation6_spill] sm:$0xff]  ;;  %v4613_v28 = vld [vmem:[#allocation7_spill] sm:$0xff] }
 0x21d   : > { %2231 = vst [vmem:[%s4252_s8 + $0xb8] sm:$0xff] %v4309_v34  ;;  %v2478_v46 = vpop.f32.mrf.mxu0  ;;  %v2502_v10 = vpop.f32.mrf.mxu1  ;;  %v2143_v63 = vmul.f32 %v1976_v35, %v1976_v35  ;;  %v1846_v45 = vadd.f32 %v4223_v18, %v1621_v37  ;;  %v4611_v18 = vld [vmem:[#allocation8_spill] sm:$0xff] }
 0x21e   : > { %v2104_v21 = vadd.f32 %v2103_v41, %v1971_v16  ;;  %v2142_v13 = vmul.f32 %v1971_v16, %v1971_v16  ;;  %v2172_v51 = vadd.f32 %v2171_v11, %v2141_v33  ;;  %2214 = vst [vmem:[%s4252_s8 + $0x30] sm:$0xff] %v1971_v16  ;;  %v1986_v38 = vadd.f32 %v2478_v46, %v4172_v17  ;;  %v4615_v46 = vld [vmem:[#allocation11_spill] sm:$0xff] }
 0x21f   : > { %2230 = vst [vmem:[%s4252_s8 + $0xb0] sm:$0xff] %v4318_v57  ;;  %v4327_v19 = vadd.f32 %v2502_v10, %v1841_v60  ;;  %v1980_v62 = vpop.f32.mrf.mxu0  ;;  %v2060_v56 = vpop.f32.mrf.mxu1  ;;  %v1851_v17 = vadd.f32 %v4227_v49, %v1626_v36  ;;  %v1631_v49 = vadd.f32 %v4229_v14, %v4136_v54  ;;  %v1646_v6 = vadd.f32 %v4242_v25, %v4611_v18 }
 0x220   : > { %v2173_v23 = vadd.f32 %v2172_v51, %v2142_v13  ;;  %2217 = vst [vmem:[%s4252_s8 + $0x48] sm:$0xff] %v1986_v38  ;;  %v1981_v27 = vadd.f32 %v1980_v62, %v4169_v42  ;;  %v2105_v59 = vadd.f32 %v2104_v21, %v1976_v35  ;;  %v4336_v26 = vadd.f32 %v2060_v56, %v1836_v31  ;;  %v4616_v56 = vld [vmem:[#allocation14_spill] sm:$0xff] }
 0x221   : > { %2233 = vst [vmem:[%s4252_s8 + $0xc8] sm:$0xff] %v4327_v19  ;;  %v2481_v50 = vpop.f32.mrf.mxu0  ;;  %v2505_v24 = vpop.f32.mrf.mxu1  ;;  %v2145_v12 = vmul.f32 %v1986_v38, %v1986_v38  ;;  %v1856_v33 = vadd.f32 %v4613_v28, %v1631_v49  ;;  %v1871_v13 = vadd.f32 %v4244_v43, %v1646_v6  ;;  %v2154_v18 = vmul.f32 %v4277_v32, %v4277_v32 }
 0x222   : > { %v2106_v30 = vadd.f32 %v2105_v59, %v1981_v27  ;;  %v2144_v2 = vmul.f32 %v1981_v27, %v1981_v27  ;;  %v2174_v9 = vadd.f32 %v2173_v23, %v2143_v63  ;;  %2216 = vst [vmem:[%s4252_s8 + $0x40] sm:$0xff] %v1981_v27  ;;  %v1996_v42 = vadd.f32 %v2481_v50, %v4178_v15  ;;  %v4617_v50 = vld [vmem:[#allocation10_spill] sm:$0xff] }
 0x223   : > { %2232 = vst [vmem:[%s4252_s8 + $0xc0] sm:$0xff] %v4336_v26  ;;  %v4345_v58 = vadd.f32 %v2505_v24, %v1851_v17  ;;  %v1990_v22 = vpop.f32.mrf.mxu0  ;;  %v2070_v52 = vpop.f32.mrf.mxu1  ;;  %v1861_v15 = vadd.f32 %v4235_v7, %v1636_v48  ;;  %v4614_v7 = vld [vmem:[#allocation5_spill] sm:$0xff] }
 0x224   : > { %v2175_v1 = vadd.f32 %v2174_v9, %v2144_v2  ;;  %2219 = vst [vmem:[%s4252_s8 + $0x58] sm:$0xff] %v1996_v42  ;;  %v1991_v44 = vadd.f32 %v1990_v22, %v4175_v3  ;;  %v2107_v61 = vadd.f32 %v2106_v30, %v1986_v38  ;;  %v4354_v54 = vadd.f32 %v2070_v52, %v1846_v45 }
 0x225   : > { %2235 = vst [vmem:[%s4252_s8 + $0xd8] sm:$0xff] %v4345_v58  ;;  %v2484_v14 = vpop.f32.mrf.mxu0  ;;  %v2508_v29 = vpop.f32.mrf.mxu1  ;;  %v1641_v11 = vadd.f32 %v4237_v47, %v4614_v7  ;;  %v2147_v60 = vmul.f32 %v1996_v42, %v1996_v42  ;;  %v2152_v52 = vmul.f32 %v4262_v39, %v4262_v39 }
 0x226   : > { %v2108_v35 = vadd.f32 %v2107_v61, %v1991_v44  ;;  %v2146_v20 = vmul.f32 %v1991_v44, %v1991_v44  ;;  %v2176_v53 = vadd.f32 %v2175_v1, %v2145_v12  ;;  %2218 = vst [vmem:[%s4252_s8 + $0x50] sm:$0xff] %v1991_v44  ;;  %v2006_v3 = vadd.f32 %v2484_v14, %v4612_v40 }
 0x227   : > { %2234 = vst [vmem:[%s4252_s8 + $0xd0] sm:$0xff] %v4354_v54  ;;  %v4363_v25 = vadd.f32 %v2508_v29, %v1861_v15  ;;  %v2000_v16 = vpop.f32.mrf.mxu0  ;;  %v2080_v41 = vpop.f32.mrf.mxu1  ;;  %v1866_v23 = vadd.f32 %v4239_v0, %v1641_v11  ;;  %v2153_v44 = vmul.f32 %v4255_v8, %v4255_v8  ;;  %v2155_v29 = vmul.f32 %v4273_v55, %v4273_v55 }
 0x228   : > { %v2177_v36 = vadd.f32 %v2176_v53, %v2146_v20  ;;  %2221 = vst [vmem:[%s4252_s8 + $0x68] sm:$0xff] %v2006_v3  ;;  %v2001_v10 = vadd.f32 %v2000_v16, %v4615_v46  ;;  %v2109_v21 = vadd.f32 %v2108_v35, %v1996_v42  ;;  %v4370_v47 = vadd.f32 %v2080_v41, %v1856_v33 }
 0x229   : > { %2237 = vst [vmem:[%s4252_s8 + $0xe8] sm:$0xff] %v4363_v25  ;;  %v2487_v51 = vpop.f32.mrf.mxu0  ;;  %v2511_v38 = vpop.f32.mrf.mxu1  ;;  %v2149_v17 = vmul.f32 %v2006_v3, %v2006_v3 }
 0x22a   : > { %v2110_v31 = vadd.f32 %v2109_v21, %v2001_v10  ;;  %v2148_v37 = vmul.f32 %v2001_v10, %v2001_v10  ;;  %v2178_v62 = vadd.f32 %v2177_v36, %v2147_v60  ;;  %2220 = vst [vmem:[%s4252_s8 + $0x60] sm:$0xff] %v2001_v10  ;;  %v2016_v63 = vadd.f32 %v2487_v51, %v4616_v56 }
 0x22b   : > { %2236 = vst [vmem:[%s4252_s8 + $0xe0] sm:$0xff] %v4370_v47  ;;  %v4377_v43 = vadd.f32 %v2511_v38, %v1871_v13  ;;  %v2010_v27 = vpop.f32.mrf.mxu0  ;;  %v2090_v59 = vpop.f32.mrf.mxu1 }
 0x22c   : > { %v2179_v48 = vadd.f32 %v2178_v62, %v2148_v37  ;;  %2223 = vst [vmem:[%s4252_s8 + $0x78] sm:$0xff] %v2016_v63  ;;  %v2011_v24 = vadd.f32 %v2010_v27, %v4617_v50  ;;  %v2111_v30 = vadd.f32 %v2110_v31, %v2006_v3  ;;  %v2091_v2 = vadd.f32 %v2090_v59, %v1866_v23 }
 0x22d   : > { %2239 = vst [vmem:[%s4252_s8 + $0xf8] sm:$0xff] %v4377_v43  ;;  %v2151_v0 = vmul.f32 %v2016_v63, %v2016_v63 }
 0x22e   : > { %v2112_v9 = vadd.f32 %v2111_v30, %v2011_v24  ;;  %v2150_v42 = vmul.f32 %v2011_v24, %v2011_v24  ;;  %v2180_v45 = vadd.f32 %v2179_v48, %v2149_v17  ;;  %2222 = vst [vmem:[%s4252_s8 + $0x70] sm:$0xff] %v2011_v24  ;;  %2238 = vst [vmem:[%s4252_s8 + $0xf0] sm:$0xff] %v2091_v2 }
 0x22f   : > { %v2166_v56 = vmul.f32 %v2091_v2, %v2091_v2 }
 0x230   : > { %v2113_v49 = vadd.f32 %v2112_v9, %v2016_v63  ;;  %v2181_v22 = vadd.f32 %v2180_v45, %v2150_v42 }
 0x232   : > { %v2114_v12 = vadd.f32 %v2113_v49, %v4262_v39  ;;  %v2182_v1 = vadd.f32 %v2181_v22, %v2151_v0  ;;  %v2156_v39 = vmul.f32 %v4300_v5, %v4300_v5 }
 0x234   : > { %v2115_v61 = vadd.f32 %v2114_v12, %v4255_v8  ;;  %v2183_v15 = vadd.f32 %v2182_v1, %v2152_v52  ;;  %v2157_v8 = vmul.f32 %v4291_v4, %v4291_v4 }
 0x236   : > { %v2116_v6 = vadd.f32 %v2115_v61, %v4277_v32  ;;  %v2184_v14 = vadd.f32 %v2183_v15, %v2153_v44  ;;  %v2158_v32 = vmul.f32 %v4318_v57, %v4318_v57 }
 0x238   : > { %v2117_v35 = vadd.f32 %v2116_v6, %v4273_v55  ;;  %v2185_v20 = vadd.f32 %v2184_v14, %v2154_v18  ;;  %v2159_v55 = vmul.f32 %v4309_v34, %v4309_v34 }
 0x23a   : > { %v2118_v53 = vadd.f32 %v2117_v35, %v4300_v5  ;;  %v2186_v40 = vadd.f32 %v2185_v20, %v2155_v29  ;;  %v2160_v5 = vmul.f32 %v4336_v26, %v4336_v26 }
 0x23c   : > { %v2119_v3 = vadd.f32 %v2118_v53, %v4291_v4  ;;  %v2187_v28 = vadd.f32 %v2186_v40, %v2156_v39  ;;  %v2161_v4 = vmul.f32 %v4327_v19, %v4327_v19 }
 0x23e   : > { %v2188_v33 = vadd.f32 %v2187_v28, %v2157_v8  ;;  %v2120_v7 = vadd.f32 %v2119_v3, %v4318_v57  ;;  %v2162_v57 = vmul.f32 %v4354_v54, %v4354_v54 }
 0x240   : > { %v2121_v11 = vadd.f32 %v2120_v7, %v4309_v34  ;;  %v2189_v16 = vadd.f32 %v2188_v33, %v2158_v32  ;;  %v2163_v34 = vmul.f32 %v4345_v58, %v4345_v58 }
 0x242   : > { %v2122_v41 = vadd.f32 %v2121_v11, %v4336_v26  ;;  %v2190_v60 = vadd.f32 %v2189_v16, %v2159_v55  ;;  %v2164_v26 = vmul.f32 %v4370_v47, %v4370_v47 }
 0x244   : > { %v2123_v36 = vadd.f32 %v2122_v41, %v4327_v19  ;;  %v2191_v46 = vadd.f32 %v2190_v60, %v2160_v5  ;;  %v2165_v19 = vmul.f32 %v4363_v25, %v4363_v25 }
 0x246   : > { %v2124_v10 = vadd.f32 %v2123_v36, %v4354_v54  ;;  %v2192_v21 = vadd.f32 %v2191_v46, %v2161_v4 }
 0x248   : > { %v2125_v13 = vadd.f32 %v2124_v10, %v4345_v58  ;;  %v2193_v51 = vadd.f32 %v2192_v21, %v2162_v57  ;;  %v2167_v58 = vmul.f32 %v4377_v43, %v4377_v43 }
 0x24a   : > { %v2126_v38 = vadd.f32 %v2125_v13, %v4370_v47  ;;  %v2194_v31 = vadd.f32 %v2193_v51, %v2163_v34 }
 0x24c   : > { %v2127_v37 = vadd.f32 %v2126_v38, %v4363_v25  ;;  %v2195_v62 = vadd.f32 %v2194_v31, %v2164_v26 }
 0x24e   : > { %v2128_v54 = vadd.f32 %v2127_v37, %v2091_v2  ;;  %v2196_v63 = vadd.f32 %v2195_v62, %v2165_v19 }
 0x250   : > { %v2129_v23 = vadd.f32 %v2128_v54, %v4377_v43  ;;  %v2197_v27 = vadd.f32 %v2196_v63, %v2166_v56 }
 0x252   : > { %v2130_v59 = vrot.slane %v2129_v23, 4  ;;  %v2198_v17 = vadd.f32 %v2197_v27, %v2167_v58 }
 0x254   : > { %v2131_v47 = vadd.f32 %v2130_v59, %v2129_v23  ;;  %v2199_v48 = vrot.slane %v2198_v17, 4 }
 0x256   : > { %v2132_v50 = vrot.slane %v2131_v47, 2  ;;  %v2200_v24 = vadd.f32 %v2199_v48, %v2198_v17 }
 0x258   : > { %v2133_v30 = vadd.f32 %v2132_v50, %v2131_v47  ;;  %v2201_v9 = vrot.slane %v2200_v24, 2 }
 0x25a   : > { %v2134_v25 = vrot.slane %v2133_v30, 1  ;;  %v2202_v42 = vadd.f32 %v2201_v9, %v2200_v24 }
 0x25c   : > { %v2203_v45 = vrot.slane %v2202_v42, 1  ;;  %v2135_v2 = vadd.f32 %v2134_v25, %v2133_v30 }
 0x25e   : > { %v2204_v43 = vadd.f32 %v2203_v45, %v2202_v42 }
 0x260   : > { %v2206_v0 = vsel %vm2205_vm4, %v2135_v2, %v2204_v43 }
 0x261   : > { %2207 = vst [vmem:[%s208_s12] sm:$0x3] %v2206_v0 }
 0x262 PF: > { %s15_s15 = sadd.s32 1, %s2560_s15  }
 0x263   : > { %p12_p4 = scmp.ge.s32.totalorder %s15_s15, 4  }
 0x265   :  { %14 = sbr.rel (!%p12_p4) target bundleno = 1 (0x1), region = 74 }

// kernel: bottleneck_forward.4
= control target key start
LH: loop header
LB: loop body
LE: loop exit
PB: predicated region body
PF: predicated region fallthrough
CT: control target
= control target key end

     0   :  { %s5017_s21 = smov 0   ;;  %s6430_s0 = inlined_call_operand.vmem [shape: f32[2,18,18,4], index: 0, kind: input, shape index: {}]   ;;  %s6431_s1 = inlined_call_operand.vmem [shape: f32[4,128], index: 1, kind: input, shape index: {}]   ;;  %s6432_s2 = inlined_call_operand.vmem [shape: f32[4,128], index: 2, kind: input, shape index: {}]   ;;  %s6433_s3 = inlined_call_operand.vmem [shape: f32[2,18,18,128], index: 3, kind: output, shape index: {0}]   ;;  %s6434_s4 = inlined_call_operand.vmem [shape: f32[2,2,128], index: 4, kind: output, shape index: {1}]   ;;  %s6435_s5 = inlined_call_operand.vmem [shape: f32[2,16,16,128], index: 5, kind: output, shape index: {2}]   ;;  %s6436_s6 = inlined_call_operand.vmem [shape: f32[2,2,128], index: 6, kind: output, shape index: {3}]  }
   0x1 LB: > { %s4554_s22 = sadd.s32 4294967295, %s4977_s21   ;;  %p4558_p0 = scmp.ge.s32.totalorder %s4977_s21, 1  ;;  %s4977_s21 = sphi %s5017_s21, %s17_s21  }
   0x2   : > { %p219_p1 = scmp.lt.s32.totalorder %s4977_s21, 3 }
   0x4   : > { %p220_p2 = pnand %p4558_p0, %p219_p1 }
   0x5   : > { %p262_p3 = scmp.lt.s32.totalorder (!%p220_p2), %s4554_s22, 1 }
   0x6   : > { %223 = sbr.rel (%p220_p2) target bundleno = 402 (0x192), region = 32 }
   0xb   : > { %v1131_v0 = vld [vmem:[%s6431_s1] sm:$0xf]  ;;  %vm1903_vm0 = vcmask 1043456   ;;  %v397_v1 = vlaneseq  ;;  %v4979_v2 = vmov 0.0   ;;  %vm4980_vm1 = vmmov 0   ;;  %s6438_s22 = smov (!%p262_p3, %s4554_s22), 1 }
   0xc   : > { %4738 = vmatprep.subr.mxu0 %v4979_v2  ;;  %4740 = vmatprep.mubr.msk.f32.mxu0 %vm4980_vm1, %v4979_v2  ;;  %v5034_v3 = vld [vmem:[%s6432_s2] sm:$0xf]  ;;  %v4981_v4 = vmov 1983009808   ;;  %s4915_s27 = smul.u32 432, %s6438_s22  ;;  %vm1820_vm2 = vcmask 31744  }
   0xd   : > { %4739 = vmatpush3.msk.msra.mxu0 %vm1903_vm0, %v1131_v0  ;;  %v395_v5 = vunpack.c.l.s4 %v4981_v4  ;;  %v398_v6 = vshrl.u32 %v397_v1, 7  ;;  %4913 = vmatprep.subr.mxu1 %v4979_v2  ;;  %vm3890_vm3 = vcmask 1046528   ;;  %s4662_s10 = sshll.u32 %s6438_s22, 8  ;;  %s4561_s14 = sshll.u32 %s6438_s22, 1  ;;  %vm2312_vm4 = vcmask 1040384  }
   0xe   : > { %4914 = vmatpush3.msk.msra.mxu1 %vm1903_vm0, %v1131_v0  ;;  %4827 = vmatprep.mubr.msk.f32.mxu1 %vm4980_vm1, %v4979_v2  ;;  %s5051_s30 = scalar_lea.vmem %s6430_s0, %s4915_s27  ;;  %s5718_s9 = scalar_lea.vmem %s6433_s3, %s4915_s27 }
   0xf   : > { %v396_v7 = vunpack.c.0.s8 %v395_v5  ;;  %4863 = vmatprep.subr.msk.mxu1 %vm1903_vm0, %v5034_v3  ;;  %v285_v9 = vld [vmem:[%s5051_s30] sm:$0xff]  ;;  %v286_v10 = vld [vmem:[%s5051_s30 + $0x8] sm:$0xff]  ;;  %v4565_v15 = vld.sshfl [vmem:[%s5051_s30 + $0x10] sm:$0x3 pattern:$0x76325410]  ;;  %s5919_s13 = scalar_lea.vmem %s6435_s5, %s4662_s10  ;;  %s284_s17 = scalar_lea.vmem %s6436_s6, %s4561_s14 }
  0x10   : > { %v393_v11 = vcombine.high %v285_v9, %v285_v9  ;;  %v410_v13 = vcombine.high %v286_v10, %v286_v10  ;;  %v5061_v16 = vld [vmem:[%s5051_s30 + $0x18] sm:$0xff]  ;;  %v5064_v17 = vld [vmem:[%s5051_s30 + $0x20] sm:$0xff]  ;;  %v4969_v34 = vld.sshfl [vmem:[%s5051_s30 + $0x130] sm:$0x3 pattern:$0x76325410]  ;;  %s275_s20 = scalar_lea.vmem %s6434_s4, %s4561_s14 }
  0x11   : > { %v5053_v8 = vsub.s32 %v396_v7, %v398_v6  ;;  %v434_v18 = vcombine.high %v5061_v16, %v5061_v16  ;;  %v451_v20 = vcombine.high %v5064_v17, %v5064_v17  ;;  %v324_v39 = vld [vmem:[%s5051_s30 + $0x138] sm:$0xff]  ;;  %v5088_v51 = vld [vmem:[%s5051_s30 + $0x28] sm:$0x3]  ;;  %v5091_v52 = vld [vmem:[%s5051_s30 + $0x30] sm:$0xff] }
  0x12   : > { %v926_v49 = vcombine.high %v324_v39, %v324_v39  ;;  %v325_v57 = vld [vmem:[%s5051_s30 + $0x140] sm:$0xff] }
  0x13   : > { %v400_v12 = vrot.slane %v285_v9, %v5053_v8  ;;  %v417_v14 = vrot.slane %v286_v10, %v5053_v8  ;;  %v441_v19 = vrot.slane %v5061_v16, %v5053_v8  ;;  %v458_v21 = vrot.slane %v5064_v17, %v5053_v8  ;;  %v5106_v9 = vld [vmem:[%s5051_s30 + $0x38] sm:$0xff] }
  0x14   : > { %v407_v22 = vrot.slane %v393_v11, %v5053_v8  ;;  %v424_v24 = vrot.slane %v410_v13, %v5053_v8  ;;  %v448_v26 = vrot.slane %v434_v18, %v5053_v8  ;;  %v465_v29 = vrot.slane %v451_v20, %v5053_v8  ;;  %v4970_v20 = vld.sshfl [vmem:[%s5051_s30 + $0x148] sm:$0x3 pattern:$0x76325410] }
  0x15   : > { %v408_v23 = vcombine.high %v400_v12, %v400_v12  ;;  %v425_v25 = vcombine.high %v417_v14, %v417_v14  ;;  %v449_v27 = vcombine.high %v441_v19, %v441_v19  ;;  %v1166_v28 = vcombine.low %v4565_v15, %v441_v19 }
  0x16   : > { %v409_v30 = vcombine.high %v407_v22, %v407_v22  ;;  %v426_v32 = vcombine.high %v424_v24, %v424_v24  ;;  %v450_v37 = vcombine.high %v448_v26, %v448_v26  ;;  %v466_v38 = vcombine.high %v458_v21, %v458_v21 }
  0x17   : > { %v1132_v31 = vcombine.low %v400_v12, %v408_v23  ;;  %v1149_v33 = vcombine.low %v417_v14, %v425_v25  ;;  %v1167_v35 = vcombine.low %v449_v27, %v448_v26  ;;  %v1174_v36 = vrot.slane %v1166_v28, %v5053_v8  ;;  %v327_v25 = vld [vmem:[%s5051_s30 + $0x150] sm:$0xff]  ;;  %v5122_v26 = vld [vmem:[%s5051_s30 + $0x40] sm:$0x3] }
  0x18   : > { %v1133_v40 = vcombine.low %v407_v22, %v409_v30  ;;  %v1150_v42 = vcombine.low %v424_v24, %v426_v32  ;;  %v1183_v45 = vcombine.low %v450_v37, %v458_v21  ;;  %v1184_v46 = vcombine.low %v466_v38, %v465_v29 }
  0x19   : > { %v1140_v41 = vrot.slane %v1132_v31, %v5053_v8  ;;  %v1157_v43 = vrot.slane %v1149_v33, %v5053_v8  ;;  %v1181_v44 = vrot.slane %v1167_v35, %v5053_v8  ;;  %v933_v50 = vrot.slane %v324_v39, %v5053_v8 }
  0x1a   : > { %v1147_v47 = vrot.slane %v1133_v40, %v5053_v8  ;;  %v1164_v48 = vrot.slane %v1150_v42, %v5053_v8  ;;  %v1191_v54 = vrot.slane %v1183_v45, %v5053_v8  ;;  %v1198_v55 = vrot.slane %v1184_v46, %v5053_v8 }
  0x1b   : > { %v1182_v53 = vcombine.low %v1174_v36, %v1181_v44  ;;  %v467_v56 = vcombine.high %v465_v29, %v465_v29  ;;  %v940_v60 = vrot.slane %v926_v49, %v5053_v8  ;;  %v941_v61 = vcombine.high %v933_v50, %v933_v50 }
  0x1c   : > { %v1148_v58 = vcombine.low %v1140_v41, %v1147_v47  ;;  %v1165_v59 = vcombine.low %v1157_v43, %v1164_v48  ;;  %v5097_v62 = vcombine.low %v1191_v54, %v1198_v55  ;;  %v1625_v63 = vcombine.low %v4969_v34, %v933_v50  ;;  %v5130_v34 = vld [vmem:[%s5051_s30 + $0x48] sm:$0xff]  ;;  %v328_v43 = vld [vmem:[%s5051_s30 + $0x158] sm:$0xff] }
  0x1d   : > { %v474_v0 = vrot.slane %v5088_v51, %v5053_v8  ;;  %v482_v1 = vrot.slane %v5091_v52, %v5053_v8  ;;  %v1626_v4 = vcombine.low %v941_v61, %v940_v60  ;;  %v942_v5 = vcombine.high %v940_v60, %v940_v60 }
  0x1e   : > { %4741 = vmatmul.mubr.msk.f32.vlgmr.msra.gmra.mxu0 %vm1820_vm2, %v1148_v58  ;;  %v943_v6 = vcombine.high %v325_v57, %v325_v57  ;;  %v950_v7 = vrot.slane %v325_v57, %v5053_v8  ;;  %v1633_v10 = vrot.slane %v1625_v63, %v5053_v8  ;;  %v475_v13 = vcombine.high %v5091_v52, %v5091_v52  ;;  %v5154_v58 = vld [vmem:[%s5051_s30 + $0x50] sm:$0xff] }
  0x1f   : > { %4743 = vmatprep.mubr.msk.f32.mxu0 %vm4980_vm1, %v4979_v2  ;;  %v490_v11 = vcombine.high %v482_v1, %v482_v1  ;;  %v1200_v12 = vcombine.low %v467_v56, %v474_v0  ;;  %v1640_v14 = vrot.slane %v1626_v4, %v5053_v8  ;;  %v499_v24 = vrot.slane %v5106_v9, %v5053_v8 }
  0x20   : > { %v957_v15 = vrot.slane %v943_v6, %v5053_v8  ;;  %v958_v18 = vcombine.high %v950_v7, %v950_v7  ;;  %v1642_v19 = vcombine.low %v942_v5, %v950_v7  ;;  %v489_v23 = vrot.slane %v475_v13, %v5053_v8  ;;  %v5168_v5 = vld [vmem:[%s5051_s30 + $0x160] sm:$0x3] }
  0x21   : > { %v1201_v21 = vcombine.low %v482_v1, %v490_v11  ;;  %v1208_v22 = vrot.slane %v1200_v12, %v5053_v8  ;;  %v1641_v27 = vcombine.low %v1633_v10, %v1640_v14  ;;  %v507_v33 = vcombine.high %v499_v24, %v499_v24 }
  0x22   : > { %4744 = vmatmul.mubr.msk.f32.gmra.mxu0 %vm1820_vm2, %v1165_v59  ;;  %v1643_v28 = vcombine.low %v958_v18, %v957_v15  ;;  %v1650_v29 = vrot.slane %v1642_v19, %v5053_v8  ;;  %v959_v30 = vcombine.high %v957_v15, %v957_v15  ;;  %v491_v32 = vcombine.high %v489_v23, %v489_v23  ;;  %v5177_v19 = vld [vmem:[%s5051_s30 + $0x168] sm:$0xff] }
  0x23   : > { %4746 = vmatprep.mubr.msk.f32.mxu0 %vm4980_vm1, %v4979_v2  ;;  %v1215_v31 = vrot.slane %v1201_v21, %v5053_v8  ;;  %4828 = vmatmul.mubr.msk.f32.vlgmr.msra.gmra.mxu1 %vm1820_vm2, %v1641_v27  ;;  %v974_v36 = vrot.slane %v327_v25, %v5053_v8  ;;  %v492_v37 = vcombine.high %v5106_v9, %v5106_v9 }
  0x24   : > { %v1657_v35 = vrot.slane %v1643_v28, %v5053_v8  ;;  %v515_v38 = vrot.slane %v5122_v26, %v5053_v8  ;;  %4830 = vmatprep.mubr.msk.f32.mxu1 %vm4980_vm1, %v4979_v2  ;;  %v1217_v40 = vcombine.low %v489_v23, %v491_v32  ;;  %v1218_v41 = vcombine.low %v499_v24, %v507_v33  ;;  %v5186_v24 = vld [vmem:[%s5051_s30 + $0x58] sm:$0x3]  ;;  %v5199_v33 = vld [vmem:[%s5051_s30 + $0x170] sm:$0xff] }
  0x25   : > { %v1216_v39 = vcombine.low %v1208_v22, %v1215_v31  ;;  %v1659_v42 = vcombine.low %v959_v30, %v4970_v20  ;;  %v982_v45 = vcombine.high %v974_v36, %v974_v36  ;;  %v506_v46 = vrot.slane %v492_v37, %v5053_v8  ;;  %4864 = vmatpush3.msk.msra.mxu1 %vm1903_vm0, %v5034_v3 }
  0x26   : > { %4747 = vmatmul.mubr.msk.f32.gmra.mxu0 %vm1820_vm2, %v1182_v53  ;;  %v1658_v44 = vcombine.low %v1650_v29, %v1657_v35  ;;  %v523_v47 = vrot.slane %v5130_v34, %v5053_v8  ;;  %v1225_v48 = vrot.slane %v1217_v40, %v5053_v8  ;;  %v1232_v49 = vrot.slane %v1218_v41, %v5053_v8 }
  0x27   : > { %4749 = vmatprep.mubr.msk.f32.mxu0 %vm4980_vm1, %v4979_v2  ;;  %v1667_v50 = vrot.slane %v1659_v42, %v5053_v8  ;;  %v967_v54 = vcombine.high %v327_v25, %v327_v25  ;;  %v1660_v53 = vcombine.low %v974_v36, %v982_v45  ;;  %v508_v55 = vcombine.high %v506_v46, %v506_v46 }
  0x28   : > { %4831 = vmatmul.mubr.msk.f32.gmra.mxu1 %vm1820_vm2, %v1658_v44  ;;  %v1235_v56 = vcombine.low %v515_v38, %v523_v47  ;;  %v991_v57 = vrot.slane %v328_v43, %v5053_v8  ;;  %v1233_v59 = vcombine.low %v1225_v48, %v1232_v49  ;;  %v516_v61 = vcombine.high %v5130_v34, %v5130_v34 }
  0x29   : > { %4833 = vmatprep.mubr.msk.f32.mxu1 %vm4980_vm1, %v4979_v2  ;;  %v981_v60 = vrot.slane %v967_v54, %v5053_v8  ;;  %v1674_v63 = vrot.slane %v1660_v53, %v5053_v8  ;;  %v1234_v0 = vcombine.low %v506_v46, %v508_v55  ;;  %v531_v7 = vcombine.high %v523_v47, %v523_v47 }
  0x2a   : > { %4750 = vmatmul.mubr.msk.f32.gmra.mxu0 %vm1820_vm2, %v5097_v62  ;;  %v1249_v1 = vrot.slane %v1235_v56, %v5053_v8  ;;  %v999_v4 = vcombine.high %v991_v57, %v991_v57  ;;  %v530_v3 = vrot.slane %v516_v61, %v5053_v8  ;;  %v540_v62 = vrot.slane %v5154_v58, %v5053_v8 }
  0x2b   : > { %4752 = vmatprep.mubr.msk.f32.mxu0 %vm4980_vm1, %v4979_v2  ;;  %v983_v6 = vcombine.high %v981_v60, %v981_v60  ;;  %v1675_v10 = vcombine.low %v1667_v50, %v1674_v63  ;;  %v1242_v11 = vrot.slane %v1234_v0, %v5053_v8  ;;  %v984_v13 = vcombine.high %v328_v43, %v328_v43  ;;  %v5209_v43 = vld [vmem:[%s5051_s30 + $0x60] sm:$0xff]  ;;  %v5233_v0 = vld [vmem:[%s5051_s30 + $0x68] sm:$0xff] }
  0x2c   : > { %v1677_v12 = vcombine.low %v991_v57, %v999_v4  ;;  %v532_v15 = vcombine.high %v530_v3, %v530_v3  ;;  %v1251_v18 = vcombine.low %v531_v7, %v530_v3  ;;  %v1007_v20 = vrot.slane %v5168_v5, %v5053_v8  ;;  %v5226_v57 = vld [vmem:[%s5051_s30 + $0x178] sm:$0x3] }
  0x2d   : > { %v1676_v14 = vcombine.low %v981_v60, %v983_v6  ;;  %4834 = vmatmul.mubr.msk.f32.gmra.mxu1 %vm1820_vm2, %v1675_v10  ;;  %v1250_v21 = vcombine.low %v1242_v11, %v1249_v1  ;;  %v998_v23 = vrot.slane %v984_v13, %v5053_v8  ;;  %v1015_v30 = vrot.slane %v5177_v19, %v5053_v8 }
  0x2e   : > { %4753 = vmatmul.mubr.msk.f32.gmra.mxu0 %vm1820_vm2, %v1216_v39  ;;  %v1691_v22 = vrot.slane %v1677_v12, %v5053_v8  ;;  %4836 = vmatprep.mubr.msk.f32.mxu1 %vm4980_vm1, %v4979_v2  ;;  %v1252_v27 = vcombine.low %v532_v15, %v540_v62  ;;  %v1259_v28 = vrot.slane %v1251_v18, %v5053_v8  ;;  %v5250_v18 = vld [vmem:[%s5051_s30 + $0x180] sm:$0xff] }
  0x2f   : > { %4755 = vmatprep.mubr.msk.f32.mxu0 %vm4980_vm1, %v4979_v2  ;;  %v1684_v25 = vrot.slane %v1676_v14, %v5053_v8  ;;  %v1000_v29 = vcombine.high %v998_v23, %v998_v23  ;;  %v533_v31 = vcombine.high %v5154_v58, %v5154_v58  ;;  %v548_v32 = vcombine.high %v540_v62, %v540_v62 }
  0x30   : > { %v1266_v36 = vrot.slane %v1252_v27, %v5053_v8  ;;  %v556_v37 = vrot.slane %v5186_v24, %v5053_v8  ;;  %v1008_v38 = vcombine.high %v5177_v19, %v5177_v19  ;;  %v1694_v40 = vcombine.low %v1007_v20, %v1015_v30 }
  0x31   : > { %v1692_v35 = vcombine.low %v1684_v25, %v1691_v22  ;;  %v1693_v39 = vcombine.low %v998_v23, %v1000_v29  ;;  %v547_v41 = vrot.slane %v533_v31, %v5053_v8  ;;  %v1023_v42 = vcombine.high %v1015_v30, %v1015_v30  ;;  %v5256_v25 = vld [vmem:[%s5051_s30 + $0x70] sm:$0x3] }
  0x32   : > { %4756 = vmatmul.mubr.msk.f32.gmra.mxu0 %vm1820_vm2, %v1233_v59  ;;  %v1267_v44 = vcombine.low %v1259_v28, %v1266_v36  ;;  %v1022_v45 = vrot.slane %v1008_v38, %v5053_v8  ;;  %v1032_v46 = vrot.slane %v5199_v33, %v5053_v8  ;;  %v1708_v48 = vrot.slane %v1694_v40, %v5053_v8 }
  0x33   : > { %4758 = vmatprep.mubr.msk.f32.mxu0 %vm4980_vm1, %v4979_v2  ;;  %4837 = vmatmul.mubr.msk.f32.gmra.mxu1 %vm1820_vm2, %v1692_v35  ;;  %v1701_v47 = vrot.slane %v1693_v39, %v5053_v8  ;;  %v549_v49 = vcombine.high %v547_v41, %v547_v41  ;;  %v1268_v50 = vcombine.low %v548_v32, %v547_v41 }
  0x34   : > { %4839 = vmatprep.mubr.msk.f32.mxu1 %vm4980_vm1, %v4979_v2  ;;  %v1024_v54 = vcombine.high %v1022_v45, %v1022_v45  ;;  %v1710_v53 = vcombine.low %v1023_v42, %v1022_v45  ;;  %v557_v55 = vcombine.high %v5209_v43, %v5209_v43  ;;  %v564_v56 = vrot.slane %v5209_v43, %v5053_v8 }
  0x35   : > { %v1709_v59 = vcombine.low %v1701_v47, %v1708_v48  ;;  %v1269_v60 = vcombine.low %v549_v49, %v556_v37  ;;  %v1276_v61 = vrot.slane %v1268_v50, %v5053_v8  ;;  %v1025_v63 = vcombine.high %v5199_v33, %v5199_v33  ;;  %v5266_v37 = vld [vmem:[%s5051_s30 + $0x78] sm:$0xff] }
  0x36   : > { %4759 = vmatmul.mubr.msk.f32.gmra.mxu0 %vm1820_vm2, %v1250_v21  ;;  %v1711_v1 = vcombine.low %v1024_v54, %v1032_v46  ;;  %v1718_v4 = vrot.slane %v1710_v53, %v5053_v8  ;;  %v571_v6 = vrot.slane %v557_v55, %v5053_v8  ;;  %v572_v3 = vcombine.high %v564_v56, %v564_v56 }
  0x37   : > { %4761 = vmatprep.mubr.msk.f32.mxu0 %vm4980_vm1, %v4979_v2  ;;  %4840 = vmatmul.mubr.msk.f32.gmra.mxu1 %vm1820_vm2, %v1709_v59  ;;  %v1283_v7 = vrot.slane %v1269_v60, %v5053_v8  ;;  %v1039_v62 = vrot.slane %v1025_v63, %v5053_v8  ;;  %v1040_v10 = vcombine.high %v1032_v46, %v1032_v46  ;;  %v5280_v46 = vld [vmem:[%s5051_s30 + $0x188] sm:$0xff]  ;;  %v3891_v47 = vrot.slane %v5061_v16, 1 }
  0x38   : > { %v1048_v11 = vrot.slane %v5226_v57, %v5053_v8  ;;  %4842 = vmatprep.mubr.msk.f32.mxu1 %vm4980_vm1, %v4979_v2  ;;  %v1725_v12 = vrot.slane %v1711_v1, %v5053_v8  ;;  %v573_v13 = vcombine.high %v571_v6, %v571_v6  ;;  %v1285_v14 = vcombine.low %v564_v56, %v572_v3 }
  0x39   : > { %v574_v15 = vcombine.high %v5233_v0, %v5233_v0  ;;  %v1284_v20 = vcombine.low %v1276_v61, %v1283_v7  ;;  %v1041_v21 = vcombine.high %v1039_v62, %v1039_v62  ;;  %v1727_v22 = vcombine.low %v1040_v10, %v1039_v62  ;;  %v5297_v7 = vld [vmem:[%s5051_s30 + $0x80] sm:$0xff] }
  0x3a   : > { %4762 = vmatmul.mubr.msk.f32.gmra.mxu0 %vm1820_vm2, %v1267_v44  ;;  %v581_v23 = vrot.slane %v5233_v0, %v5053_v8  ;;  %v1726_v27 = vcombine.low %v1718_v4, %v1725_v12  ;;  %v1286_v28 = vcombine.low %v571_v6, %v573_v13  ;;  %v1293_v29 = vrot.slane %v1285_v14, %v5053_v8  ;;  %v5308_v13 = vld [vmem:[%s5051_s30 + $0x190] sm:$0x3] }
  0x3b   : > { %4764 = vmatprep.mubr.msk.f32.mxu0 %vm4980_vm1, %v4979_v2  ;;  %v588_v30 = vrot.slane %v574_v15, %v5053_v8  ;;  %v1728_v31 = vcombine.low %v1041_v21, %v1048_v11  ;;  %v1735_v32 = vrot.slane %v1727_v22, %v5053_v8  ;;  %v1049_v36 = vcombine.high %v5250_v18, %v5250_v18 }
  0x3c   : > { %v589_v35 = vcombine.high %v581_v23, %v581_v23  ;;  %4843 = vmatmul.mubr.msk.f32.gmra.mxu1 %vm1820_vm2, %v1726_v27  ;;  %v1300_v38 = vrot.slane %v1286_v28, %v5053_v8  ;;  %v1056_v40 = vrot.slane %v5250_v18, %v5053_v8  ;;  %v597_v41 = vrot.slane %v5256_v25, %v5053_v8 }
  0x3d   : > { %v590_v39 = vcombine.high %v588_v30, %v588_v30  ;;  %4845 = vmatprep.mubr.msk.f32.mxu1 %vm4980_vm1, %v4979_v2  ;;  %v1742_v42 = vrot.slane %v1728_v31, %v5053_v8  ;;  %v1063_v45 = vrot.slane %v1049_v36, %v5053_v8  ;;  %v598_v54 = vcombine.high %v5266_v37, %v5266_v37 }
  0x3e   : > { %4765 = vmatmul.mubr.msk.f32.gmra.mxu0 %vm1820_vm2, %v1284_v20  ;;  %v1302_v44 = vcombine.low %v581_v23, %v589_v35  ;;  %v1301_v48 = vcombine.low %v1293_v29, %v1300_v38  ;;  %v1064_v50 = vcombine.high %v1056_v40, %v1056_v40  ;;  %v605_v59 = vrot.slane %v5266_v37, %v5053_v8 }
  0x3f   : > { %4767 = vmatprep.mubr.msk.f32.mxu0 %vm4980_vm1, %v4979_v2  ;;  %v1303_v49 = vcombine.low %v588_v30, %v590_v39  ;;  %v1743_v53 = vcombine.low %v1735_v32, %v1742_v42  ;;  %v1065_v56 = vcombine.high %v1063_v45, %v1063_v45  ;;  %v612_v63 = vrot.slane %v598_v54, %v5053_v8  ;;  %v336_v30 = vld [vmem:[%s5051_s30 + $0x198] sm:$0xff]  ;;  %v337_v54 = vld [vmem:[%s5051_s30 + $0x1a0] sm:$0xff] }
  0x40   : > { %v1310_v55 = vrot.slane %v1302_v44, %v5053_v8  ;;  %v1744_v61 = vcombine.low %v1056_v40, %v1064_v50  ;;  %v1066_v1 = vcombine.high %v5280_v46, %v5280_v46  ;;  %v613_v6 = vcombine.high %v605_v59, %v605_v59  ;;  %v5332_v50 = vld [vmem:[%s5051_s30 + $0x90] sm:$0xff] }
  0x41   : > { %v1317_v60 = vrot.slane %v1303_v49, %v5053_v8  ;;  %4846 = vmatmul.mubr.msk.f32.gmra.mxu1 %vm1820_vm2, %v1743_v53  ;;  %v1745_v4 = vcombine.low %v1063_v45, %v1065_v56  ;;  %v1319_v3 = vcombine.low %v597_v41, %v605_v59  ;;  %v3892_v62 = vrot.slane %v5064_v17, 1  ;;  %v5329_v49 = vld [vmem:[%s5051_s30 + $0x88] sm:$0x3] }
  0x42   : > { %4768 = vmatmul.mubr.msk.f32.gmra.mxu0 %vm1820_vm2, %v1301_v48  ;;  %4848 = vmatprep.mubr.msk.f32.mxu1 %vm4980_vm1, %v4979_v2  ;;  %v1752_v11 = vrot.slane %v1744_v61, %v5053_v8  ;;  %v1073_v12 = vrot.slane %v5280_v46, %v5053_v8  ;;  %v3894_v14 = vrot.slane %v5088_v51, 1  ;;  %v1320_v20 = vcombine.low %v613_v6, %v612_v63 }
  0x43   : > { %4770 = vmatprep.mubr.msk.f32.mxu0 %vm4980_vm1, %v4979_v2  ;;  %v1318_v10 = vcombine.low %v1310_v55, %v1317_v60  ;;  %v1759_v15 = vrot.slane %v1745_v4, %v5053_v8  ;;  %v1327_v21 = vrot.slane %v1319_v3, %v5053_v8  ;;  %v1080_v22 = vrot.slane %v1066_v1, %v5053_v8 }
  0x44   : > { %v1081_v23 = vcombine.high %v1073_v12, %v1073_v12  ;;  %v614_v27 = vcombine.high %v612_v63, %v612_v63  ;;  %v615_v28 = vcombine.high %v5297_v7, %v5297_v7  ;;  %v622_v29 = vrot.slane %v5297_v7, %v5053_v8 }
  0x45   : > { %v1760_v31 = vcombine.low %v1752_v11, %v1759_v15  ;;  %v1334_v32 = vrot.slane %v1320_v20, %v5053_v8  ;;  %v1082_v35 = vcombine.high %v1080_v22, %v1080_v22  ;;  %v1089_v36 = vrot.slane %v5308_v13, %v5053_v8  ;;  %v5350_v11 = vld [vmem:[%s5051_s30 + $0x98] sm:$0xff] }
  0x46   : > { %4771 = vmatmul.mubr.msk.f32.gmra.mxu0 %vm1820_vm2, %v1318_v10  ;;  %v1761_v38 = vcombine.low %v1073_v12, %v1081_v23  ;;  %v629_v39 = vrot.slane %v615_v28, %v5053_v8  ;;  %v630_v40 = vcombine.high %v622_v29, %v622_v29  ;;  %v1336_v41 = vcombine.low %v614_v27, %v622_v29 }
  0x47   : > { %4773 = vmatprep.mubr.msk.f32.mxu0 %vm4980_vm1, %v4979_v2  ;;  %4849 = vmatmul.mubr.msk.f32.gmra.mxu1 %vm1820_vm2, %v1760_v31  ;;  %v1335_v42 = vcombine.low %v1327_v21, %v1334_v32  ;;  %v1762_v44 = vcombine.low %v1080_v22, %v1082_v35  ;;  %v1090_v45 = vcombine.high %v336_v30, %v336_v30 }
  0x48   : > { %v1097_v48 = vrot.slane %v336_v30, %v5053_v8  ;;  %4851 = vmatprep.mubr.msk.f32.mxu1 %vm4980_vm1, %v4979_v2  ;;  %v1769_v53 = vrot.slane %v1761_v38, %v5053_v8  ;;  %v1337_v55 = vcombine.low %v630_v40, %v629_v39  ;;  %v1344_v56 = vrot.slane %v1336_v41, %v5053_v8 }
  0x49   : > { %v631_v59 = vcombine.high %v629_v39, %v629_v39  ;;  %v1776_v60 = vrot.slane %v1762_v44, %v5053_v8  ;;  %v1104_v61 = vrot.slane %v1090_v45, %v5053_v8  ;;  %v638_v6 = vrot.slane %v5329_v49, %v5053_v8  ;;  %v4566_v45 = vld.sshfl [vmem:[%s5051_s30 + $0x1a8] sm:$0x3 pattern:$0x76325410] }
  0x4a   : > { %4774 = vmatmul.mubr.msk.f32.gmra.mxu0 %vm1820_vm2, %v1335_v42  ;;  %v1105_v63 = vcombine.high %v1097_v48, %v1097_v48  ;;  %v1778_v1 = vcombine.low %v1089_v36, %v1097_v48  ;;  %v1351_v4 = vrot.slane %v1337_v55, %v5053_v8  ;;  %v646_v3 = vrot.slane %v5332_v50, %v5053_v8  ;;  %v5371_v48 = vld [vmem:[%s5051_s30 + $0xa0] sm:$0x3] }
  0x4b   : > { %4776 = vmatprep.mubr.msk.f32.mxu0 %vm4980_vm1, %v4979_v2  ;;  %v1107_v10 = vcombine.high %v337_v54, %v337_v54  ;;  %v1777_v12 = vcombine.low %v1769_v53, %v1776_v60  ;;  %v1106_v21 = vcombine.high %v1104_v61, %v1104_v61  ;;  %v1353_v27 = vcombine.low %v631_v59, %v638_v6 }
  0x4c   : > { %v1779_v15 = vcombine.low %v1105_v63, %v1104_v61  ;;  %v1786_v20 = vrot.slane %v1778_v1, %v5053_v8  ;;  %v1352_v22 = vcombine.low %v1344_v56, %v1351_v4  ;;  %v654_v23 = vcombine.high %v646_v3, %v646_v3  ;;  %v5375_v56 = vld [vmem:[%s5051_s30 + $0xa8] sm:$0xff] }
  0x4d   : > { %v1114_v28 = vrot.slane %v337_v54, %v5053_v8  ;;  %4852 = vmatmul.mubr.msk.f32.gmra.mxu1 %vm1820_vm2, %v1777_v12  ;;  %v1121_v30 = vrot.slane %v1107_v10, %v5053_v8  ;;  %v639_v31 = vcombine.high %v5332_v50, %v5332_v50  ;;  %v663_v32 = vrot.slane %v5350_v11, %v5053_v8 }
  0x4e   : > { %v1793_v29 = vrot.slane %v1779_v15, %v5053_v8  ;;  %4854 = vmatprep.mubr.msk.f32.mxu1 %vm4980_vm1, %v4979_v2  ;;  %4777 = vmatmul.mubr.msk.f32.gmra.mxu0 %vm1820_vm2, %v1352_v22  ;;  %v1354_v35 = vcombine.low %v646_v3, %v654_v23  ;;  %v1361_v36 = vrot.slane %v1353_v27, %v5053_v8  ;;  %v3896_v39 = vrot.slane %v5091_v52, 1 }
  0x4f   : > { %v1122_v38 = vcombine.high %v1114_v28, %v1114_v28  ;;  %4779 = vmatprep.mubr.msk.f32.mxu0 %vm4980_vm1, %v4979_v2  ;;  %v1795_v41 = vcombine.low %v1106_v21, %v1114_v28  ;;  %v653_v42 = vrot.slane %v639_v31, %v5053_v8  ;;  %v671_v44 = vcombine.high %v663_v32, %v663_v32  ;;  %v5392_v21 = vld [vmem:[%s5051_s30 + $0xb0] sm:$0xff] }
  0x50   : > { %v1794_v40 = vcombine.low %v1786_v20, %v1793_v29  ;;  %v1368_v54 = vrot.slane %v1354_v35, %v5053_v8  ;;  %v1123_v55 = vcombine.high %v1121_v30, %v1121_v30  ;;  %v3897_v52 = vrot.slane %v5106_v9, 1 }
  0x51   : > { %v1796_v53 = vcombine.low %v1122_v38, %v1121_v30  ;;  %v1803_v59 = vrot.slane %v1795_v41, %v5053_v8  ;;  %v655_v60 = vcombine.high %v653_v42, %v653_v42  ;;  %v1371_v61 = vcombine.low %v663_v32, %v671_v44  ;;  %v5420_v44 = vld [vmem:[%s5051_s30 + $0xc0] sm:$0xff] }
  0x52   : > { %4855 = vmatmul.mubr.msk.f32.gmra.mxu1 %vm1820_vm2, %v1794_v40  ;;  %v656_v63 = vcombine.high %v5350_v11, %v5350_v11  ;;  %v1369_v1 = vcombine.low %v1361_v36, %v1368_v54  ;;  %v1812_v6 = vcombine.low %v1123_v55, %v4566_v45  ;;  %v679_v3 = vrot.slane %v5371_v48, %v5053_v8  ;;  %v5413_v36 = vld [vmem:[%s5051_s30 + $0xb8] sm:$0x3] }
  0x53   : > { %4857 = vmatprep.mubr.msk.f32.mxu1 %vm4980_vm1, %v4979_v2  ;;  %v1810_v4 = vrot.slane %v1796_v53, %v5053_v8  ;;  %v1370_v10 = vcombine.low %v653_v42, %v655_v60  ;;  %v1385_v12 = vrot.slane %v1371_v61, %v5053_v8  ;;  %v687_v20 = vrot.slane %v5375_v56, %v5053_v8 }
  0x54   : > { %v670_v15 = vrot.slane %v656_v63, %v5053_v8  ;;  %4780 = vmatmul.mubr.msk.f32.gmra.mxu0 %vm1820_vm2, %v1369_v1  ;;  %v3899_v23 = vrot.slane %v5122_v26, 1  ;;  %v3901_v27 = vrot.slane %v5130_v34, 1  ;;  %v3902_v28 = vrot.slane %v5154_v58, 1 }
  0x55   : > { %v1811_v22 = vcombine.low %v1803_v59, %v1810_v4  ;;  %4782 = vmatprep.mubr.msk.f32.mxu0 %vm4980_vm1, %v4979_v2  ;;  %v1378_v29 = vrot.slane %v1370_v10, %v5053_v8  ;;  %v1388_v31 = vcombine.low %v679_v3, %v687_v20  ;;  %v680_v32 = vcombine.high %v5375_v56, %v5375_v56  ;;  %v5451_v10 = vld [vmem:[%s5051_s30 + $0xc8] sm:$0xff] }
  0x56   : > { %v672_v30 = vcombine.high %v670_v15, %v670_v15  ;;  %v1819_v35 = vrot.slane %v1812_v6, %v5053_v8  ;;  %v3893_v26 = vsel %vm3890_vm3, %v3891_v47, %v3892_v62  ;;  %v695_v34 = vcombine.high %v687_v20, %v687_v20 }
  0x57   : > { %4858 = vmatmul.mubr.msk.f32.gmra.mxu1 %vm1820_vm2, %v1811_v22  ;;  %v704_v58 = vrot.slane %v5392_v21, %v5053_v8  ;;  %v1386_v38 = vcombine.low %v1378_v29, %v1385_v12  ;;  %v1402_v41 = vrot.slane %v1388_v31, %v5053_v8  ;;  %v694_v42 = vrot.slane %v680_v32, %v5053_v8 }
  0x58   : > { %4860 = vmatprep.mubr.msk.f32.mxu1 %vm4980_vm1, %v4979_v2  ;;  %v1387_v40 = vcombine.low %v670_v15, %v672_v30  ;;  %v3895_v16 = vsel %vm3890_vm3, %v3892_v62, %v3894_v14  ;;  %v3898_v47 = vsel %vm3890_vm3, %v3896_v39, %v3897_v52  ;;  %v697_v45 = vcombine.high %v5392_v21, %v5392_v21 }
  0x59   : > { %v712_v54 = vcombine.high %v704_v58, %v704_v58  ;;  %4783 = vmatmul.mubr.msk.f32.gmra.mxu0 %vm1820_vm2, %v1386_v38  ;;  %v696_v55 = vcombine.high %v694_v42, %v694_v42  ;;  %v1404_v59 = vcombine.low %v695_v34, %v694_v42  ;;  %v720_v51 = vrot.slane %v5413_v36, %v5053_v8  ;;  %v5475_v34 = vld [vmem:[%s5051_s30 + $0xd8] sm:$0xff] }
  0x5a   : > { %v1395_v53 = vrot.slane %v1387_v40, %v5053_v8  ;;  %4785 = vmatprep.mubr.msk.f32.mxu0 %vm4980_vm1, %v4979_v2  ;;  %v711_v17 = vrot.slane %v697_v45, %v5053_v8  ;;  %v3904_v62 = vrot.slane %v5186_v24, 1  ;;  %v3906_v14 = vrot.slane %v5209_v43, 1 }
  0x5b   : > { %4861 = vmatmul.mubr.msk.f32.gmra.mxu1 %vm1820_vm2, %v1819_v35  ;;  %v721_v39 = vcombine.high %v5420_v44, %v5420_v44  ;;  %v1405_v61 = vcombine.low %v696_v55, %v704_v58  ;;  %v1412_v63 = vrot.slane %v1404_v59, %v5053_v8  ;;  %v728_v1 = vrot.slane %v5420_v44, %v5053_v8 }
  0x5c   : > { %4865 = vmatprep.mubr.msk.f32.mxu1 %vm1820_vm2, %v3893_v26  ;;  %v1403_v60 = vcombine.low %v1395_v53, %v1402_v41  ;;  %v713_v4 = vcombine.high %v711_v17, %v711_v17  ;;  %v1421_v6 = vcombine.low %v712_v54, %v711_v17  ;;  %v3907_v3 = vrot.slane %v5233_v0, 1  ;;  %v5472_v26 = vld [vmem:[%s5051_s30 + $0xd0] sm:$0x3] }
  0x5d   : > { %v735_v24 = vrot.slane %v721_v39, %v5053_v8  ;;  %v1419_v43 = vrot.slane %v1405_v61, %v5053_v8  ;;  %v3900_v12 = vsel %vm3890_vm3, %v3897_v52, %v3899_v23  ;;  %v3903_v15 = vsel %vm3890_vm3, %v3901_v27, %v3902_v28 }
  0x5e   : > { %4786 = vmatmul.mubr.msk.f32.gmra.mxu0 %vm1820_vm2, %v1403_v60  ;;  %v736_v20 = vcombine.high %v728_v1, %v728_v1  ;;  %v1422_v0 = vcombine.low %v713_v4, %v720_v51  ;;  %v1429_v22 = vrot.slane %v1421_v6, %v5053_v8  ;;  %v3905_v9 = vsel %vm3890_vm3, %v3902_v28, %v3904_v62  ;;  %v5498_v51 = vld [vmem:[%s5051_s30 + $0xe0] sm:$0xff] }
  0x5f   : > { %4866 = vmatmul.mubr.msk.f32.vlgmr.msra.gmra.mxu1 %vm1820_vm2, %v3895_v16  ;;  %4788 = vmatprep.mubr.msk.f32.mxu0 %vm4980_vm1, %v4979_v2  ;;  %v737_v29 = vcombine.high %v735_v24, %v735_v24  ;;  %v1420_v30 = vcombine.low %v1412_v63, %v1419_v43  ;;  %v738_v23 = vcombine.high %v5451_v10, %v5451_v10  ;;  %v3909_v58 = vrot.slane %v5256_v25, 1  ;;  %v5517_v43 = vld [vmem:[%s5051_s30 + $0xe8] sm:$0x3] }
  0x60   : > { %4868 = vmatprep.mubr.msk.f32.mxu1 %vm1820_vm2, %v3898_v47  ;;  %v1438_v52 = vcombine.low %v728_v1, %v736_v20  ;;  %v1436_v27 = vrot.slane %v1422_v0, %v5053_v8  ;;  %v3908_v31 = vsel %vm3890_vm3, %v3906_v14, %v3907_v3  ;;  %v745_v35 = vrot.slane %v5451_v10, %v5053_v8 }
  0x61   : > { %v1439_v32 = vcombine.low %v735_v24, %v737_v29  ;;  %v3911_v38 = vrot.slane %v5266_v37, 1  ;;  %v752_v40 = vrot.slane %v738_v23, %v5053_v8  ;;  %v3912_v16 = vrot.slane %v5297_v7, 1 }
  0x62   : > { %4789 = vmatmul.mubr.msk.f32.gmra.mxu0 %vm1820_vm2, %v1420_v30  ;;  %v1446_v28 = vrot.slane %v1438_v52, %v5053_v8  ;;  %v1437_v41 = vcombine.low %v1429_v22, %v1436_v27  ;;  %v753_v47 = vcombine.high %v745_v35, %v745_v35  ;;  %v3914_v25 = vrot.slane %v5329_v49, 1 }
  0x63   : > { %4869 = vmatmul.mubr.msk.f32.gmra.mxu1 %vm1820_vm2, %v3900_v12  ;;  %4791 = vmatprep.mubr.msk.f32.mxu0 %vm4980_vm1, %v4979_v2  ;;  %v1453_v42 = vrot.slane %v1439_v32, %v5053_v8  ;;  %v754_v45 = vcombine.high %v752_v40, %v752_v40  ;;  %v761_v37 = vrot.slane %v5472_v26, %v5053_v8  ;;  %v3916_v55 = vrot.slane %v5332_v50, 1  ;;  %v5520_v12 = vld [vmem:[%s5051_s30 + $0xf0] sm:$0xff]  ;;  %v5538_v32 = vld [vmem:[%s5051_s30 + $0xf8] sm:$0xff] }
  0x64   : > { %4871 = vmatprep.mubr.msk.f32.mxu1 %vm1820_vm2, %v3903_v15  ;;  %v762_v54 = vcombine.high %v5475_v34, %v5475_v34  ;;  %v1455_v53 = vcombine.low %v745_v35, %v753_v47  ;;  %v3917_v59 = vrot.slane %v5350_v11, 1  ;;  %v769_v7 = vrot.slane %v5475_v34, %v5053_v8 }
  0x65   : > { %v1454_v17 = vcombine.low %v1446_v28, %v1453_v42  ;;  %v3910_v49 = vsel %vm3890_vm3, %v3907_v3, %v3909_v58  ;;  %v1456_v62 = vcombine.low %v752_v40, %v754_v45  ;;  %v3913_v60 = vsel %vm3890_vm3, %v3911_v38, %v3912_v16 }
  0x66   : > { %4792 = vmatmul.mubr.msk.f32.gmra.mxu0 %vm1820_vm2, %v1437_v41  ;;  %v776_v14 = vrot.slane %v762_v54, %v5053_v8  ;;  %v1463_v50 = vrot.slane %v1455_v53, %v5053_v8  ;;  %v777_v11 = vcombine.high %v769_v7, %v769_v7  ;;  %v1472_v39 = vcombine.low %v761_v37, %v769_v7  ;;  %v5559_v54 = vld [vmem:[%s5051_s30 + $0x100] sm:$0x3]  ;;  %v5562_v53 = vld [vmem:[%s5051_s30 + $0x108] sm:$0xff] }
  0x67   : > { %4872 = vmatmul.mubr.msk.f32.gmra.mxu1 %vm1820_vm2, %v3905_v9  ;;  %4794 = vmatprep.mubr.msk.f32.mxu0 %vm4980_vm1, %v4979_v2  ;;  %v1470_v61 = vrot.slane %v1456_v62, %v5053_v8  ;;  %v779_v1 = vcombine.high %v5498_v51, %v5498_v51  ;;  %v3915_v4 = vsel %vm3890_vm3, %v3912_v16, %v3914_v25  ;;  %v3919_v0 = vrot.slane %v5371_v48, 1 }
  0x68   : > { %4874 = vmatprep.mubr.msk.f32.mxu1 %vm1820_vm2, %v3908_v31  ;;  %v778_v63 = vcombine.high %v776_v14, %v776_v14  ;;  %v3918_v6 = vsel %vm3890_vm3, %v3916_v55, %v3917_v59  ;;  %v1473_v3 = vcombine.low %v777_v11, %v776_v14  ;;  %v786_v24 = vrot.slane %v5498_v51, %v5053_v8 }
  0x69   : > { %v1471_v15 = vcombine.low %v1463_v50, %v1470_v61  ;;  %v1480_v20 = vrot.slane %v1472_v39, %v5053_v8  ;;  %v793_v22 = vrot.slane %v779_v1, %v5053_v8  ;;  %v3921_v30 = vrot.slane %v5375_v56, 1 }
  0x6a   : > { %4795 = vmatmul.mubr.msk.f32.gmra.mxu0 %vm1820_vm2, %v1454_v17  ;;  %v1487_v29 = vrot.slane %v1473_v3, %v5053_v8  ;;  %v794_v9 = vcombine.high %v786_v24, %v786_v24  ;;  %v1489_v52 = vcombine.low %v778_v63, %v786_v24  ;;  %v3922_v23 = vrot.slane %v5392_v21, 1 }
  0x6b   : > { %4875 = vmatmul.mubr.msk.f32.gmra.mxu1 %vm1820_vm2, %v3910_v49  ;;  %4797 = vmatprep.mubr.msk.f32.mxu0 %vm4980_vm1, %v4979_v2  ;;  %v795_v27 = vcombine.high %v793_v22, %v793_v22  ;;  %v802_v48 = vrot.slane %v5517_v43, %v5053_v8  ;;  %v810_v31 = vrot.slane %v5520_v12, %v5053_v8  ;;  %v3924_v28 = vrot.slane %v5413_v36, 1 }
  0x6c   : > { %4877 = vmatprep.mubr.msk.f32.mxu1 %vm1820_vm2, %v3913_v60  ;;  %v1490_v35 = vcombine.low %v794_v9, %v793_v22  ;;  %v3926_v56 = vrot.slane %v5420_v44, 1  ;;  %v3927_v58 = vrot.slane %v5451_v10, 1  ;;  %v1488_v38 = vcombine.low %v1480_v20, %v1487_v29  ;;  %v5597_v20 = vld [vmem:[%s5051_s30 + $0x120] sm:$0xff] }
  0x6d   : > { %v1497_v21 = vrot.slane %v1489_v52, %v5053_v8  ;;  %v818_v40 = vcombine.high %v810_v31, %v810_v31  ;;  %v1506_v41 = vcombine.low %v795_v27, %v802_v48  ;;  %v803_v44 = vcombine.high %v5520_v12, %v5520_v12  ;;  %v320_v48 = vld [vmem:[%s5051_s30 + $0x118] sm:$0x3] }
  0x6e   : > { %4798 = vmatmul.mubr.msk.f32.gmra.mxu0 %vm1820_vm2, %v1471_v15  ;;  %v1504_v36 = vrot.slane %v1490_v35, %v5053_v8  ;;  %v827_v10 = vrot.slane %v5538_v32, %v5053_v8  ;;  %v3920_v42 = vsel %vm3890_vm3, %v3917_v59, %v3919_v0  ;;  %v3923_v47 = vsel %vm3890_vm3, %v3921_v30, %v3922_v23 }
  0x6f   : > { %4878 = vmatmul.mubr.msk.f32.gmra.mxu1 %vm1820_vm2, %v3915_v4  ;;  %4800 = vmatprep.mubr.msk.f32.mxu0 %vm4980_vm1, %v4979_v2  ;;  %v1507_v16 = vcombine.low %v810_v31, %v818_v40  ;;  %v3925_v45 = vsel %vm3890_vm3, %v3922_v23, %v3924_v28  ;;  %v817_v25 = vrot.slane %v803_v44, %v5053_v8  ;;  %v3929_v49 = vrot.slane %v5472_v26, 1  ;;  %v5613_v28 = vld [vmem:[%s5051_s30 + $0x128] sm:$0xff] }
  0x70   : > { %4880 = vmatprep.mubr.msk.f32.mxu1 %vm1820_vm2, %v3918_v6  ;;  %v835_v37 = vcombine.high %v827_v10, %v827_v10  ;;  %v1505_v55 = vcombine.low %v1497_v21, %v1504_v36  ;;  %v3928_v7 = vsel %vm3890_vm3, %v3926_v56, %v3927_v58  ;;  %v1514_v17 = vrot.slane %v1506_v41, %v5053_v8  ;;  %v5585_v6 = vld [vmem:[%s5051_s30 + $0x110] sm:$0xff] }
  0x71   : > { %v1521_v59 = vrot.slane %v1507_v16, %v5053_v8  ;;  %v819_v62 = vcombine.high %v817_v25, %v817_v25  ;;  %v820_v50 = vcombine.high %v5538_v32, %v5538_v32  ;;  %v3931_v11 = vrot.slane %v5475_v34, 1 }
  0x72   : > { %4801 = vmatmul.mubr.msk.f32.gmra.mxu0 %vm1820_vm2, %v1488_v38  ;;  %v1524_v14 = vcombine.low %v827_v10, %v835_v37  ;;  %v3932_v39 = vrot.slane %v5498_v51, 1  ;;  %v843_v60 = vrot.slane %v5559_v54, %v5053_v8  ;;  %v851_v61 = vrot.slane %v5562_v53, %v5053_v8 }
  0x73   : > { %4881 = vmatmul.mubr.msk.f32.gmra.mxu1 %vm1820_vm2, %v3920_v42  ;;  %4803 = vmatprep.mubr.msk.f32.mxu0 %vm4980_vm1, %v4979_v2  ;;  %v1523_v63 = vcombine.low %v817_v25, %v819_v62  ;;  %v3934_v26 = vrot.slane %v5517_v43, 1  ;;  %v3936_v1 = vrot.slane %v5520_v12, 1  ;;  %v834_v4 = vrot.slane %v820_v50, %v5053_v8 }
  0x74   : > { %4883 = vmatprep.mubr.msk.f32.mxu1 %vm1820_vm2, %v3923_v47  ;;  %v1522_v34 = vcombine.low %v1514_v17, %v1521_v59  ;;  %v1538_v51 = vrot.slane %v1524_v14, %v5053_v8  ;;  %v3937_v3 = vrot.slane %v5538_v32, 1  ;;  %v1541_v24 = vcombine.low %v843_v60, %v851_v61 }
  0x75   : > { %v1531_v43 = vrot.slane %v1523_v63, %v5053_v8  ;;  %v836_v12 = vcombine.high %v834_v4, %v834_v4  ;;  %v844_v15 = vcombine.high %v5562_v53, %v5562_v53  ;;  %v3930_v0 = vsel %vm3890_vm3, %v3927_v58, %v3929_v49 }
  0x76   : > { %4804 = vmatmul.mubr.msk.f32.gmra.mxu0 %vm1820_vm2, %v1505_v55  ;;  %v3933_v22 = vsel %vm3890_vm3, %v3931_v11, %v3932_v39  ;;  %v861_v29 = vcombine.high %v5585_v6, %v5585_v6  ;;  %v859_v30 = vcombine.high %v851_v61, %v851_v61  ;;  %v3935_v9 = vsel %vm3890_vm3, %v3932_v39, %v3934_v26 }
  0x77   : > { %4884 = vmatmul.mubr.msk.f32.gmra.mxu1 %vm1820_vm2, %v3925_v45  ;;  %4806 = vmatprep.mubr.msk.f32.mxu0 %vm4980_vm1, %v4979_v2  ;;  %v1540_v52 = vcombine.low %v834_v4, %v836_v12  ;;  %v868_v23 = vrot.slane %v5585_v6, %v5053_v8  ;;  %v858_v27 = vrot.slane %v844_v15, %v5053_v8  ;;  %v3939_v38 = vrot.slane %v5559_v54, 1  ;;  %v4964_v12 = vld [vmem:[%s5051_s30 + $0x138] sm:$0xff] }
  0x78   : > { %4886 = vmatprep.mubr.msk.f32.mxu1 %vm1820_vm2, %v3928_v7  ;;  %v1539_v31 = vcombine.low %v1531_v43, %v1538_v51  ;;  %v3938_v32 = vsel %vm3890_vm3, %v3936_v1, %v3937_v3  ;;  %v1555_v35 = vrot.slane %v1541_v24, %v5053_v8  ;;  %v885_v56 = vcombine.high %v5597_v20, %v5597_v20 }
  0x79   : > { %v1548_v58 = vrot.slane %v1540_v52, %v5053_v8  ;;  %v860_v21 = vcombine.high %v858_v27, %v858_v27  ;;  %v1557_v40 = vcombine.low %v859_v30, %v858_v27  ;;  %v884_v41 = vrot.slane %v320_v48, %v5053_v8 }
  0x7a   : > { %4807 = vmatmul.mubr.msk.f32.gmra.mxu0 %vm1820_vm2, %v1522_v34  ;;  %v892_v36 = vrot.slane %v5597_v20, %v5053_v8  ;;  %v875_v44 = vrot.slane %v861_v29, %v5053_v8  ;;  %v876_v10 = vcombine.high %v868_v23, %v868_v23  ;;  %v3941_v42 = vrot.slane %v5562_v53, 1 }
  0x7b   : > { %4887 = vmatmul.mubr.msk.f32.gmra.mxu1 %vm1820_vm2, %v3930_v0  ;;  %4809 = vmatprep.mubr.msk.f32.mxu0 %vm4980_vm1, %v4979_v2  ;;  %v3942_v16 = vrot.slane %v5585_v6, 1  ;;  %v1558_v47 = vcombine.low %v860_v21, %v868_v23  ;;  %v902_v45 = vcombine.high %v5613_v28, %v5613_v28  ;;  %v1556_v25 = vcombine.low %v1548_v58, %v1555_v35  ;;  %v4967_v35 = vld [vmem:[%s5051_s30 + $0x150] sm:$0xff] }
  0x7c   : > { %4889 = vmatprep.mubr.msk.f32.mxu1 %vm1820_vm2, %v3933_v22  ;;  %v1565_v37 = vrot.slane %v1557_v40, %v5053_v8  ;;  %v877_v54 = vcombine.high %v875_v44, %v875_v44  ;;  %v1574_v55 = vcombine.low %v876_v10, %v875_v44  ;;  %v909_v7 = vrot.slane %v5613_v28, %v5053_v8 }
  0x7d   : > { %v1572_v53 = vrot.slane %v1558_v47, %v5053_v8  ;;  %v899_v17 = vrot.slane %v885_v56, %v5053_v8  ;;  %v3940_v59 = vsel %vm3890_vm3, %v3937_v3, %v3939_v38  ;;  %v3944_v49 = vrot.slane %v320_v48, 1  ;;  %v4963_v3 = vld [vmem:[%s5051_s30 + $0x130] sm:$0x3]  ;;  %v4966_v48 = vld [vmem:[%s5051_s30 + $0x148] sm:$0x3]  ;;  %v4968_v56 = vld [vmem:[%s5051_s30 + $0x158] sm:$0xff] }
  0x7e   : > { %4810 = vmatmul.mubr.msk.f32.gmra.mxu0 %vm1820_vm2, %v1539_v31  ;;  %v1575_v62 = vcombine.low %v877_v54, %v884_v41  ;;  %v900_v14 = vcombine.high %v892_v36, %v892_v36  ;;  %v3943_v50 = vsel %vm3890_vm3, %v3941_v42, %v3942_v16  ;;  %v3946_v11 = vrot.slane %v5597_v20, 1  ;;  %v4965_v20 = vld [vmem:[%s5051_s30 + $0x140] sm:$0xff] }
  0x7f   : > { %4890 = vmatmul.mubr.msk.f32.gmra.mxu1 %vm1820_vm2, %v3935_v9  ;;  %4812 = vmatprep.mubr.msk.f32.mxu0 %vm4980_vm1, %v4979_v2  ;;  %v3947_v39 = vrot.slane %v5613_v28, 1  ;;  %v901_v60 = vcombine.high %v899_v17, %v899_v17  ;;  %v1573_v61 = vcombine.low %v1565_v37, %v1572_v53  ;;  %v1582_v63 = vrot.slane %v1574_v55, %v5053_v8 }
  0x80   : > { %4892 = vmatprep.mubr.msk.f32.mxu1 %vm1820_vm2, %v3938_v32  ;;  %v1589_v26 = vrot.slane %v1575_v62, %v5053_v8  ;;  %v1591_v1 = vcombine.low %v892_v36, %v900_v14  ;;  %v916_v6 = vrot.slane %v902_v45, %v5053_v8  ;;  %v917_v34 = vcombine.high %v909_v7, %v909_v7 }
  0x81   : > { %v1592_v4 = vcombine.low %v899_v17, %v901_v60  ;;  %v3945_v51 = vsel %vm3890_vm3, %v3942_v16, %v3944_v49  ;;  %v3949_v24 = vrot.slane %v4963_v3, 1  ;;  %v3948_v43 = vsel %vm3890_vm3, %v3946_v11, %v3947_v39 }
  0x82   : > { %4813 = vmatmul.mubr.msk.f32.gmra.mxu0 %vm1820_vm2, %v1556_v25  ;;  %v3951_v15 = vrot.slane %v4964_v12, 1  ;;  %v3952_v0 = vrot.slane %v4965_v20, 1  ;;  %v918_v22 = vcombine.high %v916_v6, %v916_v6  ;;  %v1590_v29 = vcombine.low %v1582_v63, %v1589_v26 }
  0x83   : > { %4893 = vmatmul.mubr.msk.f32.gmra.mxu1 %vm1820_vm2, %v3940_v59  ;;  %4815 = vmatprep.mubr.msk.f32.mxu0 %vm4980_vm1, %v4979_v2  ;;  %v1599_v30 = vrot.slane %v1591_v1, %v5053_v8  ;;  %v1606_v9 = vrot.slane %v1592_v4, %v5053_v8  ;;  %v1608_v52 = vcombine.low %v909_v7, %v917_v34  ;;  %v3954_v31 = vrot.slane %v4966_v48, 1 }
  0x84   : > { %4895 = vmatprep.mubr.msk.f32.mxu1 %vm1820_vm2, %v3943_v50  ;;  %v1609_v23 = vcombine.low %v916_v6, %v918_v22  ;;  %v3950_v27 = vsel %vm3890_vm3, %v3947_v39, %v3949_v24  ;;  %v3953_v32 = vsel %vm3890_vm3, %v3951_v15, %v3952_v0  ;;  %v3956_v28 = vrot.slane %v4967_v35, 1 }
  0x85   : > { %v3957_v58 = vrot.slane %v4968_v56, 1  ;;  %v1607_v38 = vcombine.low %v1599_v30, %v1606_v9  ;;  %v1616_v21 = vrot.slane %v1608_v52, %v5053_v8  ;;  %v3955_v41 = vsel %vm3890_vm3, %v3952_v0, %v3954_v31 }
  0x86   : > { %4816 = vmatmul.mubr.msk.f32.gmra.mxu0 %vm1820_vm2, %v1573_v61  ;;  %v1623_v40 = vrot.slane %v1609_v23, %v5053_v8  ;;  %v3959_v36 = vrot.slane %v5168_v5, 1  ;;  %v3961_v10 = vrot.slane %v5177_v19, 1  ;;  %v3962_v42 = vrot.slane %v5199_v33, 1 }
  0x87   : > { %4896 = vmatmul.mubr.msk.f32.gmra.mxu1 %vm1820_vm2, %v3945_v51  ;;  %4818 = vmatprep.mubr.msk.f32.mxu0 %vm4980_vm1, %v4979_v2  ;;  %v3958_v44 = vsel %vm3890_vm3, %v3956_v28, %v3957_v58  ;;  %v3964_v5 = vrot.slane %v5226_v57, 1  ;;  %v3966_v19 = vrot.slane %v5250_v18, 1  ;;  %v3967_v33 = vrot.slane %v5280_v46, 1 }
  0x88   : > { %4898 = vmatprep.mubr.msk.f32.mxu1 %vm1820_vm2, %v3948_v43  ;;  %v1624_v16 = vcombine.low %v1616_v21, %v1623_v40  ;;  %v3960_v47 = vsel %vm3890_vm3, %v3957_v58, %v3959_v36  ;;  %v3963_v45 = vsel %vm3890_vm3, %v3961_v10, %v3962_v42  ;;  %v3969_v25 = vrot.slane %v5308_v13, 1 }
  0x89   : > { %v3968_v37 = vsel %vm3890_vm3, %v3966_v19, %v3967_v33 }
  0x8a   : > { %4819 = vmatmul.mubr.msk.f32.gmra.mxu0 %vm1820_vm2, %v1590_v29  ;;  %v3970_v57 = vsel %vm3890_vm3, %v3967_v33, %v3969_v25 }
  0x8b   : > { %4899 = vmatmul.mubr.msk.f32.gmra.mxu1 %vm1820_vm2, %v3950_v27  ;;  %4821 = vmatprep.mubr.msk.f32.mxu0 %vm4980_vm1, %v4979_v2 }
  0x8c   : > { %4901 = vmatprep.mubr.msk.f32.mxu1 %vm1820_vm2, %v3953_v32 }
  0x8e   : > { %4822 = vmatmul.mubr.msk.f32.gmra.mxu0 %vm1820_vm2, %v1607_v38 }
  0x8f   : > { %4902 = vmatmul.mubr.msk.f32.gmra.mxu1 %vm1820_vm2, %v3955_v41  ;;  %4824 = vmatprep.mubr.msk.f32.mxu0 %vm4980_vm1, %v4979_v2  ;;  %v3965_v2 = vsel %vm3890_vm3, %v3962_v42, %v3964_v5 }
  0x90   : > { %4904 = vmatprep.mubr.msk.f32.mxu1 %vm1820_vm2, %v3958_v44 }
  0x92   : > { %4825 = vmatmul.mubr.msk.f32.gmra.mxu0 %vm1820_vm2, %v1624_v16 }
  0x93   : > { %4905 = vmatmul.mubr.msk.f32.gmra.mxu1 %vm1820_vm2, %v3960_v47 }
  0x94   : > { %4907 = vmatprep.mubr.msk.f32.mxu1 %vm1820_vm2, %v3963_v45 }
  0x97   : > { %4908 = vmatmul.mubr.msk.f32.gmra.mxu1 %vm1820_vm2, %v3965_v2 }
  0x98   : > { %4910 = vmatprep.mubr.msk.f32.mxu1 %vm1820_vm2, %v3968_v37 }
  0x9b   : > { %4911 = vmatmul.mubr.msk.f32.gmra.mxu1 %vm1820_vm2, %v3970_v57 }
  0xde   : > { %v1973_v18 = vpop.f32.mrf.mxu0 }
  0xdf   : > { %v2356_v46 = vcombine.high %v1973_v18, %v1973_v18  ;;  %v2363_v54 = vrot.slane %v1973_v18, %v5053_v8  ;;  %v2224_v17 = vmul.f32 %v1973_v18, %v1973_v18 }
  0xe0   : > { %v4742_v55 = vpop.f32.mrf.mxu0 }
  0xe1   : > { %v2370_v53 = vrot.slane %v2356_v46, %v5053_v8  ;;  %v2371_v7 = vcombine.high %v2363_v54, %v2363_v54 }
  0xe2   : > { %v1978_v13 = vpop.f32.mrf.mxu0 }
  0xe3   : > { %v2372_v59 = vcombine.high %v2370_v53, %v2370_v53  ;;  %v3044_v49 = vcombine.low %v2363_v54, %v2371_v7  ;;  %v2177_v62 = vadd.f32 %v1978_v13, %v1973_v18  ;;  %v2225_v14 = vmul.f32 %v1978_v13, %v1978_v13  ;;  %v5705_v60 = vpop.f32.mrf.mxu1 }
  0xe4   : > { %v2373_v50 = vcombine.high %v1978_v13, %v1978_v13  ;;  %v2380_v11 = vrot.slane %v1978_v13, %v5053_v8  ;;  %v4745_v39 = vpop.f32.mrf.mxu0  ;;  %v2849_v34 = vcombine.high %v5705_v60, %v5705_v60  ;;  %v2856_v51 = vrot.slane %v5705_v60, %v5053_v8 }
  0xe5   : > { %v3045_v61 = vcombine.low %v2370_v53, %v2372_v59  ;;  %v3052_v63 = vrot.slane %v3044_v49, %v5053_v8  ;;  %v2265_v26 = vadd.f32 %v2225_v14, %v2224_v17  ;;  %v4829_v3 = vpop.f32.mrf.mxu1 }
  0xe6   : > { %v2387_v1 = vrot.slane %v2373_v50, %v5053_v8  ;;  %v2388_v4 = vcombine.high %v2380_v11, %v2380_v11  ;;  %v1983_v6 = vpop.f32.mrf.mxu0  ;;  %4621 = vst.sshfl [vmem:[%s5718_s9 + $0x130] sm:$0x3 pattern:$0x76325410] %v2856_v51  ;;  %v2864_v27 = vcombine.high %v2856_v51, %v2856_v51  ;;  %v2863_v35 = vrot.slane %v2849_v34, %v5053_v8 }
  0xe7   : > { %v3059_v24 = vrot.slane %v3045_v61, %v5053_v8  ;;  %v2178_v43 = vadd.f32 %v2177_v62, %v1983_v6  ;;  %v2226_v12 = vmul.f32 %v1983_v6, %v1983_v6  ;;  %v2390_v15 = vcombine.high %v1983_v6, %v1983_v6 }
  0xe8   : > { %v2389_v20 = vcombine.high %v2387_v1, %v2387_v1  ;;  %v3061_v0 = vcombine.low %v2380_v11, %v2388_v4  ;;  %v2397_v22 = vrot.slane %v1983_v6, %v5053_v8  ;;  %v4748_v29 = vpop.f32.mrf.mxu0  ;;  %v5723_v30 = vpop.f32.mrf.mxu1  ;;  %v3577_v47 = vcombine.low %v2864_v27, %v2863_v35 }
  0xe9   : > { %v3060_v9 = vcombine.low %v3052_v63, %v3059_v24  ;;  %v2266_v52 = vadd.f32 %v2265_v26, %v2226_v12  ;;  %v2404_v23 = vrot.slane %v2390_v15, %v5053_v8  ;;  %v2866_v5 = vcombine.high %v5723_v30, %v5723_v30 }
  0xea   : > { %v3062_v48 = vcombine.low %v2387_v1, %v2389_v20  ;;  %v2405_v31 = vcombine.high %v2397_v22, %v2397_v22  ;;  %4609 = vst.sshfl [vmem:[%s5718_s9 + $0x10] sm:$0x3 pattern:$0x76325410] %v2397_v22  ;;  %v1988_v32 = vpop.f32.mrf.mxu0  ;;  %v4832_v28 = vpop.f32.mrf.mxu1  ;;  %v3069_v40 = vrot.slane %v3061_v0, %v5053_v8  ;;  %v2865_v25 = vcombine.high %v2863_v35, %v2863_v35 }
  0xeb   : > { %3836 = vst [vmem:[%s5718_s9] sm:$0xff] %v3060_v9  ;;  %v2179_v56 = vadd.f32 %v2178_v43, %v1988_v32  ;;  %v2227_v58 = vmul.f32 %v1988_v32, %v1988_v32  ;;  %v2406_v38 = vcombine.high %v2404_v23, %v2404_v23  ;;  %v2407_v21 = vcombine.high %v1988_v32, %v1988_v32 }
  0xec   : > { %v3076_v41 = vrot.slane %v3062_v48, %v5053_v8  ;;  %v3085_v36 = vcombine.low %v2405_v31, %v2404_v23  ;;  %v2414_v44 = vrot.slane %v1988_v32, %v5053_v8  ;;  %v4751_v10 = vpop.f32.mrf.mxu0  ;;  %v3585_v49 = vrot.slane %v3577_v47, %v5053_v8 }
  0xed   : > { %v2267_v42 = vadd.f32 %v2266_v52, %v2227_v58  ;;  %v2421_v16 = vrot.slane %v2407_v21, %v5053_v8  ;;  %v5735_v37 = vpop.f32.mrf.mxu1  ;;  %v2873_v14 = vrot.slane %v5723_v30, %v5053_v8  ;;  %v2880_v50 = vrot.slane %v2866_v5, %v5053_v8 }
  0xee   : > { %v3077_v45 = vcombine.low %v3069_v40, %v3076_v41  ;;  %v2422_v19 = vcombine.high %v2414_v44, %v2414_v44  ;;  %v3086_v33 = vcombine.low %v2406_v38, %v2414_v44  ;;  %v1993_v2 = vpop.f32.mrf.mxu0  ;;  %v3093_v57 = vrot.slane %v3085_v36, %v5053_v8 }
  0xef   : > { %v2180_v18 = vadd.f32 %v2179_v56, %v1993_v2  ;;  %v2228_v46 = vmul.f32 %v1993_v2, %v1993_v2  ;;  %v2423_v54 = vcombine.high %v2421_v16, %v2421_v16  ;;  %v2424_v7 = vcombine.high %v1993_v2, %v1993_v2  ;;  %v4835_v59 = vpop.f32.mrf.mxu1 }
  0xf0   : > { %3837 = vst [vmem:[%s5718_s9 + $0x8] sm:$0xff] %v3077_v45  ;;  %v3100_v55 = vrot.slane %v3086_v33, %v5053_v8  ;;  %v3102_v53 = vcombine.low %v2422_v19, %v2421_v16  ;;  %v2431_v17 = vrot.slane %v1993_v2, %v5053_v8  ;;  %v4754_v13 = vpop.f32.mrf.mxu0  ;;  %v2881_v4 = vcombine.high %v2873_v14, %v2873_v14 }
  0xf1   : > { %v2268_v62 = vadd.f32 %v2267_v42, %v2228_v46  ;;  %v2438_v61 = vrot.slane %v2424_v7, %v5053_v8  ;;  %v3578_v6 = vcombine.low %v2865_v25, %v2873_v14  ;;  %v2882_v29 = vcombine.high %v2880_v50, %v2880_v50 }
  0xf2   : > { %v3101_v11 = vcombine.low %v3093_v57, %v3100_v55  ;;  %v3110_v39 = vrot.slane %v3102_v53, %v5053_v8  ;;  %v2439_v63 = vcombine.high %v2431_v17, %v2431_v17  ;;  %v1998_v26 = vpop.f32.mrf.mxu0  ;;  %v3103_v1 = vcombine.low %v2423_v54, %v2431_v17 }
  0xf3   : > { %v2181_v34 = vadd.f32 %v2180_v18, %v1998_v26  ;;  %v5747_v51 = vpop.f32.mrf.mxu1  ;;  %v2440_v3 = vcombine.high %v2438_v61, %v2438_v61  ;;  %v2229_v24 = vmul.f32 %v1998_v26, %v1998_v26  ;;  %v2441_v43 = vcombine.high %v1998_v26, %v1998_v26 }
  0xf4   : > { %3839 = vst [vmem:[%s5718_s9 + $0x18] sm:$0xff] %v3101_v11  ;;  %4610 = vst.sshfl [vmem:[%s5718_s9 + $0x28] sm:$0x3 pattern:$0x76325410] %v2439_v63  ;;  %v2448_v12 = vrot.slane %v1998_v26, %v5053_v8  ;;  %v4757_v15 = vpop.f32.mrf.mxu0  ;;  %v3117_v20 = vrot.slane %v3103_v1, %v5053_v8  ;;  %v3592_v0 = vrot.slane %v3578_v6, %v5053_v8 }
  0xf5   : > { %v3594_v22 = vcombine.low %v2881_v4, %v2880_v50  ;;  %v4838_v9 = vpop.f32.mrf.mxu1  ;;  %v3126_v52 = vcombine.low %v2438_v61, %v2440_v3  ;;  %v2269_v23 = vadd.f32 %v2268_v62, %v2229_v24  ;;  %v2455_v27 = vrot.slane %v2441_v43, %v5053_v8 }
  0xf6   : > { %v2456_v48 = vcombine.high %v2448_v12, %v2448_v12  ;;  %v2003_v31 = vpop.f32.mrf.mxu0  ;;  %v3118_v32 = vcombine.low %v3110_v39, %v3117_v20  ;;  %v3593_v35 = vcombine.low %v3585_v49, %v3592_v0  ;;  %v2883_v56 = vcombine.high %v5735_v37, %v5735_v37 }
  0xf7   : > { %v3602_v28 = vrot.slane %v3594_v22, %v5053_v8  ;;  %v3134_v58 = vrot.slane %v3126_v52, %v5053_v8  ;;  %v2457_v38 = vcombine.high %v2455_v27, %v2455_v27  ;;  %v2890_v40 = vrot.slane %v5735_v37, %v5053_v8  ;;  %v5761_v36 = vpop.f32.mrf.mxu1 }
  0xf8   : > { %v3127_v21 = vcombine.low %v2448_v12, %v2456_v48  ;;  %v4760_v41 = vpop.f32.mrf.mxu0  ;;  %3840 = vst [vmem:[%s5718_s9 + $0x20] sm:$0xff] %v3118_v32  ;;  %3875 = vst [vmem:[%s5718_s9 + $0x138] sm:$0xff] %v3593_v35  ;;  %v2897_v44 = vrot.slane %v2883_v56, %v5053_v8  ;;  %v2182_v10 = vadd.f32 %v2181_v34, %v2003_v31 }
  0xf9   : > { %v2230_v42 = vmul.f32 %v2003_v31, %v2003_v31  ;;  %v2458_v16 = vcombine.high %v2003_v31, %v2003_v31  ;;  %v3143_v5 = vcombine.low %v2455_v27, %v2457_v38  ;;  %v2898_v45 = vcombine.high %v2890_v40, %v2890_v40  ;;  %v4841_v2 = vpop.f32.mrf.mxu1 }
  0xfa   : > { %v3141_v47 = vrot.slane %v3127_v21, %v5053_v8  ;;  %v3595_v19 = vcombine.low %v2882_v29, %v2890_v40  ;;  %v2008_v33 = vpop.f32.mrf.mxu0  ;;  %v2899_v25 = vcombine.high %v2897_v44, %v2897_v44  ;;  %v2465_v18 = vrot.slane %v2003_v31, %v5053_v8 }
  0xfb   : > { %v2270_v57 = vadd.f32 %v2269_v23, %v2230_v42  ;;  %v2472_v46 = vrot.slane %v2458_v16, %v5053_v8  ;;  %4622 = vst.sshfl [vmem:[%s5718_s9 + $0x148] sm:$0x3 pattern:$0x76325410] %v2898_v45  ;;  %v2900_v13 = vcombine.high %v5747_v51, %v5747_v51  ;;  %v2907_v59 = vrot.slane %v5747_v51, %v5053_v8 }
  0xfc   : > { %v3142_v54 = vcombine.low %v3134_v58, %v3141_v47  ;;  %v3609_v55 = vrot.slane %v3595_v19, %v5053_v8  ;;  %v4763_v53 = vpop.f32.mrf.mxu0  ;;  %v3618_v7 = vcombine.low %v2897_v44, %v2899_v25  ;;  %v2473_v17 = vcombine.high %v2465_v18, %v2465_v18  ;;  %v5776_v49 = vpop.f32.mrf.mxu1 }
  0xfd   : > { %4611 = vst.sshfl [vmem:[%s5718_s9 + $0x40] sm:$0x3 pattern:$0x76325410] %v2472_v46  ;;  %v2183_v14 = vadd.f32 %v2182_v10, %v2008_v33  ;;  %v2231_v50 = vmul.f32 %v2008_v33, %v2008_v33  ;;  %v2474_v11 = vcombine.high %v2472_v46, %v2472_v46  ;;  %v3151_v61 = vrot.slane %v3143_v5, %v5053_v8 }
  0xfe   : > { %3842 = vst [vmem:[%s5718_s9 + $0x30] sm:$0xff] %v3142_v54  ;;  %v3610_v62 = vcombine.low %v3602_v28, %v3609_v55  ;;  %v2013_v39 = vpop.f32.mrf.mxu0  ;;  %v3144_v63 = vcombine.low %v2465_v18, %v2473_v17  ;;  %v2914_v26 = vrot.slane %v2900_v13, %v5053_v8  ;;  %v2915_v1 = vcombine.high %v2907_v59, %v2907_v59  ;;  %v4844_v4 = vpop.f32.mrf.mxu1 }
  0xff   : > { %v3626_v6 = vrot.slane %v3618_v7, %v5053_v8  ;;  %v2271_v34 = vadd.f32 %v2270_v57, %v2231_v50  ;;  %v2475_v3 = vcombine.high %v2008_v33, %v2008_v33  ;;  %v2482_v24 = vrot.slane %v2008_v33, %v5053_v8 }
 0x100   : > { %3876 = vst [vmem:[%s5718_s9 + $0x140] sm:$0xff] %v3610_v62  ;;  %v4766_v43 = vpop.f32.mrf.mxu0  ;;  %v3158_v12 = vrot.slane %v3144_v63, %v5053_v8  ;;  %v2916_v15 = vcombine.high %v2914_v26, %v2914_v26  ;;  %v3619_v20 = vcombine.low %v2907_v59, %v2915_v1  ;;  %v2917_v0 = vcombine.high %v5761_v36, %v5761_v36 }
 0x101   : > { %v2489_v22 = vrot.slane %v2475_v3, %v5053_v8  ;;  %v2490_v29 = vcombine.high %v2482_v24, %v2482_v24  ;;  %v3167_v9 = vcombine.low %v2474_v11, %v2482_v24  ;;  %v2924_v52 = vrot.slane %v5761_v36, %v5053_v8  ;;  %v5792_v27 = vpop.f32.mrf.mxu1 }
 0x102   : > { %v5790_v23 = vpop.f32.mrf.mxu0  ;;  %v3159_v48 = vcombine.low %v3151_v61, %v3158_v12  ;;  %v3633_v31 = vrot.slane %v3619_v20, %v5053_v8  ;;  %v3635_v32 = vcombine.low %v2914_v26, %v2916_v15  ;;  %v2931_v35 = vrot.slane %v2917_v0, %v5053_v8 }
 0x103   : > { %v3168_v28 = vcombine.low %v2490_v29, %v2489_v22  ;;  %v3175_v56 = vrot.slane %v3167_v9, %v5053_v8  ;;  %v2932_v58 = vcombine.high %v2924_v52, %v2924_v52  ;;  %v2184_v38 = vadd.f32 %v2183_v14, %v2013_v39  ;;  %v4847_v40 = vpop.f32.mrf.mxu1 }
 0x104   : > { %v4769_v21 = vpop.f32.mrf.mxu0  ;;  %3843 = vst [vmem:[%s5718_s9 + $0x38] sm:$0xff] %v3159_v48  ;;  %v3634_v41 = vcombine.low %v3626_v6, %v3633_v31  ;;  %v3643_v44 = vrot.slane %v3635_v32, %v5053_v8  ;;  %4623 = vst.sshfl [vmem:[%s5718_s9 + $0x160] sm:$0x3 pattern:$0x76325410] %v2931_v35  ;;  %v2232_v10 = vmul.f32 %v2013_v39, %v2013_v39 }
 0x105   : > { %v2491_v42 = vcombine.high %v2489_v22, %v2489_v22  ;;  %v3182_v16 = vrot.slane %v3168_v28, %v5053_v8  ;;  %v3636_v47 = vcombine.low %v2924_v52, %v2932_v58  ;;  %v2492_v5 = vcombine.high %v2013_v39, %v2013_v39 }
 0x106   : > { %v2499_v45 = vrot.slane %v2013_v39, %v5053_v8  ;;  %v5802_v19 = vpop.f32.mrf.mxu0  ;;  %3878 = vst [vmem:[%s5718_s9 + $0x150] sm:$0xff] %v3634_v41  ;;  %v5805_v33 = vadd.f32 %v2271_v34, %v2232_v10  ;;  %v2933_v2 = vcombine.high %v2931_v35, %v2931_v35  ;;  %v2934_v25 = vcombine.high %v5776_v49, %v5776_v49 }
 0x107   : > { %v3183_v57 = vcombine.low %v3175_v56, %v3182_v16  ;;  %v3650_v18 = vrot.slane %v3636_v47, %v5053_v8  ;;  %v2506_v46 = vrot.slane %v2492_v5, %v5053_v8  ;;  %v5811_v55 = vpop.f32.mrf.mxu1  ;;  %v2941_v17 = vrot.slane %v5776_v49, %v5053_v8 }
 0x108   : > { %v2507_v54 = vcombine.high %v2499_v45, %v2499_v45  ;;  %v4772_v53 = vpop.f32.mrf.mxu0  ;;  %v3184_v7 = vcombine.low %v2491_v42, %v2499_v45  ;;  %v2948_v13 = vrot.slane %v2934_v25, %v5053_v8  ;;  %v5817_v59 = vadd.f32 %v2184_v38, %v5790_v23 }
 0x109   : > { %3845 = vst [vmem:[%s5718_s9 + $0x48] sm:$0xff] %v3183_v57  ;;  %v3651_v62 = vcombine.low %v3643_v44, %v3650_v18  ;;  %v2508_v14 = vcombine.high %v2506_v46, %v2506_v46  ;;  %v4850_v11 = vpop.f32.mrf.mxu1  ;;  %v2949_v61 = vcombine.high %v2941_v17, %v2941_v17  ;;  %v3659_v63 = vcombine.low %v2933_v2, %v2941_v17 }
 0x10a   : > { %v3185_v50 = vcombine.low %v2507_v54, %v2506_v46  ;;  %v5820_v39 = vpop.f32.mrf.mxu0  ;;  %v2509_v26 = vcombine.high %v5790_v23, %v5790_v23  ;;  %v3192_v1 = vrot.slane %v3184_v7, %v5053_v8  ;;  %v2516_v6 = vrot.slane %v5790_v23, %v5053_v8 }
 0x10b   : > { %3879 = vst [vmem:[%s5718_s9 + $0x158] sm:$0xff] %v3651_v62  ;;  %4612 = vst.sshfl [vmem:[%s5718_s9 + $0x58] sm:$0x3 pattern:$0x76325410] %v2508_v14  ;;  %v3660_v3 = vcombine.low %v2949_v61, %v2948_v13  ;;  %v3667_v24 = vrot.slane %v3659_v63, %v5053_v8  ;;  %v2950_v12 = vcombine.high %v2948_v13, %v2948_v13 }
 0x10c   : > { %v3199_v4 = vrot.slane %v3185_v50, %v5053_v8  ;;  %v4775_v34 = vpop.f32.mrf.mxu0  ;;  %v2523_v43 = vrot.slane %v2509_v26, %v5053_v8  ;;  %v2524_v20 = vcombine.high %v2516_v6, %v2516_v6  ;;  %v2951_v0 = vcombine.high %v5792_v27, %v5792_v27 }
 0x10d   : > { %v2958_v22 = vrot.slane %v5792_v27, %v5053_v8  ;;  %v5836_v29 = vpop.f32.mrf.mxu1  ;;  %v5840_v9 = vmul.f32 %v5705_v60, %v5705_v60  ;;  %v3674_v52 = vrot.slane %v3660_v3, %v5053_v8  ;;  %v2233_v21 = vmul.f32 %v5790_v23, %v5790_v23 }
 0x10e   : > { %v3200_v15 = vcombine.low %v3192_v1, %v3199_v4  ;;  %v2525_v48 = vcombine.high %v2523_v43, %v2523_v43  ;;  %v5843_v31 = vpop.f32.mrf.mxu0  ;;  %v3208_v32 = vcombine.low %v2516_v6, %v2524_v20  ;;  %v2965_v35 = vrot.slane %v2951_v0, %v5053_v8 }
 0x10f   : > { %v2966_v28 = vcombine.high %v2958_v22, %v2958_v22  ;;  %v3676_v56 = vcombine.low %v2950_v12, %v2958_v22  ;;  %v4853_v58 = vpop.f32.mrf.mxu1  ;;  %v3675_v38 = vcombine.low %v3667_v24, %v3674_v52  ;;  %v2526_v41 = vcombine.high %v5802_v19, %v5802_v19 }
 0x110   : > { %3846 = vst [vmem:[%s5718_s9 + $0x50] sm:$0xff] %v3200_v15  ;;  %v3209_v40 = vcombine.low %v2523_v43, %v2525_v48  ;;  %v4778_v44 = vpop.f32.mrf.mxu0  ;;  %v5853_v10 = vmul.f32 %v5723_v30, %v5723_v30  ;;  %v2967_v42 = vcombine.high %v2965_v35, %v2965_v35  ;;  %v3216_v45 = vrot.slane %v3208_v32, %v5053_v8 }
 0x111   : > { %v3677_v16 = vcombine.low %v2966_v28, %v2965_v35  ;;  %v3684_v47 = vrot.slane %v3676_v56, %v5053_v8  ;;  %3881 = vst [vmem:[%s5718_s9 + $0x168] sm:$0xff] %v3675_v38  ;;  %v2533_v2 = vrot.slane %v5802_v19, %v5053_v8  ;;  %v2540_v25 = vrot.slane %v2526_v41, %v5053_v8 }
 0x112   : > { %v5856_v5 = vpop.f32.mrf.mxu1  ;;  %v3223_v23 = vrot.slane %v3209_v40, %v5053_v8  ;;  %v5866_v57 = vmul.f32 %v5735_v37, %v5735_v37  ;;  %4624 = vst.sshfl [vmem:[%s5718_s9 + $0x178] sm:$0x3 pattern:$0x76325410] %v2967_v42  ;;  %v2968_v46 = vcombine.high %v5811_v55, %v5811_v55  ;;  %v2975_v54 = vrot.slane %v5811_v55, %v5053_v8 }
 0x113   : > { %v3691_v18 = vrot.slane %v3677_v16, %v5053_v8  ;;  %v2273_v7 = vadd.f32 %v5805_v33, %v2233_v21  ;;  %v2541_v13 = vcombine.high %v2533_v2, %v2533_v2  ;;  %v2542_v62 = vcombine.high %v2540_v25, %v2540_v25 }
 0x114   : > { %v4856_v53 = vpop.f32.mrf.mxu1  ;;  %v3224_v17 = vcombine.low %v3216_v45, %v3223_v23  ;;  %v5875_v14 = vpop.f32.mrf.mxu0  ;;  %v2982_v11 = vrot.slane %v2968_v46, %v5053_v8  ;;  %v2983_v61 = vcombine.high %v2975_v54, %v2975_v54  ;;  %v2543_v63 = vcombine.high %v5820_v39, %v5820_v39 }
 0x115   : > { %v3692_v50 = vcombine.low %v3684_v47, %v3691_v18  ;;  %v2234_v26 = vmul.f32 %v5802_v19, %v5802_v19  ;;  %v3225_v1 = vcombine.low %v2533_v2, %v2541_v13  ;;  %v3226_v33 = vcombine.low %v2540_v25, %v2542_v62 }
 0x116   : > { %3848 = vst [vmem:[%s5718_s9 + $0x60] sm:$0xff] %v3224_v17  ;;  %v2550_v4 = vrot.slane %v5820_v39, %v5053_v8  ;;  %v4781_v34 = vpop.f32.mrf.mxu0  ;;  %v2186_v3 = vadd.f32 %v5817_v59, %v5802_v19  ;;  %v2984_v24 = vcombine.high %v2982_v11, %v2982_v11  ;;  %v3700_v43 = vcombine.low %v2975_v54, %v2983_v61 }
 0x117   : > { %v5885_v6 = vpop.f32.mrf.mxu1  ;;  %3882 = vst [vmem:[%s5718_s9 + $0x170] sm:$0xff] %v3692_v50  ;;  %v2557_v12 = vrot.slane %v2543_v63, %v5053_v8  ;;  %v3233_v15 = vrot.slane %v3225_v1, %v5053_v8  ;;  %v3240_v20 = vrot.slane %v3226_v33, %v5053_v8  ;;  %v2985_v22 = vcombine.high %v5836_v29, %v5836_v29 }
 0x118   : > { %v2558_v0 = vcombine.high %v2550_v4, %v2550_v4  ;;  %4613 = vst.sshfl [vmem:[%s5718_s9 + $0x70] sm:$0x3 pattern:$0x76325410] %v2550_v4  ;;  %v3701_v48 = vcombine.low %v2982_v11, %v2984_v24  ;;  %v3708_v32 = vrot.slane %v3700_v43, %v5053_v8  ;;  %v2235_v19 = vmul.f32 %v5820_v39, %v5820_v39 }
 0x119   : > { %v4859_v52 = vpop.f32.mrf.mxu1  ;;  %v2992_v59 = vrot.slane %v5836_v29, %v5053_v8  ;;  %v5901_v35 = vpop.f32.mrf.mxu0  ;;  %v2274_v28 = vadd.f32 %v2273_v7, %v2234_v26  ;;  %v3241_v56 = vcombine.low %v3233_v15, %v3240_v20  ;;  %v2999_v38 = vrot.slane %v2985_v22, %v5053_v8 }
 0x11a   : > { %v3249_v58 = vcombine.low %v2558_v0, %v2557_v12  ;;  %v3715_v40 = vrot.slane %v3701_v48, %v5053_v8  ;;  %v2559_v44 = vcombine.high %v2557_v12, %v2557_v12  ;;  %v2560_v42 = vcombine.high %v5843_v31, %v5843_v31 }
 0x11b   : > { %v5905_v21 = vpop.f32.mrf.mxu1  ;;  %v3000_v41 = vcombine.high %v2992_v59, %v2992_v59  ;;  %v4784_v16 = vpop.f32.mrf.mxu0  ;;  %3849 = vst [vmem:[%s5718_s9 + $0x68] sm:$0xff] %v3241_v56  ;;  %v2187_v47 = vadd.f32 %v2186_v3, %v5820_v39  ;;  %v3001_v45 = vcombine.high %v2999_v38, %v2999_v38  ;;  %v2236_v23 = vmul.f32 %v5843_v31, %v5843_v31 }
 0x11c   : > { %v2567_v2 = vrot.slane %v5843_v31, %v5053_v8  ;;  %v3716_v18 = vcombine.low %v3708_v32, %v3715_v40  ;;  %v2275_v46 = vadd.f32 %v2274_v28, %v2235_v19  ;;  %v2574_v39 = vrot.slane %v2560_v42, %v5053_v8 }
 0x11d   : > { %v4862_v25 = vpop.f32.mrf.mxu1  ;;  %v3717_v54 = vcombine.low %v2992_v59, %v3000_v41  ;;  %v3718_v7 = vcombine.low %v2999_v38, %v3001_v45  ;;  %v3002_v62 = vcombine.high %v5856_v5, %v5856_v5  ;;  %v3257_v11 = vrot.slane %v3249_v58, %v5053_v8 }
 0x11e   : > { %v5922_v53 = vpop.f32.mrf.mxu0  ;;  %v2575_v17 = vcombine.high %v2567_v2, %v2567_v2  ;;  %v3250_v13 = vcombine.low %v2559_v44, %v2567_v2  ;;  %3884 = vst [vmem:[%s5718_s9 + $0x180] sm:$0xff] %v3716_v18  ;;  %v2188_v63 = vadd.f32 %v2187_v47, %v5843_v31  ;;  %v3009_v26 = vrot.slane %v5856_v5, %v5053_v8 }
 0x11f   : > { %v5926_v50 = vpop.f32.mrf.mxu1  ;;  %v3725_v61 = vrot.slane %v3717_v54, %v5053_v8  ;;  %v3732_v33 = vrot.slane %v3718_v7, %v5053_v8  ;;  %v2276_v4 = vadd.f32 %v2275_v46, %v2236_v23  ;;  %v3016_v3 = vrot.slane %v3002_v62, %v5053_v8 }
 0x120   : > { %4373 = vst [vmem:[%s5919_s13 + $0x8] sm:$0xff] %v5926_v50  ;;  %v4787_v1 = vpop.f32.mrf.mxu0  ;;  %v3264_v34 = vrot.slane %v3250_v13, %v5053_v8  ;;  %v3266_v43 = vcombine.low %v2575_v17, %v2574_v39  ;;  %v3017_v12 = vcombine.high %v3009_v26, %v3009_v26  ;;  %4625 = vst.sshfl [vmem:[%s5718_s9 + $0x190] sm:$0x3 pattern:$0x76325410] %v3009_v26 }
 0x121   : > { %v5939_v24 = vpop.f32.mrf.mxu1  ;;  %v2576_v31 = vcombine.high %v2574_v39, %v2574_v39  ;;  %v2577_v15 = vcombine.high %v5875_v14, %v5875_v14  ;;  %v3733_v0 = vcombine.low %v3725_v61, %v3732_v33  ;;  %v2189_v52 = vadd.f32 %v2188_v63, %v5875_v14 }
 0x122   : > { %4372 = vst [vmem:[%s5919_s13] sm:$0xff] %v5939_v24  ;;  %v5946_v20 = vpop.f32.mrf.mxu0  ;;  %v3265_v22 = vcombine.low %v3257_v11, %v3264_v34  ;;  %v2584_v48 = vrot.slane %v5875_v14, %v5053_v8  ;;  %v3741_v19 = vcombine.low %v3017_v12, %v3016_v3  ;;  %v2237_v59 = vmul.f32 %v5875_v14, %v5875_v14 }
 0x123   : > { %v5951_v32 = vpop.f32.mrf.mxu1  ;;  %v2591_v28 = vrot.slane %v2577_v15, %v5053_v8  ;;  %v3018_v56 = vcombine.high %v3016_v3, %v3016_v3  ;;  %3885 = vst [vmem:[%s5718_s9 + $0x188] sm:$0xff] %v3733_v0  ;;  %v3019_v41 = vcombine.high %v5885_v6, %v5885_v6  ;;  %v3026_v44 = vrot.slane %v5885_v6, %v5053_v8 }
 0x124   : > { %4375 = vst [vmem:[%s5919_s13 + $0x18] sm:$0xff] %v5951_v32  ;;  %v4790_v58 = vpop.f32.mrf.mxu0  ;;  %3851 = vst [vmem:[%s5718_s9 + $0x78] sm:$0xff] %v3265_v22  ;;  %v2592_v38 = vcombine.high %v2584_v48, %v2584_v48  ;;  %v3267_v40 = vcombine.low %v2576_v31, %v2584_v48  ;;  %v3274_v14 = vrot.slane %v3266_v43, %v5053_v8 }
 0x125   : > { %v5964_v42 = vpop.f32.mrf.mxu1  ;;  %v3749_v16 = vrot.slane %v3741_v19, %v5053_v8  ;;  %v2593_v47 = vcombine.high %v2591_v28, %v2591_v28  ;;  %v2238_v45 = vmul.f32 %v5901_v35, %v5901_v35  ;;  %v3033_v25 = vrot.slane %v3019_v41, %v5053_v8 }
 0x126   : > { %4374 = vst [vmem:[%s5919_s13 + $0x10] sm:$0xff] %v5964_v42  ;;  %v5972_v23 = vpop.f32.mrf.mxu0  ;;  %v3281_v2 = vrot.slane %v3267_v40, %v5053_v8  ;;  %4614 = vst.sshfl [vmem:[%s5718_s9 + $0x88] sm:$0x3 pattern:$0x76325410] %v2592_v38  ;;  %v3034_v18 = vcombine.high %v3026_v44, %v3026_v44  ;;  %v3742_v46 = vcombine.low %v3018_v56, %v3026_v44 }
 0x127   : > { %v5977_v54 = vpop.f32.mrf.mxu1  ;;  %v2277_v39 = vadd.f32 %v2276_v4, %v2237_v59  ;;  %v3290_v7 = vcombine.low %v2591_v28, %v2593_v47  ;;  %v2594_v17 = vcombine.high %v5901_v35, %v5901_v35  ;;  %v2601_v13 = vrot.slane %v5901_v35, %v5053_v8 }
 0x128   : > { %4377 = vst [vmem:[%s5919_s13 + $0x28] sm:$0xff] %v5977_v54  ;;  %v4793_v62 = vpop.f32.mrf.mxu0  ;;  %v5987_v11 = vmul.f32 %v5747_v51, %v5747_v51  ;;  %v3282_v61 = vcombine.low %v3274_v14, %v3281_v2  ;;  %v3756_v63 = vrot.slane %v3742_v46, %v5053_v8  ;;  %v3758_v26 = vcombine.low %v3034_v18, %v3033_v25 }
 0x129   : > { %v5990_v1 = vpop.f32.mrf.mxu1  ;;  %v2190_v33 = vadd.f32 %v2189_v52, %v5901_v35  ;;  %v2278_v4 = vadd.f32 %v2277_v39, %v2238_v45  ;;  %v2608_v34 = vrot.slane %v2594_v17, %v5053_v8  ;;  %v2609_v3 = vcombine.high %v2601_v13, %v2601_v13 }
 0x12a   : > { %4376 = vst [vmem:[%s5919_s13 + $0x20] sm:$0xff] %v5990_v1  ;;  %v5996_v43 = vpop.f32.mrf.mxu0  ;;  %v3298_v12 = vrot.slane %v3290_v7, %v5053_v8  ;;  %3852 = vst [vmem:[%s5718_s9 + $0x80] sm:$0xff] %v3282_v61  ;;  %v3757_v31 = vcombine.low %v3749_v16, %v3756_v63  ;;  %v3035_v15 = vcombine.high %v3033_v25, %v3033_v25 }
 0x12b   : > { %v3042_v0 = vrot.slane %v5905_v21, %v5053_v8  ;;  %v6002_v22 = vpop.f32.mrf.mxu1  ;;  %v2610_v35 = vcombine.high %v2608_v34, %v2608_v34  ;;  %v3291_v52 = vcombine.low %v2601_v13, %v2609_v3  ;;  %v3766_v48 = vrot.slane %v3758_v26, %v5053_v8 }
 0x12c   : > { %v2191_v19 = vadd.f32 %v2190_v33, %v5922_v53  ;;  %4379 = vst [vmem:[%s5919_s13 + $0x38] sm:$0xff] %v6002_v22  ;;  %v4796_v59 = vpop.f32.mrf.mxu0  ;;  %3887 = vst [vmem:[%s5718_s9 + $0x198] sm:$0xff] %v3757_v31  ;;  %v2239_v58 = vmul.f32 %v5922_v53, %v5922_v53  ;;  %v2611_v38 = vcombine.high %v5922_v53, %v5922_v53 }
 0x12d   : > { %v3043_v28 = vcombine.high %v3042_v0, %v3042_v0  ;;  %v3759_v56 = vcombine.low %v3035_v15, %v3042_v0  ;;  %v6013_v40 = vpop.f32.mrf.mxu1  ;;  %v3305_v41 = vrot.slane %v3291_v52, %v5053_v8  ;;  %v3307_v44 = vcombine.low %v2608_v34, %v2610_v35 }
 0x12e   : > { %v2618_v14 = vrot.slane %v5922_v53, %v5053_v8  ;;  %v4302_v16 = vmul.f32 %v5926_v50, %v5926_v50  ;;  %4378 = vst [vmem:[%s5919_s13 + $0x30] sm:$0xff] %v6013_v40  ;;  %v6022_v47 = vpop.f32.mrf.mxu0  ;;  %v2279_v2 = vadd.f32 %v2278_v4, %v2239_v58  ;;  %v2625_v25 = vrot.slane %v2611_v38, %v5053_v8 }
 0x12f   : > { %v3773_v45 = vrot.slane %v3759_v56, %v5053_v8  ;;  %4626 = vst.sshfl [vmem:[%s5718_s9 + $0x1a8] sm:$0x3 pattern:$0x76325410] %v3043_v28  ;;  %v4264_v18 = vadd.f32 %v5926_v50, %v5939_v24  ;;  %v6029_v46 = vpop.f32.mrf.mxu1  ;;  %v3306_v53 = vcombine.low %v3298_v12, %v3305_v41  ;;  %v3315_v39 = vrot.slane %v3307_v44, %v5053_v8 }
 0x130   : > { %v2626_v7 = vcombine.high %v2618_v14, %v2618_v14  ;;  %v4301_v17 = vmul.f32 %v5939_v24, %v5939_v24  ;;  %4381 = vst [vmem:[%s5919_s13 + $0x48] sm:$0xff] %v6029_v46  ;;  %v4799_v13 = vpop.f32.mrf.mxu0  ;;  %4615 = vst.sshfl [vmem:[%s5718_s9 + $0xa0] sm:$0x3 pattern:$0x76325410] %v2625_v25  ;;  %v2192_v61 = vadd.f32 %v2191_v19, %v5946_v20 }
 0x131   : > { %v3774_v62 = vcombine.low %v3766_v48, %v3773_v45  ;;  %v2240_v50 = vmul.f32 %v5946_v20, %v5946_v20  ;;  %v2627_v63 = vcombine.high %v2625_v25, %v2625_v25  ;;  %v6040_v26 = vpop.f32.mrf.mxu1  ;;  %3854 = vst [vmem:[%s5718_s9 + $0x90] sm:$0xff] %v3306_v53  ;;  %v2628_v24 = vcombine.high %v5946_v20, %v5946_v20 }
 0x132   : > { %v3308_v33 = vcombine.low %v2618_v14, %v2626_v7  ;;  %v4333_v4 = vadd.f32 %v4302_v16, %v4301_v17  ;;  %v2635_v34 = vrot.slane %v5946_v20, %v5053_v8  ;;  %4380 = vst [vmem:[%s5919_s13 + $0x40] sm:$0xff] %v6040_v26  ;;  %v6049_v3 = vpop.f32.mrf.mxu0  ;;  %v4304_v31 = vmul.f32 %v5951_v32, %v5951_v32 }
 0x133   : > { %3888 = vst [vmem:[%s5718_s9 + $0x1a0] sm:$0xff] %v3774_v62  ;;  %v2280_v12 = vadd.f32 %v2279_v2, %v2240_v50  ;;  %v4265_v15 = vadd.f32 %v4264_v18, %v5964_v42  ;;  %v4303_v0 = vmul.f32 %v5964_v42, %v5964_v42  ;;  %v6057_v35 = vpop.f32.mrf.mxu1  ;;  %v2642_v20 = vrot.slane %v2628_v24, %v5053_v8 }
 0x134   : > { %v3322_v52 = vrot.slane %v3308_v33, %v5053_v8  ;;  %v2643_v48 = vcombine.high %v2635_v34, %v2635_v34  ;;  %v3331_v19 = vcombine.low %v2627_v63, %v2635_v34  ;;  %4383 = vst [vmem:[%s5919_s13 + $0x58] sm:$0xff] %v6057_v35  ;;  %v4802_v59 = vpop.f32.mrf.mxu0  ;;  %v2193_v56 = vadd.f32 %v2192_v61, %v5972_v23 }
 0x135   : > { %v4334_v28 = vadd.f32 %v4333_v4, %v4303_v0  ;;  %v2241_v58 = vmul.f32 %v5972_v23, %v5972_v23  ;;  %v2645_v42 = vcombine.high %v5972_v23, %v5972_v23  ;;  %v6068_v38 = vpop.f32.mrf.mxu1  ;;  %v2644_v16 = vcombine.high %v2642_v20, %v2642_v20 }
 0x136   : > { %v3323_v41 = vcombine.low %v3315_v39, %v3322_v52  ;;  %v3332_v44 = vcombine.low %v2643_v48, %v2642_v20  ;;  %v3339_v14 = vrot.slane %v3331_v19, %v5053_v8  ;;  %4382 = vst [vmem:[%s5919_s13 + $0x50] sm:$0xff] %v6068_v38  ;;  %v6073_v45 = vpop.f32.mrf.mxu0  ;;  %v2652_v25 = vrot.slane %v5972_v23, %v5053_v8 }
 0x137   : > { %v2281_v2 = vadd.f32 %v2280_v12, %v2241_v58  ;;  %v2659_v18 = vrot.slane %v2645_v42, %v5053_v8  ;;  %v4306_v53 = vmul.f32 %v5977_v54, %v5977_v54  ;;  %v6080_v7 = vpop.f32.mrf.mxu1  ;;  %v4266_v17 = vadd.f32 %v5951_v32, %v4265_v15 }
 0x138   : > { %3855 = vst [vmem:[%s5718_s9 + $0x98] sm:$0xff] %v3323_v41  ;;  %v3346_v39 = vrot.slane %v3332_v44, %v5053_v8  ;;  %v4305_v13 = vmul.f32 %v5990_v1, %v5990_v1  ;;  %v4335_v62 = vadd.f32 %v4334_v28, %v4304_v31  ;;  %4385 = vst [vmem:[%s5919_s13 + $0x68] sm:$0xff] %v6080_v7  ;;  %v4805_v23 = vpop.f32.mrf.mxu0 }
 0x139   : > { %v2660_v61 = vcombine.high %v2652_v25, %v2652_v25  ;;  %v2661_v50 = vcombine.high %v2659_v18, %v2659_v18  ;;  %v3348_v63 = vcombine.low %v2644_v16, %v2652_v25  ;;  %v2194_v33 = vadd.f32 %v2193_v56, %v5996_v43  ;;  %v6090_v4 = vpop.f32.mrf.mxu1 }
 0x13a   : > { %v3347_v24 = vcombine.low %v3339_v14, %v3346_v39  ;;  %v4267_v34 = vadd.f32 %v4266_v17, %v5990_v1  ;;  %v4336_v32 = vadd.f32 %v4335_v62, %v4305_v13  ;;  %v2242_v12 = vmul.f32 %v5996_v43, %v5996_v43  ;;  %4384 = vst [vmem:[%s5919_s13 + $0x60] sm:$0xff] %v6090_v4  ;;  %v6097_v31 = vpop.f32.mrf.mxu0 }
 0x13b   : > { %v3349_v15 = vcombine.low %v2660_v61, %v2659_v18  ;;  %v3356_v0 = vrot.slane %v3348_v63, %v5053_v8  ;;  %4616 = vst.sshfl [vmem:[%s5718_s9 + $0xb8] sm:$0x3 pattern:$0x76325410] %v2661_v50  ;;  %v2662_v52 = vcombine.high %v5996_v43, %v5996_v43  ;;  %v2669_v20 = vrot.slane %v5996_v43, %v5053_v8  ;;  %v6105_v1 = vpop.f32.mrf.mxu1 }
 0x13c   : > { %3857 = vst [vmem:[%s5718_s9 + $0xa8] sm:$0xff] %v3347_v24  ;;  %v2282_v48 = vadd.f32 %v2281_v2, %v2242_v12  ;;  %v4308_v19 = vmul.f32 %v6002_v22, %v6002_v22  ;;  %v4268_v59 = vadd.f32 %v5977_v54, %v4267_v34  ;;  %v4307_v28 = vmul.f32 %v6013_v40, %v6013_v40  ;;  %v4808_v56 = vpop.f32.mrf.mxu0 }
 0x13d   : > { %4387 = vst [vmem:[%s5919_s13 + $0x78] sm:$0xff] %v6105_v1  ;;  %v3363_v58 = vrot.slane %v3349_v15, %v5053_v8  ;;  %v2676_v43 = vrot.slane %v2662_v52, %v5053_v8  ;;  %v2677_v42 = vcombine.high %v2669_v20, %v2669_v20  ;;  %v4337_v41 = vadd.f32 %v4336_v32, %v4306_v53  ;;  %v6117_v44 = vpop.f32.mrf.mxu1 }
 0x13e   : > { %v4269_v14 = vadd.f32 %v4268_v59, %v6013_v40  ;;  %v2195_v16 = vadd.f32 %v2194_v33, %v6022_v47  ;;  %v2243_v54 = vmul.f32 %v6022_v47, %v6022_v47  ;;  %v2679_v2 = vcombine.high %v6022_v47, %v6022_v47  ;;  %4386 = vst [vmem:[%s5919_s13 + $0x70] sm:$0xff] %v6117_v44  ;;  %v6127_v25 = vpop.f32.mrf.mxu0 }
 0x13f   : > { %v3364_v18 = vcombine.low %v3356_v0, %v3363_v58  ;;  %v2678_v53 = vcombine.high %v2676_v43, %v2676_v43  ;;  %v3372_v39 = vcombine.low %v2669_v20, %v2677_v42  ;;  %v4338_v17 = vadd.f32 %v4337_v41, %v4307_v28  ;;  %v6129_v13 = vpop.f32.mrf.mxu1 }
 0x140   : > { %v2283_v40 = vadd.f32 %v2282_v48, %v2243_v54  ;;  %v2686_v62 = vrot.slane %v6022_v47, %v5053_v8  ;;  %v2693_v23 = vrot.slane %v2679_v2, %v5053_v8  ;;  %v4310_v61 = vmul.f32 %v6029_v46, %v6029_v46  ;;  %4389 = vst [vmem:[%s5919_s13 + $0x88] sm:$0xff] %v6129_v13  ;;  %v4811_v50 = vpop.f32.mrf.mxu0 }
 0x141   : > { %3858 = vst [vmem:[%s5718_s9 + $0xb0] sm:$0xff] %v3364_v18  ;;  %v3373_v63 = vcombine.low %v2676_v43, %v2678_v53  ;;  %v3380_v33 = vrot.slane %v3372_v39, %v5053_v8  ;;  %v4270_v24 = vadd.f32 %v6002_v22, %v4269_v14  ;;  %v4309_v34 = vmul.f32 %v6040_v26, %v6040_v26  ;;  %v6143_v32 = vpop.f32.mrf.mxu1 }
 0x142   : > { %v2694_v47 = vcombine.high %v2686_v62, %v2686_v62  ;;  %v2695_v12 = vcombine.high %v2693_v23, %v2693_v23  ;;  %v4339_v15 = vadd.f32 %v4338_v17, %v4308_v19  ;;  %v2196_v0 = vadd.f32 %v2195_v16, %v6049_v3  ;;  %4388 = vst [vmem:[%s5919_s13 + $0x80] sm:$0xff] %v6143_v32  ;;  %v6148_v52 = vpop.f32.mrf.mxu0 }
 0x143   : > { %v3387_v20 = vrot.slane %v3373_v63, %v5053_v8  ;;  %v4271_v48 = vadd.f32 %v4270_v24, %v6040_v26  ;;  %v2244_v22 = vmul.f32 %v6049_v3, %v6049_v3  ;;  %v2696_v59 = vcombine.high %v6049_v3, %v6049_v3  ;;  %v6156_v28 = vpop.f32.mrf.mxu1 }
 0x144   : > { %v3389_v19 = vcombine.low %v2686_v62, %v2694_v47  ;;  %v3390_v56 = vcombine.low %v2693_v23, %v2695_v12  ;;  %v4340_v58 = vadd.f32 %v4339_v15, %v4309_v34  ;;  %v2703_v43 = vrot.slane %v6049_v3, %v5053_v8  ;;  %4391 = vst [vmem:[%s5919_s13 + $0x98] sm:$0xff] %v6156_v28  ;;  %v4814_v26 = vpop.f32.mrf.mxu0 }
 0x145   : > { %v3388_v42 = vcombine.low %v3380_v33, %v3387_v20  ;;  %v2284_v41 = vadd.f32 %v2283_v40, %v2244_v22  ;;  %v2710_v14 = vrot.slane %v2696_v59, %v5053_v8  ;;  %v4312_v16 = vmul.f32 %v6057_v35, %v6057_v35  ;;  %v6165_v54 = vpop.f32.mrf.mxu1 }
 0x146   : > { %v3397_v2 = vrot.slane %v3389_v19, %v5053_v8  ;;  %v3404_v18 = vrot.slane %v3390_v56, %v5053_v8  ;;  %v2711_v53 = vcombine.high %v2703_v43, %v2703_v43  ;;  %4617 = vst.sshfl [vmem:[%s5718_s9 + $0xd0] sm:$0x3 pattern:$0x76325410] %v2703_v43  ;;  %v4272_v3 = vadd.f32 %v6029_v46, %v4271_v48  ;;  %v6173_v39 = vpop.f32.mrf.mxu0 }
 0x147   : > { %4390 = vst [vmem:[%s5919_s13 + $0x90] sm:$0xff] %v6165_v54  ;;  %3860 = vst [vmem:[%s5718_s9 + $0xc0] sm:$0xff] %v3388_v42  ;;  %v4311_v17 = vmul.f32 %v6068_v38, %v6068_v38  ;;  %v4341_v40 = vadd.f32 %v4340_v58, %v4310_v61  ;;  %v2197_v62 = vadd.f32 %v2196_v0, %v6073_v45  ;;  %v6181_v50 = vpop.f32.mrf.mxu1 }
 0x148   : > { %v2245_v23 = vmul.f32 %v6073_v45, %v6073_v45  ;;  %v3405_v63 = vcombine.low %v3397_v2, %v3404_v18  ;;  %v3413_v46 = vcombine.low %v2711_v53, %v2710_v14  ;;  %v4273_v33 = vadd.f32 %v4272_v3, %v6068_v38  ;;  %4393 = vst [vmem:[%s5919_s13 + $0xa8] sm:$0xff] %v6181_v50  ;;  %v4817_v34 = vpop.f32.mrf.mxu0 }
 0x149   : > { %v2712_v24 = vcombine.high %v2710_v14, %v2710_v14  ;;  %v4342_v47 = vadd.f32 %v4341_v40, %v4311_v17  ;;  %v2713_v61 = vcombine.high %v6073_v45, %v6073_v45  ;;  %v2720_v15 = vrot.slane %v6073_v45, %v5053_v8  ;;  %v6190_v0 = vpop.f32.mrf.mxu1 }
 0x14a   : > { %v2285_v12 = vadd.f32 %v2284_v41, %v2245_v23  ;;  %3861 = vst [vmem:[%s5718_s9 + $0xc8] sm:$0xff] %v3405_v63  ;;  %v3421_v20 = vrot.slane %v3413_v46, %v5053_v8  ;;  %v4314_v38 = vmul.f32 %v6080_v7, %v6080_v7  ;;  %v4274_v48 = vadd.f32 %v6057_v35, %v4273_v33  ;;  %v6201_v59 = vpop.f32.mrf.mxu0 }
 0x14b   : > { %v4313_v22 = vmul.f32 %v6090_v4, %v6090_v4  ;;  %4392 = vst [vmem:[%s5919_s13 + $0xa0] sm:$0xff] %v6190_v0  ;;  %v2727_v45 = vrot.slane %v2713_v61, %v5053_v8  ;;  %v2728_v19 = vcombine.high %v2720_v15, %v2720_v15  ;;  %v3414_v56 = vcombine.low %v2712_v24, %v2720_v15  ;;  %v6204_v43 = vpop.f32.mrf.mxu1 }
 0x14c   : > { %v4343_v58 = vadd.f32 %v4342_v47, %v4312_v16  ;;  %v4275_v26 = vadd.f32 %v4274_v48, %v6090_v4  ;;  %v2198_v42 = vadd.f32 %v2197_v62, %v6097_v31  ;;  %v2246_v35 = vmul.f32 %v6097_v31, %v6097_v31  ;;  %4395 = vst [vmem:[%s5919_s13 + $0xb8] sm:$0xff] %v6204_v43  ;;  %v4820_v14 = vpop.f32.mrf.mxu0 }
 0x14d   : > { %v2730_v41 = vcombine.high %v6097_v31, %v6097_v31  ;;  %v3428_v2 = vrot.slane %v3414_v56, %v5053_v8  ;;  %v3430_v18 = vcombine.low %v2728_v19, %v2727_v45  ;;  %v2729_v53 = vcombine.high %v2727_v45, %v2727_v45  ;;  %v6215_v3 = vpop.f32.mrf.mxu1 }
 0x14e   : > { %v4344_v16 = vadd.f32 %v4343_v58, %v4313_v22  ;;  %v2286_v4 = vadd.f32 %v2285_v12, %v2246_v35  ;;  %v2737_v17 = vrot.slane %v6097_v31, %v5053_v8  ;;  %v4316_v62 = vmul.f32 %v6105_v1, %v6105_v1  ;;  %4394 = vst [vmem:[%s5919_s13 + $0xb0] sm:$0xff] %v6215_v3  ;;  %v6224_v23 = vpop.f32.mrf.mxu0 }
 0x14f   : > { %v2744_v40 = vrot.slane %v2730_v41, %v5053_v8  ;;  %v3429_v63 = vcombine.low %v3421_v20, %v3428_v2  ;;  %v3438_v46 = vrot.slane %v3430_v18, %v5053_v8  ;;  %v4276_v33 = vadd.f32 %v6080_v7, %v4275_v26  ;;  %v6230_v31 = vpop.f32.mrf.mxu1 }
 0x150   : > { %v4315_v24 = vmul.f32 %v6117_v44, %v6117_v44  ;;  %v2745_v34 = vcombine.high %v2737_v17, %v2737_v17  ;;  %v3431_v12 = vcombine.low %v2729_v53, %v2737_v17  ;;  %v4345_v61 = vadd.f32 %v4344_v16, %v4314_v38  ;;  %4397 = vst [vmem:[%s5919_s13 + $0xc8] sm:$0xff] %v6230_v31  ;;  %v4823_v15 = vpop.f32.mrf.mxu0 }
 0x151   : > { %v2746_v47 = vcombine.high %v2744_v40, %v2744_v40  ;;  %3863 = vst [vmem:[%s5718_s9 + $0xd8] sm:$0xff] %v3429_v63  ;;  %v4277_v20 = vadd.f32 %v4276_v33, %v6117_v44  ;;  %v2199_v48 = vadd.f32 %v2198_v42, %v6127_v25  ;;  %v2247_v7 = vmul.f32 %v6127_v25, %v6127_v25  ;;  %v6241_v45 = vpop.f32.mrf.mxu1 }
 0x152   : > { %v2747_v22 = vcombine.high %v6127_v25, %v6127_v25  ;;  %v3445_v19 = vrot.slane %v3431_v12, %v5053_v8  ;;  %4618 = vst.sshfl [vmem:[%s5718_s9 + $0xe8] sm:$0x3 pattern:$0x76325410] %v2745_v34  ;;  %v4346_v56 = vadd.f32 %v4345_v61, %v4315_v24  ;;  %v2754_v58 = vrot.slane %v6127_v25, %v5053_v8  ;;  %v6249_v44 = vpop.f32.mrf.mxu0 }
 0x153   : > { %v3454_v38 = vcombine.low %v2744_v40, %v2746_v47  ;;  %4396 = vst [vmem:[%s5919_s13 + $0xc0] sm:$0xff] %v6241_v45  ;;  %v2287_v26 = vadd.f32 %v2286_v4, %v2247_v7  ;;  %v4318_v35 = vmul.f32 %v6129_v13, %v6129_v13  ;;  %v4278_v41 = vadd.f32 %v6105_v1, %v4277_v20  ;;  %v6255_v14 = vpop.f32.mrf.mxu1 }
 0x154   : > { %v2761_v42 = vrot.slane %v2747_v22, %v5053_v8  ;;  %v3446_v2 = vcombine.low %v3438_v46, %v3445_v19  ;;  %v2762_v25 = vcombine.high %v2754_v58, %v2754_v58  ;;  %v4317_v16 = vmul.f32 %v6143_v32, %v6143_v32  ;;  %4399 = vst [vmem:[%s5919_s13 + $0xd8] sm:$0xff] %v6255_v14  ;;  %v4826_v53 = vpop.f32.mrf.mxu0 }
 0x155   : > { %v3462_v18 = vrot.slane %v3454_v38, %v5053_v8  ;;  %v4279_v17 = vadd.f32 %v4278_v41, %v6143_v32  ;;  %v4347_v40 = vadd.f32 %v4346_v56, %v4316_v62  ;;  %v2200_v63 = vadd.f32 %v2199_v48, %v6148_v52  ;;  %v6264_v1 = vpop.f32.mrf.mxu1 }
 0x156   : > { %v2763_v4 = vcombine.high %v2761_v42, %v2761_v42  ;;  %3864 = vst [vmem:[%s5718_s9 + $0xe0] sm:$0xff] %v3446_v2  ;;  %v3455_v46 = vcombine.low %v2754_v58, %v2762_v25  ;;  %v2248_v33 = vmul.f32 %v6148_v52, %v6148_v52  ;;  %v2764_v24 = vcombine.high %v6148_v52, %v6148_v52 }
 0x157   : > { %v2771_v34 = vrot.slane %v6148_v52, %v5053_v8  ;;  %4398 = vst [vmem:[%s5919_s13 + $0xd0] sm:$0xff] %v6264_v1  ;;  %v4348_v62 = vadd.f32 %v4347_v40, %v4317_v16  ;;  %v4320_v47 = vmul.f32 %v6156_v28, %v6156_v28  ;;  %v4280_v12 = vadd.f32 %v6129_v13, %v4279_v17  ;;  %v6278_v61 = vpop.f32.mrf.mxu1 }
 0x158   : > { %v3471_v32 = vcombine.low %v2761_v42, %v2763_v4  ;;  %v3469_v15 = vrot.slane %v3455_v46, %v5053_v8  ;;  %v2288_v20 = vadd.f32 %v2287_v26, %v2248_v33  ;;  %v2778_v48 = vrot.slane %v2764_v24, %v5053_v8  ;;  %4401 = vst [vmem:[%s5919_s13 + $0xe8] sm:$0xff] %v6278_v61 }
 0x159   : > { %v2779_v7 = vcombine.high %v2771_v34, %v2771_v34  ;;  %v4281_v22 = vadd.f32 %v4280_v12, %v6165_v54  ;;  %v4319_v19 = vmul.f32 %v6165_v54, %v6165_v54  ;;  %v4349_v13 = vadd.f32 %v4348_v62, %v4318_v35  ;;  %v6288_v38 = vpop.f32.mrf.mxu1 }
 0x15a   : > { %v3479_v52 = vrot.slane %v3471_v32, %v5053_v8  ;;  %v3470_v56 = vcombine.low %v3462_v18, %v3469_v15  ;;  %4619 = vst.sshfl [vmem:[%s5718_s9 + $0x100] sm:$0x3 pattern:$0x76325410] %v2778_v48  ;;  %v2201_v26 = vadd.f32 %v2200_v63, %v6173_v39  ;;  %v2249_v42 = vmul.f32 %v6173_v39, %v6173_v39 }
 0x15b   : > { %v3472_v58 = vcombine.low %v2771_v34, %v2779_v7  ;;  %4400 = vst [vmem:[%s5919_s13 + $0xe0] sm:$0xff] %v6288_v38  ;;  %v4350_v41 = vadd.f32 %v4349_v13, %v4319_v19  ;;  %v2780_v2 = vcombine.high %v2778_v48, %v2778_v48  ;;  %v2781_v25 = vcombine.high %v6173_v39, %v6173_v39  ;;  %v6300_v35 = vpop.f32.mrf.mxu1 }
 0x15c   : > { %v2788_v54 = vrot.slane %v6173_v39, %v5053_v8  ;;  %3866 = vst [vmem:[%s5718_s9 + $0xf0] sm:$0xff] %v3470_v56  ;;  %v2289_v16 = vadd.f32 %v2288_v20, %v2249_v42  ;;  %v4322_v53 = vmul.f32 %v6181_v50, %v6181_v50  ;;  %v4282_v4 = vadd.f32 %v6156_v28, %v4281_v22 }
 0x15d   : > { %v3486_v18 = vrot.slane %v3472_v58, %v5053_v8  ;;  %4403 = vst [vmem:[%s5919_s13 + $0xf8] sm:$0xff] %v6300_v35  ;;  %v2795_v17 = vrot.slane %v2781_v25, %v5053_v8  ;;  %v4321_v39 = vmul.f32 %v6190_v0, %v6190_v0  ;;  %v6312_v46 = vpop.f32.mrf.mxu1  ;;  %v4351_v34 = vadd.f32 %v4350_v41, %v4320_v47 }
 0x15e   : > { %v2796_v40 = vcombine.high %v2788_v54, %v2788_v54  ;;  %v3495_v63 = vcombine.low %v2780_v2, %v2788_v54  ;;  %v4283_v24 = vadd.f32 %v4282_v4, %v6190_v0  ;;  %v2202_v32 = vadd.f32 %v2201_v26, %v6201_v59  ;;  %4402 = vst [vmem:[%s5919_s13 + $0xf0] sm:$0xff] %v6312_v46 }
 0x15f   : > { %v3487_v33 = vcombine.low %v3479_v52, %v3486_v18  ;;  %v2250_v12 = vmul.f32 %v6201_v59, %v6201_v59  ;;  %v2797_v15 = vcombine.high %v2795_v17, %v2795_v17  ;;  %v4352_v20 = vadd.f32 %v4351_v34, %v4321_v39 }
 0x160   : > { %v3496_v28 = vcombine.low %v2796_v40, %v2795_v17  ;;  %v3503_v62 = vrot.slane %v3495_v63, %v5053_v8  ;;  %v2798_v48 = vcombine.high %v6201_v59, %v6201_v59  ;;  %v2805_v0 = vrot.slane %v6201_v59, %v5053_v8 }
 0x161   : > { %3867 = vst [vmem:[%s5718_s9 + $0xf8] sm:$0xff] %v3487_v33  ;;  %v4324_v47 = vmul.f32 %v6204_v43, %v6204_v43  ;;  %v2290_v52 = vadd.f32 %v2289_v16, %v2250_v12  ;;  %v4284_v22 = vadd.f32 %v6181_v50, %v4283_v24  ;;  %v4323_v19 = vmul.f32 %v6215_v3, %v6215_v3 }
 0x162   : > { %v3510_v7 = vrot.slane %v3496_v28, %v5053_v8  ;;  %v2812_v13 = vrot.slane %v2798_v48, %v5053_v8  ;;  %v2813_v56 = vcombine.high %v2805_v0, %v2805_v0  ;;  %v3512_v58 = vcombine.low %v2797_v15, %v2805_v0 }
 0x163   : > { %v4353_v26 = vadd.f32 %v4352_v20, %v4322_v53  ;;  %v4285_v59 = vadd.f32 %v4284_v22, %v6215_v3  ;;  %v2203_v41 = vadd.f32 %v2202_v32, %v6224_v23  ;;  %v2251_v2 = vmul.f32 %v6224_v23, %v6224_v23 }
 0x164   : > { %v3511_v42 = vcombine.low %v3503_v62, %v3510_v7  ;;  %v2814_v25 = vcombine.high %v2812_v13, %v2812_v13  ;;  %v3513_v54 = vcombine.low %v2813_v56, %v2812_v13  ;;  %v3520_v50 = vrot.slane %v3512_v58, %v5053_v8 }
 0x165   : > { %v4354_v18 = vadd.f32 %v4353_v26, %v4323_v19  ;;  %v2291_v16 = vadd.f32 %v2290_v52, %v2251_v2  ;;  %v2815_v4 = vcombine.high %v6224_v23, %v6224_v23  ;;  %v2822_v53 = vrot.slane %v6224_v23, %v5053_v8 }
 0x166   : > { %3869 = vst [vmem:[%s5718_s9 + $0x108] sm:$0xff] %v3511_v42  ;;  %v4326_v3 = vmul.f32 %v6230_v31, %v6230_v31  ;;  %v3527_v17 = vrot.slane %v3513_v54, %v5053_v8  ;;  %4620 = vst.sshfl [vmem:[%s5718_s9 + $0x118] sm:$0x3 pattern:$0x76325410] %v2814_v25  ;;  %v4286_v40 = vadd.f32 %v6204_v43, %v4285_v59 }
 0x167   : > { %v4325_v63 = vmul.f32 %v6241_v45, %v6241_v45  ;;  %v4355_v39 = vadd.f32 %v4354_v18, %v4324_v47  ;;  %v2829_v33 = vrot.slane %v2815_v4, %v5053_v8  ;;  %v2830_v24 = vcombine.high %v2822_v53, %v2822_v53 }
 0x168   : > { %v2204_v34 = vadd.f32 %v2203_v41, %v6249_v44  ;;  %v2252_v23 = vmul.f32 %v6249_v44, %v6249_v44  ;;  %v3528_v32 = vcombine.low %v3520_v50, %v3527_v17  ;;  %v4287_v28 = vadd.f32 %v4286_v40, %v6241_v45 }
 0x169   : > { %v4356_v62 = vadd.f32 %v4355_v39, %v4325_v63  ;;  %v2832_v12 = vcombine.high %v6249_v44, %v6249_v44  ;;  %v2831_v43 = vcombine.high %v2829_v33, %v2829_v33  ;;  %v3536_v15 = vcombine.low %v2822_v53, %v2830_v24 }
 0x16a   : > { %v2205_v20 = vadd.f32 %v2204_v34, %v5705_v60  ;;  %v2292_v48 = vadd.f32 %v2291_v16, %v2252_v23  ;;  %3870 = vst [vmem:[%s5718_s9 + $0x110] sm:$0xff] %v3528_v32  ;;  %v2839_v0 = vrot.slane %v6249_v44, %v5053_v8  ;;  %v4328_v7 = vmul.f32 %v6255_v14, %v6255_v14 }
 0x16b   : > { %v2846_v47 = vrot.slane %v2832_v12, %v5053_v8  ;;  %v4288_v45 = vadd.f32 %v6230_v31, %v4287_v28  ;;  %v3537_v52 = vcombine.low %v2829_v33, %v2831_v43  ;;  %v3544_v22 = vrot.slane %v3536_v15, %v5053_v8 }
 0x16c   : > { %v2206_v19 = vadd.f32 %v2205_v20, %v5723_v30  ;;  %v2293_v13 = vadd.f32 %v2292_v48, %v5840_v9  ;;  %v2847_v60 = vcombine.high %v2839_v0, %v2839_v0  ;;  %v4327_v44 = vmul.f32 %v6264_v1, %v6264_v1 }
 0x16d   : > { %v2848_v56 = vcombine.high %v2846_v47, %v2846_v47  ;;  %v4289_v58 = vadd.f32 %v4288_v45, %v6264_v1  ;;  %v3551_v26 = vrot.slane %v3537_v52, %v5053_v8  ;;  %v4357_v59 = vadd.f32 %v4356_v62, %v4326_v3 }
 0x16e   : > { %v2207_v42 = vadd.f32 %v2206_v19, %v5735_v37  ;;  %v2294_v31 = vadd.f32 %v2293_v13, %v5853_v10  ;;  %v2257_v30 = vmul.f32 %v5761_v36, %v5761_v36  ;;  %v3553_v41 = vcombine.low %v2839_v0, %v2847_v60 }
 0x16f   : > { %v3554_v9 = vcombine.low %v2846_v47, %v2848_v56  ;;  %v4290_v2 = vadd.f32 %v6255_v14, %v4289_v58  ;;  %v3552_v25 = vcombine.low %v3544_v22, %v3551_v26  ;;  %v4358_v50 = vadd.f32 %v4357_v59, %v4327_v44 }
 0x170   : > { %v2208_v54 = vadd.f32 %v2207_v42, %v5747_v51  ;;  %v2295_v1 = vadd.f32 %v2294_v31, %v5866_v57  ;;  %v3561_v18 = vrot.slane %v3553_v41, %v5053_v8  ;;  %v4329_v16 = vmul.f32 %v6288_v38, %v6288_v38 }
 0x171   : > { %v3568_v37 = vrot.slane %v3554_v9, %v5053_v8  ;;  %v4291_v10 = vadd.f32 %v4290_v2, %v6288_v38  ;;  %3872 = vst [vmem:[%s5718_s9 + $0x120] sm:$0xff] %v3552_v25  ;;  %v4330_v51 = vmul.f32 %v6278_v61, %v6278_v61  ;;  %v4359_v57 = vadd.f32 %v4358_v50, %v4328_v7 }
 0x172   : > { %v2209_v4 = vadd.f32 %v2208_v54, %v5761_v36  ;;  %v2296_v14 = vadd.f32 %v2295_v1, %v5987_v11  ;;  %v2258_v53 = vmul.f32 %v5776_v49, %v5776_v49  ;;  %v4331_v38 = vmul.f32 %v6312_v46, %v6312_v46 }
 0x173   : > { %v3569_v3 = vcombine.low %v3561_v18, %v3568_v37  ;;  %v4292_v8 = vadd.f32 %v6278_v61, %v4291_v10  ;;  %v4360_v63 = vadd.f32 %v4359_v57, %v4329_v16  ;;  %v2259_v36 = vmul.f32 %v5792_v27, %v5792_v27 }
 0x174   : > { %v2210_v17 = vadd.f32 %v2209_v4, %v5776_v49  ;;  %v2297_v40 = vadd.f32 %v2296_v14, %v2257_v30  ;;  %v4332_v24 = vmul.f32 %v6300_v35, %v6300_v35  ;;  %v2260_v34 = vmul.f32 %v5811_v55, %v5811_v55 }
 0x175   : > { %3873 = vst [vmem:[%s5718_s9 + $0x128] sm:$0xff] %v3569_v3  ;;  %v4293_v11 = vadd.f32 %v4292_v8, %v6312_v46  ;;  %v4361_v61 = vadd.f32 %v4360_v63, %v4330_v51  ;;  %v2261_v46 = vmul.f32 %v5836_v29, %v5836_v29  ;;  %v2262_v20 = vmul.f32 %v5856_v5, %v5856_v5 }
 0x176   : > { %v2211_v39 = vadd.f32 %v2210_v17, %v5792_v27  ;;  %v2298_v33 = vadd.f32 %v2297_v40, %v2258_v53  ;;  %v2263_v7 = vmul.f32 %v5885_v6, %v5885_v6  ;;  %v2216_v22 = vsel %vm1903_vm0, %v5905_v21, 0.0 }
 0x177   : > { %v4294_v49 = vadd.f32 %v6300_v35, %v4293_v11  ;;  %v4362_v28 = vadd.f32 %v4361_v61, %v4331_v38 }
 0x178   : > { %v2212_v23 = vadd.f32 %v2211_v39, %v5811_v55  ;;  %v2299_v32 = vadd.f32 %v2298_v33, %v2259_v36  ;;  %v2264_v55 = vmul.f32 %v5905_v21, %v5905_v21 }
 0x179   : > { %v4295_v62 = vrot.slane %v4294_v49, 4  ;;  %v4363_v43 = vadd.f32 %v4362_v28, %v4332_v24 }
 0x17a   : > { %v2213_v27 = vadd.f32 %v2212_v23, %v5836_v29  ;;  %v2300_v12 = vadd.f32 %v2299_v32, %v2260_v34  ;;  %v2304_v56 = vsel %vm1903_vm0, %v2264_v55, 0.0 }
 0x17b   : > { %v4296_v15 = vadd.f32 %v4295_v62, %v4294_v49  ;;  %v4364_v0 = vrot.slane %v4363_v43, 4 }
 0x17c   : > { %v2214_v35 = vadd.f32 %v2213_v27, %v5856_v5  ;;  %v2301_v48 = vadd.f32 %v2300_v12, %v2261_v46 }
 0x17d   : > { %v4297_v47 = vrot.slane %v4296_v15, 2  ;;  %v4365_v52 = vadd.f32 %v4364_v0, %v4363_v43 }
 0x17e   : > { %v2215_v29 = vadd.f32 %v2214_v35, %v5885_v6  ;;  %v2302_v45 = vadd.f32 %v2301_v48, %v2262_v20 }
 0x17f   : > { %v4298_v19 = vadd.f32 %v4297_v47, %v4296_v15  ;;  %v4366_v60 = vrot.slane %v4365_v52, 2 }
 0x180   : > { %v2303_v13 = vadd.f32 %v2302_v45, %v2263_v7  ;;  %v2217_v5 = vadd.f32 %v2216_v22, %v2215_v29 }
 0x181   : > { %v4299_v58 = vrot.slane %v4298_v19, 1  ;;  %v4367_v42 = vadd.f32 %v4366_v60, %v4365_v52 }
 0x182   : > { %v2218_v44 = vrot.slane %v2217_v5, 4  ;;  %v2305_v26 = vadd.f32 %v2304_v56, %v2303_v13 }
 0x183   : > { %v4300_v30 = vadd.f32 %v4299_v58, %v4298_v19  ;;  %v4368_v6 = vrot.slane %v4367_v42, 1 }
 0x184   : > { %v2219_v31 = vadd.f32 %v2218_v44, %v2217_v5  ;;  %v2306_v59 = vrot.slane %v2305_v26, 4 }
 0x185   : > { %v4369_v9 = vadd.f32 %v4368_v6, %v4367_v42 }
 0x186   : > { %v2220_v21 = vrot.slane %v2219_v31, 2  ;;  %v2307_v41 = vadd.f32 %v2306_v59, %v2305_v26 }
 0x187   : > { %v4370_v54 = vsel %vm2312_vm4, %v4300_v30, %v4369_v9 }
 0x188   : > { %v2221_v2 = vadd.f32 %v2220_v21, %v2219_v31  ;;  %v2308_v25 = vrot.slane %v2307_v41, 2  ;;  %4371 = vst [vmem:[%s284_s17] sm:$0x3] %v4370_v54 }
 0x18a   : > { %v2222_v1 = vrot.slane %v2221_v2, 1  ;;  %v2309_v50 = vadd.f32 %v2308_v25, %v2307_v41 }
 0x18c   : > { %v2310_v18 = vrot.slane %v2309_v50, 1  ;;  %v2223_v37 = vadd.f32 %v2222_v1, %v2221_v2 }
 0x18e   : > { %v2311_v10 = vadd.f32 %v2310_v18, %v2309_v50 }
 0x190   : > { %v2313_v16 = vsel %vm2312_vm4, %v2223_v37, %v2311_v10 }
 0x191   : > { %2314 = vst [vmem:[%s275_s20] sm:$0x3] %v2313_v16 }
 0x192 PF: > { %s17_s21 = sadd.s32 1, %s4977_s21  }
 0x193   : > { %p14_p4 = scmp.ge.s32.totalorder %s17_s21, 4  }
 0x195   :  { %16 = sbr.rel (!%p14_p4) target bundleno = 1 (0x1), region = 98 }

</bundles_post_ra>
